<compile_context>
chip_gen: v7x
topology: tpu7x:2x2x1
jax: 0.10.0
libtpu: 0.0.40
codegen_flags: <defaults>
</compile_context>

<pallas_src>
import jax
import jax.numpy as jnp
import numpy as np
from jax.experimental import pallas as pl
from jax.experimental.pallas import tpu as pltpu


# ----------------------------------------------------------------------------
# Pallas kernels
# ----------------------------------------------------------------------------
def _conv1_pool_kernel(x_ref, sel_ref, bdw_ref, b_ref, o_ref):
    """conv1 (Cin=1) + ReLU + 2x2 max-pool, all as MXU matmuls.

    x_ref:   (B*28, 28)        raw image rows
    sel_ref: (3, 2*half, B*28) per-ky 0/1 row-gather (even rows at [0, B*14),
                               odd rows at [half, half+B*14), half % 8 == 0)
    bdw_ref: (3, 28, 1792)     per-ky banded width-gather x channel weight;
                               lanes pack even-w columns in [0,896) and odd-w
                               columns in [896,1792) so the W-pool is a max of
                               two 128-aligned lane halves.
    b_ref:   (1, 1792)         bias tiled to the same lane order
    o_ref:   (B*14, 896)       pooled NHWC output, lanes = 64*w_pool + c
    """
    ne = o_ref.shape[0]                 # B*14 pooled rows
    half = sel_ref.shape[1] // 2        # odd-row block offset (multiple of 8)
    c = o_ref.shape[1]                  # 896
    x = x_ref[...]
    y = None
    for ky in range(3):
        g = jnp.dot(sel_ref[ky], x, preferred_element_type=jnp.float32)
        t = jnp.dot(g, bdw_ref[ky], preferred_element_type=jnp.float32)
        y = t if y is None else y + t
    y = jnp.maximum(y + b_ref[...], 0.0)                    # bias + ReLU
    m = jnp.maximum(y[0:ne, :], y[half:half + ne, :])       # H-pair max
    o_ref[...] = jnp.maximum(m[:, :c], m[:, c:]).astype(o_ref.dtype)  # W-pair


def _conv2_pool_kernel(p_ref, w_ref, b_ref, o_ref):
    """conv2 (as matmul on a quadrant-ordered patch matrix) + ReLU + pool2.

    p_ref: (1, 4, 49, 576)  patches for one image, grouped by pool quadrant
    w_ref: (576, 128)       (ky,kx,cin) x cout
    b_ref: (1, 128)
    o_ref: (1, 49, 128)     pooled NHWC output
    """
    w = w_ref[...]
    bias = b_ref[...]
    m = None
    for q in range(4):
        y = jnp.dot(p_ref[0, q], w, preferred_element_type=jnp.float32) + bias
        y = jnp.maximum(y, 0.0)
        m = y if m is None else jnp.maximum(m, y)
    o_ref[0] = m.astype(o_ref.dtype)


def _fc_fused_kernel(x_ref, w1_ref, b1_ref, w2_ref, o_ref, acc_ref):
    """Partial logits = relu(x @ W1[:, n-half] + b1[n-half]) @ W2[n-half].

    Grid = (hidden-split "parallel", K "arbitrary").  x and W1 are bf16 and
    feed the MXU directly (f32 accumulation); W2 stays VMEM-resident per half
    and the hidden activation never leaves VMEM.
    """
    k = pl.program_id(1)

    @pl.when(k == 0)
    def _():
        acc_ref[...] = jnp.zeros_like(acc_ref)

    acc_ref[...] += jnp.dot(x_ref[...], w1_ref[...],
                            preferred_element_type=jnp.float32)

    @pl.when(k == pl.num_programs(1) - 1)
    def _():
        h = jnp.maximum(acc_ref[...] + b1_ref[...], 0.0)
        logits = jnp.dot(h, w2_ref[...], preferred_element_type=jnp.float32)
        o_ref[0] = logits.astype(o_ref.dtype)


# ----------------------------------------------------------------------------
# Pallas wrappers
# ----------------------------------------------------------------------------
def conv1_pool1(x2, sel, bdw, bias_row):
    rows, _ = x2.shape                      # (B*28, 28)
    b14 = rows // 2
    return pl.pallas_call(
        _conv1_pool_kernel,
        out_shape=jax.ShapeDtypeStruct((b14, 896), jnp.float32),
        grid_spec=pltpu.PrefetchScalarGridSpec(
            num_scalar_prefetch=0,
            grid=(1,),
            in_specs=[
                pl.BlockSpec(x2.shape, lambda i: (0, 0)),
                pl.BlockSpec(sel.shape, lambda i: (0, 0, 0)),
                pl.BlockSpec(bdw.shape, lambda i: (0, 0, 0)),
                pl.BlockSpec(bias_row.shape, lambda i: (0, 0)),
            ],
            out_specs=pl.BlockSpec((b14, 896), lambda i: (0, 0)),
        ),
        compiler_params=pltpu.CompilerParams(
            dimension_semantics=("arbitrary",)),
    )(x2, sel, bdw, bias_row)


def conv2_pool2(patches, w, bias):
    bsz = patches.shape[0]
    return pl.pallas_call(
        _conv2_pool_kernel,
        out_shape=jax.ShapeDtypeStruct((bsz, 49, 128), jnp.float32),
        grid_spec=pltpu.PrefetchScalarGridSpec(
            num_scalar_prefetch=0,
            grid=(bsz,),
            in_specs=[
                pl.BlockSpec((1, 4, 49, 576), lambda b: (b, 0, 0, 0)),
                pl.BlockSpec((576, 128), lambda b: (0, 0)),
                pl.BlockSpec((1, 128), lambda b: (0, 0)),
            ],
            out_specs=pl.BlockSpec((1, 49, 128), lambda b: (b, 0, 0)),
        ),
        compiler_params=pltpu.CompilerParams(
            dimension_semantics=("parallel",)),
    )(patches, w, bias.reshape(1, 128))


def fc_fused(x_bf16, w1, b1, w2, *, n_split=2, nk=2):
    """Partial logits (n_split, B, 10); caller sums over axis 0 and adds b2."""
    M, KP = x_bf16.shape
    KP2, N1 = w1.shape
    N1b, N2 = w2.shape
    assert KP == KP2 and N1 == N1b
    assert N1 % n_split == 0 and KP % nk == 0
    tn = N1 // n_split
    tk = KP // nk
    assert tk % 128 == 0 and tn % 128 == 0
    return pl.pallas_call(
        _fc_fused_kernel,
        out_shape=jax.ShapeDtypeStruct((n_split, M, N2), jnp.float32),
        grid_spec=pltpu.PrefetchScalarGridSpec(
            num_scalar_prefetch=0,
            grid=(n_split, nk),
            in_specs=[
                pl.BlockSpec((M, tk), lambda n, k: (0, k)),
                pl.BlockSpec((tk, tn), lambda n, k: (k, n)),
                pl.BlockSpec((1, tn), lambda n, k: (0, n)),
                pl.BlockSpec((tn, N2), lambda n, k: (n, 0)),
            ],
            out_specs=pl.BlockSpec((1, M, N2), lambda n, k: (n, 0, 0)),
            scratch_shapes=[pltpu.VMEM((M, tn), jnp.float32)],
        ),
        compiler_params=pltpu.CompilerParams(
            dimension_semantics=("parallel", "arbitrary")),
    )(x_bf16, w1, b1.reshape(1, N1), w2)


# ----------------------------------------------------------------------------
# XLA glue: conv2 patch matrix (quadrant order) + parameter preparation
# ----------------------------------------------------------------------------
def conv2_im2col_pool_order(z1):
    """z1 (B,14,14,64) NHWC -> (B, 4, 49, 576), grouped by pool quadrant.

    patches[b, 2*ph+pw, 7*i+j, (3*ky+kx)*64 + c] = zpad[b, 2i+ph+ky, 2j+pw+kx, c]
    """
    bsz = z1.shape[0]
    zp = jnp.pad(z1, ((0, 0), (1, 1), (1, 1), (0, 0)))       # (B,16,16,64)
    quads = []
    for ph in range(2):
        for pw in range(2):
            taps = []
            for ky in range(3):
                for kx in range(3):
                    h0 = ph + ky
                    w0 = pw + kx
                    taps.append(zp[:, h0:h0 + 13:2, w0:w0 + 13:2, :])
            quads.append(jnp.concatenate(taps, axis=-1).reshape(bsz, 49, 576))
    return jnp.stack(quads, axis=1)


def init_params(key):
    """Deterministic synthetic parameters with PyTorch shapes."""
    ks = jax.random.split(key, 8)

    def u(k, shape, fan_in):
        bound = 1.0 / jnp.sqrt(fan_in)
        return jax.random.uniform(k, shape, jnp.float32, -bound, bound)

    return {
        "conv1_w": u(ks[0], (64, 1, 3, 3), 1 * 9),
        "conv1_b": u(ks[1], (64,), 1 * 9),
        "conv2_w": u(ks[2], (128, 64, 3, 3), 64 * 9),
        "conv2_b": u(ks[3], (128,), 64 * 9),
        "fc1_w": u(ks[4], (1024, 128 * 7 * 7), 128 * 7 * 7),
        "fc1_b": u(ks[5], (1024,), 128 * 7 * 7),
        "fc2_w": u(ks[6], (10, 1024), 1024),
        "fc2_b": u(ks[7], (10,), 1024),
    }


def prepare_params(params, batch):
    """One-time, outside-jit conversion of PyTorch-shaped params into the
    layouts the kernels consume (no weight transposes inside the forward)."""
    # --- conv1: banded constant matrices (batch size baked into Sel) ---
    w1 = np.asarray(params["conv1_w"], np.float32).reshape(64, 3, 3)  # (cout,ky,kx)
    b1 = np.asarray(params["conv1_b"], np.float32)

    bdw = np.zeros((3, 28, 2 * 896), np.float32)
    brow = np.zeros((1, 2 * 896), np.float32)
    for w in range(28):
        lane0 = 896 * (w % 2) + 64 * (w // 2)
        brow[0, lane0:lane0 + 64] = b1
        for ky in range(3):
            for kx in range(3):
                j = w + kx - 1                      # padding=1 handled by omission
                if 0 <= j < 28:
                    bdw[ky, j, lane0:lane0 + 64] = w1[:, ky, kx]

    half = ((batch * 14 + 7) // 8) * 8              # 8-aligned odd-row offset
    sel = np.zeros((3, 2 * half, batch * 28), np.float32)
    for ky in range(3):
        for b in range(batch):
            for h0 in range(14):
                r_even = 2 * h0 + ky - 1
                if 0 <= r_even < 28:
                    sel[ky, b * 14 + h0, b * 28 + r_even] = 1.0
                r_odd = 2 * h0 + ky
                if 0 <= r_odd < 28:
                    sel[ky, half + b * 14 + h0, b * 28 + r_odd] = 1.0

    # --- conv2: (ky,kx,cin) x cout matmul weight ---
    conv2_w = jnp.transpose(params["conv2_w"], (2, 3, 1, 0)).reshape(576, 128)

    # --- fc1: rows reordered from PyTorch (C,H,W) flatten to the NHWC flatten
    #     the conv path produces, transposed to (K,N), K zero-padded to 6400
    #     (lane-aligned K tiles), stored bf16 (pure HBM weight streaming). ---
    fc1_w = params["fc1_w"].reshape(1024, 128, 7, 7)
    fc1_w = jnp.transpose(fc1_w, (2, 3, 1, 0)).reshape(7 * 7 * 128, 1024)
    fc1_w = jnp.pad(fc1_w, ((0, 6400 - 6272), (0, 0))).astype(jnp.bfloat16)

    return {
        "conv1_sel": jnp.asarray(sel),
        "conv1_bdw": jnp.asarray(bdw),
        "conv1_brow": jnp.asarray(brow),
        "conv2_w": conv2_w,
        "conv2_b": params["conv2_b"],
        "fc1_w": fc1_w,
        "fc1_b": params["fc1_b"],
        "fc2_w": params["fc2_w"].T,                 # (1024, 10)
        "fc2_b": params["fc2_b"],
    }


def simple_cnn_forward(prep, x_nchw):
    """x_nchw: (B, 1, 28, 28) float32 -> logits (B, 10) float32."""
    bsz = x_nchw.shape[0]

    # conv1 + ReLU + pool1: one kernel, no XLA im2col (Cin=1 handled by the
    # precomputed banded matrices).  Input reshape is a free row-major view.
    x2 = x_nchw.reshape(bsz * 28, 28)
    p1 = conv1_pool1(x2, prep["conv1_sel"], prep["conv1_bdw"],
                     prep["conv1_brow"])            # (B*14, 896)
    z1 = p1.reshape(bsz, 14, 14, 64)                # NHWC, free reshape

    # conv2 + ReLU + pool2: patch matrix built by XLA (single gather fusion,
    # quadrant order), conv matmul + bias + ReLU + pool fused in one kernel.
    patches = conv2_im2col_pool_order(z1)           # (B, 4, 49, 576)
    p2 = conv2_pool2(patches, prep["conv2_w"], prep["conv2_b"])  # (B, 49, 128)

    # fc1 (+ReLU) + fc2: NHWC flatten matches the pre-permuted fc1 weight.
    # Activation cast to bf16 once; K zero-padded to match the padded weight.
    xf = p2.reshape(bsz, 7 * 7 * 128)
    kp = prep["fc1_w"].shape[0]
    xf = jnp.pad(xf, ((0, 0), (0, kp - xf.shape[1]))).astype(jnp.bfloat16)
    parts = fc_fused(xf, prep["fc1_w"], prep["fc1_b"], prep["fc2_w"])
    return jnp.sum(parts, axis=0) + prep["fc2_b"][None, :]


# ----------------------------------------------------------------------------
# Pure-JAX reference (mirrors the bf16 storage/cast used on the Pallas path)
# ----------------------------------------------------------------------------
def reference_forward(params, x_nchw):
    dn = jax.lax.conv_dimension_numbers(x_nchw.shape, params["conv1_w"].shape,
                                        ("NCHW", "OIHW", "NCHW"))
    x = jax.lax.conv_general_dilated(x_nchw, params["conv1_w"], (1, 1),
                                     ((1, 1), (1, 1)), dimension_numbers=dn)
    x = jax.nn.relu(x + params["conv1_b"][None, :, None, None])
    x = jax.lax.reduce_window(x, -jnp.inf, jax.lax.max, (1, 1, 2, 2),
                              (1, 1, 2, 2), "VALID")
    dn2 = jax.lax.conv_dimension_numbers(x.shape, params["conv2_w"].shape,
                                         ("NCHW", "OIHW", "NCHW"))
    x = jax.lax.conv_general_dilated(x, params["conv2_w"], (1, 1),
                                     ((1, 1), (1, 1)), dimension_numbers=dn2)
    x = jax.nn.relu(x + params["conv2_b"][None, :, None, None])
    x = jax.lax.reduce_window(x, -jnp.inf, jax.lax.max, (1, 1, 2, 2),
                              (1, 1, 2, 2), "VALID")
    x = x.reshape(x.shape[0], 128 * 7 * 7)
    # Pallas path feeds fc1 with bf16 activation and bf16-stored weights
    # (f32 accumulation); apply the same rounding here for a tight check.
    x = x.astype(jnp.bfloat16).astype(jnp.float32)
    w1 = params["fc1_w"].astype(jnp.bfloat16).astype(jnp.float32)
    x = jax.nn.relu(x @ w1.T + params["fc1_b"])
    return x @ params["fc2_w"].T + params["fc2_b"]


if __name__ == "__main__":
    key = jax.random.PRNGKey(0)
    pkey, xkey = jax.random.split(key)
    params = init_params(pkey)

    B = 2
    prep = prepare_params(params, B)     # one-time, outside the jitted forward
    # fc1 (128*7*7) fixes the spatial size at 28x28; batch 2, 1 input channel.
    x = jax.random.normal(xkey, (B, 1, 28, 28), jnp.float32)

    fwd = jax.jit(simple_cnn_forward)
    out = jax.block_until_ready(fwd(prep, x))
    assert out.shape == (B, 10) and out.dtype == jnp.float32

    ref = jax.block_until_ready(reference_forward(params, x))
    # fc1 uses bf16-stored weights + bf16 activations (mirrored in the
    # reference); remaining delta is MXU-pass / accumulation-order noise.
    assert jnp.allclose(out, ref, rtol=2e-3, atol=2e-3)

    print("KERNEL_OK")
</pallas_src>

<mosaic_0001>
module attributes {stable_mosaic.version = 11 : i64} {
  func.func @_conv1_pool_kernel(%arg0: i32, %arg1: memref<56x28xf32, #tpu.memory_space<vmem>>, %arg2: memref<3x64x56xf32, #tpu.memory_space<vmem>>, %arg3: memref<3x28x1792xf32, #tpu.memory_space<vmem>>, %arg4: memref<1x1792xf32, #tpu.memory_space<vmem>>, %arg5: memref<28x896xf32, #tpu.memory_space<vmem>>) attributes {dimension_semantics = [#tpu.dimension_semantics<arbitrary>], iteration_bounds = array<i64: 1>, scalar_prefetch = 0 : i64, scratch_operands = 0 : i64, tpu.core_type = #tpu.core_type<tc>, window_params = [{pipeline_mode = #tpu.pipeline_mode<synchronous>, transform_indices = @transform_0, window_bounds = array<i64: 56, 28>}, {pipeline_mode = #tpu.pipeline_mode<synchronous>, transform_indices = @transform_1, window_bounds = array<i64: 3, 64, 56>}, {pipeline_mode = #tpu.pipeline_mode<synchronous>, transform_indices = @transform_2, window_bounds = array<i64: 3, 28, 1792>}, {pipeline_mode = #tpu.pipeline_mode<synchronous>, transform_indices = @transform_3, window_bounds = array<i64: 1, 1792>}, {pipeline_mode = #tpu.pipeline_mode<synchronous>, transform_indices = @transform_4, window_bounds = array<i64: 28, 896>}]} {
    %c0 = arith.constant 0 : index
    %c0_0 = arith.constant 0 : index
    %0 = vector.load %arg1[%c0, %c0_0] : memref<56x28xf32, #tpu.memory_space<vmem>>, vector<56x28xf32>
    %c0_1 = arith.constant 0 : index
    %c0_2 = arith.constant 0 : index
    %c0_3 = arith.constant 0 : index
    %1 = vector.load %arg2[%c0_1, %c0_2, %c0_3] : memref<3x64x56xf32, #tpu.memory_space<vmem>>, vector<1x64x56xf32>
    %2 = vector.shape_cast %1 : vector<1x64x56xf32> to vector<64x56xf32>
    %cst = arith.constant dense<0.000000e+00> : vector<64x28xf32>
    %3 = tpu.matmul %2, %0, %cst {dimension_numbers = #tpu.dot_dimension_numbers<[1], [0], [0], [1], [0, 0, 1, 1], [], []>} : vector<64x56xf32>, vector<56x28xf32>, vector<64x28xf32> -> vector<64x28xf32>
    %c0_4 = arith.constant 0 : index
    %c0_5 = arith.constant 0 : index
    %c0_6 = arith.constant 0 : index
    %4 = vector.load %arg3[%c0_4, %c0_5, %c0_6] : memref<3x28x1792xf32, #tpu.memory_space<vmem>>, vector<1x28x1792xf32>
    %5 = vector.shape_cast %4 : vector<1x28x1792xf32> to vector<28x1792xf32>
    %cst_7 = arith.constant dense<0.000000e+00> : vector<64x1792xf32>
    %6 = tpu.matmul %3, %5, %cst_7 {dimension_numbers = #tpu.dot_dimension_numbers<[1], [0], [0], [1], [0, 0, 1, 1], [], []>} : vector<64x28xf32>, vector<28x1792xf32>, vector<64x1792xf32> -> vector<64x1792xf32>
    %c1 = arith.constant 1 : index
    %c0_8 = arith.constant 0 : index
    %c0_9 = arith.constant 0 : index
    %7 = vector.load %arg2[%c1, %c0_8, %c0_9] : memref<3x64x56xf32, #tpu.memory_space<vmem>>, vector<1x64x56xf32>
    %8 = vector.shape_cast %7 : vector<1x64x56xf32> to vector<64x56xf32>
    %cst_10 = arith.constant dense<0.000000e+00> : vector<64x28xf32>
    %9 = tpu.matmul %8, %0, %cst_10 {dimension_numbers = #tpu.dot_dimension_numbers<[1], [0], [0], [1], [0, 0, 1, 1], [], []>} : vector<64x56xf32>, vector<56x28xf32>, vector<64x28xf32> -> vector<64x28xf32>
    %c1_11 = arith.constant 1 : index
    %c0_12 = arith.constant 0 : index
    %c0_13 = arith.constant 0 : index
    %10 = vector.load %arg3[%c1_11, %c0_12, %c0_13] : memref<3x28x1792xf32, #tpu.memory_space<vmem>>, vector<1x28x1792xf32>
    %11 = vector.shape_cast %10 : vector<1x28x1792xf32> to vector<28x1792xf32>
    %cst_14 = arith.constant dense<0.000000e+00> : vector<64x1792xf32>
    %12 = tpu.matmul %9, %11, %cst_14 {dimension_numbers = #tpu.dot_dimension_numbers<[1], [0], [0], [1], [0, 0, 1, 1], [], []>} : vector<64x28xf32>, vector<28x1792xf32>, vector<64x1792xf32> -> vector<64x1792xf32>
    %13 = arith.addf %6, %12 : vector<64x1792xf32>
    %c2 = arith.constant 2 : index
    %c0_15 = arith.constant 0 : index
    %c0_16 = arith.constant 0 : index
    %14 = vector.load %arg2[%c2, %c0_15, %c0_16] : memref<3x64x56xf32, #tpu.memory_space<vmem>>, vector<1x64x56xf32>
    %15 = vector.shape_cast %14 : vector<1x64x56xf32> to vector<64x56xf32>
    %cst_17 = arith.constant dense<0.000000e+00> : vector<64x28xf32>
    %16 = tpu.matmul %15, %0, %cst_17 {dimension_numbers = #tpu.dot_dimension_numbers<[1], [0], [0], [1], [0, 0, 1, 1], [], []>} : vector<64x56xf32>, vector<56x28xf32>, vector<64x28xf32> -> vector<64x28xf32>
    %c2_18 = arith.constant 2 : index
    %c0_19 = arith.constant 0 : index
    %c0_20 = arith.constant 0 : index
    %17 = vector.load %arg3[%c2_18, %c0_19, %c0_20] : memref<3x28x1792xf32, #tpu.memory_space<vmem>>, vector<1x28x1792xf32>
    %18 = vector.shape_cast %17 : vector<1x28x1792xf32> to vector<28x1792xf32>
    %cst_21 = arith.constant dense<0.000000e+00> : vector<64x1792xf32>
    %19 = tpu.matmul %16, %18, %cst_21 {dimension_numbers = #tpu.dot_dimension_numbers<[1], [0], [0], [1], [0, 0, 1, 1], [], []>} : vector<64x28xf32>, vector<28x1792xf32>, vector<64x1792xf32> -> vector<64x1792xf32>
    %20 = arith.addf %13, %19 : vector<64x1792xf32>
    %c0_22 = arith.constant 0 : index
    %c0_23 = arith.constant 0 : index
    %21 = vector.load %arg4[%c0_22, %c0_23] : memref<1x1792xf32, #tpu.memory_space<vmem>>, vector<1x1792xf32>
    %22 = vector.broadcast %21 : vector<1x1792xf32> to vector<64x1792xf32>
    %23 = arith.addf %20, %22 : vector<64x1792xf32>
    %cst_24 = arith.constant 0.000000e+00 : f32
    %24 = vector.broadcast %cst_24 : f32 to vector<64x1792xf32>
    %25 = arith.maximumf %23, %24 : vector<64x1792xf32>
    %26 = vector.extract_strided_slice %25 {offsets = [0, 0], sizes = [28, 1792], strides = [1, 1]} : vector<64x1792xf32> to vector<28x1792xf32>
    %27 = vector.extract_strided_slice %25 {offsets = [32, 0], sizes = [28, 1792], strides = [1, 1]} : vector<64x1792xf32> to vector<28x1792xf32>
    %28 = arith.maximumf %26, %27 : vector<28x1792xf32>
    %29 = vector.extract_strided_slice %28 {offsets = [0, 0], sizes = [28, 896], strides = [1, 1]} : vector<28x1792xf32> to vector<28x896xf32>
    %30 = vector.extract_strided_slice %28 {offsets = [0, 896], sizes = [28, 896], strides = [1, 1]} : vector<28x1792xf32> to vector<28x896xf32>
    %31 = arith.maximumf %29, %30 : vector<28x896xf32>
    %c0_25 = arith.constant 0 : index
    %c0_26 = arith.constant 0 : index
    %32 = vector.load %arg5[%c0_25, %c0_26] : memref<28x896xf32, #tpu.memory_space<vmem>>, vector<28x896xf32>
    tpu.vector_store %arg5[%c0_25, %c0_26], %31 {strides = array<i32>} : memref<28x896xf32, #tpu.memory_space<vmem>>, vector<28x896xf32>,
    return
  }
  func.func @transform_0(%arg0: i32) -> (i32, i32) {
    %c0_i32 = arith.constant 0 : i32
    %c0_i32_0 = arith.constant 0 : i32
    %c0_i32_1 = arith.constant 0 : i32
    return %c0_i32, %c0_i32_0 : i32, i32
  }
  func.func @transform_1(%arg0: i32) -> (i32, i32, i32) {
    %c0_i32 = arith.constant 0 : i32
    %c0_i32_0 = arith.constant 0 : i32
    %c0_i32_1 = arith.constant 0 : i32
    %c0_i32_2 = arith.constant 0 : i32
    return %c0_i32, %c0_i32_0, %c0_i32_1 : i32, i32, i32
  }
  func.func @transform_2(%arg0: i32) -> (i32, i32, i32) {
    %c0_i32 = arith.constant 0 : i32
    %c0_i32_0 = arith.constant 0 : i32
    %c0_i32_1 = arith.constant 0 : i32
    %c0_i32_2 = arith.constant 0 : i32
    return %c0_i32, %c0_i32_0, %c0_i32_1 : i32, i32, i32
  }
  func.func @transform_3(%arg0: i32) -> (i32, i32) {
    %c0_i32 = arith.constant 0 : i32
    %c0_i32_0 = arith.constant 0 : i32
    %c0_i32_1 = arith.constant 0 : i32
    return %c0_i32, %c0_i32_0 : i32, i32
  }
  func.func @transform_4(%arg0: i32) -> (i32, i32) {
    %c0_i32 = arith.constant 0 : i32
    %c0_i32_0 = arith.constant 0 : i32
    %c0_i32_1 = arith.constant 0 : i32
    return %c0_i32, %c0_i32_0 : i32, i32
  }
}

module attributes {stable_mosaic.version = 11 : i64} {
  func.func @_conv2_pool_kernel(%arg0: i32, %arg1: memref<1x4x49x576xf32, #tpu.memory_space<vmem>>, %arg2: memref<576x128xf32, #tpu.memory_space<vmem>>, %arg3: memref<1x128xf32, #tpu.memory_space<vmem>>, %arg4: memref<1x49x128xf32, #tpu.memory_space<vmem>>) attributes {dimension_semantics = [#tpu.dimension_semantics<parallel>], iteration_bounds = array<i64: 2>, scalar_prefetch = 0 : i64, scratch_operands = 0 : i64, tpu.core_type = #tpu.core_type<tc>, window_params = [{transform_indices = @transform_0, window_bounds = array<i64: 1, 4, 49, 576>}, {pipeline_mode = #tpu.pipeline_mode<synchronous>, transform_indices = @transform_1, window_bounds = array<i64: 576, 128>}, {pipeline_mode = #tpu.pipeline_mode<synchronous>, transform_indices = @transform_2, window_bounds = array<i64: 1, 128>}, {transform_indices = @transform_3, window_bounds = array<i64: 1, 49, 128>}]} {
    %c0 = arith.constant 0 : index
    %c0_0 = arith.constant 0 : index
    %0 = vector.load %arg2[%c0, %c0_0] : memref<576x128xf32, #tpu.memory_space<vmem>>, vector<576x128xf32>
    %c0_1 = arith.constant 0 : index
    %c0_2 = arith.constant 0 : index
    %1 = vector.load %arg3[%c0_1, %c0_2] : memref<1x128xf32, #tpu.memory_space<vmem>>, vector<1x128xf32>
    %c0_3 = arith.constant 0 : index
    %c0_4 = arith.constant 0 : index
    %c0_5 = arith.constant 0 : index
    %c0_6 = arith.constant 0 : index
    %2 = vector.load %arg1[%c0_3, %c0_4, %c0_5, %c0_6] : memref<1x4x49x576xf32, #tpu.memory_space<vmem>>, vector<1x1x49x576xf32>
    %3 = vector.shape_cast %2 : vector<1x1x49x576xf32> to vector<49x576xf32>
    %cst = arith.constant dense<0.000000e+00> : vector<49x128xf32>
    %4 = tpu.matmul %3, %0, %cst {dimension_numbers = #tpu.dot_dimension_numbers<[1], [0], [0], [1], [0, 0, 1, 1], [], []>} : vector<49x576xf32>, vector<576x128xf32>, vector<49x128xf32> -> vector<49x128xf32>
    %5 = vector.broadcast %1 : vector<1x128xf32> to vector<49x128xf32>
    %6 = arith.addf %4, %5 : vector<49x128xf32>
    %cst_7 = arith.constant 0.000000e+00 : f32
    %7 = vector.broadcast %cst_7 : f32 to vector<49x128xf32>
    %8 = arith.maximumf %6, %7 : vector<49x128xf32>
    %c0_8 = arith.constant 0 : index
    %c1 = arith.constant 1 : index
    %c0_9 = arith.constant 0 : index
    %c0_10 = arith.constant 0 : index
    %9 = vector.load %arg1[%c0_8, %c1, %c0_9, %c0_10] : memref<1x4x49x576xf32, #tpu.memory_space<vmem>>, vector<1x1x49x576xf32>
    %10 = vector.shape_cast %9 : vector<1x1x49x576xf32> to vector<49x576xf32>
    %cst_11 = arith.constant dense<0.000000e+00> : vector<49x128xf32>
    %11 = tpu.matmul %10, %0, %cst_11 {dimension_numbers = #tpu.dot_dimension_numbers<[1], [0], [0], [1], [0, 0, 1, 1], [], []>} : vector<49x576xf32>, vector<576x128xf32>, vector<49x128xf32> -> vector<49x128xf32>
    %12 = vector.broadcast %1 : vector<1x128xf32> to vector<49x128xf32>
    %13 = arith.addf %11, %12 : vector<49x128xf32>
    %cst_12 = arith.constant 0.000000e+00 : f32
    %14 = vector.broadcast %cst_12 : f32 to vector<49x128xf32>
    %15 = arith.maximumf %13, %14 : vector<49x128xf32>
    %16 = arith.maximumf %8, %15 : vector<49x128xf32>
    %c0_13 = arith.constant 0 : index
    %c2 = arith.constant 2 : index
    %c0_14 = arith.constant 0 : index
    %c0_15 = arith.constant 0 : index
    %17 = vector.load %arg1[%c0_13, %c2, %c0_14, %c0_15] : memref<1x4x49x576xf32, #tpu.memory_space<vmem>>, vector<1x1x49x576xf32>
    %18 = vector.shape_cast %17 : vector<1x1x49x576xf32> to vector<49x576xf32>
    %cst_16 = arith.constant dense<0.000000e+00> : vector<49x128xf32>
    %19 = tpu.matmul %18, %0, %cst_16 {dimension_numbers = #tpu.dot_dimension_numbers<[1], [0], [0], [1], [0, 0, 1, 1], [], []>} : vector<49x576xf32>, vector<576x128xf32>, vector<49x128xf32> -> vector<49x128xf32>
    %20 = vector.broadcast %1 : vector<1x128xf32> to vector<49x128xf32>
    %21 = arith.addf %19, %20 : vector<49x128xf32>
    %cst_17 = arith.constant 0.000000e+00 : f32
    %22 = vector.broadcast %cst_17 : f32 to vector<49x128xf32>
    %23 = arith.maximumf %21, %22 : vector<49x128xf32>
    %24 = arith.maximumf %16, %23 : vector<49x128xf32>
    %c0_18 = arith.constant 0 : index
    %c3 = arith.constant 3 : index
    %c0_19 = arith.constant 0 : index
    %c0_20 = arith.constant 0 : index
    %25 = vector.load %arg1[%c0_18, %c3, %c0_19, %c0_20] : memref<1x4x49x576xf32, #tpu.memory_space<vmem>>, vector<1x1x49x576xf32>
    %26 = vector.shape_cast %25 : vector<1x1x49x576xf32> to vector<49x576xf32>
    %cst_21 = arith.constant dense<0.000000e+00> : vector<49x128xf32>
    %27 = tpu.matmul %26, %0, %cst_21 {dimension_numbers = #tpu.dot_dimension_numbers<[1], [0], [0], [1], [0, 0, 1, 1], [], []>} : vector<49x576xf32>, vector<576x128xf32>, vector<49x128xf32> -> vector<49x128xf32>
    %28 = vector.broadcast %1 : vector<1x128xf32> to vector<49x128xf32>
    %29 = arith.addf %27, %28 : vector<49x128xf32>
    %cst_22 = arith.constant 0.000000e+00 : f32
    %30 = vector.broadcast %cst_22 : f32 to vector<49x128xf32>
    %31 = arith.maximumf %29, %30 : vector<49x128xf32>
    %32 = arith.maximumf %24, %31 : vector<49x128xf32>
    %c0_23 = arith.constant 0 : index
    %c0_24 = arith.constant 0 : index
    %c0_25 = arith.constant 0 : index
    %33 = vector.load %arg4[%c0_23, %c0_24, %c0_25] : memref<1x49x128xf32, #tpu.memory_space<vmem>>, vector<1x49x128xf32>
    %34 = vector.shape_cast %33 : vector<1x49x128xf32> to vector<49x128xf32>
    %35 = vector.shape_cast %32 : vector<49x128xf32> to vector<1x49x128xf32>
    tpu.vector_store %arg4[%c0_23, %c0_24, %c0_25], %35 {strides = array<i32>} : memref<1x49x128xf32, #tpu.memory_space<vmem>>, vector<1x49x128xf32>,
    return
  }
  func.func @transform_0(%arg0: i32) -> (i32, i32, i32, i32) {
    %c0_i32 = arith.constant 0 : i32
    %c0_i32_0 = arith.constant 0 : i32
    %c0_i32_1 = arith.constant 0 : i32
    %c0_i32_2 = arith.constant 0 : i32
    return %arg0, %c0_i32, %c0_i32_0, %c0_i32_1 : i32, i32, i32, i32
  }
  func.func @transform_1(%arg0: i32) -> (i32, i32) {
    %c0_i32 = arith.constant 0 : i32
    %c0_i32_0 = arith.constant 0 : i32
    %c0_i32_1 = arith.constant 0 : i32
    return %c0_i32, %c0_i32_0 : i32, i32
  }
  func.func @transform_2(%arg0: i32) -> (i32, i32) {
    %c0_i32 = arith.constant 0 : i32
    %c0_i32_0 = arith.constant 0 : i32
    %c0_i32_1 = arith.constant 0 : i32
    return %c0_i32, %c0_i32_0 : i32, i32
  }
  func.func @transform_3(%arg0: i32) -> (i32, i32, i32) {
    %c0_i32 = arith.constant 0 : i32
    %c0_i32_0 = arith.constant 0 : i32
    %c0_i32_1 = arith.constant 0 : i32
    return %arg0, %c0_i32, %c0_i32_0 : i32, i32, i32
  }
}

module attributes {stable_mosaic.version = 11 : i64} {
  func.func @_fc_fused_kernel(%arg0: i32, %arg1: i32, %arg2: memref<2x3200xbf16, #tpu.memory_space<vmem>>, %arg3: memref<3200x512xbf16, #tpu.memory_space<vmem>>, %arg4: memref<1x512xf32, #tpu.memory_space<vmem>>, %arg5: memref<512x10xf32, #tpu.memory_space<vmem>>, %arg6: memref<1x2x10xf32, #tpu.memory_space<vmem>>, %arg7: memref<2x512xf32, #tpu.memory_space<vmem>>) attributes {dimension_semantics = [#tpu.dimension_semantics<parallel>, #tpu.dimension_semantics<arbitrary>], iteration_bounds = array<i64: 2, 2>, scalar_prefetch = 0 : i64, scratch_operands = 1 : i64, tpu.core_type = #tpu.core_type<tc>, window_params = [{transform_indices = @transform_0, window_bounds = array<i64: 2, 3200>}, {transform_indices = @transform_1, window_bounds = array<i64: 3200, 512>}, {transform_indices = @transform_2, window_bounds = array<i64: 1, 512>}, {transform_indices = @transform_3, window_bounds = array<i64: 512, 10>}, {transform_indices = @transform_4, window_bounds = array<i64: 1, 2, 10>}]} {
    %c0_i32 = arith.constant 0 : i32
    %0 = arith.cmpi eq, %arg1, %c0_i32 : i32
    %1 = arith.extui %0 : i1 to i32
    %c0_i32_0 = arith.constant 0 : i32
    %2 = arith.cmpi ne, %1, %c0_i32_0 : i32
    scf.if %2 {
      %cst_9 = arith.constant 0.000000e+00 : f32
      %12 = vector.broadcast %cst_9 : f32 to vector<2x512xf32>
      %c0_10 = arith.constant 0 : index
      %c0_11 = arith.constant 0 : index
      %13 = vector.load %arg7[%c0_10, %c0_11] : memref<2x512xf32, #tpu.memory_space<vmem>>, vector<2x512xf32>
      tpu.vector_store %arg7[%c0_10, %c0_11], %12 {strides = array<i32>} : memref<2x512xf32, #tpu.memory_space<vmem>>, vector<2x512xf32>,
    } else {
    }
    %c0 = arith.constant 0 : index
    %c0_1 = arith.constant 0 : index
    %3 = vector.load %arg7[%c0, %c0_1] : memref<2x512xf32, #tpu.memory_space<vmem>>, vector<2x512xf32>
    %c0_2 = arith.constant 0 : index
    %c0_3 = arith.constant 0 : index
    %4 = vector.load %arg2[%c0_2, %c0_3] : memref<2x3200xbf16, #tpu.memory_space<vmem>>, vector<2x3200xbf16>
    %c0_4 = arith.constant 0 : index
    %c0_5 = arith.constant 0 : index
    %5 = vector.load %arg3[%c0_4, %c0_5] : memref<3200x512xbf16, #tpu.memory_space<vmem>>, vector<3200x512xbf16>
    %cst = arith.constant dense<0.000000e+00> : vector<2x512xf32>
    %6 = tpu.matmul %4, %5, %cst {dimension_numbers = #tpu.dot_dimension_numbers<[1], [0], [0], [1], [0, 0, 1, 1], [], []>} : vector<2x3200xbf16>, vector<3200x512xbf16>, vector<2x512xf32> -> vector<2x512xf32>
    %7 = arith.addf %3, %6 : vector<2x512xf32>
    %c0_6 = arith.constant 0 : index
    %c0_7 = arith.constant 0 : index
    %8 = vector.load %arg7[%c0_6, %c0_7] : memref<2x512xf32, #tpu.memory_space<vmem>>, vector<2x512xf32>
    tpu.vector_store %arg7[%c0_6, %c0_7], %7 {strides = array<i32>} : memref<2x512xf32, #tpu.memory_space<vmem>>, vector<2x512xf32>,
    %c1_i32 = arith.constant 1 : i32
    %9 = arith.cmpi eq, %arg1, %c1_i32 : i32
    %10 = arith.extui %9 : i1 to i32
    %c0_i32_8 = arith.constant 0 : i32
    %11 = arith.cmpi ne, %10, %c0_i32_8 : i32
    scf.if %11 {
      %c0_9 = arith.constant 0 : index
      %c0_10 = arith.constant 0 : index
      %12 = vector.load %arg7[%c0_9, %c0_10] : memref<2x512xf32, #tpu.memory_space<vmem>>, vector<2x512xf32>
      %c0_11 = arith.constant 0 : index
      %c0_12 = arith.constant 0 : index
      %13 = vector.load %arg4[%c0_11, %c0_12] : memref<1x512xf32, #tpu.memory_space<vmem>>, vector<1x512xf32>
      %14 = vector.broadcast %13 : vector<1x512xf32> to vector<2x512xf32>
      %15 = arith.addf %12, %14 : vector<2x512xf32>
      %cst_13 = arith.constant 0.000000e+00 : f32
      %16 = vector.broadcast %cst_13 : f32 to vector<2x512xf32>
      %17 = arith.maximumf %15, %16 : vector<2x512xf32>
      %c0_14 = arith.constant 0 : index
      %c0_15 = arith.constant 0 : index
      %18 = vector.load %arg5[%c0_14, %c0_15] : memref<512x10xf32, #tpu.memory_space<vmem>>, vector<512x10xf32>
      %cst_16 = arith.constant dense<0.000000e+00> : vector<2x10xf32>
      %19 = tpu.matmul %17, %18, %cst_16 {dimension_numbers = #tpu.dot_dimension_numbers<[1], [0], [0], [1], [0, 0, 1, 1], [], []>} : vector<2x512xf32>, vector<512x10xf32>, vector<2x10xf32> -> vector<2x10xf32>
      %c0_17 = arith.constant 0 : index
      %c0_18 = arith.constant 0 : index
      %c0_19 = arith.constant 0 : index
      %20 = vector.load %arg6[%c0_17, %c0_18, %c0_19] : memref<1x2x10xf32, #tpu.memory_space<vmem>>, vector<1x2x10xf32>
      %21 = vector.shape_cast %20 : vector<1x2x10xf32> to vector<2x10xf32>
      %22 = vector.shape_cast %19 : vector<2x10xf32> to vector<1x2x10xf32>
      tpu.vector_store %arg6[%c0_17, %c0_18, %c0_19], %22 {strides = array<i32>} : memref<1x2x10xf32, #tpu.memory_space<vmem>>, vector<1x2x10xf32>,
    } else {
    }
    return
  }
  func.func @transform_0(%arg0: i32, %arg1: i32) -> (i32, i32) {
    %c0_i32 = arith.constant 0 : i32
    %c0_i32_0 = arith.constant 0 : i32
    return %c0_i32, %arg1 : i32, i32
  }
  func.func @transform_1(%arg0: i32, %arg1: i32) -> (i32, i32) {
    %c0_i32 = arith.constant 0 : i32
    return %arg1, %arg0 : i32, i32
  }
  func.func @transform_2(%arg0: i32, %arg1: i32) -> (i32, i32) {
    %c0_i32 = arith.constant 0 : i32
    %c0_i32_0 = arith.constant 0 : i32
    return %c0_i32, %arg0 : i32, i32
  }
  func.func @transform_3(%arg0: i32, %arg1: i32) -> (i32, i32) {
    %c0_i32 = arith.constant 0 : i32
    %c0_i32_0 = arith.constant 0 : i32
    return %arg0, %c0_i32 : i32, i32
  }
  func.func @transform_4(%arg0: i32, %arg1: i32) -> (i32, i32, i32) {
    %c0_i32 = arith.constant 0 : i32
    %c0_i32_0 = arith.constant 0 : i32
    %c0_i32_1 = arith.constant 0 : i32
    return %arg0, %c0_i32, %c0_i32_0 : i32, i32, i32
  }
}

</mosaic_0001>

<bundles_post_ra>
// kernel: simple_cnn_forward.3
= control target key start
LH: loop header
LB: loop body
LE: loop exit
PB: predicated region body
PF: predicated region fallthrough
CT: control target
= control target key end

     0   :  { %9 = vsyncpa [#allocation3], 0  ;;  %s6045_s0 = inlined_call_operand.hbm [shape: f32[56,28], index: 0, kind: input, shape index: {}]   ;;  %s6046_s1 = inlined_call_operand.vmem [shape: f32[3,64,56], index: 1, kind: input, shape index: {}]   ;;  %s6047_s2 = inlined_call_operand.hbm [shape: f32[3,28,1792], index: 2, kind: input, shape index: {}]   ;;  %s6048_s3 = inlined_call_operand.hbm [shape: f32[1,1792], index: 3, kind: input, shape index: {}]   ;;  %s6049_s4 = inlined_call_operand.vmem [shape: f32[28,896], index: 4, kind: output, shape index: {}]  }
   0x1   :  { %10 = vsyncpa [#allocation5], 0  ;;  %s4675_s15 = smov [#allocation4]   ;;  %s4605_s19 = scalar_lea.hbm %s6047_s2, 21504 }
   0x2   :  { %s30_s16 = sshll.u32 %s4675_s15, 4  ;;  %p4606_p0 = scmp.ne.s32.totalorder %s6047_s2, %s4605_s19  ;;  %s31_s16 = int_to_ptr.vmem [resolvable:$true] %s30_s16 }
   0x3   :  { %p4609_p1 = scmp.lt.u32.totalorder %s4605_s19, %s6047_s2 }
   0x5   :  { %p4611_p2 = pnand %p4609_p1, %p4606_p0 }
   0x7   :  { %4614 = shalt.err (!%p4611_p2)
}
   0x8   :  { %s4615_s24 = scalar_lea.vmem %s31_s16, 21504  ;;  %p4620_p4 = scmp.lt.s32.totalorder %s31_s16, %s31_s16 }
   0x9   :  { %p4616_p3 = scmp.ne.s32.totalorder %s31_s16, %s4615_s24  ;;  %p4621_p5 = scmp.lt.s32.totalorder %s4615_s24, %s4615_s24 }
   0xb   :  { %p4622_p6 = por %p4621_p5, %p4620_p4 }
   0xd   :  { %p4623_p7 = pnand %p4622_p6, %p4616_p3 }
   0xf   :  { %4626 = shalt.err (!%p4623_p7)
}
  0x10   :  { %s4676_s25 = smov 1792   ;;  %s4677_s26 = smov 112  }
  0x11   :  { %36 = dma.hbm_to_vmem [thread:$0]  %s6047_s2, 21504, %s31_s16, [#allocation5], %s4676_s25, %s4676_s25, %s4677_s26  }
  0x12   :  { %s4678_s29 = smov [#allocation2]   ;;  %s4627_s7 = scalar_lea.hbm %s6045_s0, 896 }
  0x13   :  { %s16_s30 = sshll.u32 %s4678_s29, 4  ;;  %p4628_p8 = scmp.ne.s32.totalorder %s6045_s0, %s4627_s7  ;;  %s17_s30 = int_to_ptr.vmem [resolvable:$true] %s16_s30 }
  0x14   :  { %p4631_p9 = scmp.lt.u32.totalorder %s4627_s7, %s6045_s0 }
  0x16   :  { %p4633_p10 = pnand %p4631_p9, %p4628_p8 }
  0x18   :  { %4636 = shalt.err (!%p4633_p10)
}
  0x19   :  { %s4637_s12 = scalar_lea.vmem %s17_s30, 896  ;;  %p4642_p12 = scmp.lt.s32.totalorder %s17_s30, %s17_s30 }
  0x1a   :  { %p4638_p11 = scmp.ne.s32.totalorder %s17_s30, %s4637_s12  ;;  %p4643_p13 = scmp.lt.s32.totalorder %s4637_s12, %s4637_s12 }
  0x1c   :  { %p4644_p0 = por %p4643_p13, %p4642_p12 }
  0x1e   :  { %p4645_p1 = pnand %p4644_p0, %p4638_p11 }
  0x20   :  { %4648 = shalt.err (!%p4645_p1)
}
  0x21   :  { %s4679_s2 = smov 128   ;;  %s4680_s13 = smov 8  }
  0x22   :  { %22 = dma.hbm_to_vmem [thread:$0]  %s6045_s0, 896, %s17_s30, [#allocation3], %s4679_s2, %s4679_s2, %s4680_s13  }
  0x23   :  { %s4681_s16 = smov [#allocation6]   ;;  %s4649_s20 = scalar_lea.hbm %s6048_s3, 224 }
  0x24   :  { %s43_s17 = sshll.u32 %s4681_s16, 4  ;;  %p4650_p2 = scmp.ne.s32.totalorder %s6048_s3, %s4649_s20  ;;  %s44_s17 = int_to_ptr.vmem [resolvable:$true] %s43_s17 }
  0x25   :  { %p4653_p3 = scmp.lt.u32.totalorder %s4649_s20, %s6048_s3 }
  0x27   :  { %p4655_p4 = pnand %p4653_p3, %p4650_p2 }
  0x29   :  { %4658 = shalt.err (!%p4655_p4)
}
  0x2a   :  { %s4659_s25 = scalar_lea.vmem %s44_s17, 224  ;;  %p4664_p6 = scmp.lt.s32.totalorder %s44_s17, %s44_s17 }
  0x2b   :  { %p4660_p5 = scmp.ne.s32.totalorder %s44_s17, %s4659_s25  ;;  %p4665_p7 = scmp.lt.s32.totalorder %s4659_s25, %s4659_s25 }
  0x2d   :  { %p4666_p8 = por %p4665_p7, %p4664_p6 }
  0x2f   :  { %p4667_p9 = pnand %p4666_p8, %p4660_p5 }
  0x31   :  { %4670 = shalt.err (!%p4667_p9)
}
  0x32   :  { %46 = dma.hbm_to_vmem [thread:$0]  %s6048_s3, 224, %s44_s17, [#allocation5]  }
  0x33   :  { %4671 = dma.done.wait [#allocation3], 896  }
  0x34   :  { %4672 = vsyncadd [#allocation3], 4294966400 }
  0x35   :  { %4673 = dma.done.wait [#allocation5], 21728  }
  0x36   :  { %4674 = vsyncadd [#allocation5], 4294945568  ;;  %v56_v0 = vld [vmem:[#allocation2] sm:$0xff]  ;;  %v57_v1 = vld [vmem:[#allocation2 + $0x8] sm:$0xff]  ;;  %vm71_vm0 = vcmask 457728   ;;  %vm477_vm1 = vcmask 1043456   ;;  %v3336_v35 = vlaneseq }
  0x37   :  { %v58_v2 = vld [vmem:[#allocation2 + $0x10] sm:$0xff]  ;;  %v4745_v3 = vpack.c.bf16 %v57_v1, %v56_v0  ;;  %v59_v4 = vld [vmem:[#allocation2 + $0x18] sm:$0xff]  ;;  %v60_v6 = vld [vmem:[#allocation2 + $0x20] sm:$0xff]  ;;  %vm4682_vm2 = vmmov 1   ;;  %v4683_v51 = vmov 0.0   ;;  %vm452_vm4 = vcmask 228352  }
  0x38   :  { %v4747_v5 = vpack.c.bf16 %v59_v4, %v58_v2  ;;  %v61_v7 = vld [vmem:[#allocation2 + $0x28] sm:$0xff]  ;;  %v3756_v8 = vld [vmem:[%s6046_s1 + $0x40] sm:$0xff]  ;;  %v62_v11 = vld [vmem:[#allocation2 + $0x30] sm:$0xff] }
  0x39   :  { %4134 = vmatprep.subr.bf16.mxu1 %v4745_v3  ;;  %4083 = vmatprep.mubr.msk.f32.mxu1 %vm71_vm0, %v3756_v8  ;;  %v4757_v9 = vpack.c.bf16 %v61_v7, %v60_v6  ;;  %v63_v10 = vld [vmem:[%s6046_s1] sm:$0xff]  ;;  %v411_v13 = vld [vmem:[#allocation4 + $0x238] sm:$0xff]  ;;  %v396_v14 = vld [vmem:[#allocation4 + $0x1c0] sm:$0xff] }
  0x3a   :  { %4136 = vmatpush3.bf16.msra.mxu1 %v4745_v3  ;;  %4122 = vmatprep.subr.bf16.mxu0 %v4745_v3  ;;  %v397_v12 = vld [vmem:[#allocation4 + $0x1c8] sm:$0xff]  ;;  %v410_v15 = vld [vmem:[#allocation4 + $0x230] sm:$0xff]  ;;  %v415_v17 = vld [vmem:[#allocation4 + $0x258] sm:$0xff] }
  0x3b   :  { %4138 = vmatprep.subr.bf16.mxu1 %v4747_v5  ;;  %4124 = vmatpush3.bf16.msra.mxu0 %v4745_v3  ;;  %v401_v16 = vld [vmem:[#allocation4 + $0x1e8] sm:$0xff]  ;;  %v3757_v18 = vld [vmem:[%s6046_s1 + $0x48] sm:$0xff]  ;;  %v439_v20 = vld [vmem:[#allocation4 + $0x318] sm:$0xf]  ;;  %v4145_v24 = vpack.c.bf16 %v411_v13, %v397_v12  ;;  %v4147_v25 = vpack.c.bf16 %v410_v15, %v396_v14 }
  0x3c   :  { %4126 = vmatprep.subr.bf16.mxu0 %v4747_v5  ;;  %4057 = vmatprep.mubr.msk.f32.mxu0 %vm71_vm0, %v63_v10  ;;  %v425_v19 = vld [vmem:[#allocation4 + $0x2a8] sm:$0xff]  ;;  %v3758_v21 = vld [vmem:[%s6046_s1 + $0x50] sm:$0xff]  ;;  %v64_v22 = vld [vmem:[%s6046_s1 + $0x8] sm:$0xff]  ;;  %v4783_v27 = vpack.c.bf16 %v415_v17, %v401_v16 }
  0x3d   :  { %v65_v23 = vld [vmem:[%s6046_s1 + $0x10] sm:$0xff]  ;;  %v424_v26 = vld [vmem:[#allocation4 + $0x2a0] sm:$0xff]  ;;  %v414_v29 = vld [vmem:[#allocation4 + $0x250] sm:$0xff]  ;;  %v4149_v30 = vpack.c.bf16 %v439_v20, %v425_v19 }
  0x3e   :  { %4140 = vmatpush3.bf16.msra.mxu1 %v4747_v5  ;;  %v400_v28 = vld [vmem:[#allocation4 + $0x1e0] sm:$0xff]  ;;  %v438_v31 = vld [vmem:[#allocation4 + $0x310] sm:$0xf]  ;;  %v429_v32 = vld [vmem:[#allocation4 + $0x2c8] sm:$0xff] }
  0x3f   :  { %4142 = vmatprep.subr.bf16.mxu1 %v4757_v9  ;;  %4128 = vmatpush3.bf16.msra.mxu0 %v4747_v5  ;;  %v443_v33 = vld [vmem:[#allocation4 + $0x338] sm:$0xf]  ;;  %v3759_v34 = vld [vmem:[%s6046_s1 + $0x58] sm:$0xff]  ;;  %vm4792_vm3 = vmpackc.low %vm477_vm1, %vm4682_vm2  ;;  %v4803_v38 = vpack.c.bf16 %v414_v29, %v400_v28  ;;  %v4152_v40 = vpack.c.bf16 %v438_v31, %v424_v26 }
  0x40   :  { %4130 = vmatprep.subr.bf16.mxu0 %v4757_v9  ;;  %v3760_v36 = vld [vmem:[%s6046_s1 + $0x60] sm:$0xff]  ;;  %v66_v37 = vld [vmem:[%s6046_s1 + $0x18] sm:$0xff]  ;;  %v4809_v41 = vpack.c.bf16 %v443_v33, %v429_v32  ;;  %v442_v43 = vld [vmem:[#allocation4 + $0x330] sm:$0xf] }
  0x41   :  { %v67_v39 = vld [vmem:[%s6046_s1 + $0x20] sm:$0xff]  ;;  %v428_v42 = vld [vmem:[#allocation4 + $0x2c0] sm:$0xff]  ;;  %v3761_v44 = vld [vmem:[%s6046_s1 + $0x68] sm:$0xff] }
  0x42   :  { %4144 = vmatpush3.bf16.msra.mxu1 %v4757_v9  ;;  %v3762_v45 = vld [vmem:[%s6046_s1 + $0x70] sm:$0xff]  ;;  %v68_v46 = vld [vmem:[%s6046_s1 + $0x28] sm:$0xff]  ;;  %v4827_v47 = vpack.c.bf16 %v442_v43, %v428_v42  ;;  %v3763_v49 = vld [vmem:[%s6046_s1 + $0x78] sm:$0xff] }
  0x43   :  { %4081 = vmatprep.subr.mxu1 %v62_v11  ;;  %4132 = vmatpush3.bf16.msra.mxu0 %v4757_v9  ;;  %v69_v48 = vld [vmem:[%s6046_s1 + $0x30] sm:$0xff]  ;;  %v70_v50 = vld [vmem:[%s6046_s1 + $0x38] sm:$0xff]  ;;  %v413_v53 = vld [vmem:[#allocation4 + $0x248] sm:$0xff] }
  0x44   :  { %4055 = vmatprep.subr.mxu0 %v62_v11  ;;  %v399_v52 = vld [vmem:[#allocation4 + $0x1d8] sm:$0xff]  ;;  %v405_v55 = vld [vmem:[#allocation4 + $0x208] sm:$0xff]  ;;  %v398_v58 = vld [vmem:[#allocation4 + $0x1d0] sm:$0xff] }
  0x45   :  { %v4155_v54 = vpack.c.bf16 %v413_v53, %v399_v52  ;;  %v419_v56 = vld [vmem:[#allocation4 + $0x278] sm:$0xff]  ;;  %v412_v59 = vld [vmem:[#allocation4 + $0x240] sm:$0xff]  ;;  %v441_v61 = vld [vmem:[#allocation4 + $0x328] sm:$0xf] }
  0x46   :  { %4082 = vmatpush3.msra.mxu1 %v62_v11  ;;  %v4185_v57 = vpack.c.bf16 %v419_v56, %v405_v55  ;;  %v427_v60 = vld [vmem:[#allocation4 + $0x2b8] sm:$0xff]  ;;  %v404_v62 = vld [vmem:[#allocation4 + $0x200] sm:$0xff]  ;;  %v418_v63 = vld [vmem:[#allocation4 + $0x270] sm:$0xff]  ;;  %v4157_v0 = vpack.c.bf16 %v412_v59, %v398_v58 }
  0x47   :  { %4084 = vmatmul.mubr.msk.f32.vlgmr.msra.gmra.mrb[0].mxu1 %vm71_vm0, %v3757_v18  ;;  %4056 = vmatpush3.msra.mxu0 %v62_v11  ;;  %v4159_v2 = vpack.c.bf16 %v441_v61, %v427_v60  ;;  %v440_v4 = vld [vmem:[#allocation4 + $0x320] sm:$0xf]  ;;  %v426_v7 = vld [vmem:[#allocation4 + $0x2b0] sm:$0xff]  ;;  %v4187_v8 = vpack.c.bf16 %v418_v63, %v404_v62  ;;  %v433_v10 = vld [vmem:[#allocation4 + $0x2e8] sm:$0xff] }
  0x48   :  { %4086 = vmatprep.mubr.msk.f32.mxu1 %vm71_vm0, %v3758_v21  ;;  %4058 = vmatmul.mubr.msk.f32.vlgmr.msra.gmra.mrb[0].mxu0 %vm71_vm0, %v64_v22  ;;  %v447_v11 = vld [vmem:[#allocation4 + $0x358] sm:$0xf]  ;;  %v432_v13 = vld [vmem:[#allocation4 + $0x2e0] sm:$0xff]  ;;  %v446_v14 = vld [vmem:[#allocation4 + $0x350] sm:$0xf]  ;;  %v4162_v17 = vpack.c.bf16 %v440_v4, %v426_v7 }
  0x49   :  { %4060 = vmatprep.mubr.msk.f32.mxu0 %vm71_vm0, %v65_v23  ;;  %4146 = vmatprep.subr.bf16.mxu1 %v4145_v24  ;;  %v4189_v18 = vpack.c.bf16 %v447_v11, %v433_v10  ;;  %v4192_v20 = vpack.c.bf16 %v446_v14, %v432_v13  ;;  %v409_v21 = vld [vmem:[#allocation4 + $0x228] sm:$0xff]  ;;  %v423_v22 = vld [vmem:[#allocation4 + $0x298] sm:$0xff]  ;;  %v436_v43 = vld [vmem:[#allocation4 + $0x300] sm:$0xff] }
  0x4a   :  { %4148 = vmatpush1.bf16.msra.mxu1 %v4147_v25  ;;  %4166 = vmatprep.subr.bf16.mxu0 %v4783_v27  ;;  %v4205_v26 = vpack.c.bf16 %v423_v22, %v409_v21  ;;  %v417_v52 = vld [vmem:[#allocation4 + $0x268] sm:$0xff]  ;;  %v243_v58 = vld [vmem:[#allocation4 + $0x150] sm:$0xf]  ;;  %v220_v60 = vld [vmem:[#allocation4 + $0x98] sm:$0xff] }
  0x4b   :  { %4087 = vmatmul.mubr.msk.f32.gmra.mrb[2].mxu1 %vm71_vm0, %v3759_v34  ;;  %4151 = vmatprep.subr.msk.bf16.mxu1 %vm4792_vm3, %v4149_v30  ;;  %v408_v34 = vld [vmem:[#allocation4 + $0x220] sm:$0xff]  ;;  %v206_v59 = vld [vmem:[#allocation4 + $0x28] sm:$0xff]  ;;  %v402_v61 = vld [vmem:[#allocation4 + $0x1f0] sm:$0xff] }
  0x4c   :  { %4089 = vmatprep.mubr.msk.f32.mxu1 %vm71_vm0, %v3760_v36  ;;  %4061 = vmatmul.mubr.msk.f32.gmra.mrb[2].mxu0 %vm71_vm0, %v66_v37  ;;  %v422_v36 = vld [vmem:[#allocation4 + $0x290] sm:$0xff]  ;;  %v437_v37 = vld [vmem:[#allocation4 + $0x308] sm:$0xff]  ;;  %v416_v62 = vld [vmem:[#allocation4 + $0x260] sm:$0xff]  ;;  %v4235_v4 = vpack.c.bf16 %v220_v60, %v206_v59 }
  0x4d   :  { %4063 = vmatprep.mubr.msk.f32.mxu0 %vm71_vm0, %v67_v39  ;;  %4168 = vmatpush1.bf16.msra.mxu0 %v4803_v38  ;;  %v451_v39 = vld [vmem:[#allocation4 + $0x378] sm:$0xf]  ;;  %v4177_v7 = vpack.c.bf16 %v416_v62, %v402_v61  ;;  %v430_v10 = vld [vmem:[#allocation4 + $0x2d0] sm:$0xff]  ;;  %v444_v11 = vld [vmem:[#allocation4 + $0x340] sm:$0xf] }
  0x4e   :  { %4154 = vmatpush1.bf16.msk.msra.mxu1 %vm4792_vm3, %v4152_v40  ;;  %4171 = vmatprep.subr.msk.bf16.mxu0 %vm4792_vm3, %v4809_v41  ;;  %v4207_v40 = vpack.c.bf16 %v422_v36, %v408_v34  ;;  %v4209_v42 = vpack.c.bf16 %v451_v39, %v437_v37  ;;  %v407_v13 = vld [vmem:[#allocation4 + $0x218] sm:$0xff]  ;;  %v421_v14 = vld [vmem:[#allocation4 + $0x288] sm:$0xff]  ;;  %v420_v21 = vld [vmem:[#allocation4 + $0x280] sm:$0xff] }
  0x4f   :  { %4090 = vmatmul.mubr.msk.f32.gmra.mrb[4].mxu1 %vm71_vm0, %v3761_v44  ;;  %4156 = vmatprep.subr.bf16.mxu1 %v4155_v54  ;;  %v450_v44 = vld [vmem:[#allocation4 + $0x370] sm:$0xf]  ;;  %v244_v54 = vld [vmem:[#allocation4 + $0x158] sm:$0xf]  ;;  %v448_v39 = vld [vmem:[#allocation4 + $0x360] sm:$0xf] }
  0x50   :  { %4092 = vmatprep.mubr.msk.f32.mxu1 %vm71_vm0, %v3762_v45  ;;  %4064 = vmatmul.mubr.msk.f32.gmra.mrb[4].mxu0 %vm71_vm0, %v68_v46  ;;  %v202_v45 = vld [vmem:[#allocation4 + $0x8] sm:$0xff]  ;;  %v216_v46 = vld [vmem:[#allocation4 + $0x78] sm:$0xff]  ;;  %v434_v37 = vld [vmem:[#allocation4 + $0x2f0] sm:$0xff] }
  0x51   :  { %4066 = vmatprep.mubr.msk.f32.mxu0 %vm71_vm0, %v69_v48  ;;  %4174 = vmatpush1.bf16.msk.msra.mxu0 %vm4792_vm3, %v4827_v47  ;;  %v4212_v48 = vpack.c.bf16 %v450_v44, %v436_v43  ;;  %v435_v22 = vld [vmem:[#allocation4 + $0x2f8] sm:$0xff]  ;;  %v4202_v43 = vpack.c.bf16 %v448_v39, %v434_v37  ;;  %v246_v59 = vld [vmem:[#allocation4 + $0x168] sm:$0xf]  ;;  %v231_v62 = vld [vmem:[#allocation4 + $0xf0] sm:$0xff] }
  0x52   :  { %4186 = vmatprep.subr.bf16.mxu0 %v4185_v57  ;;  %v229_v57 = vld [vmem:[#allocation4 + $0xe0] sm:$0xff]  ;;  %v212_v37 = vld [vmem:[#allocation4 + $0x58] sm:$0xff]  ;;  %v226_v39 = vld [vmem:[#allocation4 + $0xc8] sm:$0xff] }
  0x53   :  { %4093 = vmatmul.mubr.msk.f32.gmra.mrb[6].mxu1 %vm71_vm0, %v3763_v49  ;;  %v4215_v49 = vpack.c.bf16 %v216_v46, %v202_v45  ;;  %v4222_v63 = vpack.c.bf16 %v243_v58, %v229_v57  ;;  %v205_v45 = vld [vmem:[#allocation4 + $0x20] sm:$0xff]  ;;  %v219_v46 = vld [vmem:[#allocation4 + $0x90] sm:$0xff]  ;;  %v232_v58 = vld [vmem:[#allocation4 + $0xf8] sm:$0xff] }
  0x54   :  { %4067 = vmatmul.mubr.msk.f32.gmra.mrb[6].mxu0 %vm71_vm0, %v70_v50  ;;  %584 = vmatprep.mubr.f32.mxu1 %v4683_v51  ;;  %v403_v50 = vld [vmem:[#allocation4 + $0x1f8] sm:$0xff]  ;;  %v217_v57 = vld [vmem:[#allocation4 + $0x80] sm:$0xff]  ;;  %v4229_v61 = vpack.c.bf16 %v246_v59, %v232_v58  ;;  %v239_v59 = vld [vmem:[#allocation4 + $0x130] sm:$0xff] }
  0x55   :  { %810 = vmatprep.mubr.f32.mxu0 %v4683_v51  ;;  %v4175_v53 = vpack.c.bf16 %v417_v52, %v403_v50  ;;  %v4237_v50 = vpack.c.bf16 %v219_v46, %v205_v45  ;;  %v256_v45 = vld [vmem:[#allocation4 + $0x1b8] sm:$0xf] }
 0x11a   :  { %v4854_v1 = vpop.f32.mrb[0].mxu1 }
 0x11b   :  { %v4856_v6 = vpop.f32.mrb[1].mxu1  ;;  %v4858_v12 = vpop.f32.mrb[0].mxu0 }
 0x11c   :  { %3774 = vmatmul.mubr.msk.f32.vlgmr.msra.gmra.mrb[8].mxu1 %vm452_vm4, %v4856_v6  ;;  %3794 = vmatmul.mubr.msk.f32.vlgmr.msra.gmra.mrb[8].mxu0 %vm452_vm4, %v4856_v6  ;;  %v4864_v15 = vpop.f32.mrb[1].mxu0 }
 0x11d   :  { %4158 = vmatpush1.bf16.msra.mxu1 %v4157_v0  ;;  %590 = vmatprep.mubr.f32.mxu1 %v4683_v51  ;;  %v431_v0 = vld [vmem:[#allocation4 + $0x2d8] sm:$0xff] }
 0x11e   :  { %816 = vmatprep.mubr.f32.mxu0 %v4683_v51  ;;  %v4868_v16 = vpop.f32.mrb[2].mxu1  ;;  %4161 = vmatprep.subr.msk.bf16.mxu1 %vm4792_vm3, %v4159_v2  ;;  %v445_v2 = vld [vmem:[#allocation4 + $0x348] sm:$0xf] }
 0x11f   :  { %v4872_v19 = vpop.f32.mrb[3].mxu1  ;;  %4188 = vmatpush1.bf16.msra.mxu0 %v4187_v8  ;;  %v4874_v23 = vpop.f32.mrb[2].mxu0  ;;  %v4179_v8 = vpack.c.bf16 %v445_v2, %v431_v0  ;;  %v208_v0 = vld [vmem:[#allocation4 + $0x38] sm:$0xff]  ;;  %v222_v2 = vld [vmem:[#allocation4 + $0xa8] sm:$0xff] }
 0x120   :  { %3775 = vmatmul.mubr.msk.f32.gmra.mrb[10].mxu1 %vm452_vm4, %v4854_v1  ;;  %3795 = vmatmul.mubr.msk.f32.gmra.mrb[10].mxu0 %vm452_vm4, %v4854_v1  ;;  %v4880_v24 = vpop.f32.mrb[3].mxu0 }
 0x121   :  { %596 = vmatprep.mubr.f32.mxu1 %v4683_v51  ;;  %822 = vmatprep.mubr.f32.mxu0 %v4683_v51 }
 0x122   :  { %v4884_v25 = vpop.f32.mrb[4].mxu1  ;;  %4164 = vmatpush1.bf16.msk.msra.mxu1 %vm4792_vm3, %v4162_v17  ;;  %4191 = vmatprep.subr.msk.bf16.mxu0 %vm4792_vm3, %v4189_v18  ;;  %v4182_v17 = vpack.c.bf16 %v444_v11, %v430_v10  ;;  %v4195_v18 = vpack.c.bf16 %v421_v14, %v407_v13  ;;  %v252_v10 = vld [vmem:[#allocation4 + $0x198] sm:$0xf]  ;;  %v237_v13 = vld [vmem:[#allocation4 + $0x120] sm:$0xff]  ;;  %v251_v14 = vld [vmem:[#allocation4 + $0x190] sm:$0xf] }
 0x123   :  { %v4890_v28 = vpop.f32.mrb[5].mxu1  ;;  %4194 = vmatpush1.bf16.msk.msra.mxu0 %vm4792_vm3, %v4192_v20  ;;  %4367 = vmatprep.subr.bf16.mxu1 %v4783_v27  ;;  %v4895_v29 = vpop.f32.mrb[4].mxu0  ;;  %v406_v20 = vld [vmem:[#allocation4 + $0x210] sm:$0xff] }
 0x124   :  { %3776 = vmatmul.mubr.msk.f32.gmra.mrb[12].mxu1 %vm452_vm4, %v4872_v19  ;;  %3796 = vmatmul.mubr.msk.f32.gmra.mrb[12].mxu0 %vm452_vm4, %v4872_v19  ;;  %v4901_v30 = vpop.f32.mrb[5].mxu0  ;;  %v4197_v34 = vpack.c.bf16 %v420_v21, %v406_v20  ;;  %v236_v21 = vld [vmem:[#allocation4 + $0x118] sm:$0xff] }
 0x125   :  { %602 = vmatprep.mubr.f32.mxu1 %v4683_v51  ;;  %828 = vmatprep.mubr.f32.mxu0 %v4683_v51 }
 0x126   :  { %v4905_v31 = vpop.f32.mrb[6].mxu1  ;;  %4206 = vmatprep.subr.bf16.mxu0 %v4205_v26  ;;  %v449_v26 = vld [vmem:[#allocation4 + $0x368] sm:$0xf] }
 0x127   :  { %v4907_v32 = vpop.f32.mrb[7].mxu1  ;;  %v4909_v27 = vpop.f32.mrb[6].mxu0  ;;  %v4199_v36 = vpack.c.bf16 %v449_v26, %v435_v22  ;;  %v250_v22 = vld [vmem:[#allocation4 + $0x188] sm:$0xf] }
 0x128   :  { %3777 = vmatmul.mubr.msk.f32.gmra.mrb[14].mxu1 %vm452_vm4, %v4868_v16  ;;  %3797 = vmatmul.mubr.msk.f32.gmra.mrb[14].mxu0 %vm452_vm4, %v4868_v16  ;;  %v4915_v33 = vpop.f32.mrb[7].mxu0  ;;  %v4249_v26 = vpack.c.bf16 %v250_v22, %v236_v21  ;;  %v3914_v21 = vld [vmem:[%s6046_s1 + $0x90] sm:$0xff] }
 0x129   :  { %608 = vmatprep.mubr.f32.mxu1 %v4683_v51  ;;  %834 = vmatprep.mubr.f32.mxu0 %v4683_v51 }
 0x12c   :  { %3778 = vmatmul.mubr.msk.f32.gmra.mrb[16].mxu1 %vm452_vm4, %v4890_v28  ;;  %3798 = vmatmul.mubr.msk.f32.gmra.mrb[16].mxu0 %vm452_vm4, %v4890_v28 }
 0x12d   :  { %614 = vmatprep.mubr.f32.mxu1 %v4683_v51  ;;  %840 = vmatprep.mubr.f32.mxu0 %v4683_v51 }
 0x130   :  { %3779 = vmatmul.mubr.msk.f32.gmra.mrb[18].mxu1 %vm452_vm4, %v4884_v25  ;;  %3799 = vmatmul.mubr.msk.f32.gmra.mrb[18].mxu0 %vm452_vm4, %v4884_v25 }
 0x131   :  { %620 = vmatprep.mubr.f32.mxu1 %v4683_v51  ;;  %1036 = vmatprep.mubr.f32.mxu0 %v4683_v51 }
 0x134   :  { %3780 = vmatmul.mubr.msk.f32.gmra.mrb[20].mxu1 %vm452_vm4, %v4907_v32  ;;  %3814 = vmatmul.mubr.msk.f32.vlgmr.msra.gmra.mrb[20].mxu0 %vm452_vm4, %v4856_v6 }
 0x135   :  { %626 = vmatprep.mubr.f32.mxu1 %v4683_v51  ;;  %1042 = vmatprep.mubr.f32.mxu0 %v4683_v51 }
 0x136   :  { %4208 = vmatpush1.bf16.msra.mxu0 %v4207_v40  ;;  %v204_v40 = vld [vmem:[#allocation4 + $0x18] sm:$0xff] }
 0x137   :  { %4211 = vmatprep.subr.msk.bf16.mxu0 %vm4792_vm3, %v4209_v42  ;;  %v218_v42 = vld [vmem:[#allocation4 + $0x88] sm:$0xff] }
 0x138   :  { %3781 = vmatmul.mubr.msk.f32.gmra.mrb[22].mxu1 %vm452_vm4, %v4905_v31  ;;  %3815 = vmatmul.mubr.msk.f32.gmra.mrb[22].mxu0 %vm452_vm4, %v4854_v1  ;;  %v4225_v44 = vpack.c.bf16 %v218_v42, %v204_v40  ;;  %v4265_v40 = vpack.c.bf16 %v226_v39, %v212_v37  ;;  %v213_v42 = vld [vmem:[#allocation4 + $0x60] sm:$0xff]  ;;  %v3916_v39 = vld [vmem:[%s6046_s1 + $0xa0] sm:$0xff] }
 0x139   :  { %697 = vmatprep.mubr.f32.mxu1 %v4683_v51  ;;  %1048 = vmatprep.mubr.f32.mxu0 %v4683_v51 }
 0x13a   :  { %4214 = vmatpush1.bf16.msk.msra.mxu0 %vm4792_vm3, %v4212_v48  ;;  %v234_v48 = vld [vmem:[#allocation4 + $0x108] sm:$0xff] }
 0x13b   :  { %4216 = vmatprep.subr.bf16.mxu0 %v4215_v49  ;;  %v248_v49 = vld [vmem:[#allocation4 + $0x178] sm:$0xf] }
 0x13c   :  { %3784 = vmatmul.mubr.msk.f32.vlgmr.msra.gmra.mrb[24].mxu1 %vm452_vm4, %v4856_v6  ;;  %3816 = vmatmul.mubr.msk.f32.gmra.mrb[24].mxu0 %vm452_vm4, %v4872_v19  ;;  %v4239_v52 = vpack.c.bf16 %v248_v49, %v234_v48  ;;  %v241_v49 = vld [vmem:[#allocation4 + $0x140] sm:$0xff] }
 0x13d   :  { %4369 = vmatpush1.bf16.msra.mxu1 %v4803_v38  ;;  %703 = vmatprep.mubr.f32.mxu1 %v4683_v51  ;;  %v201_v38 = vld [vmem:[#allocation4] sm:$0xff] }
 0x13e   :  { %1054 = vmatprep.mubr.f32.mxu0 %v4683_v51  ;;  %4368 = vmatprep.subr.msk.bf16.mxu1 %vm4792_vm3, %v4809_v41  ;;  %v215_v41 = vld [vmem:[#allocation4 + $0x70] sm:$0xff] }
 0x13f   :  { %v4217_v55 = vpack.c.bf16 %v215_v41, %v201_v38  ;;  %v247_v38 = vld [vmem:[#allocation4 + $0x170] sm:$0xf]  ;;  %v210_v41 = vld [vmem:[#allocation4 + $0x48] sm:$0xff] }
 0x140   :  { %3785 = vmatmul.mubr.msk.f32.gmra.mrb[26].mxu1 %vm452_vm4, %v4854_v1  ;;  %3817 = vmatmul.mubr.msk.f32.gmra.mrb[26].mxu0 %vm452_vm4, %v4868_v16 }
 0x141   :  { %709 = vmatprep.mubr.f32.mxu1 %v4683_v51  ;;  %1060 = vmatprep.mubr.f32.mxu0 %v4683_v51 }
 0x142   :  { %4370 = vmatpush1.bf16.msk.msra.mxu1 %vm4792_vm3, %v4827_v47  ;;  %v230_v47 = vld [vmem:[#allocation4 + $0xe8] sm:$0xff] }
 0x143   :  { %4176 = vmatprep.subr.bf16.mxu1 %v4175_v53  ;;  %v4219_v56 = vpack.c.bf16 %v244_v54, %v230_v47  ;;  %v233_v53 = vld [vmem:[#allocation4 + $0x100] sm:$0xff]  ;;  %v224_v47 = vld [vmem:[#allocation4 + $0xb8] sm:$0xff] }
 0x144   :  { %3786 = vmatmul.mubr.msk.f32.gmra.mrb[28].mxu1 %vm452_vm4, %v4872_v19  ;;  %3818 = vmatmul.mubr.msk.f32.gmra.mrb[28].mxu0 %vm452_vm4, %v4890_v28  ;;  %v4242_v54 = vpack.c.bf16 %v247_v38, %v233_v53  ;;  %v2322_v53 = vld [vmem:[#allocation4 + $0x3f8] sm:$0xff] }
 0x145   :  { %715 = vmatprep.mubr.f32.mxu1 %v4683_v51  ;;  %1066 = vmatprep.mubr.f32.mxu0 %v4683_v51 }
 0x148   :  { %3787 = vmatmul.mubr.msk.f32.gmra.mrb[30].mxu1 %vm452_vm4, %v4868_v16  ;;  %3819 = vmatmul.mubr.msk.f32.gmra.mrb[30].mxu0 %vm452_vm4, %v4884_v25 }
 0x149   :  { %721 = vmatprep.mubr.f32.mxu1 %v4683_v51  ;;  %1072 = vmatprep.mubr.f32.mxu0 %v4683_v51 }
 0x14c   :  { %3788 = vmatmul.mubr.msk.f32.gmra.mrb[32].mxu1 %vm452_vm4, %v4890_v28  ;;  %3820 = vmatmul.mubr.msk.f32.gmra.mrb[32].mxu0 %vm452_vm4, %v4907_v32 }
 0x14d   :  { %727 = vmatprep.mubr.f32.mxu1 %v4683_v51  ;;  %1078 = vmatprep.mubr.f32.mxu0 %v4683_v51 }
 0x150   :  { %3789 = vmatmul.mubr.msk.f32.gmra.mrb[34].mxu1 %vm452_vm4, %v4884_v25  ;;  %3821 = vmatmul.mubr.msk.f32.gmra.mrb[34].mxu0 %vm452_vm4, %v4905_v31 }
 0x151   :  { %733 = vmatprep.mubr.f32.mxu1 %v4683_v51  ;;  %1262 = vmatprep.mubr.f32.mxu0 %v4683_v51 }
 0x154   :  { %3790 = vmatmul.mubr.msk.f32.gmra.mrb[36].mxu1 %vm452_vm4, %v4907_v32  ;;  %3834 = vmatmul.mubr.msk.f32.vlgmr.msra.gmra.mrb[36].mxu0 %vm452_vm4, %v4856_v6 }
 0x155   :  { %739 = vmatprep.mubr.f32.mxu1 %v4683_v51  ;;  %1268 = vmatprep.mubr.f32.mxu0 %v4683_v51 }
 0x156   :  { %4218 = vmatpush1.bf16.msra.mxu0 %v4217_v55  ;;  %v4255_v55 = vpack.c.bf16 %v224_v47, %v210_v41  ;;  %v211_v47 = vld [vmem:[#allocation4 + $0x50] sm:$0xff] }
 0x157   :  { %4221 = vmatprep.subr.msk.bf16.mxu0 %vm4792_vm3, %v4219_v56  ;;  %v203_v56 = vld [vmem:[#allocation4 + $0x10] sm:$0xff] }
 0x158   :  { %3791 = vmatmul.mubr.msk.f32.gmra.mrb[38].mxu1 %vm452_vm4, %v4905_v31  ;;  %3835 = vmatmul.mubr.msk.f32.gmra.mrb[38].mxu0 %vm452_vm4, %v4854_v1  ;;  %v4227_v60 = vpack.c.bf16 %v217_v57, %v203_v56  ;;  %v254_v56 = vld [vmem:[#allocation4 + $0x1a8] sm:$0xf] }
 0x159   :  { %846 = vmatprep.mubr.f32.mxu1 %v4683_v51  ;;  %1274 = vmatprep.mubr.f32.mxu0 %v4683_v51 }
 0x15a   :  { %4224 = vmatpush1.bf16.msk.msra.mxu0 %vm4792_vm3, %v4222_v63  ;;  %v245_v63 = vld [vmem:[#allocation4 + $0x160] sm:$0xf] }
 0x15b   :  { %4236 = vmatprep.subr.bf16.mxu0 %v4235_v4  ;;  %v4232_v4 = vpack.c.bf16 %v245_v63, %v231_v62  ;;  %v2307_v62 = vld [vmem:[#allocation4 + $0x380] sm:$0xff]  ;;  %v2321_v63 = vld [vmem:[#allocation4 + $0x3f0] sm:$0xff] }
 0x15c   :  { %3800 = vmatmul.mubr.msk.f32.vlgmr.msra.gmra.mrb[40].mxu1 %vm452_vm4, %v4907_v32  ;;  %3836 = vmatmul.mubr.msk.f32.gmra.mrb[40].mxu0 %vm452_vm4, %v4872_v19 }
 0x15d   :  { %4178 = vmatpush1.bf16.msra.mxu1 %v4177_v7  ;;  %852 = vmatprep.mubr.f32.mxu1 %v4683_v51  ;;  %v4245_v7 = vpack.c.bf16 %v222_v2, %v208_v0  ;;  %v2336_v0 = vld [vmem:[#allocation4 + $0x468] sm:$0xff]  ;;  %v2350_v2 = vld [vmem:[#allocation4 + $0x4d8] sm:$0xf] }
 0x15e   :  { %4181 = vmatprep.subr.msk.bf16.mxu1 %vm4792_vm3, %v4179_v8  ;;  %1280 = vmatprep.mubr.f32.mxu0 %v4683_v51  ;;  %v238_v8 = vld [vmem:[#allocation4 + $0x128] sm:$0xff] }
 0x15f   :  { %v4259_v11 = vpack.c.bf16 %v252_v10, %v238_v8  ;;  %v4604_v10 = vld [vmem:[#allocation2 + $0x30] sm:$0xff] }
 0x160   :  { %3801 = vmatmul.mubr.msk.f32.gmra.mrb[42].mxu1 %vm452_vm4, %v4905_v31  ;;  %3837 = vmatmul.mubr.msk.f32.gmra.mrb[42].mxu0 %vm452_vm4, %v4868_v16 }
 0x161   :  { %4184 = vmatpush1.bf16.msk.msra.mxu1 %vm4792_vm3, %v4182_v17  ;;  %923 = vmatprep.mubr.f32.mxu1 %v4683_v51  ;;  %v228_v17 = vld [vmem:[#allocation4 + $0xd8] sm:$0xff] }
 0x162   :  { %4196 = vmatprep.subr.bf16.mxu1 %v4195_v18  ;;  %1286 = vmatprep.mubr.f32.mxu0 %v4683_v51  ;;  %v4262_v18 = vpack.c.bf16 %v251_v14, %v237_v13 }
 0x164   :  { %3804 = vmatmul.mubr.msk.f32.vlgmr.msra.gmra.mrb[44].mxu1 %vm452_vm4, %v4856_v6  ;;  %3838 = vmatmul.mubr.msk.f32.gmra.mrb[44].mxu0 %vm452_vm4, %v4890_v28 }
 0x165   :  { %4198 = vmatpush1.bf16.msra.mxu1 %v4197_v34  ;;  %929 = vmatprep.mubr.f32.mxu1 %v4683_v51  ;;  %v235_v34 = vld [vmem:[#allocation4 + $0x110] sm:$0xff] }
 0x166   :  { %1292 = vmatprep.mubr.f32.mxu0 %v4683_v51  ;;  %4201 = vmatprep.subr.msk.bf16.mxu1 %vm4792_vm3, %v4199_v36  ;;  %v249_v36 = vld [vmem:[#allocation4 + $0x180] sm:$0xf] }
 0x168   :  { %3805 = vmatmul.mubr.msk.f32.gmra.mrb[46].mxu1 %vm452_vm4, %v4854_v1  ;;  %3839 = vmatmul.mubr.msk.f32.gmra.mrb[46].mxu0 %vm452_vm4, %v4884_v25 }
 0x169   :  { %935 = vmatprep.mubr.f32.mxu1 %v4683_v51  ;;  %1298 = vmatprep.mubr.f32.mxu0 %v4683_v51 }
 0x16a   :  { %4204 = vmatpush1.bf16.msk.msra.mxu1 %vm4792_vm3, %v4202_v43  ;;  %v227_v43 = vld [vmem:[#allocation4 + $0xd0] sm:$0xff] }
 0x16b   :  { %4226 = vmatprep.subr.bf16.mxu1 %v4225_v44  ;;  %v242_v44 = vld [vmem:[#allocation4 + $0x148] sm:$0xff]  ;;  %v4277_v46 = vpack.c.bf16 %v227_v43, %v213_v42  ;;  %v3917_v42 = vld [vmem:[%s6046_s1 + $0xa8] sm:$0xff]  ;;  %v3918_v43 = vld [vmem:[%s6046_s1 + $0xb0] sm:$0xff] }
 0x16c   :  { %3806 = vmatmul.mubr.msk.f32.gmra.mrb[48].mxu1 %vm452_vm4, %v4872_v19  ;;  %3840 = vmatmul.mubr.msk.f32.gmra.mrb[48].mxu0 %vm452_vm4, %v4907_v32  ;;  %v4279_v48 = vpack.c.bf16 %v256_v45, %v242_v44 }
 0x16d   :  { %941 = vmatprep.mubr.f32.mxu1 %v4683_v51  ;;  %1304 = vmatprep.mubr.f32.mxu0 %v4683_v51 }
 0x170   :  { %3807 = vmatmul.mubr.msk.f32.gmra.mrb[50].mxu1 %vm452_vm4, %v4868_v16  ;;  %3841 = vmatmul.mubr.msk.f32.gmra.mrb[50].mxu0 %vm452_vm4, %v4905_v31 }
 0x171   :  { %947 = vmatprep.mubr.f32.mxu1 %v4683_v51  ;;  %1441 = vmatprep.mubr.f32.mxu0 %v4683_v51 }
 0x174   :  { %3808 = vmatmul.mubr.msk.f32.gmra.mrb[52].mxu1 %vm452_vm4, %v4890_v28  ;;  %3844 = vmatmul.mubr.msk.f32.vlgmr.msra.gmra.mrb[52].mxu0 %vm452_vm4, %v4864_v15 }
 0x175   :  { %953 = vmatprep.mubr.f32.mxu1 %v4683_v51  ;;  %1447 = vmatprep.mubr.f32.mxu0 %v4683_v51 }
 0x176   :  { %4238 = vmatpush1.bf16.msra.mxu0 %v4237_v50  ;;  %v255_v50 = vld [vmem:[#allocation4 + $0x1b0] sm:$0xf] }
 0x177   :  { %4241 = vmatprep.subr.msk.bf16.mxu0 %vm4792_vm3, %v4239_v52  ;;  %v2308_v52 = vld [vmem:[#allocation4 + $0x388] sm:$0xff]  ;;  %v4282_v38 = vpack.c.bf16 %v255_v50, %v241_v49 }
 0x178   :  { %3809 = vmatmul.mubr.msk.f32.gmra.mrb[54].mxu1 %vm452_vm4, %v4884_v25  ;;  %3845 = vmatmul.mubr.msk.f32.gmra.mrb[54].mxu0 %vm452_vm4, %v4858_v12  ;;  %v4297_v41 = vpack.c.bf16 %v2322_v53, %v2308_v52  ;;  %v2312_v53 = vld [vmem:[#allocation4 + $0x3a8] sm:$0xff] }
 0x179   :  { %959 = vmatprep.mubr.f32.mxu1 %v4683_v51  ;;  %1453 = vmatprep.mubr.f32.mxu0 %v4683_v51 }
 0x17a   :  { %4244 = vmatpush1.bf16.msk.msra.mxu0 %vm4792_vm3, %v4242_v54  ;;  %v225_v54 = vld [vmem:[#allocation4 + $0xc0] sm:$0xff] }
 0x17b   :  { %4256 = vmatprep.subr.bf16.mxu0 %v4255_v55  ;;  %v240_v55 = vld [vmem:[#allocation4 + $0x138] sm:$0xff]  ;;  %v4267_v57 = vpack.c.bf16 %v225_v54, %v211_v47  ;;  %v2328_v54 = vld [vmem:[#allocation4 + $0x428] sm:$0xff] }
 0x17c   :  { %3810 = vmatmul.mubr.msk.f32.gmra.mrb[56].mxu1 %vm452_vm4, %v4907_v32  ;;  %3846 = vmatmul.mubr.msk.f32.gmra.mrb[56].mxu0 %vm452_vm4, %v4880_v24  ;;  %v4269_v58 = vpack.c.bf16 %v254_v56, %v240_v55  ;;  %v2314_v47 = vld [vmem:[#allocation4 + $0x3b8] sm:$0xff]  ;;  %v2311_v56 = vld [vmem:[#allocation4 + $0x3a0] sm:$0xff] }
 0x17d   :  { %965 = vmatprep.mubr.f32.mxu1 %v4683_v51  ;;  %1459 = vmatprep.mubr.f32.mxu0 %v4683_v51  ;;  %v4327_v55 = vpack.c.bf16 %v2328_v54, %v2314_v47  ;;  %v2343_v54 = vld [vmem:[#allocation4 + $0x4a0] sm:$0xff] }
 0x180   :  { %3811 = vmatmul.mubr.msk.f32.gmra.mrb[58].mxu1 %vm452_vm4, %v4905_v31  ;;  %3847 = vmatmul.mubr.msk.f32.gmra.mrb[58].mxu0 %vm452_vm4, %v4874_v23 }
 0x181   :  { %1149 = vmatprep.mubr.f32.mxu1 %v4683_v51  ;;  %1465 = vmatprep.mubr.f32.mxu0 %v4683_v51 }
 0x184   :  { %3824 = vmatmul.mubr.msk.f32.vlgmr.msra.gmra.mrb[60].mxu1 %vm452_vm4, %v4856_v6  ;;  %3848 = vmatmul.mubr.msk.f32.gmra.mrb[60].mxu0 %vm452_vm4, %v4901_v30  ;;  %v223_v6 = vld [vmem:[#allocation4 + $0xb0] sm:$0xff] }
 0x185   :  { %4228 = vmatpush1.bf16.msra.mxu1 %v4227_v60  ;;  %1155 = vmatprep.mubr.f32.mxu1 %v4683_v51  ;;  %v253_v60 = vld [vmem:[#allocation4 + $0x1a0] sm:$0xf] }
 0x186   :  { %1471 = vmatprep.mubr.f32.mxu0 %v4683_v51  ;;  %4231 = vmatprep.subr.msk.bf16.mxu1 %vm4792_vm3, %v4229_v61  ;;  %v4272_v61 = vpack.c.bf16 %v253_v60, %v239_v59  ;;  %v2354_v59 = vld [vmem:[#allocation4 + $0x4f8] sm:$0xf]  ;;  %v2313_v60 = vld [vmem:[#allocation4 + $0x3b0] sm:$0xff] }
 0x188   :  { %3825 = vmatmul.mubr.msk.f32.gmra.mrb[62].mxu1 %vm452_vm4, %v4854_v1  ;;  %3849 = vmatmul.mubr.msk.f32.gmra.mrb[62].mxu0 %vm452_vm4, %v4895_v29  ;;  %v209_v1 = vld [vmem:[#allocation4 + $0x40] sm:$0xff] }
 0x189   :  { %1161 = vmatprep.mubr.f32.mxu1 %v4683_v51  ;;  %1477 = vmatprep.mubr.f32.mxu0 %v4683_v51 }
 0x18a   :  { %4234 = vmatpush1.bf16.msk.msra.mxu1 %vm4792_vm3, %v4232_v4  ;;  %v4299_v4 = vpack.c.bf16 %v2321_v63, %v2307_v62 }
 0x18b   :  { %4246 = vmatprep.subr.bf16.mxu1 %v4245_v7  ;;  %v4301_v7 = vpack.c.bf16 %v2350_v2, %v2336_v0  ;;  %v2339_v2 = vld [vmem:[#allocation4 + $0x480] sm:$0xff] }
 0x18c   :  { %3826 = vmatmul.mubr.msk.f32.gmra.mrb[64].mxu1 %vm452_vm4, %v4872_v19  ;;  %3850 = vmatmul.mubr.msk.f32.gmra.mrb[64].mxu0 %vm452_vm4, %v4915_v33  ;;  %v4257_v19 = vpack.c.bf16 %v223_v6, %v209_v1  ;;  %v2335_v1 = vld [vmem:[#allocation4 + $0x460] sm:$0xff]  ;;  %v2349_v6 = vld [vmem:[#allocation4 + $0x4d0] sm:$0xf] }
 0x18d   :  { %1167 = vmatprep.mubr.f32.mxu1 %v4683_v51  ;;  %1483 = vmatprep.mubr.f32.mxu0 %v4683_v51  ;;  %v4304_v8 = vpack.c.bf16 %v2349_v6, %v2335_v1  ;;  %v2342_v6 = vld [vmem:[#allocation4 + $0x498] sm:$0xff] }
 0x190   :  { %3827 = vmatmul.mubr.msk.f32.gmra.mrb[66].mxu1 %vm452_vm4, %v4868_v16  ;;  %3851 = vmatmul.mubr.msk.f32.gmra.mrb[66].mxu0 %vm452_vm4, %v4909_v27  ;;  %v214_v16 = vld [vmem:[#allocation4 + $0x68] sm:$0xff] }
 0x191   :  { %1173 = vmatprep.mubr.f32.mxu1 %v4683_v51  ;;  %1667 = vmatprep.mubr.f32.mxu0 %v4683_v51  ;;  %v4275_v20 = vpack.c.bf16 %v228_v17, %v214_v16  ;;  %v2309_v16 = vld [vmem:[#allocation4 + $0x390] sm:$0xff]  ;;  %v2323_v17 = vld [vmem:[#allocation4 + $0x400] sm:$0xff] }
 0x194   :  { %3828 = vmatmul.mubr.msk.f32.gmra.mrb[68].mxu1 %vm452_vm4, %v4890_v28  ;;  %3864 = vmatmul.mubr.msk.f32.vlgmr.msra.gmra.mrb[8].mxu0 %vm452_vm4, %v4864_v15  ;;  %v221_v28 = vld [vmem:[#allocation4 + $0xa0] sm:$0xff] }
 0x195   :  { %1179 = vmatprep.mubr.f32.mxu1 %v4683_v51  ;;  %1673 = vmatprep.mubr.f32.mxu0 %v4683_v51 }
 0x196   :  { %4258 = vmatpush1.bf16.msra.mxu0 %v4257_v19 }
 0x197   :  { %4261 = vmatprep.subr.msk.bf16.mxu0 %vm4792_vm3, %v4259_v11 }
 0x198   :  { %3829 = vmatmul.mubr.msk.f32.gmra.mrb[70].mxu1 %vm452_vm4, %v4884_v25  ;;  %3865 = vmatmul.mubr.msk.f32.gmra.mrb[10].mxu0 %vm452_vm4, %v4858_v12  ;;  %v207_v25 = vld [vmem:[#allocation4 + $0x30] sm:$0xff] }
 0x199   :  { %1185 = vmatprep.mubr.f32.mxu1 %v4683_v51  ;;  %1679 = vmatprep.mubr.f32.mxu0 %v4683_v51 }
 0x19a   :  { %4264 = vmatpush1.bf16.msk.msra.mxu0 %vm4792_vm3, %v4262_v18 }
 0x19b   :  { %4276 = vmatprep.subr.bf16.mxu0 %v4275_v20  ;;  %v2352_v20 = vld [vmem:[#allocation4 + $0x4e8] sm:$0xf] }
 0x19c   :  { %3830 = vmatmul.mubr.msk.f32.gmra.mrb[72].mxu1 %vm452_vm4, %v4907_v32  ;;  %3866 = vmatmul.mubr.msk.f32.gmra.mrb[12].mxu0 %vm452_vm4, %v4880_v24  ;;  %v4247_v32 = vpack.c.bf16 %v221_v28, %v207_v25  ;;  %v4309_v28 = vpack.c.bf16 %v2323_v17, %v2309_v16 }
 0x19d   :  { %1191 = vmatprep.mubr.f32.mxu1 %v4683_v51  ;;  %1685 = vmatprep.mubr.f32.mxu0 %v4683_v51 }
 0x1a0   :  { %3831 = vmatmul.mubr.msk.f32.gmra.mrb[74].mxu1 %vm452_vm4, %v4905_v31  ;;  %3867 = vmatmul.mubr.msk.f32.gmra.mrb[14].mxu0 %vm452_vm4, %v4874_v23  ;;  %v4252_v31 = vpack.c.bf16 %v249_v36, %v235_v34 }
 0x1a1   :  { %1554 = vmatprep.mubr.f32.mxu1 %v4683_v51  ;;  %1691 = vmatprep.mubr.f32.mxu0 %v4683_v51 }
 0x1a4   :  { %3854 = vmatmul.mubr.msk.f32.vlgmr.msra.gmra.mrb[24].mxu1 %vm452_vm4, %v4864_v15  ;;  %3868 = vmatmul.mubr.msk.f32.gmra.mrb[16].mxu0 %vm452_vm4, %v4901_v30 }
 0x1a5   :  { %4248 = vmatpush1.bf16.msra.mxu1 %v4247_v32  ;;  %1560 = vmatprep.mubr.f32.mxu1 %v4683_v51  ;;  %v2337_v32 = vld [vmem:[#allocation4 + $0x470] sm:$0xff] }
 0x1a6   :  { %1697 = vmatprep.mubr.f32.mxu0 %v4683_v51  ;;  %4251 = vmatprep.subr.msk.bf16.mxu1 %vm4792_vm3, %v4249_v26  ;;  %v2351_v26 = vld [vmem:[#allocation4 + $0x4e0] sm:$0xf] }
 0x1a7   :  { %v4314_v37 = vpack.c.bf16 %v2351_v26, %v2337_v32 }
 0x1a8   :  { %3855 = vmatmul.mubr.msk.f32.gmra.mrb[26].mxu1 %vm452_vm4, %v4858_v12  ;;  %3869 = vmatmul.mubr.msk.f32.gmra.mrb[18].mxu0 %vm452_vm4, %v4895_v29 }
 0x1a9   :  { %1566 = vmatprep.mubr.f32.mxu1 %v4683_v51  ;;  %1703 = vmatprep.mubr.f32.mxu0 %v4683_v51 }
 0x1aa   :  { %4254 = vmatpush1.bf16.msk.msra.mxu1 %vm4792_vm3, %v4252_v31 }
 0x1ab   :  { %4266 = vmatprep.subr.bf16.mxu1 %v4265_v40 }
 0x1ac   :  { %3856 = vmatmul.mubr.msk.f32.gmra.mrb[28].mxu1 %vm452_vm4, %v4880_v24  ;;  %3870 = vmatmul.mubr.msk.f32.gmra.mrb[68].mxu0 %vm452_vm4, %v4915_v33 }
 0x1ad   :  { %1572 = vmatprep.mubr.f32.mxu1 %v4683_v51  ;;  %1709 = vmatprep.mubr.f32.mxu0 %v4683_v51 }
 0x1b0   :  { %3857 = vmatmul.mubr.msk.f32.gmra.mrb[30].mxu1 %vm452_vm4, %v4874_v23  ;;  %3871 = vmatmul.mubr.msk.f32.gmra.mrb[70].mxu0 %vm452_vm4, %v4909_v27 }
 0x1b1   :  { %1578 = vmatprep.mubr.f32.mxu1 %v4683_v51  ;;  %1893 = vmatprep.mubr.f32.mxu0 %v4683_v51 }
 0x1b4   :  { %3858 = vmatmul.mubr.msk.f32.gmra.mrb[32].mxu1 %vm452_vm4, %v4901_v30  ;;  %3884 = vmatmul.mubr.msk.f32.vlgmr.msra.gmra.mrb[20].mxu0 %vm452_vm4, %v4864_v15 }
 0x1b5   :  { %1584 = vmatprep.mubr.f32.mxu1 %v4683_v51  ;;  %1899 = vmatprep.mubr.f32.mxu0 %v4683_v51 }
 0x1b6   :  { %4278 = vmatpush1.bf16.msra.mxu0 %v4277_v46  ;;  %v3919_v46 = vld [vmem:[%s6046_s1 + $0xb8] sm:$0xff] }
 0x1b7   :  { %4281 = vmatprep.subr.msk.bf16.mxu0 %vm4792_vm3, %v4279_v48 }
 0x1b8   :  { %3859 = vmatmul.mubr.msk.f32.gmra.mrb[34].mxu1 %vm452_vm4, %v4895_v29  ;;  %3885 = vmatmul.mubr.msk.f32.gmra.mrb[22].mxu0 %vm452_vm4, %v4858_v12 }
 0x1b9   :  { %1590 = vmatprep.mubr.f32.mxu1 %v4683_v51  ;;  %1905 = vmatprep.mubr.f32.mxu0 %v4683_v51 }
 0x1ba   :  { %4284 = vmatpush1.bf16.msk.msra.mxu0 %vm4792_vm3, %v4282_v38  ;;  %v2326_v38 = vld [vmem:[#allocation4 + $0x418] sm:$0xff] }
 0x1bb   :  { %4298 = vmatprep.subr.bf16.mxu0 %v4297_v41  ;;  %v4317_v41 = vpack.c.bf16 %v2326_v38, %v2312_v53  ;;  %v2317_v53 = vld [vmem:[#allocation4 + $0x3d0] sm:$0xff]  ;;  %v2331_v38 = vld [vmem:[#allocation4 + $0x440] sm:$0xff] }
 0x1bc   :  { %3860 = vmatmul.mubr.msk.f32.gmra.mrb[36].mxu1 %vm452_vm4, %v4915_v33  ;;  %3886 = vmatmul.mubr.msk.f32.gmra.mrb[24].mxu0 %vm452_vm4, %v4880_v24 }
 0x1bd   :  { %1596 = vmatprep.mubr.f32.mxu1 %v4683_v51  ;;  %1911 = vmatprep.mubr.f32.mxu0 %v4683_v51 }
 0x1c0   :  { %3861 = vmatmul.mubr.msk.f32.gmra.mrb[38].mxu1 %vm452_vm4, %v4909_v27  ;;  %3887 = vmatmul.mubr.msk.f32.gmra.mrb[26].mxu0 %vm452_vm4, %v4874_v23 }
 0x1c1   :  { %1780 = vmatprep.mubr.f32.mxu1 %v4683_v51  ;;  %1917 = vmatprep.mubr.f32.mxu0 %v4683_v51 }
 0x1c4   :  { %3874 = vmatmul.mubr.msk.f32.vlgmr.msra.gmra.mrb[44].mxu1 %vm452_vm4, %v4864_v15  ;;  %3888 = vmatmul.mubr.msk.f32.gmra.mrb[28].mxu0 %vm452_vm4, %v4901_v30 }
 0x1c5   :  { %4268 = vmatpush1.bf16.msra.mxu1 %v4267_v57  ;;  %1786 = vmatprep.mubr.f32.mxu1 %v4683_v51  ;;  %v2325_v57 = vld [vmem:[#allocation4 + $0x410] sm:$0xff] }
 0x1c6   :  { %1923 = vmatprep.mubr.f32.mxu0 %v4683_v51  ;;  %4271 = vmatprep.subr.msk.bf16.mxu1 %vm4792_vm3, %v4269_v58  ;;  %v2340_v58 = vld [vmem:[#allocation4 + $0x488] sm:$0xff]  ;;  %v4319_v62 = vpack.c.bf16 %v2325_v57, %v2311_v56  ;;  %v4349_v56 = vpack.c.bf16 %v2331_v38, %v2317_v53  ;;  %v2346_v57 = vld [vmem:[#allocation4 + $0x4b8] sm:$0xff] }
 0x1c7   :  { %v4321_v0 = vpack.c.bf16 %v2354_v59, %v2340_v58  ;;  %v2360_v58 = vld [vmem:[#allocation4 + $0x528] sm:$0xf]  ;;  %v2345_v59 = vld [vmem:[#allocation4 + $0x4b0] sm:$0xff] }
 0x1c8   :  { %3875 = vmatmul.mubr.msk.f32.gmra.mrb[46].mxu1 %vm452_vm4, %v4858_v12  ;;  %3889 = vmatmul.mubr.msk.f32.gmra.mrb[30].mxu0 %vm452_vm4, %v4895_v29 }
 0x1c9   :  { %1792 = vmatprep.mubr.f32.mxu1 %v4683_v51  ;;  %1929 = vmatprep.mubr.f32.mxu0 %v4683_v51 }
 0x1ca   :  { %4274 = vmatpush1.bf16.msk.msra.mxu1 %vm4792_vm3, %v4272_v61  ;;  %v2327_v61 = vld [vmem:[#allocation4 + $0x420] sm:$0xff] }
 0x1cb   :  { %4286 = vmatprep.subr.bf16.mxu1 %v4745_v3  ;;  %v4329_v1 = vpack.c.bf16 %v2327_v61, %v2313_v60  ;;  %v2359_v60 = vld [vmem:[#allocation4 + $0x520] sm:$0xf]  ;;  %v2320_v61 = vld [vmem:[#allocation4 + $0x3e8] sm:$0xff] }
 0x1cc   :  { %3876 = vmatmul.mubr.msk.f32.gmra.mrb[48].mxu1 %vm452_vm4, %v4880_v24  ;;  %3890 = vmatmul.mubr.msk.f32.gmra.mrb[32].mxu0 %vm452_vm4, %v4915_v33 }
 0x1cd   :  { %1798 = vmatprep.mubr.f32.mxu1 %v4683_v51  ;;  %1935 = vmatprep.mubr.f32.mxu0 %v4683_v51 }
 0x1d0   :  { %3877 = vmatmul.mubr.msk.f32.gmra.mrb[50].mxu1 %vm452_vm4, %v4874_v23  ;;  %3891 = vmatmul.mubr.msk.f32.gmra.mrb[34].mxu0 %vm452_vm4, %v4909_v27 }
 0x1d1   :  { %1804 = vmatprep.mubr.f32.mxu1 %v4683_v51  ;;  %2119 = vmatprep.mubr.f32.mxu0 %v4683_v51 }
 0x1d4   :  { %3878 = vmatmul.mubr.msk.f32.gmra.mrb[52].mxu1 %vm452_vm4, %v4901_v30  ;;  %3904 = vmatmul.mubr.msk.f32.vlgmr.msra.gmra.mrb[36].mxu0 %vm452_vm4, %v4864_v15 }
 0x1d5   :  { %1810 = vmatprep.mubr.f32.mxu1 %v4683_v51  ;;  %2125 = vmatprep.mubr.f32.mxu0 %v4683_v51 }
 0x1d6   :  { %4300 = vmatpush1.bf16.msra.mxu0 %v4299_v4  ;;  %v2353_v4 = vld [vmem:[#allocation4 + $0x4f0] sm:$0xf] }
 0x1d7   :  { %4303 = vmatprep.subr.msk.bf16.mxu0 %vm4792_vm3, %v4301_v7  ;;  %v4324_v16 = vpack.c.bf16 %v2353_v4, %v2339_v2  ;;  %v4351_v2 = vpack.c.bf16 %v2360_v58, %v2346_v57  ;;  %v4354_v4 = vpack.c.bf16 %v2359_v60, %v2345_v59 }
 0x1d8   :  { %3879 = vmatmul.mubr.msk.f32.gmra.mrb[54].mxu1 %vm452_vm4, %v4895_v29  ;;  %3905 = vmatmul.mubr.msk.f32.gmra.mrb[38].mxu0 %vm452_vm4, %v4858_v12 }
 0x1d9   :  { %1816 = vmatprep.mubr.f32.mxu1 %v4683_v51  ;;  %2131 = vmatprep.mubr.f32.mxu0 %v4683_v51 }
 0x1da   :  { %4306 = vmatpush1.bf16.msk.msra.mxu0 %vm4792_vm3, %v4304_v8  ;;  %v2356_v8 = vld [vmem:[#allocation4 + $0x508] sm:$0xf] }
 0x1db   :  { %4318 = vmatprep.subr.bf16.mxu0 %v4317_v41  ;;  %v4331_v17 = vpack.c.bf16 %v2356_v8, %v2342_v6  ;;  %v2319_v6 = vld [vmem:[#allocation4 + $0x3e0] sm:$0xff]  ;;  %v2333_v8 = vld [vmem:[#allocation4 + $0x450] sm:$0xff] }
 0x1dc   :  { %3880 = vmatmul.mubr.msk.f32.gmra.mrb[56].mxu1 %vm452_vm4, %v4915_v33  ;;  %3906 = vmatmul.mubr.msk.f32.gmra.mrb[40].mxu0 %vm452_vm4, %v4880_v24 }
 0x1dd   :  { %1822 = vmatprep.mubr.f32.mxu1 %v4683_v51  ;;  %2137 = vmatprep.mubr.f32.mxu0 %v4683_v51 }
 0x1e0   :  { %3881 = vmatmul.mubr.msk.f32.gmra.mrb[58].mxu1 %vm452_vm4, %v4909_v27  ;;  %3907 = vmatmul.mubr.msk.f32.gmra.mrb[42].mxu0 %vm452_vm4, %v4874_v23 }
 0x1e1   :  { %2006 = vmatprep.mubr.f32.mxu1 %v4683_v51  ;;  %2143 = vmatprep.mubr.f32.mxu0 %v4683_v51 }
 0x1e4   :  { %3894 = vmatmul.mubr.msk.f32.vlgmr.msra.gmra.mrb[60].mxu1 %vm452_vm4, %v4864_v15  ;;  %3908 = vmatmul.mubr.msk.f32.gmra.mrb[44].mxu0 %vm452_vm4, %v4901_v30  ;;  %v2324_v15 = vld [vmem:[#allocation4 + $0x408] sm:$0xff] }
 0x1e5   :  { %4288 = vmatpush3.bf16.msra.mxu1 %v4745_v3  ;;  %2012 = vmatprep.mubr.f32.mxu1 %v4683_v51  ;;  %v2310_v3 = vld [vmem:[#allocation4 + $0x398] sm:$0xff] }
 0x1e6   :  { %2149 = vmatprep.mubr.f32.mxu0 %v4683_v51  ;;  %4290 = vmatprep.subr.bf16.mxu1 %v4747_v5 }
 0x1e8   :  { %3895 = vmatmul.mubr.msk.f32.gmra.mrb[62].mxu1 %vm452_vm4, %v4858_v12  ;;  %3909 = vmatmul.mubr.msk.f32.gmra.mrb[46].mxu0 %vm452_vm4, %v4895_v29 }
 0x1e9   :  { %2018 = vmatprep.mubr.f32.mxu1 %v4683_v51  ;;  %2155 = vmatprep.mubr.f32.mxu0 %v4683_v51 }
 0x1ea   :  { %4292 = vmatpush3.bf16.msra.mxu1 %v4747_v5  ;;  %v4307_v5 = vpack.c.bf16 %v2324_v15, %v2310_v3  ;;  %v2341_v3 = vld [vmem:[#allocation4 + $0x490] sm:$0xff]  ;;  %v2355_v15 = vld [vmem:[#allocation4 + $0x500] sm:$0xf] }
 0x1eb   :  { %4294 = vmatprep.subr.bf16.mxu1 %v4757_v9 }
 0x1ec   :  { %3896 = vmatmul.mubr.msk.f32.gmra.mrb[64].mxu1 %vm452_vm4, %v4880_v24  ;;  %3910 = vmatmul.mubr.msk.f32.gmra.mrb[48].mxu0 %vm452_vm4, %v4915_v33 }
 0x1ed   :  { %2024 = vmatprep.mubr.f32.mxu1 %v4683_v51  ;;  %2161 = vmatprep.mubr.f32.mxu0 %v4683_v51 }
 0x1ee   :  { %4296 = vmatpush3.bf16.msra.mxu1 %v4757_v9 }
 0x1ef   :  { %v5270_v12 = vpop.f32.mrb[8].mxu1  ;;  %4107 = vmatprep.subr.mxu1 %v4604_v10 }
 0x1f0   :  { %v5272_v19 = vpop.f32.mrb[9].mxu1  ;;  %3897 = vmatmul.mubr.msk.f32.gmra.mrb[66].mxu1 %vm452_vm4, %v4874_v23  ;;  %3911 = vmatmul.mubr.msk.f32.gmra.mrb[50].mxu0 %vm452_vm4, %v4909_v27 }
 0x1f1   :  { %2030 = vmatprep.mubr.f32.mxu1 %v4683_v51  ;;  %2493 = vmatprep.mubr.f32.mxu0 %v4683_v51 }
 0x1f2   :  { %4108 = vmatpush3.msra.mxu1 %v4604_v10  ;;  %v2316_v10 = vld [vmem:[#allocation4 + $0x3c8] sm:$0xff] }
 0x1f3   :  { %v5280_v24 = vpop.f32.mrb[10].mxu1  ;;  %4308 = vmatprep.subr.bf16.mxu1 %v4307_v5  ;;  %v2330_v5 = vld [vmem:[#allocation4 + $0x438] sm:$0xff] }
 0x1f4   :  { %v5282_v9 = vpop.f32.mrb[11].mxu1  ;;  %3898 = vmatmul.mubr.msk.f32.gmra.mrb[68].mxu1 %vm452_vm4, %v4901_v30  ;;  %v3912_v30 = vld [vmem:[%s6046_s1 + $0x80] sm:$0xff] }
 0x1f5   :  { %2036 = vmatprep.mubr.f32.mxu1 %v4683_v51 }
 0x1f7   :  { %v5287_v11 = vpop.f32.mrb[12].mxu1 }
 0x1f8   :  { %v5289_v23 = vpop.f32.mrb[13].mxu1  ;;  %3899 = vmatmul.mubr.msk.f32.gmra.mrb[70].mxu1 %vm452_vm4, %v4895_v29  ;;  %v2338_v29 = vld [vmem:[#allocation4 + $0x478] sm:$0xff] }
 0x1f9   :  { %2042 = vmatprep.mubr.f32.mxu1 %v4683_v51  ;;  %v4311_v22 = vpack.c.bf16 %v2352_v20, %v2338_v29  ;;  %v4334_v20 = vpack.c.bf16 %v2355_v15, %v2341_v3  ;;  %v2348_v3 = vld [vmem:[#allocation4 + $0x4c8] sm:$0xff]  ;;  %v2362_v15 = vld [vmem:[#allocation4 + $0x538] sm:$0xf] }
 0x1fb   :  { %v5294_v13 = vpop.f32.mrb[14].mxu1 }
 0x1fc   :  { %v5296_v14 = vpop.f32.mrb[15].mxu1  ;;  %3900 = vmatmul.mubr.msk.f32.gmra.mrb[72].mxu1 %vm452_vm4, %v4915_v33  ;;  %v3913_v33 = vld [vmem:[%s6046_s1 + $0x88] sm:$0xff] }
 0x1fd   :  { %2048 = vmatprep.mubr.f32.mxu1 %v4683_v51 }
 0x1ff   :  { %v5304_v18 = vpop.f32.mrb[16].mxu1 }
 0x200   :  { %v5306_v25 = vpop.f32.mrb[17].mxu1  ;;  %3901 = vmatmul.mubr.msk.f32.gmra.mrb[74].mxu1 %vm452_vm4, %v4909_v27  ;;  %v3915_v27 = vld [vmem:[%s6046_s1 + $0x98] sm:$0xff] }
 0x201   :  { %4109 = vmatprep.mubr.msk.f32.mxu1 %vm71_vm0, %v3912_v30 }
 0x203   :  { %v5317_v34 = vpop.f32.mrb[18].mxu1 }
 0x204   :  { %v5319_v36 = vpop.f32.mrb[19].mxu1  ;;  %4110 = vmatmul.mubr.msk.f32.vlgmr.msra.gmra.mrb[76].mxu1 %vm71_vm0, %v3913_v33  ;;  %v4337_v33 = vpack.c.bf16 %v2330_v5, %v2316_v10  ;;  %v4359_v10 = vpack.c.bf16 %v2333_v8, %v2319_v6  ;;  %v4361_v5 = vpack.c.bf16 %v2362_v15, %v2348_v3 }
 0x205   :  { %4112 = vmatprep.mubr.msk.f32.mxu1 %vm71_vm0, %v3914_v21  ;;  %4310 = vmatpush1.bf16.msra.mxu1 %v4309_v28  ;;  %v2318_v28 = vld [vmem:[#allocation4 + $0x3d8] sm:$0xff]  ;;  %v2332_v21 = vld [vmem:[#allocation4 + $0x448] sm:$0xff] }
 0x206   :  { %4313 = vmatprep.subr.msk.bf16.mxu1 %vm4792_vm3, %v4311_v22  ;;  %v4347_v32 = vpack.c.bf16 %v2332_v21, %v2318_v28 }
 0x207   :  { %v5331_v31 = vpop.f32.mrb[20].mxu1 }
 0x208   :  { %v5333_v40 = vpop.f32.mrb[21].mxu1  ;;  %4113 = vmatmul.mubr.msk.f32.gmra.mrb[78].mxu1 %vm71_vm0, %v3915_v27 }
 0x209   :  { %4115 = vmatprep.mubr.msk.f32.mxu1 %vm71_vm0, %v3916_v39  ;;  %4316 = vmatpush1.bf16.msk.msra.mxu1 %vm4792_vm3, %v4314_v37  ;;  %v2315_v39 = vld [vmem:[#allocation4 + $0x3c0] sm:$0xff] }
 0x20a   :  { %4328 = vmatprep.subr.bf16.mxu1 %v4327_v55  ;;  %v2357_v55 = vld [vmem:[#allocation4 + $0x510] sm:$0xf] }
 0x20b   :  { %v5345_v44 = vpop.f32.mrb[22].mxu1 }
 0x20c   :  { %v5347_v45 = vpop.f32.mrb[23].mxu1  ;;  %4116 = vmatmul.mubr.msk.f32.gmra.mrb[80].mxu1 %vm71_vm0, %v3917_v42  ;;  %v2329_v42 = vld [vmem:[#allocation4 + $0x430] sm:$0xff] }
 0x20d   :  { %4118 = vmatprep.mubr.msk.f32.mxu1 %vm71_vm0, %v3918_v43  ;;  %v2344_v43 = vld [vmem:[#allocation4 + $0x4a8] sm:$0xff]  ;;  %v4339_v41 = vpack.c.bf16 %v2329_v42, %v2315_v39 }
 0x210   :  { %4119 = vmatmul.mubr.msk.f32.gmra.mrb[82].mxu1 %vm71_vm0, %v3919_v46  ;;  %v2358_v46 = vld [vmem:[#allocation4 + $0x518] sm:$0xf] }
 0x211   :  { %2606 = vmatprep.mubr.f32.mxu1 %v4683_v51  ;;  %v4341_v47 = vpack.c.bf16 %v2358_v46, %v2344_v43 }
 0x22f   :  { %v5356_v48 = vpop.f32.mrb[40].mxu1 }
 0x230   :  { %v5358_v49 = vpop.f32.mrb[41].mxu1 }
 0x233   :  { %v5360_v50 = vpop.f32.mrb[42].mxu1 }
 0x234   :  { %v5362_v52 = vpop.f32.mrb[43].mxu1 }
 0x2d7   :  { %v5364_v63 = vpop.f32.mrb[76].mxu1 }
 0x2d8   :  { %v5366_v7 = vpop.f32.mrb[77].mxu1 }
 0x2d9   :  { %3930 = vmatmul.mubr.msk.f32.vlgmr.msra.gmra.mrb[52].mxu0 %vm452_vm4, %v5366_v7  ;;  %3940 = vmatmul.mubr.msk.f32.vlgmr.msra.gmra.mrb[24].mxu1 %vm452_vm4, %v5366_v7 }
 0x2da   :  { %4320 = vmatpush1.bf16.msra.mxu0 %v4319_v62  ;;  %2499 = vmatprep.mubr.f32.mxu0 %v4683_v51  ;;  %v2334_v62 = vld [vmem:[#allocation4 + $0x458] sm:$0xff] }
 0x2db   :  { %2612 = vmatprep.mubr.f32.mxu1 %v4683_v51  ;;  %v5374_v30 = vpop.f32.mrb[78].mxu1  ;;  %4323 = vmatprep.subr.msk.bf16.mxu0 %vm4792_vm3, %v4321_v0  ;;  %v4344_v0 = vpack.c.bf16 %v2357_v55, %v2343_v54 }
 0x2dc   :  { %v5378_v29 = vpop.f32.mrb[79].mxu1  ;;  %4330 = vmatpush1.bf16.msra.mxu1 %v4329_v1  ;;  %v4357_v1 = vpack.c.bf16 %v2334_v62, %v2320_v61 }
 0x2dd   :  { %3931 = vmatmul.mubr.msk.f32.gmra.mrb[54].mxu0 %vm452_vm4, %v5364_v63  ;;  %3941 = vmatmul.mubr.msk.f32.gmra.mrb[26].mxu1 %vm452_vm4, %v5364_v63 }
 0x2de   :  { %2505 = vmatprep.mubr.f32.mxu0 %v4683_v51  ;;  %2618 = vmatprep.mubr.f32.mxu1 %v4683_v51 }
 0x2df   :  { %v5386_v22 = vpop.f32.mrb[80].mxu1  ;;  %4326 = vmatpush1.bf16.msk.msra.mxu0 %vm4792_vm3, %v4324_v16  ;;  %4333 = vmatprep.subr.msk.bf16.mxu1 %vm4792_vm3, %v4331_v17  ;;  %v2347_v16 = vld [vmem:[#allocation4 + $0x4c0] sm:$0xff]  ;;  %v2361_v17 = vld [vmem:[#allocation4 + $0x530] sm:$0xf] }
 0x2e0   :  { %v5392_v26 = vpop.f32.mrb[81].mxu1  ;;  %4336 = vmatpush1.bf16.msk.msra.mxu1 %vm4792_vm3, %v4334_v20  ;;  %4338 = vmatprep.subr.bf16.mxu0 %v4337_v33  ;;  %v4364_v20 = vpack.c.bf16 %v2361_v17, %v2347_v16  ;;  %v5555_v33 = vshrl.u32 %v3336_v35, 7 }
 0x2e1   :  { %3932 = vmatmul.mubr.msk.f32.gmra.mrb[56].mxu0 %vm452_vm4, %v5378_v29  ;;  %3942 = vmatmul.mubr.msk.f32.gmra.mrb[28].mxu1 %vm452_vm4, %v5378_v29 }
 0x2e2   :  { %2511 = vmatprep.mubr.f32.mxu0 %v4683_v51  ;;  %2624 = vmatprep.mubr.f32.mxu1 %v4683_v51  ;;  %v6052_v42 = vsub.s32 3, %v5555_v33  ;;  %v3338_v43 = vsub.s32 0, %v5555_v33  ;;  %v6051_v61 = vsub.s32 5, %v5555_v33 }
 0x2e3   :  { %v5402_v27 = vpop.f32.mrb[82].mxu1  ;;  %4348 = vmatprep.subr.bf16.mxu1 %v4347_v32 }
 0x2e4   :  { %v5404_v37 = vpop.f32.mrb[83].mxu1 }
 0x2e5   :  { %3933 = vmatmul.mubr.msk.f32.gmra.mrb[58].mxu0 %vm452_vm4, %v5374_v30  ;;  %3943 = vmatmul.mubr.msk.f32.gmra.mrb[30].mxu1 %vm452_vm4, %v5374_v30 }
 0x2e6   :  { %2517 = vmatprep.mubr.f32.mxu0 %v4683_v51  ;;  %2630 = vmatprep.mubr.f32.mxu1 %v4683_v51 }
 0x2e9   :  { %3934 = vmatmul.mubr.msk.f32.gmra.mrb[60].mxu0 %vm452_vm4, %v5392_v26  ;;  %3944 = vmatmul.mubr.msk.f32.gmra.mrb[32].mxu1 %vm452_vm4, %v5392_v26 }
 0x2ea   :  { %2523 = vmatprep.mubr.f32.mxu0 %v4683_v51  ;;  %2636 = vmatprep.mubr.f32.mxu1 %v4683_v51 }
 0x2ed   :  { %3935 = vmatmul.mubr.msk.f32.gmra.mrb[62].mxu0 %vm452_vm4, %v5386_v22  ;;  %3945 = vmatmul.mubr.msk.f32.gmra.mrb[34].mxu1 %vm452_vm4, %v5386_v22 }
 0x2ee   :  { %2529 = vmatprep.mubr.f32.mxu0 %v4683_v51  ;;  %2642 = vmatprep.mubr.f32.mxu1 %v4683_v51 }
 0x2f1   :  { %3936 = vmatmul.mubr.msk.f32.gmra.mrb[64].mxu0 %vm452_vm4, %v5404_v37  ;;  %3946 = vmatmul.mubr.msk.f32.gmra.mrb[36].mxu1 %vm452_vm4, %v5404_v37 }
 0x2f2   :  { %2535 = vmatprep.mubr.f32.mxu0 %v4683_v51  ;;  %2648 = vmatprep.mubr.f32.mxu1 %v4683_v51 }
 0x2f5   :  { %3937 = vmatmul.mubr.msk.f32.gmra.mrb[66].mxu0 %vm452_vm4, %v5402_v27  ;;  %3947 = vmatmul.mubr.msk.f32.gmra.mrb[38].mxu1 %vm452_vm4, %v5402_v27 }
 0x2f6   :  { %2719 = vmatprep.mubr.f32.mxu0 %v4683_v51  ;;  %2832 = vmatprep.mubr.f32.mxu1 %v4683_v51 }
 0x2f9   :  { %3950 = vmatmul.mubr.msk.f32.vlgmr.msra.gmra.mrb[8].mxu0 %vm452_vm4, %v5366_v7  ;;  %3960 = vmatmul.mubr.msk.f32.vlgmr.msra.gmra.mrb[44].mxu1 %vm452_vm4, %v5366_v7 }
 0x2fa   :  { %4340 = vmatpush1.bf16.msra.mxu0 %v4339_v41  ;;  %2725 = vmatprep.mubr.f32.mxu0 %v4683_v51 }
 0x2fb   :  { %2838 = vmatprep.mubr.f32.mxu1 %v4683_v51  ;;  %4343 = vmatprep.subr.msk.bf16.mxu0 %vm4792_vm3, %v4341_v47 }
 0x2fc   :  { %4350 = vmatpush1.bf16.msra.mxu1 %v4349_v56 }
 0x2fd   :  { %3951 = vmatmul.mubr.msk.f32.gmra.mrb[10].mxu0 %vm452_vm4, %v5364_v63  ;;  %3961 = vmatmul.mubr.msk.f32.gmra.mrb[46].mxu1 %vm452_vm4, %v5364_v63 }
 0x2fe   :  { %2731 = vmatprep.mubr.f32.mxu0 %v4683_v51  ;;  %2844 = vmatprep.mubr.f32.mxu1 %v4683_v51 }
 0x2ff   :  { %4346 = vmatpush1.bf16.msk.msra.mxu0 %vm4792_vm3, %v4344_v0  ;;  %4353 = vmatprep.subr.msk.bf16.mxu1 %vm4792_vm3, %v4351_v2 }
 0x300   :  { %4356 = vmatpush1.bf16.msk.msra.mxu1 %vm4792_vm3, %v4354_v4  ;;  %4358 = vmatprep.subr.bf16.mxu0 %v4357_v1 }
 0x301   :  { %3952 = vmatmul.mubr.msk.f32.gmra.mrb[12].mxu0 %vm452_vm4, %v5378_v29  ;;  %3962 = vmatmul.mubr.msk.f32.gmra.mrb[48].mxu1 %vm452_vm4, %v5378_v29 }
 0x302   :  { %2737 = vmatprep.mubr.f32.mxu0 %v4683_v51  ;;  %2850 = vmatprep.mubr.f32.mxu1 %v4683_v51 }
 0x305   :  { %3953 = vmatmul.mubr.msk.f32.gmra.mrb[14].mxu0 %vm452_vm4, %v5374_v30  ;;  %3963 = vmatmul.mubr.msk.f32.gmra.mrb[50].mxu1 %vm452_vm4, %v5374_v30 }
 0x306   :  { %2743 = vmatprep.mubr.f32.mxu0 %v4683_v51  ;;  %2856 = vmatprep.mubr.f32.mxu1 %v4683_v51 }
 0x309   :  { %3954 = vmatmul.mubr.msk.f32.gmra.mrb[16].mxu0 %vm452_vm4, %v5392_v26  ;;  %3964 = vmatmul.mubr.msk.f32.gmra.mrb[52].mxu1 %vm452_vm4, %v5392_v26 }
 0x30a   :  { %2749 = vmatprep.mubr.f32.mxu0 %v4683_v51  ;;  %2862 = vmatprep.mubr.f32.mxu1 %v4683_v51 }
 0x30d   :  { %3955 = vmatmul.mubr.msk.f32.gmra.mrb[18].mxu0 %vm452_vm4, %v5386_v22  ;;  %3965 = vmatmul.mubr.msk.f32.gmra.mrb[54].mxu1 %vm452_vm4, %v5386_v22 }
 0x30e   :  { %2755 = vmatprep.mubr.f32.mxu0 %v4683_v51  ;;  %2868 = vmatprep.mubr.f32.mxu1 %v4683_v51 }
 0x311   :  { %3956 = vmatmul.mubr.msk.f32.gmra.mrb[68].mxu0 %vm452_vm4, %v5404_v37  ;;  %3966 = vmatmul.mubr.msk.f32.gmra.mrb[56].mxu1 %vm452_vm4, %v5404_v37 }
 0x312   :  { %2761 = vmatprep.mubr.f32.mxu0 %v4683_v51  ;;  %2874 = vmatprep.mubr.f32.mxu1 %v4683_v51 }
 0x315   :  { %3957 = vmatmul.mubr.msk.f32.gmra.mrb[70].mxu0 %vm452_vm4, %v5402_v27  ;;  %3967 = vmatmul.mubr.msk.f32.gmra.mrb[58].mxu1 %vm452_vm4, %v5402_v27 }
 0x316   :  { %2945 = vmatprep.mubr.f32.mxu0 %v4683_v51  ;;  %3058 = vmatprep.mubr.f32.mxu1 %v4683_v51 }
 0x319   :  { %3970 = vmatmul.mubr.msk.f32.vlgmr.msra.gmra.mrb[20].mxu0 %vm452_vm4, %v5366_v7  ;;  %3980 = vmatmul.mubr.msk.f32.vlgmr.msra.gmra.mrb[60].mxu1 %vm452_vm4, %v5366_v7 }
 0x31a   :  { %4360 = vmatpush1.bf16.msra.mxu0 %v4359_v10  ;;  %2951 = vmatprep.mubr.f32.mxu0 %v4683_v51 }
 0x31b   :  { %3064 = vmatprep.mubr.f32.mxu1 %v4683_v51  ;;  %4363 = vmatprep.subr.msk.bf16.mxu0 %vm4792_vm3, %v4361_v5 }
 0x31d   :  { %3971 = vmatmul.mubr.msk.f32.gmra.mrb[22].mxu0 %vm452_vm4, %v5364_v63  ;;  %3981 = vmatmul.mubr.msk.f32.gmra.mrb[62].mxu1 %vm452_vm4, %v5364_v63 }
 0x31e   :  { %2957 = vmatprep.mubr.f32.mxu0 %v4683_v51  ;;  %3070 = vmatprep.mubr.f32.mxu1 %v4683_v51 }
 0x31f   :  { %4366 = vmatpush1.bf16.msk.msra.mxu0 %vm4792_vm3, %v4364_v20 }
 0x321   :  { %3972 = vmatmul.mubr.msk.f32.gmra.mrb[24].mxu0 %vm452_vm4, %v5378_v29  ;;  %3982 = vmatmul.mubr.msk.f32.gmra.mrb[64].mxu1 %vm452_vm4, %v5378_v29 }
 0x322   :  { %2963 = vmatprep.mubr.f32.mxu0 %v4683_v51  ;;  %3076 = vmatprep.mubr.f32.mxu1 %v4683_v51 }
 0x325   :  { %3973 = vmatmul.mubr.msk.f32.gmra.mrb[26].mxu0 %vm452_vm4, %v5374_v30  ;;  %3983 = vmatmul.mubr.msk.f32.gmra.mrb[66].mxu1 %vm452_vm4, %v5374_v30 }
 0x326   :  { %2969 = vmatprep.mubr.f32.mxu0 %v4683_v51  ;;  %3082 = vmatprep.mubr.f32.mxu1 %v4683_v51 }
 0x329   :  { %3974 = vmatmul.mubr.msk.f32.gmra.mrb[28].mxu0 %vm452_vm4, %v5392_v26  ;;  %3984 = vmatmul.mubr.msk.f32.gmra.mrb[68].mxu1 %vm452_vm4, %v5392_v26 }
 0x32a   :  { %2975 = vmatprep.mubr.f32.mxu0 %v4683_v51  ;;  %3088 = vmatprep.mubr.f32.mxu1 %v4683_v51 }
 0x32d   :  { %3975 = vmatmul.mubr.msk.f32.gmra.mrb[30].mxu0 %vm452_vm4, %v5386_v22  ;;  %3985 = vmatmul.mubr.msk.f32.gmra.mrb[70].mxu1 %vm452_vm4, %v5386_v22 }
 0x32e   :  { %2981 = vmatprep.mubr.f32.mxu0 %v4683_v51  ;;  %3094 = vmatprep.mubr.f32.mxu1 %v4683_v51 }
 0x331   :  { %3976 = vmatmul.mubr.msk.f32.gmra.mrb[32].mxu0 %vm452_vm4, %v5404_v37  ;;  %3986 = vmatmul.mubr.msk.f32.gmra.mrb[72].mxu1 %vm452_vm4, %v5404_v37 }
 0x332   :  { %2987 = vmatprep.mubr.f32.mxu0 %v4683_v51  ;;  %3100 = vmatprep.mubr.f32.mxu1 %v4683_v51 }
 0x335   :  { %3977 = vmatmul.mubr.msk.f32.gmra.mrb[34].mxu0 %vm452_vm4, %v5402_v27  ;;  %3987 = vmatmul.mubr.msk.f32.gmra.mrb[74].mxu1 %vm452_vm4, %v5402_v27 }
 0x336   :  { %3171 = vmatprep.mubr.f32.mxu0 %v4683_v51 }
 0x339   :  { %3990 = vmatmul.mubr.msk.f32.vlgmr.msra.gmra.mrb[36].mxu0 %vm452_vm4, %v5366_v7  ;;  %v5561_v7 = vld [vmem:[#allocation6] sm:$0xff] }
 0x33a   :  { %3177 = vmatprep.mubr.f32.mxu0 %v4683_v51  ;;  %v5590_v41 = vrot.slane %v5561_v7, %v6052_v42  ;;  %v5595_v47 = vrot.slane %v5561_v7, %v3338_v43 }
 0x33d   :  { %3991 = vmatmul.mubr.msk.f32.gmra.mrb[38].mxu0 %vm452_vm4, %v5364_v63  ;;  %v3362_v63 = vsub.s32 6, %v5555_v33 }
 0x33e   :  { %3183 = vmatprep.mubr.f32.mxu0 %v4683_v51 }
 0x341   :  { %3992 = vmatmul.mubr.msk.f32.gmra.mrb[40].mxu0 %vm452_vm4, %v5378_v29  ;;  %v5564_v29 = vrot.slane %v5561_v7, %v3362_v63 }
 0x342   :  { %3189 = vmatprep.mubr.f32.mxu0 %v4683_v51 }
 0x345   :  { %3993 = vmatmul.mubr.msk.f32.gmra.mrb[42].mxu0 %vm452_vm4, %v5374_v30 }
 0x346   :  { %3195 = vmatprep.mubr.f32.mxu0 %v4683_v51 }
 0x349   :  { %3994 = vmatmul.mubr.msk.f32.gmra.mrb[44].mxu0 %vm452_vm4, %v5392_v26 }
 0x34a   :  { %3201 = vmatprep.mubr.f32.mxu0 %v4683_v51 }
 0x34d   :  { %3995 = vmatmul.mubr.msk.f32.gmra.mrb[46].mxu0 %vm452_vm4, %v5386_v22  ;;  %v3346_v22 = vsub.s32 2, %v5555_v33 }
 0x34e   :  { %3207 = vmatprep.mubr.f32.mxu0 %v4683_v51 }
 0x351   :  { %3996 = vmatmul.mubr.msk.f32.gmra.mrb[48].mxu0 %vm452_vm4, %v5404_v37  ;;  %v3342_v37 = vsub.s32 1, %v5555_v33 }
 0x352   :  { %3213 = vmatprep.mubr.f32.mxu0 %v4683_v51 }
 0x355   :  { %3997 = vmatmul.mubr.msk.f32.gmra.mrb[50].mxu0 %vm452_vm4, %v5402_v27 }
 0x3ac   :  { %v2495_v30 = vpop.f32.mrb[52].mxu0  ;;  %v2608_v28 = vpop.f32.mrb[24].mxu1 }
 0x3ad   :  { %v4371_v21 = vadd.f32 %v2495_v30, %v5270_v12  ;;  %v2497_v32 = vpop.f32.mrb[53].mxu0  ;;  %v2610_v26 = vpop.f32.mrb[25].mxu1 }
 0x3ae   :  { %v4372_v39 = vadd.f32 %v2497_v32, %v5272_v19  ;;  %v5585_v19 = vrot.slane %v5561_v7, %v3346_v22  ;;  %v3409_v60 = vadd.f32 %v5590_v41, %v2610_v26 }
 0x3af   :  { %v3406_v62 = vadd.f32 %v4371_v21, %v5595_v47 }
 0x3b0   :  { %v2501_v51 = vpop.f32.mrb[54].mxu0  ;;  %v2614_v46 = vpop.f32.mrb[26].mxu1  ;;  %v3408_v59 = vadd.f32 %v5585_v19, %v2608_v28  ;;  %v3521_v17 = vmax.f32 %v3409_v60, 0.0 }
 0x3b1   :  { %v4373_v27 = vadd.f32 %v2501_v51, %v5280_v24  ;;  %v2503_v53 = vpop.f32.mrb[55].mxu0  ;;  %v2616_v38 = vpop.f32.mrb[27].mxu1  ;;  %v5600_v24 = vrot.slane %v5561_v7, %v3342_v37  ;;  %v5610_v2 = vadd.f32 %v5585_v19, %v2614_v46  ;;  %v3518_v35 = vmax.f32 %v3406_v62, 0.0 }
 0x3b2   :  { %v4374_v12 = vadd.f32 %v2503_v53, %v5282_v9  ;;  %v3520_v16 = vmax.f32 %v3408_v59, 0.0 }
 0x3b3   :  { %v3407_v0 = vadd.f32 %v4372_v39, %v5600_v24  ;;  %v3534_v30 = vmax.f32 %v5610_v2, 0.0 }
 0x3b4   :  { %v2507_v9 = vpop.f32.mrb[56].mxu0  ;;  %v2620_v54 = vpop.f32.mrb[28].mxu1  ;;  %v5622_v15 = vadd.f32 %v4374_v12, %v5600_v24 }
 0x3b5   :  { %v4375_v55 = vadd.f32 %v2507_v9, %v5287_v11  ;;  %v2509_v56 = vpop.f32.mrb[57].mxu0  ;;  %v2622_v57 = vpop.f32.mrb[29].mxu1  ;;  %v5613_v11 = vadd.f32 %v4373_v27, %v5595_v47  ;;  %v5625_v10 = vadd.f32 %v5585_v19, %v2620_v54  ;;  %v3519_v63 = vmax.f32 %v3407_v0, 0.0 }
 0x3b6   :  { %v4376_v58 = vadd.f32 %v2509_v56, %v5289_v23  ;;  %v5616_v23 = vadd.f32 %v5590_v41, %v2616_v38  ;;  %v5631_v20 = vadd.f32 %v5590_v41, %v2622_v57  ;;  %v3533_v53 = vmax.f32 %v5622_v15, 0.0 }
 0x3b7   :  { %v5640_v28 = vadd.f32 %v4375_v55, %v5595_v47  ;;  %v3532_v32 = vmax.f32 %v5613_v11, 0.0  ;;  %v3548_v38 = vmax.f32 %v5625_v10, 0.0 }
 0x3b8   :  { %v2513_v4 = vpop.f32.mrb[58].mxu0  ;;  %v2626_v1 = vpop.f32.mrb[30].mxu1  ;;  %v3535_v26 = vmax.f32 %v5616_v23, 0.0  ;;  %v5651_v54 = vadd.f32 %v4376_v58, %v5600_v24  ;;  %v3549_v55 = vmax.f32 %v5631_v20, 0.0 }
 0x3b9   :  { %v5619_v6 = vadd.f32 %v2513_v4, %v5294_v13  ;;  %v2515_v8 = vpop.f32.mrb[59].mxu0  ;;  %v2628_v3 = vpop.f32.mrb[31].mxu1  ;;  %v5636_v13 = vrot.slane %v5561_v7, %v6051_v61  ;;  %v3546_v57 = vmax.f32 %v5640_v28, 0.0  ;;  %v5657_v59 = vadd.f32 %v5585_v19, %v2626_v1 }
 0x3ba   :  { %v5628_v5 = vadd.f32 %v2515_v8, %v5296_v14  ;;  %v3547_v28 = vmax.f32 %v5651_v54, 0.0 }
 0x3bc   :  { %v2519_v21 = vpop.f32.mrb[60].mxu0  ;;  %v2632_v14 = vpop.f32.mrb[32].mxu1 }
 0x3bd   :  { %v4379_v39 = vadd.f32 %v2519_v21, %v5304_v18  ;;  %v3464_v51 = vadd.f32 %v5585_v19, %v2632_v14  ;;  %v2521_v46 = vpop.f32.mrb[61].mxu0  ;;  %v2634_v27 = vpop.f32.mrb[33].mxu1 }
 0x3be   :  { %v4380_v12 = vadd.f32 %v2521_v46, %v5306_v25  ;;  %v3465_v9 = vadd.f32 %v5590_v41, %v2634_v27 }
 0x3bf   :  { %v3462_v56 = vadd.f32 %v4379_v39, %v5595_v47  ;;  %v3576_v18 = vmax.f32 %v3464_v51, 0.0 }
 0x3c0   :  { %v3463_v60 = vadd.f32 %v4380_v12, %v5600_v24  ;;  %v3577_v62 = vmax.f32 %v3465_v9, 0.0  ;;  %v2525_v0 = vpop.f32.mrb[62].mxu0  ;;  %v2638_v25 = vpop.f32.mrb[34].mxu1 }
 0x3c1   :  { %v3574_v2 = vmax.f32 %v3462_v56, 0.0  ;;  %v5660_v4 = vmax.f32 %v3520_v16, %v3576_v18  ;;  %v4381_v58 = vadd.f32 %v2525_v0, %v5317_v34  ;;  %v3478_v11 = vadd.f32 %v5585_v19, %v2638_v25  ;;  %v2527_v23 = vpop.f32.mrb[63].mxu0  ;;  %v2640_v8 = vpop.f32.mrb[35].mxu1 }
 0x3c2   :  { %v3575_v15 = vmax.f32 %v3463_v60, 0.0  ;;  %v5664_v10 = vmax.f32 %v3521_v17, %v3577_v62  ;;  %v4382_v1 = vadd.f32 %v2527_v23, %v5319_v36  ;;  %v3479_v20 = vadd.f32 %v5590_v41, %v2640_v8 }
 0x3c3   :  { %v5669_v21 = vmax.f32 %v3518_v35, %v3574_v2  ;;  %v3476_v16 = vadd.f32 %v4381_v58, %v5595_v47  ;;  %v3590_v14 = vmax.f32 %v3478_v11, 0.0  ;;  %v3451_v34 = vadd.f32 %v5590_v41, %v2628_v3 }
 0x3c4   :  { %v5673_v39 = vmax.f32 %v3519_v63, %v3575_v15  ;;  %v3477_v51 = vadd.f32 %v4382_v1, %v5600_v24  ;;  %v3591_v46 = vmax.f32 %v3479_v20, 0.0  ;;  %v2531_v17 = vpop.f32.mrb[64].mxu0  ;;  %v2644_v27 = vpop.f32.mrb[36].mxu1  ;;  %v3448_v62 = vadd.f32 %v5619_v6, %v5595_v47 }
 0x3c5   :  { %v3588_v12 = vmax.f32 %v3476_v16, 0.0  ;;  %v5676_v36 = vmax.f32 %v3534_v30, %v3590_v14  ;;  %v4383_v9 = vadd.f32 %v2531_v17, %v5331_v31  ;;  %v3492_v35 = vadd.f32 %v5585_v19, %v2644_v27  ;;  %v2533_v54 = vpop.f32.mrb[65].mxu0  ;;  %v2646_v56 = vpop.f32.mrb[37].mxu1 }
 0x3c6   :  { %v3589_v18 = vmax.f32 %v3477_v51, 0.0  ;;  %v5680_v60 = vmax.f32 %v3535_v26, %v3591_v46  ;;  %v4384_v3 = vadd.f32 %v2533_v54, %v5333_v40  ;;  %v3493_v63 = vadd.f32 %v5590_v41, %v2646_v56 }
 0x3c7   :  { %v5686_v0 = vmax.f32 %v3532_v32, %v3588_v12  ;;  %v3490_v30 = vadd.f32 %v4383_v9, %v5595_v47  ;;  %v3604_v25 = vmax.f32 %v3492_v35, 0.0  ;;  %v3449_v31 = vadd.f32 %v5628_v5, %v5600_v24 }
 0x3c8   :  { %v5691_v2 = vmax.f32 %v3533_v53, %v3589_v18  ;;  %v3491_v26 = vadd.f32 %v4384_v3, %v5600_v24  ;;  %v3605_v58 = vmax.f32 %v3493_v63, 0.0  ;;  %v2537_v11 = vpop.f32.mrb[66].mxu0  ;;  %v2650_v40 = vpop.f32.mrb[38].mxu1  ;;  %v3562_v14 = vmax.f32 %v5657_v59, 0.0 }
 0x3c9   :  { %v3602_v23 = vmax.f32 %v3490_v30, 0.0  ;;  %v5694_v8 = vmax.f32 %v3548_v38, %v3604_v25  ;;  %v4385_v6 = vadd.f32 %v2537_v11, %v5345_v44  ;;  %v3506_v32 = vadd.f32 %v5585_v19, %v2650_v40  ;;  %v2539_v15 = vpop.f32.mrb[67].mxu0  ;;  %v2652_v1 = vpop.f32.mrb[39].mxu1 }
 0x3ca   :  { %v3603_v20 = vmax.f32 %v3491_v26, 0.0  ;;  %v5698_v16 = vmax.f32 %v3549_v55, %v3605_v58  ;;  %v4386_v5 = vadd.f32 %v2539_v15, %v5347_v45  ;;  %v3507_v53 = vadd.f32 %v5590_v41, %v2652_v1 }
 0x3cb   :  { %v5703_v51 = vmax.f32 %v3546_v57, %v3602_v23  ;;  %v3504_v38 = vadd.f32 %v4385_v6, %v5595_v47  ;;  %v3618_v46 = vmax.f32 %v3506_v32, 0.0  ;;  %v3563_v17 = vmax.f32 %v3451_v34, 0.0 }
 0x3cc   :  { %v5706_v44 = vmax.f32 %v3547_v28, %v3603_v20  ;;  %v3505_v19 = vadd.f32 %v4386_v5, %v5600_v24  ;;  %v3619_v27 = vmax.f32 %v3507_v53, 0.0  ;;  %v2721_v12 = vpop.f32.mrb[8].mxu0  ;;  %v2834_v55 = vpop.f32.mrb[44].mxu1  ;;  %v3560_v9 = vmax.f32 %v3448_v62, 0.0 }
 0x3cd   :  { %v3616_v35 = vmax.f32 %v3504_v38, 0.0  ;;  %v5709_v45 = vmax.f32 %v3562_v14, %v3618_v46  ;;  %v3412_v41 = vadd.f32 %v5564_v29, %v2834_v55  ;;  %v2723_v59 = vpop.f32.mrb[9].mxu0  ;;  %v2836_v57 = vpop.f32.mrb[45].mxu1  ;;  %v3561_v54 = vmax.f32 %v3449_v31, 0.0 }
 0x3ce   :  { %v3617_v56 = vmax.f32 %v3505_v19, 0.0  ;;  %v5712_v47 = vmax.f32 %v3563_v17, %v3619_v27  ;;  %v3411_v28 = vadd.f32 %v5636_v13, %v2723_v59  ;;  %v6050_v18 = vsub.s32 4, %v5555_v33 }
 0x3cf   :  { %v5715_v34 = vmax.f32 %v3560_v9, %v3616_v35  ;;  %v3366_v62 = vsub.s32 7, %v5555_v33  ;;  %v3524_v9 = vmax.f32 %v3412_v41, 0.0 }
 0x3d0   :  { %v5717_v24 = vmax.f32 %v3561_v54, %v3617_v56  ;;  %v2727_v3 = vpop.f32.mrb[10].mxu0  ;;  %v2840_v63 = vpop.f32.mrb[46].mxu1  ;;  %v5730_v58 = vrot.slane %v5561_v7, %v6050_v18 }
 0x3d1   :  { %v5722_v30 = vadd.f32 %v5564_v29, %v2840_v63  ;;  %v2729_v25 = vpop.f32.mrb[11].mxu0  ;;  %v2842_v31 = vpop.f32.mrb[47].mxu1  ;;  %v5733_v23 = vrot.slane %v5561_v7, %v3366_v62 }
 0x3d2   :  { %v5725_v26 = vadd.f32 %v5636_v13, %v2729_v25  ;;  %v3410_v20 = vadd.f32 %v5730_v58, %v2721_v12  ;;  %v3424_v17 = vadd.f32 %v5730_v58, %v2727_v3 }
 0x3d3   :  { %v3413_v14 = vadd.f32 %v5733_v23, %v2836_v57  ;;  %v3427_v27 = vadd.f32 %v5733_v23, %v2842_v31  ;;  %v3523_v57 = vmax.f32 %v3411_v28, 0.0 }
 0x3d4   :  { %v2733_v11 = vpop.f32.mrb[12].mxu0  ;;  %v2846_v40 = vpop.f32.mrb[48].mxu1  ;;  %v3522_v55 = vmax.f32 %v3410_v20, 0.0  ;;  %v3536_v25 = vmax.f32 %v3424_v17, 0.0 }
 0x3d5   :  { %v5736_v6 = vadd.f32 %v5564_v29, %v2846_v40  ;;  %v2735_v32 = vpop.f32.mrb[13].mxu0  ;;  %v2848_v15 = vpop.f32.mrb[49].mxu1  ;;  %v5754_v12 = vadd.f32 %v5730_v58, %v2733_v11  ;;  %v3525_v54 = vmax.f32 %v3413_v14, 0.0  ;;  %v3538_v40 = vmax.f32 %v5722_v30, 0.0 }
 0x3d6   :  { %v5739_v1 = vadd.f32 %v5636_v13, %v2735_v32  ;;  %v3537_v11 = vmax.f32 %v5725_v26, 0.0  ;;  %v3539_v32 = vmax.f32 %v3427_v27, 0.0  ;;  %v3441_v14 = vadd.f32 %v5733_v23, %v2848_v15 }
 0x3d7   :  { %v3550_v28 = vmax.f32 %v5754_v12, 0.0 }
 0x3d8   :  { %v5742_v5 = vpop.f32.mrb[14].mxu0  ;;  %v2852_v53 = vpop.f32.mrb[50].mxu1 }
 0x3d9   :  { %v5746_v38 = vadd.f32 %v5564_v29, %v2852_v53  ;;  %v2741_v7 = vpop.f32.mrb[15].mxu0  ;;  %v2854_v46 = vpop.f32.mrb[51].mxu1 }
 0x3da   :  { %v5750_v19 = vadd.f32 %v5636_v13, %v2741_v7 }
 0x3dc   :  { %v2745_v35 = vpop.f32.mrb[16].mxu0  ;;  %v2858_v59 = vpop.f32.mrb[52].mxu1 }
 0x3dd   :  { %v3466_v56 = vadd.f32 %v5730_v58, %v2745_v35  ;;  %v3468_v63 = vadd.f32 %v5564_v29, %v2858_v59  ;;  %v2747_v62 = vpop.f32.mrb[17].mxu0  ;;  %v2860_v3 = vpop.f32.mrb[53].mxu1 }
 0x3de   :  { %v3467_v31 = vadd.f32 %v5636_v13, %v2747_v62  ;;  %v3469_v41 = vadd.f32 %v5733_v23, %v2860_v3 }
 0x3df   :  { %v3578_v20 = vmax.f32 %v3466_v56, 0.0  ;;  %v3580_v53 = vmax.f32 %v3468_v63, 0.0 }
 0x3e0   :  { %v3579_v7 = vmax.f32 %v3467_v31, 0.0  ;;  %v3581_v35 = vmax.f32 %v3469_v41, 0.0  ;;  %v2751_v59 = vpop.f32.mrb[18].mxu0  ;;  %v2864_v18 = vpop.f32.mrb[54].mxu1  ;;  %v3552_v31 = vmax.f32 %v5736_v6, 0.0 }
 0x3e1   :  { %v5764_v17 = vmax.f32 %v3522_v55, %v3578_v20  ;;  %v5766_v30 = vmax.f32 %v3524_v9, %v3580_v53  ;;  %v3480_v62 = vadd.f32 %v5730_v58, %v2751_v59  ;;  %v3482_v3 = vadd.f32 %v5564_v29, %v2864_v18  ;;  %v2753_v26 = vpop.f32.mrb[19].mxu0  ;;  %v2866_v27 = vpop.f32.mrb[55].mxu1 }
 0x3e2   :  { %v5770_v56 = vmax.f32 %v3523_v57, %v3579_v7  ;;  %v3637_v63 = vmax.f32 %v3525_v54, %v3581_v35  ;;  %v3481_v12 = vadd.f32 %v5636_v13, %v2753_v26  ;;  %v3483_v15 = vadd.f32 %v5733_v23, %v2866_v27 }
 0x3e3   :  { %v3551_v55 = vmax.f32 %v5739_v1, 0.0  ;;  %v3592_v41 = vmax.f32 %v3480_v62, 0.0  ;;  %v3594_v9 = vmax.f32 %v3482_v3, 0.0  ;;  %v3553_v20 = vmax.f32 %v3441_v14, 0.0 }
 0x3e4   :  { %v3686_v53 = vmax.f32 %v5669_v21, %v3637_v63  ;;  %v3593_v59 = vmax.f32 %v3481_v12, 0.0  ;;  %v3595_v18 = vmax.f32 %v3483_v15, 0.0  ;;  %v2757_v61 = vpop.f32.mrb[68].mxu0  ;;  %v2870_v42 = vpop.f32.mrb[56].mxu1  ;;  %v3566_v62 = vmax.f32 %v5746_v38, 0.0 }
 0x3e5   :  { %v5777_v57 = vmax.f32 %v3536_v25, %v3592_v41  ;;  %v5779_v54 = vmax.f32 %v3538_v40, %v3594_v9  ;;  %v4387_v7 = vadd.f32 %v2757_v61, %v5356_v48  ;;  %v3496_v35 = vadd.f32 %v5564_v29, %v2870_v42  ;;  %v2759_v6 = vpop.f32.mrb[69].mxu0  ;;  %v2872_v26 = vpop.f32.mrb[57].mxu1 }
 0x3e6   :  { %3714 = vst [vmem:[%s6049_s4] sm:$0xff] %v3686_v53  ;;  %v5786_v1 = vmax.f32 %v3537_v11, %v3593_v59  ;;  %v3651_v21 = vmax.f32 %v3539_v32, %v3595_v18  ;;  %v4388_v14 = vadd.f32 %v2759_v6, %v5358_v49  ;;  %v3497_v25 = vadd.f32 %v5733_v23, %v2872_v26 }
 0x3e7   :  { %v3452_v40 = vadd.f32 %v5730_v58, %v5742_v5  ;;  %v3455_v48 = vadd.f32 %v5733_v23, %v2854_v46  ;;  %v3494_v42 = vadd.f32 %v4387_v7, %v5730_v58  ;;  %v3608_v61 = vmax.f32 %v3496_v35, 0.0 }
 0x3e8   :  { %v3693_v3 = vmax.f32 %v5686_v0, %v3651_v21  ;;  %v3495_v11 = vadd.f32 %v4388_v14, %v5636_v13  ;;  %v3609_v27 = vmax.f32 %v3497_v25, 0.0  ;;  %v2763_v32 = vpop.f32.mrb[70].mxu0  ;;  %v2876_v63 = vpop.f32.mrb[58].mxu1 }
 0x3e9   :  { %v3606_v49 = vmax.f32 %v3494_v42, 0.0  ;;  %v5797_v12 = vmax.f32 %v3552_v31, %v3608_v61  ;;  %v4389_v15 = vadd.f32 %v2763_v32, %v5360_v50  ;;  %v3510_v5 = vadd.f32 %v5564_v29, %v2876_v63  ;;  %v2765_v46 = vpop.f32.mrb[71].mxu0  ;;  %v2878_v41 = vpop.f32.mrb[59].mxu1 }
 0x3ea   :  { %3721 = vst [vmem:[%s6049_s4 + $0x38] sm:$0xff] %v3693_v3  ;;  %v3607_v38 = vmax.f32 %v3495_v11, 0.0  ;;  %v3665_v0 = vmax.f32 %v3553_v20, %v3609_v27  ;;  %v4390_v9 = vadd.f32 %v2765_v46, %v5362_v52  ;;  %v3511_v53 = vadd.f32 %v5733_v23, %v2878_v41 }
 0x3eb   :  { %6055 = vst [vmem:[#allocation9_spill] sm:$0xff] %v5797_v12  ;;  %v3567_v59 = vmax.f32 %v3455_v48, 0.0  ;;  %v5806_v18 = vmax.f32 %v3550_v28, %v3606_v49  ;;  %v3508_v31 = vadd.f32 %v4389_v15, %v5730_v58  ;;  %v3622_v50 = vmax.f32 %v3510_v5, 0.0 }
 0x3ec   :  { %v5809_v7 = vmax.f32 %v3551_v55, %v3607_v38  ;;  %v3700_v29 = vmax.f32 %v5703_v51, %v3665_v0  ;;  %v3509_v35 = vadd.f32 %v4390_v9, %v5636_v13  ;;  %v3623_v6 = vmax.f32 %v3511_v53, 0.0  ;;  %v2947_v26 = vpop.f32.mrb[20].mxu0  ;;  %v3060_v21 = vpop.f32.mrb[60].mxu1  ;;  %v5819_v51 = vld [vmem:[#allocation6 + $0x8] sm:$0x3f] }
 0x3ed   :  { %v3564_v20 = vmax.f32 %v3452_v40, 0.0  ;;  %v3620_v14 = vmax.f32 %v3508_v31, 0.0  ;;  %v5813_v52 = vmax.f32 %v3566_v62, %v3622_v50  ;;  %v2949_v23 = vpop.f32.mrb[21].mxu0  ;;  %v3062_v25 = vpop.f32.mrb[61].mxu1  ;;  %v3565_v28 = vmax.f32 %v5750_v19, 0.0 }
 0x3ee   :  { %3728 = vst [vmem:[%s6049_s4 + $0x70] sm:$0xff] %v3700_v29  ;;  %v3621_v58 = vmax.f32 %v3509_v35, 0.0  ;;  %v3679_v55 = vmax.f32 %v3567_v59, %v3623_v6  ;;  %v5829_v19 = vrot.slane %v5819_v51, %v3338_v43  ;;  %v5834_v62 = vrot.slane %v5819_v51, %v3346_v22 }
 0x3ef   :  { %6056 = vst [vmem:[#allocation10_spill] sm:$0xff] %v5813_v52  ;;  %v5821_v13 = vmax.f32 %v3564_v20, %v3620_v14  ;;  %v6058_v27 = vsub.s32 3, %v5555_v33  ;;  %v6059_v31 = vsub.s32 5, %v5555_v33 }
 0x3f0   :  { %v5823_v48 = vmax.f32 %v3565_v28, %v3621_v58  ;;  %v3707_v40 = vmax.f32 %v5715_v34, %v3679_v55  ;;  %v2953_v42 = vpop.f32.mrb[22].mxu0  ;;  %v3066_v61 = vpop.f32.mrb[62].mxu1  ;;  %v5842_v34 = vrot.slane %v5819_v51, %v3342_v37  ;;  %v3414_v22 = vadd.f32 %v5829_v19, %v2947_v26 }
 0x3f1   :  { %v2955_v3 = vpop.f32.mrb[23].mxu0  ;;  %v3068_v11 = vpop.f32.mrb[63].mxu1  ;;  %v5847_v43 = vrot.slane %v5819_v51, %v6058_v27  ;;  %v3416_v49 = vadd.f32 %v5834_v62, %v3060_v21  ;;  %v5854_v37 = vadd.f32 %v5829_v19, %v2953_v42  ;;  %v5857_v38 = vadd.f32 %v5834_v62, %v3066_v61 }
 0x3f2   :  { %6057 = vst [vmem:[#allocation11_spill] sm:$0xff] %v5823_v48  ;;  %3735 = vst [vmem:[%s6049_s4 + $0xa8] sm:$0xf] %v3707_v40  ;;  %v3415_v46 = vadd.f32 %v5842_v34, %v2949_v23  ;;  %v5860_v0 = vadd.f32 %v5842_v34, %v2955_v3  ;;  %v5868_v50 = vrot.slane %v5819_v51, %v6059_v31  ;;  %v3526_v29 = vmax.f32 %v3414_v22, 0.0 }
 0x3f3   :  { %v3417_v41 = vadd.f32 %v5847_v43, %v3062_v25  ;;  %v5863_v9 = vadd.f32 %v5847_v43, %v3068_v11  ;;  %v3528_v35 = vmax.f32 %v3416_v49, 0.0  ;;  %v3540_v58 = vmax.f32 %v5854_v37, 0.0 }
 0x3f4   :  { %v2959_v32 = vpop.f32.mrb[24].mxu0  ;;  %v3072_v63 = vpop.f32.mrb[64].mxu1  ;;  %v3527_v14 = vmax.f32 %v3415_v46, 0.0  ;;  %v3542_v55 = vmax.f32 %v5857_v38, 0.0  ;;  %v3541_v61 = vmax.f32 %v5860_v0, 0.0 }
 0x3f5   :  { %v2961_v15 = vpop.f32.mrb[25].mxu0  ;;  %v3074_v5 = vpop.f32.mrb[65].mxu1  ;;  %v5871_v6 = vadd.f32 %v5829_v19, %v2959_v32  ;;  %v5874_v26 = vadd.f32 %v5834_v62, %v3072_v63  ;;  %v3529_v23 = vmax.f32 %v3417_v41, 0.0  ;;  %v3543_v3 = vmax.f32 %v5863_v9, 0.0 }
 0x3f6   :  { %v5877_v25 = vadd.f32 %v5842_v34, %v2961_v15  ;;  %v5880_v28 = vadd.f32 %v5847_v43, %v3074_v5 }
 0x3f8   :  { %v2965_v53 = vpop.f32.mrb[26].mxu0  ;;  %v3078_v59 = vpop.f32.mrb[66].mxu1 }
 0x3f9   :  { %v2967_v21 = vpop.f32.mrb[27].mxu0  ;;  %v3080_v20 = vpop.f32.mrb[67].mxu1  ;;  %v5885_v40 = vadd.f32 %v5829_v19, %v2965_v53  ;;  %v5888_v42 = vadd.f32 %v5834_v62, %v3078_v59 }
 0x3fa   :  { %v5893_v11 = vadd.f32 %v5842_v34, %v2967_v21  ;;  %v5896_v27 = vadd.f32 %v5847_v43, %v3080_v20 }
 0x3fc   :  { %v2971_v32 = vpop.f32.mrb[28].mxu0  ;;  %v3084_v63 = vpop.f32.mrb[68].mxu1 }
 0x3fd   :  { %v3470_v15 = vadd.f32 %v5829_v19, %v2971_v32  ;;  %v3472_v5 = vadd.f32 %v5834_v62, %v3084_v63  ;;  %v2973_v46 = vpop.f32.mrb[29].mxu0  ;;  %v3086_v41 = vpop.f32.mrb[69].mxu1 }
 0x3fe   :  { %v3471_v0 = vadd.f32 %v5842_v34, %v2973_v46  ;;  %v3473_v9 = vadd.f32 %v5847_v43, %v3086_v41 }
 0x3ff   :  { %v3582_v31 = vmax.f32 %v3470_v15, 0.0  ;;  %v3584_v21 = vmax.f32 %v3472_v5, 0.0 }
 0x400   :  { %v3583_v63 = vmax.f32 %v3471_v0, 0.0  ;;  %v3585_v49 = vmax.f32 %v3473_v9, 0.0  ;;  %v2977_v22 = vpop.f32.mrb[30].mxu0  ;;  %v3090_v37 = vpop.f32.mrb[70].mxu1 }
 0x401   :  { %v3638_v52 = vmax.f32 %v3526_v29, %v3582_v31  ;;  %v3640_v38 = vmax.f32 %v3528_v35, %v3584_v21  ;;  %v3484_v46 = vadd.f32 %v5829_v19, %v2977_v22  ;;  %v3486_v41 = vadd.f32 %v5834_v62, %v3090_v37  ;;  %v2979_v48 = vpop.f32.mrb[31].mxu0  ;;  %v3092_v53 = vpop.f32.mrb[71].mxu1 }
 0x402   :  { %v3639_v12 = vmax.f32 %v3527_v14, %v3583_v63  ;;  %v3641_v59 = vmax.f32 %v3529_v23, %v3585_v49  ;;  %v3485_v15 = vadd.f32 %v5842_v34, %v2979_v48  ;;  %v3487_v5 = vadd.f32 %v5847_v43, %v3092_v53 }
 0x403   :  { %v3687_v32 = vmax.f32 %v5673_v39, %v3638_v52  ;;  %v3689_v0 = vmax.f32 %v5664_v10, %v3640_v38  ;;  %v3596_v9 = vmax.f32 %v3484_v46, 0.0  ;;  %v3598_v20 = vmax.f32 %v3486_v41, 0.0 }
 0x404   :  { %v3688_v29 = vmax.f32 %v5660_v4, %v3639_v12  ;;  %v3690_v35 = vmax.f32 %v5764_v17, %v3641_v59  ;;  %v3597_v22 = vmax.f32 %v3485_v15, 0.0  ;;  %v3599_v37 = vmax.f32 %v3487_v5, 0.0  ;;  %v2983_v31 = vpop.f32.mrb[32].mxu0  ;;  %v3096_v21 = vpop.f32.mrb[72].mxu1 }
 0x405   :  { %3715 = vst [vmem:[%s6049_s4 + $0x8] sm:$0xff] %v3687_v32  ;;  %3717 = vst [vmem:[%s6049_s4 + $0x18] sm:$0xff] %v3689_v0  ;;  %v3652_v39 = vmax.f32 %v3540_v58, %v3596_v9  ;;  %v3654_v10 = vmax.f32 %v3542_v55, %v3598_v20  ;;  %v3498_v52 = vadd.f32 %v5829_v19, %v2983_v31  ;;  %v2985_v12 = vpop.f32.mrb[33].mxu0  ;;  %v3098_v17 = vpop.f32.mrb[73].mxu1 }
 0x406   :  { %v3500_v4 = vadd.f32 %v5834_v62, %v3096_v21  ;;  %3716 = vst [vmem:[%s6049_s4 + $0x10] sm:$0xff] %v3688_v29  ;;  %3718 = vst [vmem:[%s6049_s4 + $0x20] sm:$0xff] %v3690_v35  ;;  %v3653_v48 = vmax.f32 %v3541_v61, %v3597_v22  ;;  %v3655_v14 = vmax.f32 %v3543_v3, %v3599_v37  ;;  %v6061_v61 = vmax.f32 %v5874_v26, 0.0 }
 0x407   :  { %v3499_v23 = vadd.f32 %v5842_v34, %v2985_v12  ;;  %v3501_v58 = vadd.f32 %v5847_v43, %v3098_v17  ;;  %v3694_v55 = vmax.f32 %v5691_v2, %v3652_v39  ;;  %v3696_v49 = vmax.f32 %v5680_v60, %v3654_v10 }
 0x408   :  { %v3610_v38 = vmax.f32 %v3498_v52, 0.0  ;;  %v3612_v53 = vmax.f32 %v3500_v4, 0.0  ;;  %v3695_v59 = vmax.f32 %v5676_v36, %v3653_v48  ;;  %v3697_v20 = vmax.f32 %v5777_v57, %v3655_v14  ;;  %v2989_v46 = vpop.f32.mrb[34].mxu0  ;;  %v3102_v41 = vpop.f32.mrb[74].mxu1 }
 0x409   :  { %v3611_v32 = vmax.f32 %v3499_v23, 0.0  ;;  %v3613_v63 = vmax.f32 %v3501_v58, 0.0  ;;  %3722 = vst [vmem:[%s6049_s4 + $0x40] sm:$0xff] %v3694_v55  ;;  %3724 = vst [vmem:[%s6049_s4 + $0x50] sm:$0xff] %v3696_v49  ;;  %v6060_v60 = vmax.f32 %v5871_v6, 0.0  ;;  %v3512_v57 = vadd.f32 %v5829_v19, %v2989_v46  ;;  %v2991_v15 = vpop.f32.mrb[35].mxu0 }
 0x40a   :  { %v3668_v36 = vmax.f32 %v6061_v61, %v3612_v53  ;;  %v3514_v3 = vadd.f32 %v5834_v62, %v3102_v41  ;;  %v3104_v5 = vpop.f32.mrb[75].mxu1  ;;  %3723 = vst [vmem:[%s6049_s4 + $0x48] sm:$0xff] %v3695_v59  ;;  %3725 = vst [vmem:[%s6049_s4 + $0x58] sm:$0xff] %v3697_v20  ;;  %v6062_v6 = vmax.f32 %v5877_v25, 0.0  ;;  %v6063_v26 = vmax.f32 %v5880_v28, 0.0 }
 0x40b   :  { %v3666_v2 = vmax.f32 %v6060_v60, %v3610_v38  ;;  %v3513_v19 = vadd.f32 %v5842_v34, %v2991_v15  ;;  %v3515_v62 = vadd.f32 %v5847_v43, %v3104_v5  ;;  %v3624_v22 = vmax.f32 %v3512_v57, 0.0 }
 0x40c   :  { %v3667_v0 = vmax.f32 %v6062_v6, %v3611_v32  ;;  %v3669_v9 = vmax.f32 %v6063_v26, %v3613_v63  ;;  %v3703_v35 = vmax.f32 %v5698_v16, %v3668_v36  ;;  %v3626_v37 = vmax.f32 %v3514_v3, 0.0  ;;  %v3173_v10 = vpop.f32.mrb[36].mxu0 }
 0x40d   :  { %v3701_v29 = vmax.f32 %v5706_v44, %v3666_v2  ;;  %v3625_v39 = vmax.f32 %v3513_v19, 0.0  ;;  %v3627_v25 = vmax.f32 %v3515_v62, 0.0  ;;  %v6064_v44 = vmax.f32 %v5885_v40, 0.0 }
 0x40e   :  { %v3702_v31 = vmax.f32 %v5694_v8, %v3667_v0  ;;  %v3704_v21 = vmax.f32 %v5806_v18, %v3669_v9  ;;  %3731 = vst [vmem:[%s6049_s4 + $0x88] sm:$0xff] %v3703_v35  ;;  %v6065_v34 = vmax.f32 %v5888_v42, 0.0  ;;  %v3175_v8 = vpop.f32.mrb[37].mxu0  ;;  %v6066_v18 = vmax.f32 %v5893_v11, 0.0 }
 0x40f   :  { %3729 = vst [vmem:[%s6049_s4 + $0x78] sm:$0xff] %v3701_v29  ;;  %v3680_v16 = vmax.f32 %v6064_v44, %v3624_v22  ;;  %v6067_v52 = vmax.f32 %v5896_v27, 0.0  ;;  %v3419_v40 = vadd.f32 %v5868_v50, %v3175_v8  ;;  %v6068_v27 = vsub.s32 4, %v5555_v33 }
 0x410   :  { %v3682_v43 = vmax.f32 %v6065_v34, %v3626_v37  ;;  %3730 = vst [vmem:[%s6049_s4 + $0x80] sm:$0xff] %v3702_v31  ;;  %3732 = vst [vmem:[%s6049_s4 + $0x90] sm:$0xff] %v3704_v21  ;;  %v3681_v28 = vmax.f32 %v6066_v18, %v3625_v39  ;;  %v3179_v14 = vpop.f32.mrb[38].mxu0 }
 0x411   :  { %v3683_v4 = vmax.f32 %v6067_v52, %v3627_v25  ;;  %v3708_v42 = vmax.f32 %v5717_v24, %v3680_v16  ;;  %v3181_v11 = vpop.f32.mrb[39].mxu0  ;;  %v3387_v23 = vrot.slane %v5819_v51, %v6068_v27  ;;  %v3531_v60 = vmax.f32 %v3419_v40, 0.0  ;;  %v6069_v40 = vld [vmem:[#allocation9_spill] sm:$0xff] }
 0x412   :  { %v3710_v12 = vmax.f32 %v5712_v47, %v3682_v43  ;;  %v3709_v17 = vmax.f32 %v5709_v45, %v3681_v28  ;;  %v3433_v45 = vadd.f32 %v5868_v50, %v3181_v11  ;;  %v6071_v11 = vld [vmem:[#allocation10_spill] sm:$0xff] }
 0x413   :  { %v3711_v48 = vmax.f32 %v5821_v13, %v3683_v4  ;;  %3736 = vst [vmem:[%s6049_s4 + $0xb0] sm:$0xf] %v3708_v42  ;;  %v3418_v38 = vadd.f32 %v3387_v23, %v3173_v10  ;;  %v3432_v46 = vadd.f32 %v3387_v23, %v3179_v14  ;;  %v6070_v14 = vld [vmem:[#allocation11_spill] sm:$0xff] }
 0x414   :  { %3738 = vst [vmem:[%s6049_s4 + $0xc0] sm:$0xf] %v3710_v12  ;;  %3737 = vst [vmem:[%s6049_s4 + $0xb8] sm:$0xf] %v3709_v17  ;;  %v3185_v47 = vpop.f32.mrb[40].mxu0  ;;  %v3545_v26 = vmax.f32 %v3433_v45, 0.0 }
 0x415   :  { %3739 = vst [vmem:[%s6049_s4 + $0xc8] sm:$0xf] %v3711_v48  ;;  %v3187_v24 = vpop.f32.mrb[41].mxu0  ;;  %v3530_v63 = vmax.f32 %v3418_v38, 0.0  ;;  %v3544_v15 = vmax.f32 %v3432_v46, 0.0  ;;  %v3446_v5 = vadd.f32 %v3387_v23, %v3185_v47 }
 0x416   :  { %v3447_v13 = vadd.f32 %v5868_v50, %v3187_v24 }
 0x417   :  { %v3558_v31 = vmax.f32 %v3446_v5, 0.0 }
 0x418   :  { %v3191_v58 = vpop.f32.mrb[42].mxu0  ;;  %v3559_v25 = vmax.f32 %v3447_v13, 0.0 }
 0x419   :  { %v3193_v55 = vpop.f32.mrb[43].mxu0  ;;  %v3460_v21 = vadd.f32 %v3387_v23, %v3191_v58 }
 0x41a   :  { %v3461_v49 = vadd.f32 %v5868_v50, %v3193_v55 }
 0x41b   :  { %v3572_v28 = vmax.f32 %v3460_v21, 0.0 }
 0x41c   :  { %v3197_v53 = vpop.f32.mrb[44].mxu0  ;;  %v3573_v4 = vmax.f32 %v3461_v49, 0.0 }
 0x41d   :  { %v3474_v59 = vadd.f32 %v3387_v23, %v3197_v53  ;;  %v3199_v20 = vpop.f32.mrb[45].mxu0 }
 0x41e   :  { %v3475_v32 = vadd.f32 %v5868_v50, %v3199_v20 }
 0x41f   :  { %v3586_v41 = vmax.f32 %v3474_v59, 0.0 }
 0x420   :  { %v3587_v2 = vmax.f32 %v3475_v32, 0.0  ;;  %v3203_v61 = vpop.f32.mrb[46].mxu0 }
 0x421   :  { %v3642_v36 = vmax.f32 %v3530_v63, %v3586_v41  ;;  %v3488_v33 = vadd.f32 %v3387_v23, %v3203_v61  ;;  %v3205_v57 = vpop.f32.mrb[47].mxu0 }
 0x422   :  { %v3643_v51 = vmax.f32 %v3531_v60, %v3587_v2  ;;  %v3489_v3 = vadd.f32 %v5868_v50, %v3205_v57 }
 0x423   :  { %v3691_v6 = vmax.f32 %v5770_v56, %v3642_v36  ;;  %v3600_v0 = vmax.f32 %v3488_v33, 0.0 }
 0x424   :  { %v3692_v9 = vmax.f32 %v5766_v30, %v3643_v51  ;;  %v3601_v19 = vmax.f32 %v3489_v3, 0.0  ;;  %v3209_v62 = vpop.f32.mrb[48].mxu0 }
 0x425   :  { %3719 = vst [vmem:[%s6049_s4 + $0x28] sm:$0xff] %v3691_v6  ;;  %v3656_v29 = vmax.f32 %v3544_v15, %v3600_v0  ;;  %v3502_v35 = vadd.f32 %v3387_v23, %v3209_v62  ;;  %v3211_v22 = vpop.f32.mrb[49].mxu0 }
 0x426   :  { %3720 = vst [vmem:[%s6049_s4 + $0x30] sm:$0xff] %v3692_v9  ;;  %v3657_v37 = vmax.f32 %v3545_v26, %v3601_v19  ;;  %v3503_v56 = vadd.f32 %v5868_v50, %v3211_v22 }
 0x427   :  { %v3698_v30 = vmax.f32 %v5786_v1, %v3656_v29  ;;  %v3614_v39 = vmax.f32 %v3502_v35, 0.0 }
 0x428   :  { %v3699_v10 = vmax.f32 %v5779_v54, %v3657_v37  ;;  %v3615_v44 = vmax.f32 %v3503_v56, 0.0  ;;  %v3215_v16 = vpop.f32.mrb[50].mxu0 }
 0x429   :  { %3726 = vst [vmem:[%s6049_s4 + $0x60] sm:$0xff] %v3698_v30  ;;  %v3670_v34 = vmax.f32 %v3558_v31, %v3614_v39  ;;  %v3516_v43 = vadd.f32 %v3387_v23, %v3215_v16  ;;  %v3217_v8 = vpop.f32.mrb[51].mxu0 }
 0x42a   :  { %3727 = vst [vmem:[%s6049_s4 + $0x68] sm:$0xff] %v3699_v10  ;;  %v3671_v18 = vmax.f32 %v3559_v25, %v3615_v44  ;;  %v3517_v1 = vadd.f32 %v5868_v50, %v3217_v8 }
 0x42b   :  { %v3705_v52 = vmax.f32 %v5809_v7, %v3670_v34  ;;  %v3628_v54 = vmax.f32 %v3516_v43, 0.0 }
 0x42c   :  { %v3706_v42 = vmax.f32 %v6069_v40, %v3671_v18  ;;  %v3629_v12 = vmax.f32 %v3517_v1, 0.0 }
 0x42d   :  { %3733 = vst [vmem:[%s6049_s4 + $0x98] sm:$0xff] %v3705_v52  ;;  %v3684_v17 = vmax.f32 %v3572_v28, %v3628_v54 }
 0x42e   :  { %3734 = vst [vmem:[%s6049_s4 + $0xa0] sm:$0xff] %v3706_v42  ;;  %v3685_v48 = vmax.f32 %v3573_v4, %v3629_v12 }
 0x42f   :  { %v3712_v50 = vmax.f32 %v6070_v14, %v3684_v17 }
 0x430   :  { %v3713_v45 = vmax.f32 %v6071_v11, %v3685_v48 }
 0x431   :  { %3740 = vst [vmem:[%s6049_s4 + $0xd0] sm:$0xf] %v3712_v50 }
 0x432   :  { %3741 = vst [vmem:[%s6049_s4 + $0xd8] sm:$0xf] %v3713_v45 }
 0x433   :  { %3746 = vsyncpa [#allocation3], 1 }
 0x434   :  { %3747 = vsyncpa [#allocation5], 1 }

// kernel: simple_cnn_forward.4
= control target key start
LH: loop header
LB: loop body
LE: loop exit
PB: predicated region body
PF: predicated region fallthrough
CT: control target
= control target key end

     0   :  { %s2912_s12 = smov 0   ;;  %s3728_s0 = inlined_call_operand.vmem [shape: f32[2,4,49,576], index: 0, kind: input, shape index: {}]   ;;  %s3729_s1 = inlined_call_operand.vmem [shape: f32[576,128], index: 1, kind: input, shape index: {}]   ;;  %s3730_s2 = inlined_call_operand.vmem [shape: f32[1,128], index: 2, kind: input, shape index: {}]   ;;  %s3731_s3 = inlined_call_operand.vmem [shape: f32[2,49,128], index: 3, kind: output, shape index: {}]  }
   0x1 LB: > { %s1789_s13 = sadd.s32 4294967295, %s2887_s12   ;;  %p1793_p0 = scmp.ge.s32.totalorder %s2887_s12, 1  ;;  %s2887_s12 = sphi %s2912_s12, %s13_s12  }
   0x2   : > { %p137_p1 = scmp.lt.s32.totalorder %s2887_s12, 3 }
   0x4   : > { %p138_p2 = pnand %p1793_p0, %p137_p1 }
   0x5   : > { %v187_v0 = vld [vmem:[%s3729_s1 + $0x80] sm:$0xff] (!%p138_p2)  ;;  %v188_v1 = vld [vmem:[%s3729_s1 + $0x88] sm:$0xff] (!%p138_p2)  ;;  %v189_v11 = vld [vmem:[%s3729_s1 + $0x90] sm:$0xff] (!%p138_p2)  ;;  %p2994_p3 = scmp.lt.s32.totalorder (!%p138_p2), %s1789_s13, 1  ;;  %vm2890_vm0 = vmmov (!%p138_p2), 0   ;;  %vm285_vm1 = vcmask (!%p138_p2), 523264  }
   0x6   : > { %141 = sbr.rel (%p138_p2) target bundleno = 440 (0x1b8), region = 32  ;;  %v171_v2 = vld [vmem:[%s3729_s1] sm:$0xff] (!%p138_p2)  ;;  %v2929_v3 = vpack.c.bf16 (!%p138_p2), %v188_v1, %v187_v0  ;;  %v172_v4 = vld [vmem:[%s3729_s1 + $0x8] sm:$0xff] (!%p138_p2)  ;;  %v190_v13 = vld [vmem:[%s3729_s1 + $0x98] sm:$0xff] (!%p138_p2) }
   0x7   : > { %v219_v5 = vld [vmem:[%s3729_s1 + $0x180] sm:$0xff] (!%p138_p2)  ;;  %v220_v6 = vld [vmem:[%s3729_s1 + $0x188] sm:$0xff] (!%p138_p2)  ;;  %v2940_v7 = vpack.c.bf16 (!%p138_p2), %v172_v4, %v171_v2  ;;  %v173_v14 = vld [vmem:[%s3729_s1 + $0x10] sm:$0xff] (!%p138_p2)  ;;  %v2967_v16 = vpack.c.bf16 (!%p138_p2), %v190_v13, %v189_v11 }
   0x8   : > { %v2942_v8 = vpack.c.bf16 (!%p138_p2), %v220_v6, %v219_v5  ;;  %v203_v9 = vld [vmem:[%s3729_s1 + $0x100] sm:$0xff] (!%p138_p2)  ;;  %v204_v10 = vld [vmem:[%s3729_s1 + $0x108] sm:$0xff] (!%p138_p2)  ;;  %2565 = vmatprep.subr.bf16.mxu0 (!%p138_p2), %v2929_v3  ;;  %v174_v15 = vld [vmem:[%s3729_s1 + $0x18] sm:$0xff] (!%p138_p2) }
   0x9   : > { %v2954_v12 = vpack.c.bf16 (!%p138_p2), %v204_v10, %v203_v9  ;;  %2567 = vmatpush3.bf16.msra.mxu0 (!%p138_p2), %v2940_v7  ;;  %v2969_v17 = vpack.c.bf16 (!%p138_p2), %v174_v15, %v173_v14  ;;  %v221_v18 = vld [vmem:[%s3729_s1 + $0x190] sm:$0xff] (!%p138_p2)  ;;  %v222_v19 = vld [vmem:[%s3729_s1 + $0x198] sm:$0xff] (!%p138_p2)  ;;  %v191_v23 = vld [vmem:[%s3729_s1 + $0xa0] sm:$0xff] (!%p138_p2) }
   0xa   : > { %2597 = vmatprep.subr.bf16.mxu1 (!%p138_p2), %v2942_v8  ;;  %v205_v20 = vld [vmem:[%s3729_s1 + $0x110] sm:$0xff] (!%p138_p2)  ;;  %v2981_v21 = vpack.c.bf16 (!%p138_p2), %v222_v19, %v221_v18  ;;  %v206_v22 = vld [vmem:[%s3729_s1 + $0x118] sm:$0xff] (!%p138_p2)  ;;  %v192_v24 = vld [vmem:[%s3729_s1 + $0xa8] sm:$0xff] (!%p138_p2)  ;;  %2569 = vmatprep.subr.bf16.mxu0 (!%p138_p2), %v2967_v16 }
   0xb   : > { %2599 = vmatpush3.bf16.msra.mxu1 (!%p138_p2), %v2954_v12  ;;  %v2999_v25 = vpack.c.bf16 (!%p138_p2), %v206_v22, %v205_v20  ;;  %v3001_v26 = vpack.c.bf16 (!%p138_p2), %v192_v24, %v191_v23  ;;  %v175_v27 = vld [vmem:[%s3729_s1 + $0x20] sm:$0xff] (!%p138_p2)  ;;  %v176_v28 = vld [vmem:[%s3729_s1 + $0x28] sm:$0xff] (!%p138_p2)  ;;  %v193_v35 = vld [vmem:[%s3729_s1 + $0xb0] sm:$0xff] (!%p138_p2) }
   0xc   : > { %v223_v29 = vld [vmem:[%s3729_s1 + $0x1a0] sm:$0xff] (!%p138_p2)  ;;  %2601 = vmatprep.subr.bf16.mxu1 (!%p138_p2), %v2981_v21  ;;  %v224_v30 = vld [vmem:[%s3729_s1 + $0x1a8] sm:$0xff] (!%p138_p2)  ;;  %v3023_v33 = vpack.c.bf16 (!%p138_p2), %v176_v28, %v175_v27  ;;  %v194_v36 = vld [vmem:[%s3729_s1 + $0xb8] sm:$0xff] (!%p138_p2) }
   0xd   : > { %v207_v31 = vld [vmem:[%s3729_s1 + $0x120] sm:$0xff]  ;;  %v208_v32 = vld [vmem:[%s3729_s1 + $0x128] sm:$0xff]  ;;  %2571 = vmatpush3.bf16.msra.mxu0 %v2969_v17  ;;  %v3025_v34 = vpack.c.bf16 %v224_v30, %v223_v29  ;;  %v177_v37 = vld [vmem:[%s3729_s1 + $0x30] sm:$0xff]  ;;  %v3040_v39 = vpack.c.bf16 %v194_v36, %v193_v35  ;;  %s3734_s13 = smov (!%p2994_p3, %s1789_s13), 1 }
   0xe   : > { %2573 = vmatprep.subr.bf16.mxu0 %v3001_v26  ;;  %v3038_v38 = vpack.c.bf16 %v208_v32, %v207_v31  ;;  %v178_v40 = vld [vmem:[%s3729_s1 + $0x38] sm:$0xff]  ;;  %v225_v41 = vld [vmem:[%s3729_s1 + $0x1b0] sm:$0xff]  ;;  %v195_v46 = vld [vmem:[%s3729_s1 + $0xc0] sm:$0xff]  ;;  %s2868_s18 = smul.u32 1120, %s3734_s13 }
   0xf   : > { %2603 = vmatpush3.bf16.msra.mxu1 %v2999_v25  ;;  %v226_v42 = vld [vmem:[%s3729_s1 + $0x1b8] sm:$0xff]  ;;  %v209_v44 = vld [vmem:[%s3729_s1 + $0x130] sm:$0xff]  ;;  %v196_v47 = vld [vmem:[%s3729_s1 + $0xc8] sm:$0xff]  ;;  %v3073_v48 = vpack.c.bf16 %v178_v40, %v177_v37 }
  0x10   : > { %2605 = vmatprep.subr.bf16.mxu1 %v3025_v34  ;;  %v3058_v43 = vpack.c.bf16 %v226_v42, %v225_v41  ;;  %v210_v45 = vld [vmem:[%s3729_s1 + $0x138] sm:$0xff]  ;;  %v227_v49 = vld [vmem:[%s3729_s1 + $0x1c0] sm:$0xff]  ;;  %v228_v50 = vld [vmem:[%s3729_s1 + $0x1c8] sm:$0xff]  ;;  %v3085_v52 = vpack.c.bf16 %v196_v47, %v195_v46  ;;  %s3136_s10 = scalar_lea.vmem %s3728_s0, %s2868_s18 }
  0x11   : > { %2575 = vmatpush3.bf16.msra.mxu0 %v3023_v33  ;;  %v3083_v51 = vpack.c.bf16 %v210_v45, %v209_v44  ;;  %v179_v53 = vld [vmem:[%s3729_s1 + $0x40] sm:$0xff]  ;;  %v180_v54 = vld [vmem:[%s3729_s1 + $0x48] sm:$0xff]  ;;  %v3098_v56 = vpack.c.bf16 %v228_v50, %v227_v49  ;;  %v197_v58 = vld [vmem:[%s3729_s1 + $0xd0] sm:$0xff] }
  0x12   : > { %2577 = vmatprep.subr.bf16.mxu0 %v3040_v39  ;;  %v211_v55 = vld [vmem:[%s3729_s1 + $0x140] sm:$0xff]  ;;  %v212_v57 = vld [vmem:[%s3729_s1 + $0x148] sm:$0xff]  ;;  %v198_v59 = vld [vmem:[%s3729_s1 + $0xd8] sm:$0xff]  ;;  %v3116_v62 = vpack.c.bf16 %v180_v54, %v179_v53 }
  0x13   : > { %2607 = vmatpush3.bf16.msra.mxu1 %v3038_v38  ;;  %v229_v60 = vld [vmem:[%s3729_s1 + $0x1d0] sm:$0xff]  ;;  %v230_v61 = vld [vmem:[%s3729_s1 + $0x1d8] sm:$0xff]  ;;  %v3120_v63 = vpack.c.bf16 %v212_v57, %v211_v55  ;;  %v3122_v0 = vpack.c.bf16 %v198_v59, %v197_v58  ;;  %v199_v9 = vld [vmem:[%s3729_s1 + $0xe0] sm:$0xff]  ;;  %v2889_v55 = vmov 0.0|0.0  }
  0x14   : > { %2609 = vmatprep.subr.bf16.mxu1 %v3058_v43  ;;  %v181_v1 = vld [vmem:[%s3729_s1 + $0x50] sm:$0xff]  ;;  %v182_v2 = vld [vmem:[%s3729_s1 + $0x58] sm:$0xff]  ;;  %v3139_v5 = vpack.c.bf16 %v230_v61, %v229_v60  ;;  %v200_v10 = vld [vmem:[%s3729_s1 + $0xe8] sm:$0xff] }
  0x15   : > { %2579 = vmatpush3.bf16.msra.mxu0 %v3073_v48  ;;  %v213_v4 = vld [vmem:[%s3729_s1 + $0x150] sm:$0xff]  ;;  %v214_v6 = vld [vmem:[%s3729_s1 + $0x158] sm:$0xff]  ;;  %v231_v11 = vld [vmem:[%s3729_s1 + $0x1e0] sm:$0xff]  ;;  %v3157_v14 = vpack.c.bf16 %v182_v2, %v181_v1  ;;  %v3167_v20 = vpack.c.bf16 %v200_v10, %v199_v9 }
  0x16   : > { %2581 = vmatprep.subr.bf16.mxu0 %v3085_v52  ;;  %v232_v13 = vld [vmem:[%s3729_s1 + $0x1e8] sm:$0xff]  ;;  %v183_v15 = vld [vmem:[%s3729_s1 + $0x60] sm:$0xff]  ;;  %v3165_v19 = vpack.c.bf16 %v214_v6, %v213_v4  ;;  %v201_v28 = vld [vmem:[%s3729_s1 + $0xf0] sm:$0xff] }
  0x17   : > { %2611 = vmatpush3.bf16.msra.mxu1 %v3083_v51  ;;  %v245_v18 = vld [vmem:[%s3136_s10 + $0x8] sm:$0xff]  ;;  %v215_v23 = vld [vmem:[%s3729_s1 + $0x160] sm:$0xff]  ;;  %v3179_v27 = vpack.c.bf16 %v232_v13, %v231_v11  ;;  %v202_v29 = vld [vmem:[%s3729_s1 + $0xf8] sm:$0xff] }
  0x18   : > { %2613 = vmatprep.subr.bf16.mxu1 %v3098_v56  ;;  %v184_v22 = vld [vmem:[%s3729_s1 + $0x68] sm:$0xff]  ;;  %371 = vmatprep.mubr.f32.mxu0 %v245_v18  ;;  %v247_v30 = vld [vmem:[%s3136_s10 + $0x18] sm:$0xff]  ;;  %v233_v31 = vld [vmem:[%s3729_s1 + $0x1f0] sm:$0xff]  ;;  %v3201_v37 = vpack.c.bf16 %v202_v29, %v201_v28 }
  0x19   : > { %2583 = vmatpush3.bf16.msra.mxu0 %v3116_v62  ;;  %v216_v24 = vld [vmem:[%s3729_s1 + $0x168] sm:$0xff]  ;;  %v234_v32 = vld [vmem:[%s3729_s1 + $0x1f8] sm:$0xff]  ;;  %471 = vmatprep.mubr.f32.mxu1 %v247_v30  ;;  %v3195_v35 = vpack.c.bf16 %v184_v22, %v183_v15  ;;  %v185_v40 = vld [vmem:[%s3729_s1 + $0x70] sm:$0xff] }
  0x1a   : > { %2585 = vmatprep.subr.bf16.mxu0 %v3122_v0  ;;  %v3199_v36 = vpack.c.bf16 %v216_v24, %v215_v23  ;;  %v186_v41 = vld [vmem:[%s3729_s1 + $0x78] sm:$0xff]  ;;  %v3210_v42 = vpack.c.bf16 %v234_v32, %v233_v31  ;;  %v217_v44 = vld [vmem:[%s3729_s1 + $0x170] sm:$0xff]  ;;  %v235_v49 = vld [vmem:[%s3729_s1 + $0x200] sm:$0xff] }
  0x1b   : > { %2615 = vmatpush3.bf16.msra.mxu1 %v3120_v63  ;;  %v218_v45 = vld [vmem:[%s3729_s1 + $0x178] sm:$0xff]  ;;  %v3219_v46 = vpack.c.bf16 %v186_v41, %v185_v40  ;;  %v236_v50 = vld [vmem:[%s3729_s1 + $0x208] sm:$0xff]  ;;  %v244_v53 = vld [vmem:[%s3136_s10] sm:$0xff] }
  0x1c   : > { %2617 = vmatprep.subr.bf16.mxu1 %v3139_v5  ;;  %v3223_v47 = vpack.c.bf16 %v218_v45, %v217_v44  ;;  %v3234_v54 = vpack.c.bf16 %v236_v50, %v235_v49  ;;  %v246_v57 = vld [vmem:[%s3136_s10 + $0x10] sm:$0xff]  ;;  %v238_v60 = vld [vmem:[%s3729_s1 + $0x218] sm:$0xff]  ;;  %v252_v61 = vld [vmem:[%s3136_s10 + $0x40] sm:$0xff] }
  0x1d   : > { %2587 = vmatpush3.bf16.msra.mxu0 %v3157_v14  ;;  %v250_v58 = vld [vmem:[%s3136_s10 + $0x30] sm:$0xff]  ;;  %v249_v1 = vld [vmem:[%s3136_s10 + $0x28] sm:$0xff]  ;;  %v251_v2 = vld [vmem:[%s3136_s10 + $0x38] sm:$0xff] }
  0x1e   : > { %2589 = vmatprep.subr.bf16.mxu0 %v3167_v20  ;;  %v237_v59 = vld [vmem:[%s3729_s1 + $0x210] sm:$0xff]  ;;  %v255_v4 = vld [vmem:[%s3136_s10 + $0x58] sm:$0xff]  ;;  %v257_v9 = vld [vmem:[%s3136_s10 + $0x68] sm:$0xff] }
  0x1f   : > { %2619 = vmatpush3.bf16.msra.mxu1 %v3165_v19  ;;  %v3253_v6 = vpack.c.bf16 %v238_v60, %v237_v59  ;;  %v239_v10 = vld [vmem:[%s3729_s1 + $0x220] sm:$0xff]  ;;  %v240_v11 = vld [vmem:[%s3729_s1 + $0x228] sm:$0xff]  ;;  %v254_v13 = vld [vmem:[%s3136_s10 + $0x50] sm:$0xff] }
  0x20   : > { %2621 = vmatprep.subr.bf16.mxu1 %v3179_v27  ;;  %v256_v15 = vld [vmem:[%s3136_s10 + $0x60] sm:$0xff]  ;;  %v262_v22 = vld [vmem:[%s3136_s10 + $0x90] sm:$0xff]  ;;  %v3271_v23 = vpack.c.bf16 %v240_v11, %v239_v10  ;;  %v242_v28 = vld [vmem:[%s3729_s1 + $0x238] sm:$0xff] }
  0x21   : > { %2591 = vmatpush3.bf16.msra.mxu0 %v3195_v35  ;;  %v260_v18 = vld [vmem:[%s3136_s10 + $0x80] sm:$0xff]  ;;  %v241_v24 = vld [vmem:[%s3729_s1 + $0x230] sm:$0xff]  ;;  %v259_v29 = vld [vmem:[%s3136_s10 + $0x78] sm:$0xff] }
  0x22   : > { %2593 = vmatprep.subr.bf16.mxu0 %v3201_v37  ;;  %v261_v30 = vld [vmem:[%s3136_s10 + $0x88] sm:$0xff]  ;;  %v267_v32 = vld [vmem:[%s3136_s10 + $0xb8] sm:$0xff]  ;;  %v3287_v40 = vpack.c.bf16 %v242_v28, %v241_v24  ;;  %v264_v41 = vld [vmem:[%s3136_s10 + $0xa0] sm:$0xff] }
  0x23   : > { %2623 = vmatpush3.bf16.msra.mxu1 %v3199_v36  ;;  %v265_v31 = vld [vmem:[%s3136_s10 + $0xa8] sm:$0xff]  ;;  %v266_v44 = vld [vmem:[%s3136_s10 + $0xb0] sm:$0xff]  ;;  %v272_v49 = vld [vmem:[%s3136_s10 + $0xe0] sm:$0xff] }
  0x24   : > { %2625 = vmatprep.subr.bf16.mxu1 %v3210_v42  ;;  %v270_v45 = vld [vmem:[%s3136_s10 + $0xd0] sm:$0xff]  ;;  %v269_v50 = vld [vmem:[%s3136_s10 + $0xc8] sm:$0xff]  ;;  %v276_v60 = vld [vmem:[%s3136_s10 + $0x100] sm:$0x1] }
  0x25   : > { %2595 = vmatpush3.bf16.msra.mxu0 %v3219_v46  ;;  %v274_v59 = vld [vmem:[%s3136_s10 + $0xf0] sm:$0x1]  ;;  %v1810_v10 = vld [vmem:[%s3136_s10 + $0x148] sm:$0xff]  ;;  %v1820_v24 = vld [vmem:[%s3136_s10 + $0x198] sm:$0xff] }
  0x26   : > { %2628 = vmatprep.subr.bf16.mxu0 %v2889_v55  ;;  %v258_v11 = vld [vmem:[%s3136_s10 + $0x70] sm:$0xff]  ;;  %v268_v28 = vld [vmem:[%s3136_s10 + $0xc0] sm:$0xff] }
  0x27   : > { %2627 = vmatpush3.bf16.msra.mxu1 %v3223_v47 }
  0x28   : > { %2641 = vmatprep.subr.bf16.mxu1 %v2929_v3  ;;  %372 = vmatmul.mubr.f32.vlgmr.msra.gmra.mrb[0].mxu0 %v244_v53  ;;  %v271_v53 = vld [vmem:[%s3136_s10 + $0xd8] sm:$0xff] }
  0x29   : > { %2630 = vmatpush3.bf16.msra.mxu0 %v3234_v54  ;;  %376 = vmatprep.mubr.f32.mxu0 %v250_v58  ;;  %v277_v58 = vld [vmem:[%s3136_s10 + $0x108] sm:$0x1] }
  0x2a   : > { %472 = vmatmul.mubr.f32.vlgmr.msra.gmra.mrb[0].mxu1 %v246_v57  ;;  %2631 = vmatprep.subr.bf16.mxu0 %v2889_v55  ;;  %v275_v57 = vld [vmem:[%s3136_s10 + $0xf8] sm:$0x1] }
  0x2b   : > { %2643 = vmatpush3.bf16.msra.mxu1 %v2940_v7  ;;  %476 = vmatprep.mubr.f32.mxu1 %v252_v61  ;;  %v1805_v61 = vld [vmem:[%s3136_s10 + $0x120] sm:$0xff] }
  0x2c   : > { %2645 = vmatprep.subr.bf16.mxu1 %v2967_v16  ;;  %377 = vmatmul.mubr.f32.gmra.mrb[2].mxu0 %v249_v1  ;;  %v2891_v1 = vmov 0.0  }
  0x2d   : > { %381 = vmatprep.mubr.f32.mxu0 %v255_v4  ;;  %2633 = vmatpush3.bf16.msra.mxu0 %v3253_v6  ;;  %v253_v4 = vld [vmem:[%s3136_s10 + $0x48] sm:$0xff] }
  0x2e   : > { %477 = vmatmul.mubr.f32.gmra.mrb[2].mxu1 %v251_v2  ;;  %2634 = vmatprep.subr.bf16.mxu0 %v2889_v55  ;;  %v248_v2 = vld [vmem:[%s3136_s10 + $0x20] sm:$0xff] }
  0x2f   : > { %2647 = vmatpush3.bf16.msra.mxu1 %v2969_v17  ;;  %481 = vmatprep.mubr.f32.mxu1 %v257_v9  ;;  %v1804_v9 = vld [vmem:[%s3136_s10 + $0x118] sm:$0xff] }
  0x30   : > { %2649 = vmatprep.subr.bf16.mxu1 %v3001_v26  ;;  %382 = vmatmul.mubr.f32.gmra.mrb[4].mxu0 %v254_v13  ;;  %v1809_v13 = vld [vmem:[%s3136_s10 + $0x140] sm:$0xff] }
  0x31   : > { %386 = vmatprep.mubr.f32.mxu0 %v260_v18  ;;  %2636 = vmatpush3.bf16.msra.mxu0 %v3271_v23  ;;  %v263_v18 = vld [vmem:[%s3136_s10 + $0x98] sm:$0xff] }
  0x32   : > { %482 = vmatmul.mubr.f32.gmra.mrb[4].mxu1 %v256_v15  ;;  %2637 = vmatprep.subr.bf16.mxu0 %v2889_v55  ;;  %v1815_v15 = vld [vmem:[%s3136_s10 + $0x170] sm:$0xff] }
  0x33   : > { %2651 = vmatpush3.bf16.msra.mxu1 %v3023_v33  ;;  %486 = vmatprep.mubr.f32.mxu1 %v262_v22  ;;  %v1814_v22 = vld [vmem:[%s3136_s10 + $0x168] sm:$0xff] }
  0x34   : > { %2653 = vmatprep.subr.bf16.mxu1 %v3040_v39  ;;  %387 = vmatmul.mubr.f32.gmra.mrb[6].mxu0 %v259_v29  ;;  %v1819_v29 = vld [vmem:[%s3136_s10 + $0x190] sm:$0xff] }
  0x35   : > { %391 = vmatprep.mubr.f32.mxu0 %v265_v31  ;;  %2639 = vmatpush3.bf16.msra.mxu0 %v3287_v40  ;;  %v273_v31 = vld [vmem:[%s3136_s10 + $0xe8] sm:$0xff] }
  0x36   : > { %487 = vmatmul.mubr.f32.gmra.mrb[6].mxu1 %v261_v30  ;;  %2673 = vmatprep.subr.bf16.mxu0 %v2942_v8  ;;  %v1825_v30 = vld [vmem:[%s3136_s10 + $0x1c0] sm:$0xff] }
  0x37   : > { %2655 = vmatpush3.bf16.msra.mxu1 %v3073_v48  ;;  %491 = vmatprep.mubr.f32.mxu1 %v267_v32  ;;  %v1824_v32 = vld [vmem:[%s3136_s10 + $0x1b8] sm:$0xff] }
  0x38   : > { %2657 = vmatprep.subr.bf16.mxu1 %v3085_v52  ;;  %392 = vmatmul.mubr.f32.gmra.mrb[8].mxu0 %v264_v41  ;;  %v1830_v41 = vld [vmem:[%s3136_s10 + $0x1e8] sm:$0xff] }
  0x39   : > { %396 = vmatprep.mubr.f32.mxu0 %v270_v45  ;;  %v1829_v45 = vld [vmem:[%s3136_s10 + $0x1e0] sm:$0xff] }
  0x3a   : > { %492 = vmatmul.mubr.f32.gmra.mrb[8].mxu1 %v266_v44  ;;  %v278_v44 = vld [vmem:[%s3136_s10 + $0x110] sm:$0x1] }
  0x3b   : > { %2659 = vmatpush3.bf16.msra.mxu1 %v3116_v62  ;;  %496 = vmatprep.mubr.f32.mxu1 %v272_v49  ;;  %v1835_v49 = vld [vmem:[%s3136_s10 + $0x210] sm:$0x1] }
  0x3c   : > { %2661 = vmatprep.subr.bf16.mxu1 %v3122_v0  ;;  %397 = vmatmul.mubr.f32.gmra.mrb[10].mxu0 %v269_v50  ;;  %v1807_v50 = vld [vmem:[%s3136_s10 + $0x130] sm:$0xff] }
  0x3d   : > { %401 = vmatprep.mubr.f32.mxu0 %v275_v57  ;;  %v1806_v57 = vld [vmem:[%s3136_s10 + $0x128] sm:$0xff] }
  0x3e   : > { %497 = vmatmul.mubr.f32.gmra.mrb[10].mxu1 %v271_v53  ;;  %v1834_v53 = vld [vmem:[%s3136_s10 + $0x208] sm:$0x1] }
  0x3f   : > { %2663 = vmatpush3.bf16.msra.mxu1 %v3157_v14  ;;  %501 = vmatprep.mubr.f32.mxu1 %v277_v58  ;;  %v1812_v58 = vld [vmem:[%s3136_s10 + $0x158] sm:$0xff] }
  0x40   : > { %2665 = vmatprep.subr.bf16.mxu1 %v3167_v20  ;;  %402 = vmatmul.mubr.f32.gmra.mrb[12].mxu0 %v274_v59  ;;  %v1808_v59 = vld [vmem:[%s3136_s10 + $0x138] sm:$0xff] }
  0x41   : > { %2432 = vmatprep.mubr.msk.f32.mxu0 %vm2890_vm0, %v2891_v1 }
  0x42   : > { %502 = vmatmul.mubr.f32.gmra.mrb[12].mxu1 %v276_v60  ;;  %v1811_v60 = vld [vmem:[%s3136_s10 + $0x150] sm:$0xff] }
  0x43   : > { %2667 = vmatpush3.bf16.msra.mxu1 %v3195_v35  ;;  %735 = vmatprep.mubr.f32.mxu1 %v1805_v61  ;;  %v1817_v61 = vld [vmem:[%s3136_s10 + $0x180] sm:$0xff] }
  0x44   : > { %2669 = vmatprep.subr.bf16.mxu1 %v3201_v37  ;;  %2433 = vmatmul.mubr.msk.f32.vlgmr.msra.gmra.mrb[14].mxu0 %vm285_vm1, %v248_v2  ;;  %v1813_v2 = vld [vmem:[%s3136_s10 + $0x160] sm:$0xff] }
  0x45   : > { %2675 = vmatpush3.bf16.msra.mxu0 %v2954_v12  ;;  %2435 = vmatprep.mubr.msk.f32.mxu0 %vm2890_vm0, %v2891_v1 }
  0x46   : > { %2677 = vmatprep.subr.bf16.mxu0 %v2981_v21 }
  0x47   : > { %2671 = vmatpush3.bf16.msra.mxu1 %v3219_v46 }
  0x48   : > { %2704 = vmatprep.subr.bf16.mxu1 %v2889_v55  ;;  %2436 = vmatmul.mubr.msk.f32.gmra.mrb[16].mxu0 %vm285_vm1, %v253_v4  ;;  %v1816_v4 = vld [vmem:[%s3136_s10 + $0x178] sm:$0xff] }
  0x49   : > { %2679 = vmatpush3.bf16.msra.mxu0 %v2999_v25  ;;  %2438 = vmatprep.mubr.msk.f32.mxu0 %vm2890_vm0, %v2891_v1 }
  0x4a   : > { %736 = vmatmul.mubr.f32.vlgmr.msra.gmra.mrb[14].mxu1 %v1804_v9  ;;  %2681 = vmatprep.subr.bf16.mxu0 %v3025_v34  ;;  %v1822_v9 = vld [vmem:[%s3136_s10 + $0x1a8] sm:$0xff] }
  0x4b   : > { %740 = vmatprep.mubr.f32.mxu1 %v1810_v10  ;;  %2706 = vmatpush3.bf16.msra.mxu1 %v3234_v54  ;;  %v1818_v10 = vld [vmem:[%s3136_s10 + $0x188] sm:$0xff] }
  0x4c   : > { %2439 = vmatmul.mubr.msk.f32.gmra.mrb[18].mxu0 %vm285_vm1, %v258_v11  ;;  %2707 = vmatprep.subr.bf16.mxu1 %v2889_v55  ;;  %v1821_v11 = vld [vmem:[%s3136_s10 + $0x1a0] sm:$0xff] }
  0x4d   : > { %2683 = vmatpush3.bf16.msra.mxu0 %v3038_v38  ;;  %2441 = vmatprep.mubr.msk.f32.mxu0 %vm2890_vm0, %v2891_v1 }
  0x4e   : > { %741 = vmatmul.mubr.f32.gmra.mrb[16].mxu1 %v1809_v13  ;;  %2685 = vmatprep.subr.bf16.mxu0 %v3058_v43  ;;  %v1827_v13 = vld [vmem:[%s3136_s10 + $0x1d0] sm:$0xff] }
  0x4f   : > { %745 = vmatprep.mubr.f32.mxu1 %v1815_v15  ;;  %2709 = vmatpush3.bf16.msra.mxu1 %v3253_v6  ;;  %v1823_v15 = vld [vmem:[%s3136_s10 + $0x1b0] sm:$0xff] }
  0x50   : > { %2442 = vmatmul.mubr.msk.f32.gmra.mrb[20].mxu0 %vm285_vm1, %v263_v18  ;;  %2710 = vmatprep.subr.bf16.mxu1 %v2889_v55  ;;  %v1826_v18 = vld [vmem:[%s3136_s10 + $0x1c8] sm:$0xff] }
  0x51   : > { %2687 = vmatpush3.bf16.msra.mxu0 %v3083_v51  ;;  %2444 = vmatprep.mubr.msk.f32.mxu0 %vm2890_vm0, %v2891_v1 }
  0x52   : > { %746 = vmatmul.mubr.f32.gmra.mrb[18].mxu1 %v1814_v22  ;;  %2689 = vmatprep.subr.bf16.mxu0 %v3098_v56  ;;  %v1832_v22 = vld [vmem:[%s3136_s10 + $0x1f8] sm:$0xff] }
  0x53   : > { %750 = vmatprep.mubr.f32.mxu1 %v1820_v24  ;;  %2712 = vmatpush3.bf16.msra.mxu1 %v3271_v23  ;;  %v1828_v24 = vld [vmem:[%s3136_s10 + $0x1d8] sm:$0xff] }
  0x54   : > { %2445 = vmatmul.mubr.msk.f32.gmra.mrb[22].mxu0 %vm285_vm1, %v268_v28  ;;  %2713 = vmatprep.subr.bf16.mxu1 %v2889_v55  ;;  %v1831_v28 = vld [vmem:[%s3136_s10 + $0x1f0] sm:$0xff] }
  0x55   : > { %2691 = vmatpush3.bf16.msra.mxu0 %v3120_v63  ;;  %2447 = vmatprep.mubr.msk.f32.mxu0 %vm2890_vm0, %v2891_v1 }
  0x56   : > { %751 = vmatmul.mubr.f32.gmra.mrb[20].mxu1 %v1819_v29  ;;  %2693 = vmatprep.subr.bf16.mxu0 %v3139_v5  ;;  %v1837_v29 = vld [vmem:[%s3136_s10 + $0x220] sm:$0x1] }
  0x57   : > { %755 = vmatprep.mubr.f32.mxu1 %v1825_v30  ;;  %2715 = vmatpush3.bf16.msra.mxu1 %v3287_v40  ;;  %v1833_v30 = vld [vmem:[%s3136_s10 + $0x200] sm:$0xff] }
  0x58   : > { %2448 = vmatmul.mubr.msk.f32.gmra.mrb[24].mxu0 %vm285_vm1, %v273_v31  ;;  %2749 = vmatprep.subr.bf16.mxu1 %v2942_v8  ;;  %v1836_v31 = vld [vmem:[%s3136_s10 + $0x218] sm:$0x1] }
  0x59   : > { %2695 = vmatpush3.bf16.msra.mxu0 %v3165_v19  ;;  %2450 = vmatprep.mubr.msk.f32.mxu0 %vm2890_vm0, %v2891_v1 }
  0x5a   : > { %756 = vmatmul.mubr.f32.gmra.mrb[22].mxu1 %v1824_v32  ;;  %2697 = vmatprep.subr.bf16.mxu0 %v3179_v27  ;;  %v1847_v32 = vld [vmem:[%s3136_s10 + $0x238] sm:$0xff] }
  0x5b   : > { %760 = vmatprep.mubr.f32.mxu1 %v1830_v41  ;;  %v1838_v41 = vld [vmem:[%s3136_s10 + $0x228] sm:$0x1] }
  0x5c   : > { %2451 = vmatmul.mubr.msk.f32.gmra.mrb[26].mxu0 %vm285_vm1, %v278_v44  ;;  %v1849_v44 = vld [vmem:[%s3136_s10 + $0x248] sm:$0xff] }
  0x5d   : > { %2699 = vmatpush3.bf16.msra.mxu0 %v3199_v36  ;;  %835 = vmatprep.mubr.f32.mxu0 %v1807_v50  ;;  %v1848_v50 = vld [vmem:[%s3136_s10 + $0x240] sm:$0xff] }
  0x5e   : > { %761 = vmatmul.mubr.f32.gmra.mrb[24].mxu1 %v1829_v45  ;;  %2701 = vmatprep.subr.bf16.mxu0 %v3210_v42  ;;  %v1846_v45 = vld [vmem:[%s3136_s10 + $0x230] sm:$0xff] }
  0x5f   : > { %765 = vmatprep.mubr.f32.mxu1 %v1835_v49  ;;  %v1852_v49 = vld [vmem:[%s3136_s10 + $0x260] sm:$0xff] }
  0x61   : > { %2703 = vmatpush3.bf16.msra.mxu0 %v3223_v47 }
  0x62   : > { %766 = vmatmul.mubr.f32.gmra.mrb[26].mxu1 %v1834_v53  ;;  %2717 = vmatprep.subr.bf16.mxu0 %v2929_v3  ;;  %v1854_v53 = vld [vmem:[%s3136_s10 + $0x270] sm:$0xff] }
  0x63   : > { %2469 = vmatprep.mubr.msk.f32.mxu1 %vm2890_vm0, %v2891_v1 }
  0x64   : > { %836 = vmatmul.mubr.f32.vlgmr.msra.gmra.mrb[28].mxu0 %v1806_v57  ;;  %v1851_v57 = vld [vmem:[%s3136_s10 + $0x258] sm:$0xff] }
  0x65   : > { %2719 = vmatpush3.bf16.msra.mxu0 %v2940_v7  ;;  %840 = vmatprep.mubr.f32.mxu0 %v1812_v58  ;;  %v1857_v58 = vld [vmem:[%s3136_s10 + $0x288] sm:$0xff] }
  0x66   : > { %2470 = vmatmul.mubr.msk.f32.vlgmr.msra.gmra.mrb[28].mxu1 %vm285_vm1, %v1808_v59  ;;  %2721 = vmatprep.subr.bf16.mxu0 %v2967_v16  ;;  %v1853_v59 = vld [vmem:[%s3136_s10 + $0x268] sm:$0xff] }
  0x67   : > { %2751 = vmatpush3.bf16.msra.mxu1 %v2954_v12  ;;  %2472 = vmatprep.mubr.msk.f32.mxu1 %vm2890_vm0, %v2891_v1 }
  0x68   : > { %841 = vmatmul.mubr.f32.gmra.mrb[30].mxu0 %v1811_v60  ;;  %2753 = vmatprep.subr.bf16.mxu1 %v2981_v21  ;;  %v1856_v60 = vld [vmem:[%s3136_s10 + $0x280] sm:$0xff] }
  0x69   : > { %2723 = vmatpush3.bf16.msra.mxu0 %v2969_v17  ;;  %845 = vmatprep.mubr.f32.mxu0 %v1817_v61  ;;  %v1862_v61 = vld [vmem:[%s3136_s10 + $0x2b0] sm:$0xff] }
  0x6a   : > { %2725 = vmatprep.subr.bf16.mxu0 %v3001_v26  ;;  %2473 = vmatmul.mubr.msk.f32.gmra.mrb[30].mxu1 %vm285_vm1, %v1813_v2  ;;  %v1861_v2 = vld [vmem:[%s3136_s10 + $0x2a8] sm:$0xff] }
  0x6b   : > { %2755 = vmatpush3.bf16.msra.mxu1 %v2999_v25  ;;  %2475 = vmatprep.mubr.msk.f32.mxu1 %vm2890_vm0, %v2891_v1 }
  0x6c   : > { %846 = vmatmul.mubr.f32.gmra.mrb[32].mxu0 %v1816_v4  ;;  %2757 = vmatprep.subr.bf16.mxu1 %v3025_v34  ;;  %v1867_v4 = vld [vmem:[%s3136_s10 + $0x2d8] sm:$0xff] }
  0x6d   : > { %2727 = vmatpush3.bf16.msra.mxu0 %v3023_v33  ;;  %850 = vmatprep.mubr.f32.mxu0 %v1822_v9  ;;  %v1866_v9 = vld [vmem:[%s3136_s10 + $0x2d0] sm:$0xff] }
  0x6e   : > { %2729 = vmatprep.subr.bf16.mxu0 %v3040_v39  ;;  %2476 = vmatmul.mubr.msk.f32.gmra.mrb[32].mxu1 %vm285_vm1, %v1818_v10  ;;  %v1872_v10 = vld [vmem:[%s3136_s10 + $0x300] sm:$0xff] }
  0x6f   : > { %2759 = vmatpush3.bf16.msra.mxu1 %v3038_v38  ;;  %2478 = vmatprep.mubr.msk.f32.mxu1 %vm2890_vm0, %v2891_v1 }
  0x70   : > { %851 = vmatmul.mubr.f32.gmra.mrb[34].mxu0 %v1821_v11  ;;  %2761 = vmatprep.subr.bf16.mxu1 %v3058_v43  ;;  %v1871_v11 = vld [vmem:[%s3136_s10 + $0x2f8] sm:$0xff] }
  0x71   : > { %2731 = vmatpush3.bf16.msra.mxu0 %v3073_v48  ;;  %855 = vmatprep.mubr.f32.mxu0 %v1827_v13  ;;  %v1877_v13 = vld [vmem:[%s3136_s10 + $0x328] sm:$0x1] }
  0x72   : > { %2733 = vmatprep.subr.bf16.mxu0 %v3085_v52  ;;  %2479 = vmatmul.mubr.msk.f32.gmra.mrb[34].mxu1 %vm285_vm1, %v1823_v15  ;;  %v1876_v15 = vld [vmem:[%s3136_s10 + $0x320] sm:$0x1] }
  0x73   : > { %2763 = vmatpush3.bf16.msra.mxu1 %v3083_v51  ;;  %2481 = vmatprep.mubr.msk.f32.mxu1 %vm2890_vm0, %v2891_v1 }
  0x74   : > { %856 = vmatmul.mubr.f32.gmra.mrb[36].mxu0 %v1826_v18  ;;  %2765 = vmatprep.subr.bf16.mxu1 %v3098_v56  ;;  %v1889_v18 = vld [vmem:[%s3136_s10 + $0x350] sm:$0xff] }
  0x75   : > { %2735 = vmatpush3.bf16.msra.mxu0 %v3116_v62  ;;  %860 = vmatprep.mubr.f32.mxu0 %v1832_v22  ;;  %v1900_v22 = vld [vmem:[%s3136_s10 + $0x3a8] sm:$0xff] }
  0x76   : > { %2737 = vmatprep.subr.bf16.mxu0 %v3122_v0  ;;  %2482 = vmatmul.mubr.msk.f32.gmra.mrb[36].mxu1 %vm285_vm1, %v1828_v24  ;;  %v1906_v24 = vld [vmem:[%s3136_s10 + $0x3d8] sm:$0xff] }
  0x77   : > { %2767 = vmatpush3.bf16.msra.mxu1 %v3120_v63  ;;  %2484 = vmatprep.mubr.msk.f32.mxu1 %vm2890_vm0, %v2891_v1 }
  0x78   : > { %861 = vmatmul.mubr.f32.gmra.mrb[38].mxu0 %v1831_v28  ;;  %2769 = vmatprep.subr.bf16.mxu1 %v3139_v5  ;;  %v1902_v28 = vld [vmem:[%s3136_s10 + $0x3b8] sm:$0xff] }
  0x79   : > { %2739 = vmatpush3.bf16.msra.mxu0 %v3157_v14  ;;  %865 = vmatprep.mubr.f32.mxu0 %v1837_v29  ;;  %v1905_v29 = vld [vmem:[%s3136_s10 + $0x3d0] sm:$0xff] }
  0x7a   : > { %2741 = vmatprep.subr.bf16.mxu0 %v3167_v20  ;;  %2485 = vmatmul.mubr.msk.f32.gmra.mrb[38].mxu1 %vm285_vm1, %v1833_v30  ;;  %v1911_v30 = vld [vmem:[%s3136_s10 + $0x400] sm:$0xff] }
  0x7b   : > { %2771 = vmatpush3.bf16.msra.mxu1 %v3165_v19  ;;  %2487 = vmatprep.mubr.msk.f32.mxu1 %vm2890_vm0, %v2891_v1 }
  0x7c   : > { %866 = vmatmul.mubr.f32.gmra.mrb[40].mxu0 %v1836_v31  ;;  %2773 = vmatprep.subr.bf16.mxu1 %v3179_v27  ;;  %v1907_v31 = vld [vmem:[%s3136_s10 + $0x3e0] sm:$0xff] }
  0x7d   : > { %2743 = vmatpush3.bf16.msra.mxu0 %v3195_v35  ;;  %1106 = vmatprep.mubr.f32.mxu0 %v1847_v32  ;;  %v1910_v32 = vld [vmem:[%s3136_s10 + $0x3f8] sm:$0xff] }
  0x7e   : > { %2745 = vmatprep.subr.bf16.mxu0 %v3201_v37  ;;  %2488 = vmatmul.mubr.msk.f32.gmra.mrb[40].mxu1 %vm285_vm1, %v1838_v41  ;;  %v1916_v41 = vld [vmem:[%s3136_s10 + $0x428] sm:$0xff] }
  0x7f   : > { %2775 = vmatpush3.bf16.msra.mxu1 %v3199_v36  ;;  %1206 = vmatprep.mubr.f32.mxu1 %v1849_v44  ;;  %v1912_v44 = vld [vmem:[%s3136_s10 + $0x408] sm:$0xff] }
  0x80   : > { %2777 = vmatprep.subr.bf16.mxu1 %v3210_v42 }
  0x81   : > { %2747 = vmatpush3.bf16.msra.mxu0 %v3219_v46 }
  0x82   : > { %2780 = vmatprep.subr.bf16.mxu0 %v2889_v55 }
  0x83   : > { %2779 = vmatpush3.bf16.msra.mxu1 %v3223_v47 }
  0x84   : > { %1107 = vmatmul.mubr.f32.vlgmr.msra.gmra.mrb[42].mxu0 %v1846_v45  ;;  %2793 = vmatprep.subr.bf16.mxu1 %v2929_v3  ;;  %v1859_v3 = vld [vmem:[%s3136_s10 + $0x298] sm:$0xff]  ;;  %v1915_v45 = vld [vmem:[%s3136_s10 + $0x420] sm:$0xff] }
  0x85   : > { %2782 = vmatpush3.bf16.msra.mxu0 %v3234_v54  ;;  %1111 = vmatprep.mubr.f32.mxu0 %v1852_v49  ;;  %v1921_v49 = vld [vmem:[%s3136_s10 + $0x450] sm:$0x1] }
  0x86   : > { %1207 = vmatmul.mubr.f32.vlgmr.msra.gmra.mrb[42].mxu1 %v1848_v50  ;;  %2783 = vmatprep.subr.bf16.mxu0 %v2889_v55  ;;  %v1917_v50 = vld [vmem:[%s3136_s10 + $0x430] sm:$0xff] }
  0x87   : > { %1211 = vmatprep.mubr.f32.mxu1 %v1854_v53  ;;  %2795 = vmatpush3.bf16.msra.mxu1 %v2940_v7  ;;  %v1858_v7 = vld [vmem:[%s3136_s10 + $0x290] sm:$0xff]  ;;  %v1920_v53 = vld [vmem:[%s3136_s10 + $0x448] sm:$0x1] }
  0x88   : > { %1112 = vmatmul.mubr.f32.gmra.mrb[44].mxu0 %v1851_v57  ;;  %2797 = vmatprep.subr.bf16.mxu1 %v2967_v16  ;;  %v1864_v16 = vld [vmem:[%s3136_s10 + $0x2c0] sm:$0xff]  ;;  %v1922_v57 = vld [vmem:[%s3136_s10 + $0x458] sm:$0x1] }
  0x89   : > { %1116 = vmatprep.mubr.f32.mxu0 %v1857_v58  ;;  %2785 = vmatpush3.bf16.msra.mxu0 %v3253_v6 }
  0x8a   : > { %1212 = vmatmul.mubr.f32.gmra.mrb[44].mxu1 %v1853_v59  ;;  %2786 = vmatprep.subr.bf16.mxu0 %v2889_v55  ;;  %v3613_v59 = vld [vmem:[%s3730_s2] ss:$0 sm:$0xff] }
  0x8b   : > { %1216 = vmatprep.mubr.f32.mxu1 %v1859_v3  ;;  %2799 = vmatpush3.bf16.msra.mxu1 %v2969_v17  ;;  %v1863_v17 = vld [vmem:[%s3136_s10 + $0x2b8] sm:$0xff] }
  0x8c   : > { %1117 = vmatmul.mubr.f32.gmra.mrb[46].mxu0 %v1856_v60  ;;  %2801 = vmatprep.subr.bf16.mxu1 %v3001_v26  ;;  %v1869_v26 = vld [vmem:[%s3136_s10 + $0x2e8] sm:$0xff] }
  0x8d   : > { %1121 = vmatprep.mubr.f32.mxu0 %v1862_v61  ;;  %2788 = vmatpush3.bf16.msra.mxu0 %v3271_v23 }
  0x8e   : > { %1217 = vmatmul.mubr.f32.gmra.mrb[46].mxu1 %v1858_v7  ;;  %2789 = vmatprep.subr.bf16.mxu0 %v2889_v55 }
  0x8f   : > { %1221 = vmatprep.mubr.f32.mxu1 %v1864_v16  ;;  %2803 = vmatpush3.bf16.msra.mxu1 %v3023_v33  ;;  %v1868_v33 = vld [vmem:[%s3136_s10 + $0x2e0] sm:$0xff] }
  0x90   : > { %1122 = vmatmul.mubr.f32.gmra.mrb[48].mxu0 %v1861_v2  ;;  %2805 = vmatprep.subr.bf16.mxu1 %v3040_v39  ;;  %v1874_v39 = vld [vmem:[%s3136_s10 + $0x310] sm:$0xff] }
  0x91   : > { %1126 = vmatprep.mubr.f32.mxu0 %v1867_v4  ;;  %2791 = vmatpush3.bf16.msra.mxu0 %v3287_v40 }
  0x92   : > { %1222 = vmatmul.mubr.f32.gmra.mrb[48].mxu1 %v1863_v17  ;;  %2825 = vmatprep.subr.bf16.mxu0 %v2942_v8  ;;  %v1873_v8 = vld [vmem:[%s3136_s10 + $0x308] sm:$0xff] }
  0x93   : > { %1226 = vmatprep.mubr.f32.mxu1 %v1869_v26  ;;  %2807 = vmatpush3.bf16.msra.mxu1 %v3073_v48  ;;  %v1879_v48 = vld [vmem:[%s3136_s10 + $0x338] sm:$0x1] }
  0x94   : > { %1127 = vmatmul.mubr.f32.gmra.mrb[50].mxu0 %v1866_v9  ;;  %2809 = vmatprep.subr.bf16.mxu1 %v3085_v52  ;;  %v1878_v52 = vld [vmem:[%s3136_s10 + $0x330] sm:$0x1] }
  0x95   : > { %1131 = vmatprep.mubr.f32.mxu0 %v1872_v10 }
  0x96   : > { %1227 = vmatmul.mubr.f32.gmra.mrb[50].mxu1 %v1868_v33 }
  0x97   : > { %1231 = vmatprep.mubr.f32.mxu1 %v1874_v39  ;;  %2811 = vmatpush3.bf16.msra.mxu1 %v3116_v62  ;;  %v1850_v62 = vld [vmem:[%s3136_s10 + $0x250] sm:$0xff] }
  0x98   : > { %1132 = vmatmul.mubr.f32.gmra.mrb[52].mxu0 %v1871_v11  ;;  %2813 = vmatprep.subr.bf16.mxu1 %v3122_v0  ;;  %v1855_v0 = vld [vmem:[%s3136_s10 + $0x278] sm:$0xff] }
  0x99   : > { %1136 = vmatprep.mubr.f32.mxu0 %v1877_v13 }
  0x9a   : > { %1232 = vmatmul.mubr.f32.gmra.mrb[52].mxu1 %v1873_v8 }
  0x9b   : > { %1236 = vmatprep.mubr.f32.mxu1 %v1879_v48  ;;  %2815 = vmatpush3.bf16.msra.mxu1 %v3157_v14  ;;  %v1888_v14 = vld [vmem:[%s3136_s10 + $0x348] sm:$0xff] }
  0x9c   : > { %1137 = vmatmul.mubr.f32.gmra.mrb[54].mxu0 %v1876_v15  ;;  %2817 = vmatprep.subr.bf16.mxu1 %v3167_v20  ;;  %v1894_v20 = vld [vmem:[%s3136_s10 + $0x378] sm:$0xff] }
  0x9d   : > { %2506 = vmatprep.mubr.msk.f32.mxu0 %vm2890_vm0, %v2891_v1 }
  0x9e   : > { %1237 = vmatmul.mubr.f32.gmra.mrb[54].mxu1 %v1878_v52 }
  0x9f   : > { %2819 = vmatpush3.bf16.msra.mxu1 %v3195_v35  ;;  %1477 = vmatprep.mubr.f32.mxu1 %v1889_v18  ;;  %v1899_v35 = vld [vmem:[%s3136_s10 + $0x3a0] sm:$0xff] }
  0xa0   : > { %2507 = vmatmul.mubr.msk.f32.vlgmr.msra.gmra.mrb[56].mxu0 %vm285_vm1, %v1850_v62  ;;  %2821 = vmatprep.subr.bf16.mxu1 %v3201_v37  ;;  %v1904_v37 = vld [vmem:[%s3136_s10 + $0x3c8] sm:$0xff] }
  0xa1   : > { %2827 = vmatpush3.bf16.msra.mxu0 %v2954_v12  ;;  %2509 = vmatprep.mubr.msk.f32.mxu0 %vm2890_vm0, %v2891_v1  ;;  %v1860_v12 = vld [vmem:[%s3136_s10 + $0x2a0] sm:$0xff] }
  0xa2   : > { %2829 = vmatprep.subr.bf16.mxu0 %v2981_v21  ;;  %v1893_v21 = vld [vmem:[%s3136_s10 + $0x370] sm:$0xff] }
  0xa3   : > { %2823 = vmatpush3.bf16.msra.mxu1 %v3219_v46  ;;  %v1909_v46 = vld [vmem:[%s3136_s10 + $0x3f0] sm:$0xff] }
  0xa4   : > { %2510 = vmatmul.mubr.msk.f32.gmra.mrb[58].mxu0 %vm285_vm1, %v1855_v0  ;;  %2856 = vmatprep.subr.bf16.mxu1 %v2889_v55 }
  0xa5   : > { %2831 = vmatpush3.bf16.msra.mxu0 %v2999_v25  ;;  %2512 = vmatprep.mubr.msk.f32.mxu0 %vm2890_vm0, %v2891_v1  ;;  %v1865_v25 = vld [vmem:[%s3136_s10 + $0x2c8] sm:$0xff] }
  0xa6   : > { %2833 = vmatprep.subr.bf16.mxu0 %v3025_v34  ;;  %1478 = vmatmul.mubr.f32.vlgmr.msra.gmra.mrb[56].mxu1 %v1888_v14  ;;  %v1898_v34 = vld [vmem:[%s3136_s10 + $0x398] sm:$0xff] }
  0xa7   : > { %2858 = vmatpush3.bf16.msra.mxu1 %v3234_v54  ;;  %1482 = vmatprep.mubr.f32.mxu1 %v1894_v20  ;;  %v1914_v54 = vld [vmem:[%s3136_s10 + $0x418] sm:$0xff] }
  0xa8   : > { %2513 = vmatmul.mubr.msk.f32.gmra.mrb[60].mxu0 %vm285_vm1, %v1860_v12  ;;  %2859 = vmatprep.subr.bf16.mxu1 %v2889_v55 }
  0xa9   : > { %2835 = vmatpush3.bf16.msra.mxu0 %v3038_v38  ;;  %2515 = vmatprep.mubr.msk.f32.mxu0 %vm2890_vm0, %v2891_v1  ;;  %v1870_v38 = vld [vmem:[%s3136_s10 + $0x2f0] sm:$0xff] }
  0xaa   : > { %2837 = vmatprep.subr.bf16.mxu0 %v3058_v43  ;;  %1483 = vmatmul.mubr.f32.gmra.mrb[58].mxu1 %v1893_v21  ;;  %v1903_v43 = vld [vmem:[%s3136_s10 + $0x3c0] sm:$0xff] }
  0xab   : > { %1487 = vmatprep.mubr.f32.mxu1 %v1899_v35  ;;  %2861 = vmatpush3.bf16.msra.mxu1 %v3253_v6  ;;  %v1919_v6 = vld [vmem:[%s3136_s10 + $0x440] sm:$0x1] }
  0xac   : > { %2516 = vmatmul.mubr.msk.f32.gmra.mrb[62].mxu0 %vm285_vm1, %v1865_v25  ;;  %2862 = vmatprep.subr.bf16.mxu1 %v2889_v55 }
  0xad   : > { %2839 = vmatpush3.bf16.msra.mxu0 %v3083_v51  ;;  %2518 = vmatprep.mubr.msk.f32.mxu0 %vm2890_vm0, %v2891_v1  ;;  %v1875_v51 = vld [vmem:[%s3136_s10 + $0x318] sm:$0xff] }
  0xae   : > { %2841 = vmatprep.subr.bf16.mxu0 %v3098_v56  ;;  %1488 = vmatmul.mubr.f32.gmra.mrb[60].mxu1 %v1898_v34  ;;  %v1908_v56 = vld [vmem:[%s3136_s10 + $0x3e8] sm:$0xff] }
  0xaf   : > { %1492 = vmatprep.mubr.f32.mxu1 %v1904_v37  ;;  %2864 = vmatpush3.bf16.msra.mxu1 %v3271_v23  ;;  %v1896_v23 = vld [vmem:[%s3136_s10 + $0x388] sm:$0xff] }
  0xb0   : > { %2519 = vmatmul.mubr.msk.f32.gmra.mrb[64].mxu0 %vm285_vm1, %v1870_v38  ;;  %2865 = vmatprep.subr.bf16.mxu1 %v2889_v55  ;;  %v1913_v55 = vld [vmem:[%s3136_s10 + $0x410] sm:$0xff] }
  0xb1   : > { %2843 = vmatpush3.bf16.msra.mxu0 %v3120_v63  ;;  %2521 = vmatprep.mubr.msk.f32.mxu0 %vm2890_vm0, %v2891_v1  ;;  %v1880_v63 = vld [vmem:[%s3136_s10 + $0x340] sm:$0x1] }
  0xb2   : > { %2845 = vmatprep.subr.bf16.mxu0 %v3139_v5  ;;  %1493 = vmatmul.mubr.f32.gmra.mrb[62].mxu1 %v1903_v43  ;;  %v1891_v5 = vld [vmem:[%s3136_s10 + $0x360] sm:$0xff] }
  0xb3   : > { %1497 = vmatprep.mubr.f32.mxu1 %v1909_v46  ;;  %2867 = vmatpush3.bf16.msra.mxu1 %v3287_v40  ;;  %v1901_v40 = vld [vmem:[%s3136_s10 + $0x3b0] sm:$0xff] }
  0xb4   : > { %2522 = vmatmul.mubr.msk.f32.gmra.mrb[66].mxu0 %vm285_vm1, %v1875_v51 }
  0xb5   : > { %2847 = vmatpush3.bf16.msra.mxu0 %v3165_v19  ;;  %2524 = vmatprep.mubr.msk.f32.mxu0 %vm2890_vm0, %v2891_v1  ;;  %v1918_v19 = vld [vmem:[%s3136_s10 + $0x438] sm:$0x1] }
  0xb6   : > { %2849 = vmatprep.subr.bf16.mxu0 %v3179_v27  ;;  %1498 = vmatmul.mubr.f32.gmra.mrb[64].mxu1 %v1908_v56  ;;  %v1890_v27 = vld [vmem:[%s3136_s10 + $0x358] sm:$0xff] }
  0xb7   : > { %1502 = vmatprep.mubr.f32.mxu1 %v1914_v54 }
  0xb8   : > { %2525 = vmatmul.mubr.msk.f32.gmra.mrb[68].mxu0 %vm285_vm1, %v1880_v63 }
  0xb9   : > { %2851 = vmatpush3.bf16.msra.mxu0 %v3199_v36  ;;  %1577 = vmatprep.mubr.f32.mxu0 %v1891_v5  ;;  %v1892_v36 = vld [vmem:[%s3136_s10 + $0x368] sm:$0xff] }
  0xba   : > { %2853 = vmatprep.subr.bf16.mxu0 %v3210_v42  ;;  %1503 = vmatmul.mubr.f32.gmra.mrb[66].mxu1 %v1913_v55  ;;  %v1895_v42 = vld [vmem:[%s3136_s10 + $0x380] sm:$0xff] }
  0xbb   : > { %1507 = vmatprep.mubr.f32.mxu1 %v1919_v6 }
  0xbd   : > { %2855 = vmatpush3.bf16.msra.mxu0 %v3223_v47  ;;  %v1897_v47 = vld [vmem:[%s3136_s10 + $0x390] sm:$0xff]  ;;  %s2869_s10 = smul.u32 56, %s3734_s13 }
  0xbe   : > { %1508 = vmatmul.mubr.f32.gmra.mrb[68].mxu1 %v1918_v19 }
  0xbf   : > { %2543 = vmatprep.mubr.msk.f32.mxu1 %vm2890_vm0, %v2891_v1  ;;  %s3703_s20 = scalar_lea.vmem %s3731_s3, %s2869_s10 }
  0xc0   : > { %1578 = vmatmul.mubr.f32.vlgmr.msra.gmra.mrb[70].mxu0 %v1890_v27 }
  0xc1   : > { %1582 = vmatprep.mubr.f32.mxu0 %v1896_v23 }
  0xc2   : > { %2544 = vmatmul.mubr.msk.f32.vlgmr.msra.gmra.mrb[70].mxu1 %vm285_vm1, %v1892_v36 }
  0xc3   : > { %2546 = vmatprep.mubr.msk.f32.mxu1 %vm2890_vm0, %v2891_v1 }
  0xc4   : > { %1583 = vmatmul.mubr.f32.gmra.mrb[72].mxu0 %v1895_v42 }
  0xc5   : > { %1587 = vmatprep.mubr.f32.mxu0 %v1901_v40 }
  0xc6   : > { %2547 = vmatmul.mubr.msk.f32.gmra.mrb[72].mxu1 %vm285_vm1, %v1897_v47 }
  0xc7   : > { %2549 = vmatprep.mubr.msk.f32.mxu1 %vm2890_vm0, %v2891_v1 }
  0xc8   : > { %1588 = vmatmul.mubr.f32.gmra.mrb[74].mxu0 %v1900_v22 }
  0xc9   : > { %1592 = vmatprep.mubr.f32.mxu0 %v1906_v24 }
  0xca   : > { %2550 = vmatmul.mubr.msk.f32.gmra.mrb[74].mxu1 %vm285_vm1, %v1902_v28 }
  0xcb   : > { %2552 = vmatprep.mubr.msk.f32.mxu1 %vm2890_vm0, %v2891_v1 }
  0xcc   : > { %1593 = vmatmul.mubr.f32.gmra.mrb[76].mxu0 %v1905_v29 }
  0xcd   : > { %1597 = vmatprep.mubr.f32.mxu0 %v1911_v30 }
  0xce   : > { %2553 = vmatmul.mubr.msk.f32.gmra.mrb[76].mxu1 %vm285_vm1, %v1907_v31 }
  0xcf   : > { %2555 = vmatprep.mubr.msk.f32.mxu1 %vm2890_vm0, %v2891_v1 }
  0xd0   : > { %1598 = vmatmul.mubr.f32.gmra.mrb[78].mxu0 %v1910_v32 }
  0xd1   : > { %1602 = vmatprep.mubr.f32.mxu0 %v1916_v41 }
  0xd2   : > { %2556 = vmatmul.mubr.msk.f32.gmra.mrb[78].mxu1 %vm285_vm1, %v1912_v44 }
  0xd3   : > { %2558 = vmatprep.mubr.msk.f32.mxu1 %vm2890_vm0, %v2891_v1 }
  0xd4   : > { %1603 = vmatmul.mubr.f32.gmra.mrb[80].mxu0 %v1915_v45 }
  0xd5   : > { %1607 = vmatprep.mubr.f32.mxu0 %v1921_v49 }
  0xd6   : > { %2559 = vmatmul.mubr.msk.f32.gmra.mrb[80].mxu1 %vm285_vm1, %v1917_v50 }
  0xd7   : > { %2561 = vmatprep.mubr.msk.f32.mxu1 %vm2890_vm0, %v2891_v1 }
  0xd8   : > { %1608 = vmatmul.mubr.f32.gmra.mrb[82].mxu0 %v1920_v53 }
  0xda   : > { %2562 = vmatmul.mubr.msk.f32.gmra.mrb[82].mxu1 %vm285_vm1, %v1922_v57 }
  0xfb   : > { %v1964_v58 = vpop.f32.mrb[0].mxu0 }
  0xfc   : > { %v1965_v3 = vpop.f32.mrb[1].mxu0 }
  0xfd   : > { %v2017_v60 = vpop.f32.mrb[0].mxu1  ;;  %v1966_v61 = vadd.f32 %v1965_v3, %v1964_v58 }
  0xfe   : > { %v2018_v7 = vpop.f32.mrb[1].mxu1 }
  0xff   : > { %v2019_v16 = vadd.f32 %v2018_v7, %v2017_v60  ;;  %v374_v2 = vadd.f32 %v1966_v61, %v3613_v59  ;;  %v1967_v4 = vpop.f32.mrb[2].mxu0 }
 0x100   : > { %v1968_v17 = vpop.f32.mrb[3].mxu0 }
 0x101   : > { %v2020_v1 = vpop.f32.mrb[2].mxu1  ;;  %v1969_v26 = vadd.f32 %v1968_v17, %v1967_v4  ;;  %v474_v10 = vadd.f32 %v2019_v16, %v374_v2 }
 0x102   : > { %v2021_v9 = vpop.f32.mrb[3].mxu1 }
 0x103   : > { %v2022_v33 = vadd.f32 %v2021_v9, %v2020_v1  ;;  %v379_v39 = vadd.f32 %v1969_v26, %v3613_v59  ;;  %v1970_v11 = vpop.f32.mrb[4].mxu0 }
 0x104   : > { %v1971_v13 = vpop.f32.mrb[5].mxu0 }
 0x105   : > { %v2023_v8 = vpop.f32.mrb[4].mxu1  ;;  %v1972_v48 = vadd.f32 %v1971_v13, %v1970_v11  ;;  %v479_v52 = vadd.f32 %v2022_v33, %v379_v39 }
 0x106   : > { %v2024_v15 = vpop.f32.mrb[5].mxu1 }
 0x107   : > { %v2025_v18 = vadd.f32 %v2024_v15, %v2023_v8  ;;  %v384_v62 = vadd.f32 %v1972_v48, %v3613_v59  ;;  %v1973_v0 = vpop.f32.mrb[6].mxu0 }
 0x108   : > { %v1974_v14 = vpop.f32.mrb[7].mxu0 }
 0x109   : > { %v2026_v20 = vpop.f32.mrb[6].mxu1  ;;  %v1975_v12 = vadd.f32 %v1974_v14, %v1973_v0  ;;  %v484_v35 = vadd.f32 %v2025_v18, %v384_v62 }
 0x10a   : > { %v2027_v21 = vpop.f32.mrb[7].mxu1 }
 0x10b   : > { %v2028_v25 = vadd.f32 %v2027_v21, %v2026_v20  ;;  %v389_v34 = vadd.f32 %v1975_v12, %v3613_v59  ;;  %v1976_v37 = vpop.f32.mrb[8].mxu0 }
 0x10c   : > { %v1977_v38 = vpop.f32.mrb[9].mxu0 }
 0x10d   : > { %v2029_v43 = vpop.f32.mrb[8].mxu1  ;;  %v1978_v46 = vadd.f32 %v1977_v38, %v1976_v37  ;;  %v489_v56 = vadd.f32 %v2028_v25, %v389_v34 }
 0x10e   : > { %v2030_v51 = vpop.f32.mrb[9].mxu1 }
 0x10f   : > { %v2031_v54 = vadd.f32 %v2030_v51, %v2029_v43  ;;  %v394_v63 = vadd.f32 %v1978_v46, %v3613_v59  ;;  %v1979_v5 = vpop.f32.mrb[10].mxu0 }
 0x110   : > { %v1980_v55 = vpop.f32.mrb[11].mxu0 }
 0x111   : > { %v2032_v6 = vpop.f32.mrb[10].mxu1  ;;  %v1981_v19 = vadd.f32 %v1980_v55, %v1979_v5  ;;  %v494_v23 = vadd.f32 %v2031_v54, %v394_v63 }
 0x112   : > { %v2033_v27 = vpop.f32.mrb[11].mxu1 }
 0x113   : > { %v2034_v36 = vadd.f32 %v2033_v27, %v2032_v6  ;;  %v399_v42 = vadd.f32 %v1981_v19, %v3613_v59  ;;  %v1982_v40 = vpop.f32.mrb[12].mxu0 }
 0x114   : > { %v1983_v47 = vpop.f32.mrb[13].mxu0 }
 0x115   : > { %v2035_v22 = vpop.f32.mrb[12].mxu1  ;;  %v1984_v24 = vadd.f32 %v1983_v47, %v1982_v40  ;;  %v499_v29 = vadd.f32 %v2034_v36, %v399_v42 }
 0x116   : > { %v2036_v28 = vpop.f32.mrb[13].mxu1 }
 0x117   : > { %v2037_v30 = vadd.f32 %v2036_v28, %v2035_v22  ;;  %v404_v31 = vadd.f32 %v1984_v24, %v3613_v59  ;;  %v573_v32 = vpop.f32.mrb[14].mxu0 }
 0x118   : > { %v3622_v41 = vadd.f32 %v573_v32, %v474_v10  ;;  %v2434_v44 = vpop.f32.mrb[15].mxu0 }
 0x119   : > { %v504_v45 = vadd.f32 %v2037_v30, %v404_v31 }
 0x11a   : > { %v607_v22 = vmax.f32 %v3622_v41, 0.0 }
 0x11b   : > { %v578_v49 = vpop.f32.mrb[16].mxu0 }
 0x11c   : > { %v3624_v50 = vadd.f32 %v578_v49, %v479_v52  ;;  %v2437_v53 = vpop.f32.mrb[17].mxu0 }
 0x11d   : > { %v2085_v57 = vpop.f32.mrb[14].mxu1 }
 0x11e   : > { %v2086_v58 = vpop.f32.mrb[15].mxu1 }
 0x11f   : > { %v2087_v3 = vadd.f32 %v2086_v58, %v2085_v57  ;;  %v583_v60 = vpop.f32.mrb[18].mxu0  ;;  %v608_v57 = vmax.f32 %v3624_v50, 0.0 }
 0x120   : > { %v3626_v61 = vadd.f32 %v583_v60, %v484_v35  ;;  %v2440_v7 = vpop.f32.mrb[19].mxu0 }
 0x121   : > { %v2088_v16 = vpop.f32.mrb[16].mxu1  ;;  %v738_v54 = vadd.f32 %v2087_v3, %v3613_v59 }
 0x122   : > { %v2089_v2 = vpop.f32.mrb[17].mxu1 }
 0x123   : > { %v2090_v4 = vadd.f32 %v2089_v2, %v2088_v16  ;;  %v588_v17 = vpop.f32.mrb[20].mxu0 }
 0x124   : > { %v3628_v1 = vadd.f32 %v588_v17, %v489_v56  ;;  %v2443_v26 = vpop.f32.mrb[21].mxu0 }
 0x125   : > { %v2091_v9 = vpop.f32.mrb[18].mxu1 }
 0x126   : > { %v2092_v10 = vpop.f32.mrb[19].mxu1 }
 0x127   : > { %v2093_v33 = vadd.f32 %v2092_v10, %v2091_v9  ;;  %v593_v39 = vpop.f32.mrb[22].mxu0  ;;  %v609_v9 = vmax.f32 %v3626_v61, 0.0 }
 0x128   : > { %v3630_v11 = vadd.f32 %v593_v39, %v494_v23  ;;  %v2446_v13 = vpop.f32.mrb[23].mxu0  ;;  %v743_v23 = vadd.f32 %v2090_v4, %v3613_v59 }
 0x129   : > { %v2094_v8 = vpop.f32.mrb[20].mxu1  ;;  %v748_v31 = vadd.f32 %v2093_v33, %v3613_v59 }
 0x12a   : > { %v2095_v48 = vpop.f32.mrb[21].mxu1 }
 0x12b   : > { %v2096_v15 = vadd.f32 %v2095_v48, %v2094_v8  ;;  %v598_v52 = vpop.f32.mrb[24].mxu0 }
 0x12c   : > { %v3632_v18 = vadd.f32 %v598_v52, %v499_v29  ;;  %v2449_v62 = vpop.f32.mrb[25].mxu0 }
 0x12d   : > { %v2097_v0 = vpop.f32.mrb[22].mxu1  ;;  %v753_v41 = vadd.f32 %v2096_v15, %v3613_v59 }
 0x12e   : > { %v2098_v14 = vpop.f32.mrb[23].mxu1 }
 0x12f   : > { %v2099_v20 = vadd.f32 %v2098_v14, %v2097_v0  ;;  %v603_v12 = vpop.f32.mrb[26].mxu0  ;;  %v610_v0 = vmax.f32 %v3628_v1, 0.0 }
 0x130   : > { %v3634_v21 = vadd.f32 %v603_v12, %v504_v45  ;;  %v2452_v25 = vpop.f32.mrb[27].mxu0 }
 0x131   : > { %v2100_v35 = vpop.f32.mrb[24].mxu1  ;;  %v758_v50 = vadd.f32 %v2099_v20, %v3613_v59 }
 0x132   : > { %v2101_v34 = vpop.f32.mrb[25].mxu1 }
 0x133   : > { %v2102_v37 = vadd.f32 %v2101_v34, %v2100_v35 }
 0x135   : > { %v2103_v38 = vpop.f32.mrb[26].mxu1  ;;  %v763_v61 = vadd.f32 %v2102_v37, %v3613_v59 }
 0x136   : > { %v2104_v43 = vpop.f32.mrb[27].mxu1 }
 0x137   : > { %v3636_v46 = vadd.f32 %v2104_v43, %v2103_v38  ;;  %v2138_v51 = vpop.f32.mrb[28].mxu0 }
 0x138   : > { %v2139_v56 = vpop.f32.mrb[29].mxu0 }
 0x139   : > { %v2140_v63 = vadd.f32 %v2139_v56, %v2138_v51  ;;  %v937_v5 = vpop.f32.mrb[28].mxu1  ;;  %v611_v56 = vmax.f32 %v3630_v11, 0.0  ;;  %v768_v1 = vadd.f32 %v3636_v46, %v3613_v59 }
 0x13a   : > { %v2471_v55 = vpop.f32.mrb[29].mxu1 }
 0x13b   : > { %v2141_v6 = vpop.f32.mrb[30].mxu0  ;;  %v838_v19 = vadd.f32 %v2140_v63, %v738_v54 }
 0x13c   : > { %v2142_v27 = vpop.f32.mrb[31].mxu0 }
 0x13d   : > { %v938_v36 = vadd.f32 %v937_v5, %v838_v19  ;;  %v2143_v42 = vadd.f32 %v2142_v27, %v2141_v6  ;;  %v942_v40 = vpop.f32.mrb[30].mxu1 }
 0x13e   : > { %v2474_v47 = vpop.f32.mrb[31].mxu1 }
 0x13f   : > { %v971_v24 = vmax.f32 %v938_v36, 0.0  ;;  %v2144_v28 = vpop.f32.mrb[32].mxu0  ;;  %v843_v29 = vadd.f32 %v2143_v42, %v743_v23  ;;  %v612_v36 = vmax.f32 %v3632_v18, 0.0 }
 0x140   : > { %v2145_v30 = vpop.f32.mrb[33].mxu0 }
 0x141   : > { %v3642_v32 = vmax.f32 %v607_v22, %v971_v24  ;;  %v2146_v44 = vadd.f32 %v2145_v30, %v2144_v28  ;;  %v943_v45 = vadd.f32 %v942_v40, %v843_v29  ;;  %v947_v49 = vpop.f32.mrb[32].mxu1  ;;  %v613_v22 = vmax.f32 %v3634_v21, 0.0 }
 0x142   : > { %v2477_v53 = vpop.f32.mrb[33].mxu1 }
 0x143   : > { %v972_v58 = vmax.f32 %v943_v45, 0.0  ;;  %v2147_v3 = vpop.f32.mrb[34].mxu0  ;;  %v848_v60 = vadd.f32 %v2146_v44, %v748_v31 }
 0x144   : > { %v2148_v7 = vpop.f32.mrb[35].mxu0 }
 0x145   : > { %v3646_v16 = vmax.f32 %v608_v57, %v972_v58  ;;  %v2149_v2 = vadd.f32 %v2148_v7, %v2147_v3  ;;  %v948_v4 = vadd.f32 %v947_v49, %v848_v60  ;;  %v952_v17 = vpop.f32.mrb[34].mxu1 }
 0x146   : > { %v2480_v26 = vpop.f32.mrb[35].mxu1 }
 0x147   : > { %v973_v10 = vmax.f32 %v948_v4, 0.0  ;;  %v2150_v33 = vpop.f32.mrb[36].mxu0  ;;  %v853_v39 = vadd.f32 %v2149_v2, %v753_v41 }
 0x148   : > { %v2151_v13 = vpop.f32.mrb[37].mxu0 }
 0x149   : > { %v3650_v8 = vmax.f32 %v609_v9, %v973_v10  ;;  %v2152_v48 = vadd.f32 %v2151_v13, %v2150_v33  ;;  %v953_v52 = vadd.f32 %v952_v17, %v853_v39  ;;  %v957_v62 = vpop.f32.mrb[36].mxu1 }
 0x14a   : > { %v2483_v15 = vpop.f32.mrb[37].mxu1 }
 0x14b   : > { %v974_v14 = vmax.f32 %v953_v52, 0.0  ;;  %v2153_v12 = vpop.f32.mrb[38].mxu0  ;;  %v858_v35 = vadd.f32 %v2152_v48, %v758_v50 }
 0x14c   : > { %v2154_v25 = vpop.f32.mrb[39].mxu0 }
 0x14d   : > { %v3654_v34 = vmax.f32 %v610_v0, %v974_v14  ;;  %v2155_v38 = vadd.f32 %v2154_v25, %v2153_v12  ;;  %v958_v43 = vadd.f32 %v957_v62, %v858_v35  ;;  %v962_v51 = vpop.f32.mrb[38].mxu1 }
 0x14e   : > { %v2486_v20 = vpop.f32.mrb[39].mxu1 }
 0x14f   : > { %v975_v54 = vmax.f32 %v958_v43, 0.0  ;;  %v2156_v63 = vpop.f32.mrb[40].mxu0  ;;  %v863_v5 = vadd.f32 %v2155_v38, %v763_v61 }
 0x150   : > { %v2157_v55 = vpop.f32.mrb[41].mxu0 }
 0x151   : > { %v3659_v6 = vmax.f32 %v611_v56, %v975_v54  ;;  %v2158_v19 = vadd.f32 %v2157_v55, %v2156_v63  ;;  %v963_v27 = vadd.f32 %v962_v51, %v863_v5  ;;  %v967_v37 = vpop.f32.mrb[40].mxu1 }
 0x152   : > { %v2489_v23 = vpop.f32.mrb[41].mxu1 }
 0x153   : > { %v976_v42 = vmax.f32 %v963_v27, 0.0  ;;  %v868_v40 = vadd.f32 %v2158_v19, %v768_v1 }
 0x155   : > { %v3662_v47 = vmax.f32 %v612_v36, %v976_v42  ;;  %v968_v11 = vadd.f32 %v967_v37, %v868_v40 }
 0x157   : > { %v977_v24 = vmax.f32 %v968_v11, 0.0  ;;  %v2206_v28 = vpop.f32.mrb[42].mxu0 }
 0x158   : > { %v2207_v29 = vpop.f32.mrb[43].mxu0 }
 0x159   : > { %v3665_v30 = vmax.f32 %v613_v22, %v977_v24  ;;  %v2208_v46 = vadd.f32 %v2207_v29, %v2206_v28  ;;  %v2259_v31 = vpop.f32.mrb[42].mxu1 }
 0x15a   : > { %v2260_v44 = vpop.f32.mrb[43].mxu1 }
 0x15b   : > { %v1109_v45 = vadd.f32 %v2208_v46, %v3613_v59  ;;  %v2261_v49 = vadd.f32 %v2260_v44, %v2259_v31  ;;  %v2209_v53 = vpop.f32.mrb[44].mxu0 }
 0x15c   : > { %v2210_v18 = vpop.f32.mrb[45].mxu0 }
 0x15d   : > { %v2211_v57 = vadd.f32 %v2210_v18, %v2209_v53  ;;  %v2262_v58 = vpop.f32.mrb[44].mxu1  ;;  %v1209_v3 = vadd.f32 %v2261_v49, %v1109_v45 }
 0x15e   : > { %v2263_v60 = vpop.f32.mrb[45].mxu1 }
 0x15f   : > { %v1114_v7 = vadd.f32 %v2211_v57, %v3613_v59  ;;  %v2264_v21 = vadd.f32 %v2263_v60, %v2262_v58  ;;  %v2212_v41 = vpop.f32.mrb[46].mxu0 }
 0x160   : > { %v2213_v2 = vpop.f32.mrb[47].mxu0 }
 0x161   : > { %v2214_v4 = vadd.f32 %v2213_v2, %v2212_v41  ;;  %v2265_v17 = vpop.f32.mrb[46].mxu1  ;;  %v1214_v26 = vadd.f32 %v2264_v21, %v1114_v7 }
 0x162   : > { %v2266_v9 = vpop.f32.mrb[47].mxu1 }
 0x163   : > { %v1119_v10 = vadd.f32 %v2214_v4, %v3613_v59  ;;  %v2267_v33 = vadd.f32 %v2266_v9, %v2265_v17  ;;  %v2215_v39 = vpop.f32.mrb[48].mxu0 }
 0x164   : > { %v2216_v13 = vpop.f32.mrb[49].mxu0 }
 0x165   : > { %v2217_v50 = vadd.f32 %v2216_v13, %v2215_v39  ;;  %v2268_v48 = vpop.f32.mrb[48].mxu1  ;;  %v1219_v52 = vadd.f32 %v2267_v33, %v1119_v10 }
 0x166   : > { %v2269_v62 = vpop.f32.mrb[49].mxu1 }
 0x167   : > { %v1124_v15 = vadd.f32 %v2217_v50, %v3613_v59  ;;  %v2270_v0 = vadd.f32 %v2269_v62, %v2268_v48  ;;  %v2218_v14 = vpop.f32.mrb[50].mxu0 }
 0x168   : > { %v2219_v12 = vpop.f32.mrb[51].mxu0 }
 0x169   : > { %v2220_v35 = vadd.f32 %v2219_v12, %v2218_v14  ;;  %v2271_v25 = vpop.f32.mrb[50].mxu1  ;;  %v1224_v61 = vadd.f32 %v2270_v0, %v1124_v15 }
 0x16a   : > { %v2272_v38 = vpop.f32.mrb[51].mxu1 }
 0x16b   : > { %v1129_v43 = vadd.f32 %v2220_v35, %v3613_v59  ;;  %v2273_v51 = vadd.f32 %v2272_v38, %v2271_v25  ;;  %v2221_v20 = vpop.f32.mrb[52].mxu0 }
 0x16c   : > { %v2222_v56 = vpop.f32.mrb[53].mxu0 }
 0x16d   : > { %v2223_v54 = vadd.f32 %v2222_v56, %v2221_v20  ;;  %v2274_v63 = vpop.f32.mrb[52].mxu1  ;;  %v1229_v5 = vadd.f32 %v2273_v51, %v1129_v43 }
 0x16e   : > { %v2275_v55 = vpop.f32.mrb[53].mxu1 }
 0x16f   : > { %v1134_v1 = vadd.f32 %v2223_v54, %v3613_v59  ;;  %v2276_v19 = vadd.f32 %v2275_v55, %v2274_v63  ;;  %v2224_v27 = vpop.f32.mrb[54].mxu0 }
 0x170   : > { %v2225_v37 = vpop.f32.mrb[55].mxu0 }
 0x171   : > { %v2226_v23 = vadd.f32 %v2225_v37, %v2224_v27  ;;  %v2277_v36 = vpop.f32.mrb[54].mxu1  ;;  %v1234_v42 = vadd.f32 %v2276_v19, %v1134_v1 }
 0x172   : > { %v2278_v40 = vpop.f32.mrb[55].mxu1 }
 0x173   : > { %v1139_v11 = vadd.f32 %v2226_v23, %v3613_v59  ;;  %v2279_v22 = vadd.f32 %v2278_v40, %v2277_v36  ;;  %v1308_v24 = vpop.f32.mrb[56].mxu0 }
 0x174   : > { %v1309_v28 = vadd.f32 %v1308_v24, %v1209_v3  ;;  %v2508_v29 = vpop.f32.mrb[57].mxu0 }
 0x175   : > { %v1239_v46 = vadd.f32 %v2279_v22, %v1139_v11 }
 0x176   : > { %v1342_v31 = vmax.f32 %v1309_v28, 0.0 }
 0x177   : > { %v1313_v44 = vpop.f32.mrb[58].mxu0 }
 0x178   : > { %v3675_v45 = vmax.f32 %v3642_v32, %v1342_v31  ;;  %v1314_v49 = vadd.f32 %v1313_v44, %v1214_v26  ;;  %v2511_v53 = vpop.f32.mrb[59].mxu0 }
 0x179   : > { %v2327_v18 = vpop.f32.mrb[56].mxu1 }
 0x17a   : > { %v1343_v57 = vmax.f32 %v1314_v49, 0.0  ;;  %v2328_v58 = vpop.f32.mrb[57].mxu1 }
 0x17b   : > { %v1318_v60 = vpop.f32.mrb[60].mxu0  ;;  %v2329_v7 = vadd.f32 %v2328_v58, %v2327_v18 }
 0x17c   : > { %v3678_v21 = vmax.f32 %v3646_v16, %v1343_v57  ;;  %v1319_v41 = vadd.f32 %v1318_v60, %v1219_v52  ;;  %v2514_v2 = vpop.f32.mrb[61].mxu0 }
 0x17d   : > { %v2330_v3 = vpop.f32.mrb[58].mxu1  ;;  %v1480_v11 = vadd.f32 %v2329_v7, %v3613_v59 }
 0x17e   : > { %v1344_v4 = vmax.f32 %v1319_v41, 0.0  ;;  %v2331_v17 = vpop.f32.mrb[59].mxu1 }
 0x17f   : > { %v1323_v9 = vpop.f32.mrb[62].mxu0  ;;  %v2332_v10 = vadd.f32 %v2331_v17, %v2330_v3 }
 0x180   : > { %v3681_v32 = vmax.f32 %v3650_v8, %v1344_v4  ;;  %v1324_v26 = vadd.f32 %v1323_v9, %v1224_v61  ;;  %v2517_v33 = vpop.f32.mrb[63].mxu0 }
 0x181   : > { %v2333_v39 = vpop.f32.mrb[60].mxu1  ;;  %v1485_v31 = vadd.f32 %v2332_v10, %v3613_v59 }
 0x182   : > { %v1345_v13 = vmax.f32 %v1324_v26, 0.0  ;;  %v2334_v50 = vpop.f32.mrb[61].mxu1 }
 0x183   : > { %v1328_v48 = vpop.f32.mrb[64].mxu0  ;;  %v2335_v62 = vadd.f32 %v2334_v50, %v2333_v39 }
 0x184   : > { %v3684_v16 = vmax.f32 %v3654_v34, %v1345_v13  ;;  %v1329_v52 = vadd.f32 %v1328_v48, %v1229_v5  ;;  %v2520_v15 = vpop.f32.mrb[65].mxu0 }
 0x185   : > { %v2336_v0 = vpop.f32.mrb[62].mxu1  ;;  %v1490_v7 = vadd.f32 %v2335_v62, %v3613_v59 }
 0x186   : > { %v1346_v14 = vmax.f32 %v1329_v52, 0.0  ;;  %v2337_v12 = vpop.f32.mrb[63].mxu1 }
 0x187   : > { %v1333_v35 = vpop.f32.mrb[66].mxu0  ;;  %v2338_v25 = vadd.f32 %v2337_v12, %v2336_v0 }
 0x188   : > { %v3687_v8 = vmax.f32 %v3659_v6, %v1346_v14  ;;  %v1334_v61 = vadd.f32 %v1333_v35, %v1234_v42  ;;  %v2523_v38 = vpop.f32.mrb[67].mxu0 }
 0x189   : > { %v2339_v43 = vpop.f32.mrb[64].mxu1  ;;  %v1495_v39 = vadd.f32 %v2338_v25, %v3613_v59 }
 0x18a   : > { %v1347_v51 = vmax.f32 %v1334_v61, 0.0  ;;  %v2340_v20 = vpop.f32.mrb[65].mxu1 }
 0x18b   : > { %v1338_v56 = vpop.f32.mrb[68].mxu0  ;;  %v2341_v54 = vadd.f32 %v2340_v20, %v2339_v43 }
 0x18c   : > { %v3690_v34 = vmax.f32 %v3662_v47, %v1347_v51  ;;  %v1339_v63 = vadd.f32 %v1338_v56, %v1239_v46  ;;  %v2526_v5 = vpop.f32.mrb[69].mxu0 }
 0x18d   : > { %v2342_v55 = vpop.f32.mrb[66].mxu1  ;;  %v1500_v12 = vadd.f32 %v2341_v54, %v3613_v59 }
 0x18e   : > { %v1348_v1 = vmax.f32 %v1339_v63, 0.0  ;;  %v2343_v19 = vpop.f32.mrb[67].mxu1 }
 0x18f   : > { %v2344_v27 = vadd.f32 %v2343_v19, %v2342_v55 }
 0x190   : > { %v3693_v6 = vmax.f32 %v3665_v30, %v1348_v1 }
 0x191   : > { %v2345_v37 = vpop.f32.mrb[68].mxu1  ;;  %v1505_v63 = vadd.f32 %v2344_v27, %v3613_v59 }
 0x192   : > { %v2346_v23 = vpop.f32.mrb[69].mxu1 }
 0x193   : > { %v2380_v36 = vpop.f32.mrb[70].mxu0  ;;  %v3695_v42 = vadd.f32 %v2346_v23, %v2345_v37 }
 0x194   : > { %v2381_v40 = vpop.f32.mrb[71].mxu0 }
 0x195   : > { %v2382_v47 = vadd.f32 %v2381_v40, %v2380_v36  ;;  %v1679_v22 = vpop.f32.mrb[70].mxu1  ;;  %v1510_v40 = vadd.f32 %v3695_v42, %v3613_v59 }
 0x196   : > { %v2545_v24 = vpop.f32.mrb[71].mxu1 }
 0x197   : > { %v2383_v28 = vpop.f32.mrb[72].mxu0  ;;  %v1580_v29 = vadd.f32 %v2382_v47, %v1480_v11 }
 0x198   : > { %v2384_v46 = vpop.f32.mrb[73].mxu0 }
 0x199   : > { %v2385_v44 = vadd.f32 %v2384_v46, %v2383_v28  ;;  %v1680_v30 = vadd.f32 %v1679_v22, %v1580_v29  ;;  %v1684_v49 = vpop.f32.mrb[72].mxu1 }
 0x19a   : > { %v2548_v53 = vpop.f32.mrb[73].mxu1 }
 0x19b   : > { %v1713_v18 = vmax.f32 %v1680_v30, 0.0  ;;  %v2386_v57 = vpop.f32.mrb[74].mxu0  ;;  %v1585_v58 = vadd.f32 %v2385_v44, %v1485_v31 }
 0x19c   : > { %v2387_v60 = vpop.f32.mrb[75].mxu0 }
 0x19d   : > { %v1720_v41 = vmax.f32 %v3675_v45, %v1713_v18  ;;  %v2388_v2 = vadd.f32 %v2387_v60, %v2386_v57  ;;  %v1685_v3 = vadd.f32 %v1684_v49, %v1585_v58  ;;  %v1689_v4 = vpop.f32.mrb[74].mxu1 }
 0x19e   : > { %v2551_v17 = vpop.f32.mrb[75].mxu1 }
 0x19f   : > { %1727 = vst [vmem:[%s3703_s20] sm:$0xff] %v1720_v41  ;;  %v1714_v9 = vmax.f32 %v1685_v3, 0.0  ;;  %v2389_v10 = vpop.f32.mrb[76].mxu0  ;;  %v1590_v26 = vadd.f32 %v2388_v2, %v1490_v7 }
 0x1a0   : > { %v2390_v33 = vpop.f32.mrb[77].mxu0 }
 0x1a1   : > { %v1721_v13 = vmax.f32 %v3678_v21, %v1714_v9  ;;  %v2391_v50 = vadd.f32 %v2390_v33, %v2389_v10  ;;  %v1690_v48 = vadd.f32 %v1689_v4, %v1590_v26  ;;  %v1694_v62 = vpop.f32.mrb[76].mxu1 }
 0x1a2   : > { %v2554_v52 = vpop.f32.mrb[77].mxu1 }
 0x1a3   : > { %1728 = vst [vmem:[%s3703_s20 + $0x8] sm:$0xff] %v1721_v13  ;;  %v1715_v45 = vmax.f32 %v1690_v48, 0.0  ;;  %v2392_v15 = vpop.f32.mrb[78].mxu0  ;;  %v1595_v0 = vadd.f32 %v2391_v50, %v1495_v39 }
 0x1a4   : > { %v2393_v14 = vpop.f32.mrb[79].mxu0 }
 0x1a5   : > { %v1722_v35 = vmax.f32 %v3681_v32, %v1715_v45  ;;  %v2394_v61 = vadd.f32 %v2393_v14, %v2392_v15  ;;  %v1695_v38 = vadd.f32 %v1694_v62, %v1595_v0  ;;  %v1699_v25 = vpop.f32.mrb[78].mxu1 }
 0x1a6   : > { %v2557_v43 = vpop.f32.mrb[79].mxu1 }
 0x1a7   : > { %1729 = vst [vmem:[%s3703_s20 + $0x10] sm:$0xff] %v1722_v35  ;;  %v1716_v21 = vmax.f32 %v1695_v38, 0.0  ;;  %v2395_v51 = vpop.f32.mrb[80].mxu0  ;;  %v1600_v20 = vadd.f32 %v2394_v61, %v1500_v12 }
 0x1a8   : > { %v2396_v56 = vpop.f32.mrb[81].mxu0 }
 0x1a9   : > { %v1723_v5 = vmax.f32 %v3684_v16, %v1716_v21  ;;  %v2397_v55 = vadd.f32 %v2396_v56, %v2395_v51  ;;  %v1700_v1 = vadd.f32 %v1699_v25, %v1600_v20  ;;  %v1704_v54 = vpop.f32.mrb[80].mxu1 }
 0x1aa   : > { %v2560_v19 = vpop.f32.mrb[81].mxu1 }
 0x1ab   : > { %1730 = vst [vmem:[%s3703_s20 + $0x18] sm:$0xff] %v1723_v5  ;;  %v1717_v32 = vmax.f32 %v1700_v1, 0.0  ;;  %v2398_v37 = vpop.f32.mrb[82].mxu0  ;;  %v1605_v23 = vadd.f32 %v2397_v55, %v1505_v63 }
 0x1ac   : > { %v2399_v36 = vpop.f32.mrb[83].mxu0 }
 0x1ad   : > { %v1724_v11 = vmax.f32 %v3687_v8, %v1717_v32  ;;  %v2400_v27 = vadd.f32 %v2399_v36, %v2398_v37  ;;  %v1705_v47 = vadd.f32 %v1704_v54, %v1605_v23  ;;  %v1709_v16 = vpop.f32.mrb[82].mxu1 }
 0x1ae   : > { %v2563_v22 = vpop.f32.mrb[83].mxu1 }
 0x1af   : > { %1731 = vst [vmem:[%s3703_s20 + $0x20] sm:$0xff] %v1724_v11  ;;  %v1718_v24 = vmax.f32 %v1705_v47, 0.0  ;;  %v1610_v28 = vadd.f32 %v2400_v27, %v1510_v40 }
 0x1b1   : > { %v1725_v29 = vmax.f32 %v3690_v34, %v1718_v24  ;;  %v1710_v46 = vadd.f32 %v1709_v16, %v1610_v28 }
 0x1b3   : > { %1732 = vst [vmem:[%s3703_s20 + $0x28] sm:$0xff] %v1725_v29  ;;  %v1719_v31 = vmax.f32 %v1710_v46, 0.0 }
 0x1b5   : > { %v1726_v44 = vmax.f32 %v3693_v6, %v1719_v31 }
 0x1b7   : > { %1733 = vst [vmem:[%s3703_s20 + $0x30] sm:$0x1] %v1726_v44 }
 0x1b8 PF: > { %s13_s12 = sadd.s32 1, %s2887_s12  }
 0x1b9   : > { %p10_p4 = scmp.ge.s32.totalorder %s13_s12, 4  }
 0x1bb   :  { %12 = sbr.rel (!%p10_p4) target bundleno = 1 (0x1), region = 65 }

// kernel: simple_cnn_forward.5
= control target key start
LH: loop header
LB: loop body
LE: loop exit
PB: predicated region body
PF: predicated region fallthrough
CT: control target
= control target key end

     0   :  { %s10758_s15 = smov 0   ;;  %s10760_s16 = smov 0   ;;  %s13488_s0 = inlined_call_operand.vmem [shape: bf16[2,6400], index: 0, kind: input, shape index: {}]   ;;  %s13489_s1 = inlined_call_operand.vmem [shape: bf16[6400,1024], index: 1, kind: input, shape index: {}]   ;;  %s13490_s2 = inlined_call_operand.vmem [shape: f32[1,1024], index: 2, kind: input, shape index: {}]   ;;  %s13491_s3 = inlined_call_operand.vmem [shape: f32[1024,10], index: 3, kind: input, shape index: {}]   ;;  %s13492_s4 = inlined_call_operand.vmem [shape: f32[2,2,10], index: 4, kind: output, shape index: {}]  }
   0x1   :  { %s10762_s17 = smov 0   ;;  %s10764_s18 = smov 0  }
   0x2   :  { %s10766_s19 = smov 0   ;;  %s10768_s20 = smov 0  }
   0x3   :  { %s10770_s21 = smov 0  }
   0x4 LB: > { %s23_s22 = sadd.s32 1, %s10719_s19  ;;  %s26_s23 = sadd.s32 1, %s10723_s20  ;;  %s10727_s21 = sphi %s10770_s21, %s14_s21   ;;  %s10723_s20 = sphi %s10768_s20, %s13498_s20   ;;  %s10719_s19 = sphi %s10766_s19, %s13497_s19   ;;  %s10715_s18 = sphi %s10764_s18, %s13496_s18   ;;  %s10711_s17 = sphi %s10762_s17, %s13495_s17   ;;  %s10707_s16 = sphi %s10760_s16, %s13494_s16   ;;  %s10703_s15 = sphi %s10758_s15, %s13493_s15  }
   0x5   : > { %p24_p0 = scmp.ge.s32.totalorder %s23_s22, 2  ;;  %p68_p1 = scmp.ne.s32.totalorder %s10707_s16, %s10703_s15 }
   0x6   : > { %p69_p2 = scmp.eq.s32.totalorder %s10727_s21, 0  ;;  %s61_s27 = sadd.s32 1, %s10707_s16 }
   0x7   : > { %s13500_s22 = smov (%p24_p0, %s23_s22), 0  ;;  %s13502_s23 = smov (!%p24_p0, %s26_s23), %s10723_s20 }
   0x8   : > { %p70_p3 = por %p69_p2, %p68_p1  ;;  %p28_p4 = scmp.ge.s32.totalorder %s13502_s23, 2 }
   0x9   : > { %s56_s24 = ssub.s32 %s10719_s19, %s13500_s22  ;;  %p8361_p6 = scmp.ge.s32.totalorder %s10727_s21, 4 }
   0xa   : > { %s13504_s23 = smov (%p28_p4, %s13502_s23), 0 }
   0xb   : > { %s57_s25 = ssub.s32 %s10723_s20, %s13504_s23  ;;  %172 = sbr.rel (%p8361_p6) target bundleno = 426 (0x1aa), region = 16 }
   0xc   : > { %s58_s26 = sor.u32 %s57_s25, %s56_s24 }
   0xd   : > { %p59_p5 = scmp.eq.s32.totalorder %s58_s26, 0 }
   0xf   : > { %s10809_s28 = scalar_select %p59_p5, %s10707_s16, %s61_s27  }
  0x12   : > { %183 = sbr.rel (!%p70_p3) target bundleno = 426 (0x1aa), region = 24  ;;  %s185_s29 = sand.u32 (%p70_p3), 1, %s10707_s16  }
  0x13   : > { %s9406_s30 = smul.u32 (%p70_p3), 6400, %s185_s29  ;;  %s8362_s5 = sshll.u32 (%p70_p3), %s10723_s20, 2 }
  0x14   : > { %s9175_s6 = smul.u32 (%p70_p3), 3200, %s10719_s19 }
  0x15   : > { %s10823_s12 = scalar_lea.vmem (%p70_p3), [#allocation3], %s9406_s30 }
  0x16   : > { %s191_s7 = sadd.s32 (%p70_p3), %s9175_s6, %s8362_s5 }
  0x17   : > { %s8364_s8 = sshll.u32 (%p70_p3), %s191_s7, 2 }
  0x18   : > { %s10818_s11 = scalar_lea.vmem (%p70_p3), %s13489_s1, %s8364_s8 }
  0x19   : > { %v206_v0 = vld [vmem:[%s10818_s11] sm:$0xff]  ;;  %v208_v1 = vld [vmem:[%s10818_s11 + $0x8] sm:$0xff] }
  0x1a   : > { %v210_v2 = vld [vmem:[%s10818_s11 + $0x20] sm:$0xff]  ;;  %207 = vst [vmem:[%s10823_s12] sm:$0xff] %v206_v0  ;;  %209 = vst [vmem:[%s10823_s12 + $0x8] sm:$0xff] %v208_v1  ;;  %v212_v3 = vld [vmem:[%s10818_s11 + $0x28] sm:$0xff] }
  0x1b   : > { %211 = vst [vmem:[%s10823_s12 + $0x10] sm:$0xff] %v210_v2  ;;  %v214_v4 = vld [vmem:[%s10818_s11 + $0x40] sm:$0xff]  ;;  %v216_v5 = vld [vmem:[%s10818_s11 + $0x48] sm:$0xff]  ;;  %213 = vst [vmem:[%s10823_s12 + $0x18] sm:$0xff] %v212_v3 }
  0x1c   : > { %215 = vst [vmem:[%s10823_s12 + $0x20] sm:$0xff] %v214_v4  ;;  %217 = vst [vmem:[%s10823_s12 + $0x28] sm:$0xff] %v216_v5  ;;  %v218_v6 = vld [vmem:[%s10818_s11 + $0x60] sm:$0xff]  ;;  %v220_v7 = vld [vmem:[%s10818_s11 + $0x68] sm:$0xff] }
  0x1d   : > { %v222_v8 = vld [vmem:[%s10818_s11 + $0x80] sm:$0xff]  ;;  %219 = vst [vmem:[%s10823_s12 + $0x30] sm:$0xff] %v218_v6  ;;  %221 = vst [vmem:[%s10823_s12 + $0x38] sm:$0xff] %v220_v7  ;;  %v224_v9 = vld [vmem:[%s10818_s11 + $0x88] sm:$0xff] }
  0x1e   : > { %223 = vst [vmem:[%s10823_s12 + $0x40] sm:$0xff] %v222_v8  ;;  %v226_v10 = vld [vmem:[%s10818_s11 + $0xa0] sm:$0xff]  ;;  %v228_v11 = vld [vmem:[%s10818_s11 + $0xa8] sm:$0xff]  ;;  %225 = vst [vmem:[%s10823_s12 + $0x48] sm:$0xff] %v224_v9 }
  0x1f   : > { %227 = vst [vmem:[%s10823_s12 + $0x50] sm:$0xff] %v226_v10  ;;  %229 = vst [vmem:[%s10823_s12 + $0x58] sm:$0xff] %v228_v11  ;;  %v230_v12 = vld [vmem:[%s10818_s11 + $0xc0] sm:$0xff]  ;;  %v232_v13 = vld [vmem:[%s10818_s11 + $0xc8] sm:$0xff] }
  0x20   : > { %v234_v14 = vld [vmem:[%s10818_s11 + $0xe0] sm:$0xff]  ;;  %231 = vst [vmem:[%s10823_s12 + $0x60] sm:$0xff] %v230_v12  ;;  %233 = vst [vmem:[%s10823_s12 + $0x68] sm:$0xff] %v232_v13  ;;  %v236_v15 = vld [vmem:[%s10818_s11 + $0xe8] sm:$0xff] }
  0x21   : > { %235 = vst [vmem:[%s10823_s12 + $0x70] sm:$0xff] %v234_v14  ;;  %v238_v16 = vld [vmem:[%s10818_s11 + $0x100] sm:$0xff]  ;;  %v240_v17 = vld [vmem:[%s10818_s11 + $0x108] sm:$0xff]  ;;  %237 = vst [vmem:[%s10823_s12 + $0x78] sm:$0xff] %v236_v15 }
  0x22   : > { %239 = vst [vmem:[%s10823_s12 + $0x80] sm:$0xff] %v238_v16  ;;  %241 = vst [vmem:[%s10823_s12 + $0x88] sm:$0xff] %v240_v17  ;;  %v242_v18 = vld [vmem:[%s10818_s11 + $0x120] sm:$0xff]  ;;  %v244_v19 = vld [vmem:[%s10818_s11 + $0x128] sm:$0xff] }
  0x23   : > { %v246_v20 = vld [vmem:[%s10818_s11 + $0x140] sm:$0xff]  ;;  %243 = vst [vmem:[%s10823_s12 + $0x90] sm:$0xff] %v242_v18  ;;  %245 = vst [vmem:[%s10823_s12 + $0x98] sm:$0xff] %v244_v19  ;;  %v248_v21 = vld [vmem:[%s10818_s11 + $0x148] sm:$0xff] }
  0x24   : > { %247 = vst [vmem:[%s10823_s12 + $0xa0] sm:$0xff] %v246_v20  ;;  %v250_v22 = vld [vmem:[%s10818_s11 + $0x160] sm:$0xff]  ;;  %v252_v23 = vld [vmem:[%s10818_s11 + $0x168] sm:$0xff]  ;;  %249 = vst [vmem:[%s10823_s12 + $0xa8] sm:$0xff] %v248_v21 }
  0x25   : > { %251 = vst [vmem:[%s10823_s12 + $0xb0] sm:$0xff] %v250_v22  ;;  %253 = vst [vmem:[%s10823_s12 + $0xb8] sm:$0xff] %v252_v23  ;;  %v254_v24 = vld [vmem:[%s10818_s11 + $0x180] sm:$0xff]  ;;  %v256_v25 = vld [vmem:[%s10818_s11 + $0x188] sm:$0xff] }
  0x26   : > { %v258_v26 = vld [vmem:[%s10818_s11 + $0x1a0] sm:$0xff]  ;;  %255 = vst [vmem:[%s10823_s12 + $0xc0] sm:$0xff] %v254_v24  ;;  %257 = vst [vmem:[%s10823_s12 + $0xc8] sm:$0xff] %v256_v25  ;;  %v260_v27 = vld [vmem:[%s10818_s11 + $0x1a8] sm:$0xff] }
  0x27   : > { %259 = vst [vmem:[%s10823_s12 + $0xd0] sm:$0xff] %v258_v26  ;;  %v262_v28 = vld [vmem:[%s10818_s11 + $0x1c0] sm:$0xff]  ;;  %v264_v29 = vld [vmem:[%s10818_s11 + $0x1c8] sm:$0xff]  ;;  %261 = vst [vmem:[%s10823_s12 + $0xd8] sm:$0xff] %v260_v27 }
  0x28   : > { %263 = vst [vmem:[%s10823_s12 + $0xe0] sm:$0xff] %v262_v28  ;;  %265 = vst [vmem:[%s10823_s12 + $0xe8] sm:$0xff] %v264_v29  ;;  %v266_v30 = vld [vmem:[%s10818_s11 + $0x1e0] sm:$0xff]  ;;  %v268_v31 = vld [vmem:[%s10818_s11 + $0x1e8] sm:$0xff] }
  0x29   : > { %v270_v32 = vld [vmem:[%s10818_s11 + $0x200] sm:$0xff]  ;;  %267 = vst [vmem:[%s10823_s12 + $0xf0] sm:$0xff] %v266_v30  ;;  %269 = vst [vmem:[%s10823_s12 + $0xf8] sm:$0xff] %v268_v31  ;;  %v272_v33 = vld [vmem:[%s10818_s11 + $0x208] sm:$0xff] }
  0x2a   : > { %271 = vst [vmem:[%s10823_s12 + $0x100] sm:$0xff] %v270_v32  ;;  %v274_v34 = vld [vmem:[%s10818_s11 + $0x220] sm:$0xff]  ;;  %v276_v35 = vld [vmem:[%s10818_s11 + $0x228] sm:$0xff]  ;;  %273 = vst [vmem:[%s10823_s12 + $0x108] sm:$0xff] %v272_v33 }
  0x2b   : > { %275 = vst [vmem:[%s10823_s12 + $0x110] sm:$0xff] %v274_v34  ;;  %277 = vst [vmem:[%s10823_s12 + $0x118] sm:$0xff] %v276_v35  ;;  %v278_v36 = vld [vmem:[%s10818_s11 + $0x240] sm:$0xff]  ;;  %v280_v37 = vld [vmem:[%s10818_s11 + $0x248] sm:$0xff] }
  0x2c   : > { %v282_v38 = vld [vmem:[%s10818_s11 + $0x260] sm:$0xff]  ;;  %279 = vst [vmem:[%s10823_s12 + $0x120] sm:$0xff] %v278_v36  ;;  %281 = vst [vmem:[%s10823_s12 + $0x128] sm:$0xff] %v280_v37  ;;  %v284_v39 = vld [vmem:[%s10818_s11 + $0x268] sm:$0xff] }
  0x2d   : > { %283 = vst [vmem:[%s10823_s12 + $0x130] sm:$0xff] %v282_v38  ;;  %v286_v40 = vld [vmem:[%s10818_s11 + $0x280] sm:$0xff]  ;;  %v288_v41 = vld [vmem:[%s10818_s11 + $0x288] sm:$0xff]  ;;  %285 = vst [vmem:[%s10823_s12 + $0x138] sm:$0xff] %v284_v39 }
  0x2e   : > { %287 = vst [vmem:[%s10823_s12 + $0x140] sm:$0xff] %v286_v40  ;;  %289 = vst [vmem:[%s10823_s12 + $0x148] sm:$0xff] %v288_v41  ;;  %v290_v42 = vld [vmem:[%s10818_s11 + $0x2a0] sm:$0xff]  ;;  %v292_v43 = vld [vmem:[%s10818_s11 + $0x2a8] sm:$0xff] }
  0x2f   : > { %v294_v44 = vld [vmem:[%s10818_s11 + $0x2c0] sm:$0xff]  ;;  %291 = vst [vmem:[%s10823_s12 + $0x150] sm:$0xff] %v290_v42  ;;  %293 = vst [vmem:[%s10823_s12 + $0x158] sm:$0xff] %v292_v43  ;;  %v296_v45 = vld [vmem:[%s10818_s11 + $0x2c8] sm:$0xff] }
  0x30   : > { %295 = vst [vmem:[%s10823_s12 + $0x160] sm:$0xff] %v294_v44  ;;  %v298_v46 = vld [vmem:[%s10818_s11 + $0x2e0] sm:$0xff]  ;;  %v300_v47 = vld [vmem:[%s10818_s11 + $0x2e8] sm:$0xff]  ;;  %297 = vst [vmem:[%s10823_s12 + $0x168] sm:$0xff] %v296_v45 }
  0x31   : > { %299 = vst [vmem:[%s10823_s12 + $0x170] sm:$0xff] %v298_v46  ;;  %301 = vst [vmem:[%s10823_s12 + $0x178] sm:$0xff] %v300_v47  ;;  %v302_v48 = vld [vmem:[%s10818_s11 + $0x300] sm:$0xff]  ;;  %v304_v49 = vld [vmem:[%s10818_s11 + $0x308] sm:$0xff] }
  0x32   : > { %v306_v50 = vld [vmem:[%s10818_s11 + $0x320] sm:$0xff]  ;;  %303 = vst [vmem:[%s10823_s12 + $0x180] sm:$0xff] %v302_v48  ;;  %305 = vst [vmem:[%s10823_s12 + $0x188] sm:$0xff] %v304_v49  ;;  %v308_v51 = vld [vmem:[%s10818_s11 + $0x328] sm:$0xff] }
  0x33   : > { %307 = vst [vmem:[%s10823_s12 + $0x190] sm:$0xff] %v306_v50  ;;  %v310_v52 = vld [vmem:[%s10818_s11 + $0x340] sm:$0xff]  ;;  %v312_v53 = vld [vmem:[%s10818_s11 + $0x348] sm:$0xff]  ;;  %309 = vst [vmem:[%s10823_s12 + $0x198] sm:$0xff] %v308_v51 }
  0x34   : > { %311 = vst [vmem:[%s10823_s12 + $0x1a0] sm:$0xff] %v310_v52  ;;  %313 = vst [vmem:[%s10823_s12 + $0x1a8] sm:$0xff] %v312_v53  ;;  %v314_v54 = vld [vmem:[%s10818_s11 + $0x360] sm:$0xff]  ;;  %v316_v55 = vld [vmem:[%s10818_s11 + $0x368] sm:$0xff] }
  0x35   : > { %v318_v56 = vld [vmem:[%s10818_s11 + $0x380] sm:$0xff]  ;;  %315 = vst [vmem:[%s10823_s12 + $0x1b0] sm:$0xff] %v314_v54  ;;  %317 = vst [vmem:[%s10823_s12 + $0x1b8] sm:$0xff] %v316_v55  ;;  %v320_v57 = vld [vmem:[%s10818_s11 + $0x388] sm:$0xff] }
  0x36   : > { %319 = vst [vmem:[%s10823_s12 + $0x1c0] sm:$0xff] %v318_v56  ;;  %v322_v58 = vld [vmem:[%s10818_s11 + $0x3a0] sm:$0xff]  ;;  %v324_v59 = vld [vmem:[%s10818_s11 + $0x3a8] sm:$0xff]  ;;  %321 = vst [vmem:[%s10823_s12 + $0x1c8] sm:$0xff] %v320_v57 }
  0x37   : > { %323 = vst [vmem:[%s10823_s12 + $0x1d0] sm:$0xff] %v322_v58  ;;  %325 = vst [vmem:[%s10823_s12 + $0x1d8] sm:$0xff] %v324_v59  ;;  %v326_v60 = vld [vmem:[%s10818_s11 + $0x3c0] sm:$0xff]  ;;  %v328_v61 = vld [vmem:[%s10818_s11 + $0x3c8] sm:$0xff] }
  0x38   : > { %v330_v62 = vld [vmem:[%s10818_s11 + $0x3e0] sm:$0xff]  ;;  %327 = vst [vmem:[%s10823_s12 + $0x1e0] sm:$0xff] %v326_v60  ;;  %329 = vst [vmem:[%s10823_s12 + $0x1e8] sm:$0xff] %v328_v61  ;;  %v332_v63 = vld [vmem:[%s10818_s11 + $0x3e8] sm:$0xff] }
  0x39   : > { %331 = vst [vmem:[%s10823_s12 + $0x1f0] sm:$0xff] %v330_v62  ;;  %v334_v0 = vld [vmem:[%s10818_s11 + $0x400] sm:$0xff]  ;;  %v336_v1 = vld [vmem:[%s10818_s11 + $0x408] sm:$0xff]  ;;  %333 = vst [vmem:[%s10823_s12 + $0x1f8] sm:$0xff] %v332_v63 }
  0x3a   : > { %335 = vst [vmem:[%s10823_s12 + $0x200] sm:$0xff] %v334_v0  ;;  %337 = vst [vmem:[%s10823_s12 + $0x208] sm:$0xff] %v336_v1  ;;  %v338_v2 = vld [vmem:[%s10818_s11 + $0x420] sm:$0xff]  ;;  %v340_v3 = vld [vmem:[%s10818_s11 + $0x428] sm:$0xff] }
  0x3b   : > { %v342_v4 = vld [vmem:[%s10818_s11 + $0x440] sm:$0xff]  ;;  %339 = vst [vmem:[%s10823_s12 + $0x210] sm:$0xff] %v338_v2  ;;  %341 = vst [vmem:[%s10823_s12 + $0x218] sm:$0xff] %v340_v3  ;;  %v344_v5 = vld [vmem:[%s10818_s11 + $0x448] sm:$0xff] }
  0x3c   : > { %343 = vst [vmem:[%s10823_s12 + $0x220] sm:$0xff] %v342_v4  ;;  %v346_v6 = vld [vmem:[%s10818_s11 + $0x460] sm:$0xff]  ;;  %v348_v7 = vld [vmem:[%s10818_s11 + $0x468] sm:$0xff]  ;;  %345 = vst [vmem:[%s10823_s12 + $0x228] sm:$0xff] %v344_v5 }
  0x3d   : > { %347 = vst [vmem:[%s10823_s12 + $0x230] sm:$0xff] %v346_v6  ;;  %349 = vst [vmem:[%s10823_s12 + $0x238] sm:$0xff] %v348_v7  ;;  %v350_v8 = vld [vmem:[%s10818_s11 + $0x480] sm:$0xff]  ;;  %v352_v9 = vld [vmem:[%s10818_s11 + $0x488] sm:$0xff] }
  0x3e   : > { %v354_v10 = vld [vmem:[%s10818_s11 + $0x4a0] sm:$0xff]  ;;  %351 = vst [vmem:[%s10823_s12 + $0x240] sm:$0xff] %v350_v8  ;;  %353 = vst [vmem:[%s10823_s12 + $0x248] sm:$0xff] %v352_v9  ;;  %v356_v11 = vld [vmem:[%s10818_s11 + $0x4a8] sm:$0xff] }
  0x3f   : > { %355 = vst [vmem:[%s10823_s12 + $0x250] sm:$0xff] %v354_v10  ;;  %v358_v12 = vld [vmem:[%s10818_s11 + $0x4c0] sm:$0xff]  ;;  %v360_v13 = vld [vmem:[%s10818_s11 + $0x4c8] sm:$0xff]  ;;  %357 = vst [vmem:[%s10823_s12 + $0x258] sm:$0xff] %v356_v11 }
  0x40   : > { %359 = vst [vmem:[%s10823_s12 + $0x260] sm:$0xff] %v358_v12  ;;  %361 = vst [vmem:[%s10823_s12 + $0x268] sm:$0xff] %v360_v13  ;;  %v362_v14 = vld [vmem:[%s10818_s11 + $0x4e0] sm:$0xff]  ;;  %v364_v15 = vld [vmem:[%s10818_s11 + $0x4e8] sm:$0xff] }
  0x41   : > { %v366_v16 = vld [vmem:[%s10818_s11 + $0x500] sm:$0xff]  ;;  %363 = vst [vmem:[%s10823_s12 + $0x270] sm:$0xff] %v362_v14  ;;  %365 = vst [vmem:[%s10823_s12 + $0x278] sm:$0xff] %v364_v15  ;;  %v368_v17 = vld [vmem:[%s10818_s11 + $0x508] sm:$0xff] }
  0x42   : > { %367 = vst [vmem:[%s10823_s12 + $0x280] sm:$0xff] %v366_v16  ;;  %v370_v18 = vld [vmem:[%s10818_s11 + $0x520] sm:$0xff]  ;;  %v372_v19 = vld [vmem:[%s10818_s11 + $0x528] sm:$0xff]  ;;  %369 = vst [vmem:[%s10823_s12 + $0x288] sm:$0xff] %v368_v17 }
  0x43   : > { %371 = vst [vmem:[%s10823_s12 + $0x290] sm:$0xff] %v370_v18  ;;  %373 = vst [vmem:[%s10823_s12 + $0x298] sm:$0xff] %v372_v19  ;;  %v374_v20 = vld [vmem:[%s10818_s11 + $0x540] sm:$0xff]  ;;  %v376_v21 = vld [vmem:[%s10818_s11 + $0x548] sm:$0xff] }
  0x44   : > { %v378_v22 = vld [vmem:[%s10818_s11 + $0x560] sm:$0xff]  ;;  %375 = vst [vmem:[%s10823_s12 + $0x2a0] sm:$0xff] %v374_v20  ;;  %377 = vst [vmem:[%s10823_s12 + $0x2a8] sm:$0xff] %v376_v21  ;;  %v380_v23 = vld [vmem:[%s10818_s11 + $0x568] sm:$0xff] }
  0x45   : > { %379 = vst [vmem:[%s10823_s12 + $0x2b0] sm:$0xff] %v378_v22  ;;  %v382_v24 = vld [vmem:[%s10818_s11 + $0x580] sm:$0xff]  ;;  %v384_v25 = vld [vmem:[%s10818_s11 + $0x588] sm:$0xff]  ;;  %381 = vst [vmem:[%s10823_s12 + $0x2b8] sm:$0xff] %v380_v23 }
  0x46   : > { %383 = vst [vmem:[%s10823_s12 + $0x2c0] sm:$0xff] %v382_v24  ;;  %385 = vst [vmem:[%s10823_s12 + $0x2c8] sm:$0xff] %v384_v25  ;;  %v386_v26 = vld [vmem:[%s10818_s11 + $0x5a0] sm:$0xff]  ;;  %v388_v27 = vld [vmem:[%s10818_s11 + $0x5a8] sm:$0xff] }
  0x47   : > { %v390_v28 = vld [vmem:[%s10818_s11 + $0x5c0] sm:$0xff]  ;;  %387 = vst [vmem:[%s10823_s12 + $0x2d0] sm:$0xff] %v386_v26  ;;  %389 = vst [vmem:[%s10823_s12 + $0x2d8] sm:$0xff] %v388_v27  ;;  %v392_v29 = vld [vmem:[%s10818_s11 + $0x5c8] sm:$0xff] }
  0x48   : > { %391 = vst [vmem:[%s10823_s12 + $0x2e0] sm:$0xff] %v390_v28  ;;  %v394_v30 = vld [vmem:[%s10818_s11 + $0x5e0] sm:$0xff]  ;;  %v396_v31 = vld [vmem:[%s10818_s11 + $0x5e8] sm:$0xff]  ;;  %393 = vst [vmem:[%s10823_s12 + $0x2e8] sm:$0xff] %v392_v29 }
  0x49   : > { %395 = vst [vmem:[%s10823_s12 + $0x2f0] sm:$0xff] %v394_v30  ;;  %397 = vst [vmem:[%s10823_s12 + $0x2f8] sm:$0xff] %v396_v31  ;;  %v398_v32 = vld [vmem:[%s10818_s11 + $0x600] sm:$0xff]  ;;  %v400_v33 = vld [vmem:[%s10818_s11 + $0x608] sm:$0xff] }
  0x4a   : > { %v402_v34 = vld [vmem:[%s10818_s11 + $0x620] sm:$0xff]  ;;  %399 = vst [vmem:[%s10823_s12 + $0x300] sm:$0xff] %v398_v32  ;;  %401 = vst [vmem:[%s10823_s12 + $0x308] sm:$0xff] %v400_v33  ;;  %v404_v35 = vld [vmem:[%s10818_s11 + $0x628] sm:$0xff] }
  0x4b   : > { %403 = vst [vmem:[%s10823_s12 + $0x310] sm:$0xff] %v402_v34  ;;  %v406_v36 = vld [vmem:[%s10818_s11 + $0x640] sm:$0xff]  ;;  %v408_v37 = vld [vmem:[%s10818_s11 + $0x648] sm:$0xff]  ;;  %405 = vst [vmem:[%s10823_s12 + $0x318] sm:$0xff] %v404_v35 }
  0x4c   : > { %407 = vst [vmem:[%s10823_s12 + $0x320] sm:$0xff] %v406_v36  ;;  %409 = vst [vmem:[%s10823_s12 + $0x328] sm:$0xff] %v408_v37  ;;  %v410_v38 = vld [vmem:[%s10818_s11 + $0x660] sm:$0xff]  ;;  %v412_v39 = vld [vmem:[%s10818_s11 + $0x668] sm:$0xff] }
  0x4d   : > { %v414_v40 = vld [vmem:[%s10818_s11 + $0x680] sm:$0xff]  ;;  %411 = vst [vmem:[%s10823_s12 + $0x330] sm:$0xff] %v410_v38  ;;  %413 = vst [vmem:[%s10823_s12 + $0x338] sm:$0xff] %v412_v39  ;;  %v416_v41 = vld [vmem:[%s10818_s11 + $0x688] sm:$0xff] }
  0x4e   : > { %415 = vst [vmem:[%s10823_s12 + $0x340] sm:$0xff] %v414_v40  ;;  %v418_v42 = vld [vmem:[%s10818_s11 + $0x6a0] sm:$0xff]  ;;  %v420_v43 = vld [vmem:[%s10818_s11 + $0x6a8] sm:$0xff]  ;;  %417 = vst [vmem:[%s10823_s12 + $0x348] sm:$0xff] %v416_v41 }
  0x4f   : > { %419 = vst [vmem:[%s10823_s12 + $0x350] sm:$0xff] %v418_v42  ;;  %421 = vst [vmem:[%s10823_s12 + $0x358] sm:$0xff] %v420_v43  ;;  %v422_v44 = vld [vmem:[%s10818_s11 + $0x6c0] sm:$0xff]  ;;  %v424_v45 = vld [vmem:[%s10818_s11 + $0x6c8] sm:$0xff] }
  0x50   : > { %v426_v46 = vld [vmem:[%s10818_s11 + $0x6e0] sm:$0xff]  ;;  %423 = vst [vmem:[%s10823_s12 + $0x360] sm:$0xff] %v422_v44  ;;  %425 = vst [vmem:[%s10823_s12 + $0x368] sm:$0xff] %v424_v45  ;;  %v428_v47 = vld [vmem:[%s10818_s11 + $0x6e8] sm:$0xff] }
  0x51   : > { %427 = vst [vmem:[%s10823_s12 + $0x370] sm:$0xff] %v426_v46  ;;  %v430_v48 = vld [vmem:[%s10818_s11 + $0x700] sm:$0xff]  ;;  %v432_v49 = vld [vmem:[%s10818_s11 + $0x708] sm:$0xff]  ;;  %429 = vst [vmem:[%s10823_s12 + $0x378] sm:$0xff] %v428_v47 }
  0x52   : > { %431 = vst [vmem:[%s10823_s12 + $0x380] sm:$0xff] %v430_v48  ;;  %433 = vst [vmem:[%s10823_s12 + $0x388] sm:$0xff] %v432_v49  ;;  %v434_v50 = vld [vmem:[%s10818_s11 + $0x720] sm:$0xff]  ;;  %v436_v51 = vld [vmem:[%s10818_s11 + $0x728] sm:$0xff] }
  0x53   : > { %v438_v52 = vld [vmem:[%s10818_s11 + $0x740] sm:$0xff]  ;;  %435 = vst [vmem:[%s10823_s12 + $0x390] sm:$0xff] %v434_v50  ;;  %437 = vst [vmem:[%s10823_s12 + $0x398] sm:$0xff] %v436_v51  ;;  %v440_v53 = vld [vmem:[%s10818_s11 + $0x748] sm:$0xff] }
  0x54   : > { %439 = vst [vmem:[%s10823_s12 + $0x3a0] sm:$0xff] %v438_v52  ;;  %v442_v54 = vld [vmem:[%s10818_s11 + $0x760] sm:$0xff]  ;;  %v444_v55 = vld [vmem:[%s10818_s11 + $0x768] sm:$0xff]  ;;  %441 = vst [vmem:[%s10823_s12 + $0x3a8] sm:$0xff] %v440_v53 }
  0x55   : > { %443 = vst [vmem:[%s10823_s12 + $0x3b0] sm:$0xff] %v442_v54  ;;  %445 = vst [vmem:[%s10823_s12 + $0x3b8] sm:$0xff] %v444_v55  ;;  %v446_v56 = vld [vmem:[%s10818_s11 + $0x780] sm:$0xff]  ;;  %v448_v57 = vld [vmem:[%s10818_s11 + $0x788] sm:$0xff] }
  0x56   : > { %v450_v58 = vld [vmem:[%s10818_s11 + $0x7a0] sm:$0xff]  ;;  %447 = vst [vmem:[%s10823_s12 + $0x3c0] sm:$0xff] %v446_v56  ;;  %449 = vst [vmem:[%s10823_s12 + $0x3c8] sm:$0xff] %v448_v57  ;;  %v452_v59 = vld [vmem:[%s10818_s11 + $0x7a8] sm:$0xff] }
  0x57   : > { %451 = vst [vmem:[%s10823_s12 + $0x3d0] sm:$0xff] %v450_v58  ;;  %v454_v60 = vld [vmem:[%s10818_s11 + $0x7c0] sm:$0xff]  ;;  %v456_v61 = vld [vmem:[%s10818_s11 + $0x7c8] sm:$0xff]  ;;  %453 = vst [vmem:[%s10823_s12 + $0x3d8] sm:$0xff] %v452_v59 }
  0x58   : > { %455 = vst [vmem:[%s10823_s12 + $0x3e0] sm:$0xff] %v454_v60  ;;  %457 = vst [vmem:[%s10823_s12 + $0x3e8] sm:$0xff] %v456_v61  ;;  %v458_v62 = vld [vmem:[%s10818_s11 + $0x7e0] sm:$0xff]  ;;  %v460_v63 = vld [vmem:[%s10818_s11 + $0x7e8] sm:$0xff] }
  0x59   : > { %v462_v0 = vld [vmem:[%s10818_s11 + $0x800] sm:$0xff]  ;;  %459 = vst [vmem:[%s10823_s12 + $0x3f0] sm:$0xff] %v458_v62  ;;  %461 = vst [vmem:[%s10823_s12 + $0x3f8] sm:$0xff] %v460_v63  ;;  %v464_v1 = vld [vmem:[%s10818_s11 + $0x808] sm:$0xff] }
  0x5a   : > { %463 = vst [vmem:[%s10823_s12 + $0x400] sm:$0xff] %v462_v0  ;;  %v466_v2 = vld [vmem:[%s10818_s11 + $0x820] sm:$0xff]  ;;  %v468_v3 = vld [vmem:[%s10818_s11 + $0x828] sm:$0xff]  ;;  %465 = vst [vmem:[%s10823_s12 + $0x408] sm:$0xff] %v464_v1 }
  0x5b   : > { %467 = vst [vmem:[%s10823_s12 + $0x410] sm:$0xff] %v466_v2  ;;  %469 = vst [vmem:[%s10823_s12 + $0x418] sm:$0xff] %v468_v3  ;;  %v470_v4 = vld [vmem:[%s10818_s11 + $0x840] sm:$0xff]  ;;  %v472_v5 = vld [vmem:[%s10818_s11 + $0x848] sm:$0xff] }
  0x5c   : > { %v474_v6 = vld [vmem:[%s10818_s11 + $0x860] sm:$0xff]  ;;  %471 = vst [vmem:[%s10823_s12 + $0x420] sm:$0xff] %v470_v4  ;;  %473 = vst [vmem:[%s10823_s12 + $0x428] sm:$0xff] %v472_v5  ;;  %v476_v7 = vld [vmem:[%s10818_s11 + $0x868] sm:$0xff] }
  0x5d   : > { %475 = vst [vmem:[%s10823_s12 + $0x430] sm:$0xff] %v474_v6  ;;  %v478_v8 = vld [vmem:[%s10818_s11 + $0x880] sm:$0xff]  ;;  %v480_v9 = vld [vmem:[%s10818_s11 + $0x888] sm:$0xff]  ;;  %477 = vst [vmem:[%s10823_s12 + $0x438] sm:$0xff] %v476_v7 }
  0x5e   : > { %479 = vst [vmem:[%s10823_s12 + $0x440] sm:$0xff] %v478_v8  ;;  %481 = vst [vmem:[%s10823_s12 + $0x448] sm:$0xff] %v480_v9  ;;  %v482_v10 = vld [vmem:[%s10818_s11 + $0x8a0] sm:$0xff]  ;;  %v484_v11 = vld [vmem:[%s10818_s11 + $0x8a8] sm:$0xff] }
  0x5f   : > { %v486_v12 = vld [vmem:[%s10818_s11 + $0x8c0] sm:$0xff]  ;;  %483 = vst [vmem:[%s10823_s12 + $0x450] sm:$0xff] %v482_v10  ;;  %485 = vst [vmem:[%s10823_s12 + $0x458] sm:$0xff] %v484_v11  ;;  %v488_v13 = vld [vmem:[%s10818_s11 + $0x8c8] sm:$0xff] }
  0x60   : > { %487 = vst [vmem:[%s10823_s12 + $0x460] sm:$0xff] %v486_v12  ;;  %v490_v14 = vld [vmem:[%s10818_s11 + $0x8e0] sm:$0xff]  ;;  %v492_v15 = vld [vmem:[%s10818_s11 + $0x8e8] sm:$0xff]  ;;  %489 = vst [vmem:[%s10823_s12 + $0x468] sm:$0xff] %v488_v13 }
  0x61   : > { %491 = vst [vmem:[%s10823_s12 + $0x470] sm:$0xff] %v490_v14  ;;  %493 = vst [vmem:[%s10823_s12 + $0x478] sm:$0xff] %v492_v15  ;;  %v494_v16 = vld [vmem:[%s10818_s11 + $0x900] sm:$0xff]  ;;  %v496_v17 = vld [vmem:[%s10818_s11 + $0x908] sm:$0xff] }
  0x62   : > { %v498_v18 = vld [vmem:[%s10818_s11 + $0x920] sm:$0xff]  ;;  %495 = vst [vmem:[%s10823_s12 + $0x480] sm:$0xff] %v494_v16  ;;  %497 = vst [vmem:[%s10823_s12 + $0x488] sm:$0xff] %v496_v17  ;;  %v500_v19 = vld [vmem:[%s10818_s11 + $0x928] sm:$0xff] }
  0x63   : > { %499 = vst [vmem:[%s10823_s12 + $0x490] sm:$0xff] %v498_v18  ;;  %v502_v20 = vld [vmem:[%s10818_s11 + $0x940] sm:$0xff]  ;;  %v504_v21 = vld [vmem:[%s10818_s11 + $0x948] sm:$0xff]  ;;  %501 = vst [vmem:[%s10823_s12 + $0x498] sm:$0xff] %v500_v19 }
  0x64   : > { %503 = vst [vmem:[%s10823_s12 + $0x4a0] sm:$0xff] %v502_v20  ;;  %505 = vst [vmem:[%s10823_s12 + $0x4a8] sm:$0xff] %v504_v21  ;;  %v506_v22 = vld [vmem:[%s10818_s11 + $0x960] sm:$0xff]  ;;  %v508_v23 = vld [vmem:[%s10818_s11 + $0x968] sm:$0xff] }
  0x65   : > { %v510_v24 = vld [vmem:[%s10818_s11 + $0x980] sm:$0xff]  ;;  %507 = vst [vmem:[%s10823_s12 + $0x4b0] sm:$0xff] %v506_v22  ;;  %509 = vst [vmem:[%s10823_s12 + $0x4b8] sm:$0xff] %v508_v23  ;;  %v512_v25 = vld [vmem:[%s10818_s11 + $0x988] sm:$0xff] }
  0x66   : > { %511 = vst [vmem:[%s10823_s12 + $0x4c0] sm:$0xff] %v510_v24  ;;  %v514_v26 = vld [vmem:[%s10818_s11 + $0x9a0] sm:$0xff]  ;;  %v516_v27 = vld [vmem:[%s10818_s11 + $0x9a8] sm:$0xff]  ;;  %513 = vst [vmem:[%s10823_s12 + $0x4c8] sm:$0xff] %v512_v25 }
  0x67   : > { %515 = vst [vmem:[%s10823_s12 + $0x4d0] sm:$0xff] %v514_v26  ;;  %517 = vst [vmem:[%s10823_s12 + $0x4d8] sm:$0xff] %v516_v27  ;;  %v518_v28 = vld [vmem:[%s10818_s11 + $0x9c0] sm:$0xff]  ;;  %v520_v29 = vld [vmem:[%s10818_s11 + $0x9c8] sm:$0xff] }
  0x68   : > { %v522_v30 = vld [vmem:[%s10818_s11 + $0x9e0] sm:$0xff]  ;;  %519 = vst [vmem:[%s10823_s12 + $0x4e0] sm:$0xff] %v518_v28  ;;  %521 = vst [vmem:[%s10823_s12 + $0x4e8] sm:$0xff] %v520_v29  ;;  %v524_v31 = vld [vmem:[%s10818_s11 + $0x9e8] sm:$0xff] }
  0x69   : > { %523 = vst [vmem:[%s10823_s12 + $0x4f0] sm:$0xff] %v522_v30  ;;  %v526_v32 = vld [vmem:[%s10818_s11 + $0xa00] sm:$0xff]  ;;  %v528_v33 = vld [vmem:[%s10818_s11 + $0xa08] sm:$0xff]  ;;  %525 = vst [vmem:[%s10823_s12 + $0x4f8] sm:$0xff] %v524_v31 }
  0x6a   : > { %527 = vst [vmem:[%s10823_s12 + $0x500] sm:$0xff] %v526_v32  ;;  %529 = vst [vmem:[%s10823_s12 + $0x508] sm:$0xff] %v528_v33  ;;  %v530_v34 = vld [vmem:[%s10818_s11 + $0xa20] sm:$0xff]  ;;  %v532_v35 = vld [vmem:[%s10818_s11 + $0xa28] sm:$0xff] }
  0x6b   : > { %v534_v36 = vld [vmem:[%s10818_s11 + $0xa40] sm:$0xff]  ;;  %531 = vst [vmem:[%s10823_s12 + $0x510] sm:$0xff] %v530_v34  ;;  %533 = vst [vmem:[%s10823_s12 + $0x518] sm:$0xff] %v532_v35  ;;  %v536_v37 = vld [vmem:[%s10818_s11 + $0xa48] sm:$0xff] }
  0x6c   : > { %535 = vst [vmem:[%s10823_s12 + $0x520] sm:$0xff] %v534_v36  ;;  %v538_v38 = vld [vmem:[%s10818_s11 + $0xa60] sm:$0xff]  ;;  %v540_v39 = vld [vmem:[%s10818_s11 + $0xa68] sm:$0xff]  ;;  %537 = vst [vmem:[%s10823_s12 + $0x528] sm:$0xff] %v536_v37 }
  0x6d   : > { %539 = vst [vmem:[%s10823_s12 + $0x530] sm:$0xff] %v538_v38  ;;  %541 = vst [vmem:[%s10823_s12 + $0x538] sm:$0xff] %v540_v39  ;;  %v542_v40 = vld [vmem:[%s10818_s11 + $0xa80] sm:$0xff]  ;;  %v544_v41 = vld [vmem:[%s10818_s11 + $0xa88] sm:$0xff] }
  0x6e   : > { %v546_v42 = vld [vmem:[%s10818_s11 + $0xaa0] sm:$0xff]  ;;  %543 = vst [vmem:[%s10823_s12 + $0x540] sm:$0xff] %v542_v40  ;;  %545 = vst [vmem:[%s10823_s12 + $0x548] sm:$0xff] %v544_v41  ;;  %v548_v43 = vld [vmem:[%s10818_s11 + $0xaa8] sm:$0xff] }
  0x6f   : > { %547 = vst [vmem:[%s10823_s12 + $0x550] sm:$0xff] %v546_v42  ;;  %v550_v44 = vld [vmem:[%s10818_s11 + $0xac0] sm:$0xff]  ;;  %v552_v45 = vld [vmem:[%s10818_s11 + $0xac8] sm:$0xff]  ;;  %549 = vst [vmem:[%s10823_s12 + $0x558] sm:$0xff] %v548_v43 }
  0x70   : > { %551 = vst [vmem:[%s10823_s12 + $0x560] sm:$0xff] %v550_v44  ;;  %553 = vst [vmem:[%s10823_s12 + $0x568] sm:$0xff] %v552_v45  ;;  %v554_v46 = vld [vmem:[%s10818_s11 + $0xae0] sm:$0xff]  ;;  %v556_v47 = vld [vmem:[%s10818_s11 + $0xae8] sm:$0xff] }
  0x71   : > { %v558_v48 = vld [vmem:[%s10818_s11 + $0xb00] sm:$0xff]  ;;  %555 = vst [vmem:[%s10823_s12 + $0x570] sm:$0xff] %v554_v46  ;;  %557 = vst [vmem:[%s10823_s12 + $0x578] sm:$0xff] %v556_v47  ;;  %v560_v49 = vld [vmem:[%s10818_s11 + $0xb08] sm:$0xff] }
  0x72   : > { %559 = vst [vmem:[%s10823_s12 + $0x580] sm:$0xff] %v558_v48  ;;  %v562_v50 = vld [vmem:[%s10818_s11 + $0xb20] sm:$0xff]  ;;  %v564_v51 = vld [vmem:[%s10818_s11 + $0xb28] sm:$0xff]  ;;  %561 = vst [vmem:[%s10823_s12 + $0x588] sm:$0xff] %v560_v49 }
  0x73   : > { %563 = vst [vmem:[%s10823_s12 + $0x590] sm:$0xff] %v562_v50  ;;  %565 = vst [vmem:[%s10823_s12 + $0x598] sm:$0xff] %v564_v51  ;;  %v566_v52 = vld [vmem:[%s10818_s11 + $0xb40] sm:$0xff]  ;;  %v568_v53 = vld [vmem:[%s10818_s11 + $0xb48] sm:$0xff] }
  0x74   : > { %v570_v54 = vld [vmem:[%s10818_s11 + $0xb60] sm:$0xff]  ;;  %567 = vst [vmem:[%s10823_s12 + $0x5a0] sm:$0xff] %v566_v52  ;;  %569 = vst [vmem:[%s10823_s12 + $0x5a8] sm:$0xff] %v568_v53  ;;  %v572_v55 = vld [vmem:[%s10818_s11 + $0xb68] sm:$0xff] }
  0x75   : > { %571 = vst [vmem:[%s10823_s12 + $0x5b0] sm:$0xff] %v570_v54  ;;  %v574_v56 = vld [vmem:[%s10818_s11 + $0xb80] sm:$0xff]  ;;  %v576_v57 = vld [vmem:[%s10818_s11 + $0xb88] sm:$0xff]  ;;  %573 = vst [vmem:[%s10823_s12 + $0x5b8] sm:$0xff] %v572_v55 }
  0x76   : > { %575 = vst [vmem:[%s10823_s12 + $0x5c0] sm:$0xff] %v574_v56  ;;  %577 = vst [vmem:[%s10823_s12 + $0x5c8] sm:$0xff] %v576_v57  ;;  %v578_v58 = vld [vmem:[%s10818_s11 + $0xba0] sm:$0xff]  ;;  %v580_v59 = vld [vmem:[%s10818_s11 + $0xba8] sm:$0xff] }
  0x77   : > { %v582_v60 = vld [vmem:[%s10818_s11 + $0xbc0] sm:$0xff]  ;;  %579 = vst [vmem:[%s10823_s12 + $0x5d0] sm:$0xff] %v578_v58  ;;  %581 = vst [vmem:[%s10823_s12 + $0x5d8] sm:$0xff] %v580_v59  ;;  %v584_v61 = vld [vmem:[%s10818_s11 + $0xbc8] sm:$0xff] }
  0x78   : > { %583 = vst [vmem:[%s10823_s12 + $0x5e0] sm:$0xff] %v582_v60  ;;  %v586_v62 = vld [vmem:[%s10818_s11 + $0xbe0] sm:$0xff]  ;;  %v588_v63 = vld [vmem:[%s10818_s11 + $0xbe8] sm:$0xff]  ;;  %585 = vst [vmem:[%s10823_s12 + $0x5e8] sm:$0xff] %v584_v61 }
  0x79   : > { %587 = vst [vmem:[%s10823_s12 + $0x5f0] sm:$0xff] %v586_v62  ;;  %589 = vst [vmem:[%s10823_s12 + $0x5f8] sm:$0xff] %v588_v63  ;;  %v590_v0 = vld [vmem:[%s10818_s11 + $0xc00] sm:$0xff]  ;;  %v592_v1 = vld [vmem:[%s10818_s11 + $0xc08] sm:$0xff] }
  0x7a   : > { %v594_v2 = vld [vmem:[%s10818_s11 + $0xc20] sm:$0xff]  ;;  %591 = vst [vmem:[%s10823_s12 + $0x600] sm:$0xff] %v590_v0  ;;  %593 = vst [vmem:[%s10823_s12 + $0x608] sm:$0xff] %v592_v1  ;;  %v596_v3 = vld [vmem:[%s10818_s11 + $0xc28] sm:$0xff] }
  0x7b   : > { %595 = vst [vmem:[%s10823_s12 + $0x610] sm:$0xff] %v594_v2  ;;  %v598_v4 = vld [vmem:[%s10818_s11 + $0xc40] sm:$0xff]  ;;  %v600_v5 = vld [vmem:[%s10818_s11 + $0xc48] sm:$0xff]  ;;  %597 = vst [vmem:[%s10823_s12 + $0x618] sm:$0xff] %v596_v3 }
  0x7c   : > { %599 = vst [vmem:[%s10823_s12 + $0x620] sm:$0xff] %v598_v4  ;;  %601 = vst [vmem:[%s10823_s12 + $0x628] sm:$0xff] %v600_v5  ;;  %v602_v6 = vld [vmem:[%s10818_s11 + $0xc60] sm:$0xff]  ;;  %v604_v7 = vld [vmem:[%s10818_s11 + $0xc68] sm:$0xff] }
  0x7d   : > { %v606_v8 = vld [vmem:[%s10818_s11 + $0xc80] sm:$0xff]  ;;  %603 = vst [vmem:[%s10823_s12 + $0x630] sm:$0xff] %v602_v6  ;;  %605 = vst [vmem:[%s10823_s12 + $0x638] sm:$0xff] %v604_v7  ;;  %v608_v9 = vld [vmem:[%s10818_s11 + $0xc88] sm:$0xff] }
  0x7e   : > { %607 = vst [vmem:[%s10823_s12 + $0x640] sm:$0xff] %v606_v8  ;;  %v610_v10 = vld [vmem:[%s10818_s11 + $0xca0] sm:$0xff]  ;;  %v612_v11 = vld [vmem:[%s10818_s11 + $0xca8] sm:$0xff]  ;;  %609 = vst [vmem:[%s10823_s12 + $0x648] sm:$0xff] %v608_v9 }
  0x7f   : > { %611 = vst [vmem:[%s10823_s12 + $0x650] sm:$0xff] %v610_v10  ;;  %613 = vst [vmem:[%s10823_s12 + $0x658] sm:$0xff] %v612_v11  ;;  %v614_v12 = vld [vmem:[%s10818_s11 + $0xcc0] sm:$0xff]  ;;  %v616_v13 = vld [vmem:[%s10818_s11 + $0xcc8] sm:$0xff] }
  0x80   : > { %v618_v14 = vld [vmem:[%s10818_s11 + $0xce0] sm:$0xff]  ;;  %615 = vst [vmem:[%s10823_s12 + $0x660] sm:$0xff] %v614_v12  ;;  %617 = vst [vmem:[%s10823_s12 + $0x668] sm:$0xff] %v616_v13  ;;  %v620_v15 = vld [vmem:[%s10818_s11 + $0xce8] sm:$0xff] }
  0x81   : > { %619 = vst [vmem:[%s10823_s12 + $0x670] sm:$0xff] %v618_v14  ;;  %v622_v16 = vld [vmem:[%s10818_s11 + $0xd00] sm:$0xff]  ;;  %v624_v17 = vld [vmem:[%s10818_s11 + $0xd08] sm:$0xff]  ;;  %621 = vst [vmem:[%s10823_s12 + $0x678] sm:$0xff] %v620_v15 }
  0x82   : > { %623 = vst [vmem:[%s10823_s12 + $0x680] sm:$0xff] %v622_v16  ;;  %625 = vst [vmem:[%s10823_s12 + $0x688] sm:$0xff] %v624_v17  ;;  %v626_v18 = vld [vmem:[%s10818_s11 + $0xd20] sm:$0xff]  ;;  %v628_v19 = vld [vmem:[%s10818_s11 + $0xd28] sm:$0xff] }
  0x83   : > { %v630_v20 = vld [vmem:[%s10818_s11 + $0xd40] sm:$0xff]  ;;  %627 = vst [vmem:[%s10823_s12 + $0x690] sm:$0xff] %v626_v18  ;;  %629 = vst [vmem:[%s10823_s12 + $0x698] sm:$0xff] %v628_v19  ;;  %v632_v21 = vld [vmem:[%s10818_s11 + $0xd48] sm:$0xff] }
  0x84   : > { %631 = vst [vmem:[%s10823_s12 + $0x6a0] sm:$0xff] %v630_v20  ;;  %v634_v22 = vld [vmem:[%s10818_s11 + $0xd60] sm:$0xff]  ;;  %v636_v23 = vld [vmem:[%s10818_s11 + $0xd68] sm:$0xff]  ;;  %633 = vst [vmem:[%s10823_s12 + $0x6a8] sm:$0xff] %v632_v21 }
  0x85   : > { %635 = vst [vmem:[%s10823_s12 + $0x6b0] sm:$0xff] %v634_v22  ;;  %637 = vst [vmem:[%s10823_s12 + $0x6b8] sm:$0xff] %v636_v23  ;;  %v638_v24 = vld [vmem:[%s10818_s11 + $0xd80] sm:$0xff]  ;;  %v640_v25 = vld [vmem:[%s10818_s11 + $0xd88] sm:$0xff] }
  0x86   : > { %v642_v26 = vld [vmem:[%s10818_s11 + $0xda0] sm:$0xff]  ;;  %639 = vst [vmem:[%s10823_s12 + $0x6c0] sm:$0xff] %v638_v24  ;;  %641 = vst [vmem:[%s10823_s12 + $0x6c8] sm:$0xff] %v640_v25  ;;  %v644_v27 = vld [vmem:[%s10818_s11 + $0xda8] sm:$0xff] }
  0x87   : > { %643 = vst [vmem:[%s10823_s12 + $0x6d0] sm:$0xff] %v642_v26  ;;  %v646_v28 = vld [vmem:[%s10818_s11 + $0xdc0] sm:$0xff]  ;;  %v648_v29 = vld [vmem:[%s10818_s11 + $0xdc8] sm:$0xff]  ;;  %645 = vst [vmem:[%s10823_s12 + $0x6d8] sm:$0xff] %v644_v27 }
  0x88   : > { %647 = vst [vmem:[%s10823_s12 + $0x6e0] sm:$0xff] %v646_v28  ;;  %649 = vst [vmem:[%s10823_s12 + $0x6e8] sm:$0xff] %v648_v29  ;;  %v650_v30 = vld [vmem:[%s10818_s11 + $0xde0] sm:$0xff]  ;;  %v652_v31 = vld [vmem:[%s10818_s11 + $0xde8] sm:$0xff] }
  0x89   : > { %v654_v32 = vld [vmem:[%s10818_s11 + $0xe00] sm:$0xff]  ;;  %651 = vst [vmem:[%s10823_s12 + $0x6f0] sm:$0xff] %v650_v30  ;;  %653 = vst [vmem:[%s10823_s12 + $0x6f8] sm:$0xff] %v652_v31  ;;  %v656_v33 = vld [vmem:[%s10818_s11 + $0xe08] sm:$0xff] }
  0x8a   : > { %655 = vst [vmem:[%s10823_s12 + $0x700] sm:$0xff] %v654_v32  ;;  %v658_v34 = vld [vmem:[%s10818_s11 + $0xe20] sm:$0xff]  ;;  %v660_v35 = vld [vmem:[%s10818_s11 + $0xe28] sm:$0xff]  ;;  %657 = vst [vmem:[%s10823_s12 + $0x708] sm:$0xff] %v656_v33 }
  0x8b   : > { %659 = vst [vmem:[%s10823_s12 + $0x710] sm:$0xff] %v658_v34  ;;  %661 = vst [vmem:[%s10823_s12 + $0x718] sm:$0xff] %v660_v35  ;;  %v662_v36 = vld [vmem:[%s10818_s11 + $0xe40] sm:$0xff]  ;;  %v664_v37 = vld [vmem:[%s10818_s11 + $0xe48] sm:$0xff] }
  0x8c   : > { %v666_v38 = vld [vmem:[%s10818_s11 + $0xe60] sm:$0xff]  ;;  %663 = vst [vmem:[%s10823_s12 + $0x720] sm:$0xff] %v662_v36  ;;  %665 = vst [vmem:[%s10823_s12 + $0x728] sm:$0xff] %v664_v37  ;;  %v668_v39 = vld [vmem:[%s10818_s11 + $0xe68] sm:$0xff] }
  0x8d   : > { %667 = vst [vmem:[%s10823_s12 + $0x730] sm:$0xff] %v666_v38  ;;  %v670_v40 = vld [vmem:[%s10818_s11 + $0xe80] sm:$0xff]  ;;  %v672_v41 = vld [vmem:[%s10818_s11 + $0xe88] sm:$0xff]  ;;  %669 = vst [vmem:[%s10823_s12 + $0x738] sm:$0xff] %v668_v39 }
  0x8e   : > { %671 = vst [vmem:[%s10823_s12 + $0x740] sm:$0xff] %v670_v40  ;;  %673 = vst [vmem:[%s10823_s12 + $0x748] sm:$0xff] %v672_v41  ;;  %v674_v42 = vld [vmem:[%s10818_s11 + $0xea0] sm:$0xff]  ;;  %v676_v43 = vld [vmem:[%s10818_s11 + $0xea8] sm:$0xff] }
  0x8f   : > { %v678_v44 = vld [vmem:[%s10818_s11 + $0xec0] sm:$0xff]  ;;  %675 = vst [vmem:[%s10823_s12 + $0x750] sm:$0xff] %v674_v42  ;;  %677 = vst [vmem:[%s10823_s12 + $0x758] sm:$0xff] %v676_v43  ;;  %v680_v45 = vld [vmem:[%s10818_s11 + $0xec8] sm:$0xff] }
  0x90   : > { %679 = vst [vmem:[%s10823_s12 + $0x760] sm:$0xff] %v678_v44  ;;  %v682_v46 = vld [vmem:[%s10818_s11 + $0xee0] sm:$0xff]  ;;  %v684_v47 = vld [vmem:[%s10818_s11 + $0xee8] sm:$0xff]  ;;  %681 = vst [vmem:[%s10823_s12 + $0x768] sm:$0xff] %v680_v45 }
  0x91   : > { %683 = vst [vmem:[%s10823_s12 + $0x770] sm:$0xff] %v682_v46  ;;  %685 = vst [vmem:[%s10823_s12 + $0x778] sm:$0xff] %v684_v47  ;;  %v686_v48 = vld [vmem:[%s10818_s11 + $0xf00] sm:$0xff]  ;;  %v688_v49 = vld [vmem:[%s10818_s11 + $0xf08] sm:$0xff] }
  0x92   : > { %v690_v50 = vld [vmem:[%s10818_s11 + $0xf20] sm:$0xff]  ;;  %687 = vst [vmem:[%s10823_s12 + $0x780] sm:$0xff] %v686_v48  ;;  %689 = vst [vmem:[%s10823_s12 + $0x788] sm:$0xff] %v688_v49  ;;  %v692_v51 = vld [vmem:[%s10818_s11 + $0xf28] sm:$0xff] }
  0x93   : > { %691 = vst [vmem:[%s10823_s12 + $0x790] sm:$0xff] %v690_v50  ;;  %v694_v52 = vld [vmem:[%s10818_s11 + $0xf40] sm:$0xff]  ;;  %v696_v53 = vld [vmem:[%s10818_s11 + $0xf48] sm:$0xff]  ;;  %693 = vst [vmem:[%s10823_s12 + $0x798] sm:$0xff] %v692_v51 }
  0x94   : > { %695 = vst [vmem:[%s10823_s12 + $0x7a0] sm:$0xff] %v694_v52  ;;  %697 = vst [vmem:[%s10823_s12 + $0x7a8] sm:$0xff] %v696_v53  ;;  %v698_v54 = vld [vmem:[%s10818_s11 + $0xf60] sm:$0xff]  ;;  %v700_v55 = vld [vmem:[%s10818_s11 + $0xf68] sm:$0xff] }
  0x95   : > { %v702_v56 = vld [vmem:[%s10818_s11 + $0xf80] sm:$0xff]  ;;  %699 = vst [vmem:[%s10823_s12 + $0x7b0] sm:$0xff] %v698_v54  ;;  %701 = vst [vmem:[%s10823_s12 + $0x7b8] sm:$0xff] %v700_v55  ;;  %v704_v57 = vld [vmem:[%s10818_s11 + $0xf88] sm:$0xff] }
  0x96   : > { %703 = vst [vmem:[%s10823_s12 + $0x7c0] sm:$0xff] %v702_v56  ;;  %v706_v58 = vld [vmem:[%s10818_s11 + $0xfa0] sm:$0xff]  ;;  %v708_v59 = vld [vmem:[%s10818_s11 + $0xfa8] sm:$0xff]  ;;  %705 = vst [vmem:[%s10823_s12 + $0x7c8] sm:$0xff] %v704_v57 }
  0x97   : > { %707 = vst [vmem:[%s10823_s12 + $0x7d0] sm:$0xff] %v706_v58  ;;  %709 = vst [vmem:[%s10823_s12 + $0x7d8] sm:$0xff] %v708_v59  ;;  %v710_v60 = vld [vmem:[%s10818_s11 + $0xfc0] sm:$0xff]  ;;  %v712_v61 = vld [vmem:[%s10818_s11 + $0xfc8] sm:$0xff] }
  0x98   : > { %v714_v62 = vld [vmem:[%s10818_s11 + $0xfe0] sm:$0xff]  ;;  %711 = vst [vmem:[%s10823_s12 + $0x7e0] sm:$0xff] %v710_v60  ;;  %713 = vst [vmem:[%s10823_s12 + $0x7e8] sm:$0xff] %v712_v61  ;;  %v716_v63 = vld [vmem:[%s10818_s11 + $0xfe8] sm:$0xff] }
  0x99   : > { %715 = vst [vmem:[%s10823_s12 + $0x7f0] sm:$0xff] %v714_v62  ;;  %v718_v0 = vld [vmem:[%s10818_s11 + $0x1000] sm:$0xff]  ;;  %v720_v1 = vld [vmem:[%s10818_s11 + $0x1008] sm:$0xff]  ;;  %717 = vst [vmem:[%s10823_s12 + $0x7f8] sm:$0xff] %v716_v63 }
  0x9a   : > { %719 = vst [vmem:[%s10823_s12 + $0x800] sm:$0xff] %v718_v0  ;;  %721 = vst [vmem:[%s10823_s12 + $0x808] sm:$0xff] %v720_v1  ;;  %v722_v2 = vld [vmem:[%s10818_s11 + $0x1020] sm:$0xff]  ;;  %v724_v3 = vld [vmem:[%s10818_s11 + $0x1028] sm:$0xff] }
  0x9b   : > { %v726_v4 = vld [vmem:[%s10818_s11 + $0x1040] sm:$0xff]  ;;  %723 = vst [vmem:[%s10823_s12 + $0x810] sm:$0xff] %v722_v2  ;;  %725 = vst [vmem:[%s10823_s12 + $0x818] sm:$0xff] %v724_v3  ;;  %v728_v5 = vld [vmem:[%s10818_s11 + $0x1048] sm:$0xff] }
  0x9c   : > { %727 = vst [vmem:[%s10823_s12 + $0x820] sm:$0xff] %v726_v4  ;;  %v730_v6 = vld [vmem:[%s10818_s11 + $0x1060] sm:$0xff]  ;;  %v732_v7 = vld [vmem:[%s10818_s11 + $0x1068] sm:$0xff]  ;;  %729 = vst [vmem:[%s10823_s12 + $0x828] sm:$0xff] %v728_v5 }
  0x9d   : > { %731 = vst [vmem:[%s10823_s12 + $0x830] sm:$0xff] %v730_v6  ;;  %733 = vst [vmem:[%s10823_s12 + $0x838] sm:$0xff] %v732_v7  ;;  %v734_v8 = vld [vmem:[%s10818_s11 + $0x1080] sm:$0xff]  ;;  %v736_v9 = vld [vmem:[%s10818_s11 + $0x1088] sm:$0xff] }
  0x9e   : > { %v738_v10 = vld [vmem:[%s10818_s11 + $0x10a0] sm:$0xff]  ;;  %735 = vst [vmem:[%s10823_s12 + $0x840] sm:$0xff] %v734_v8  ;;  %737 = vst [vmem:[%s10823_s12 + $0x848] sm:$0xff] %v736_v9  ;;  %v740_v11 = vld [vmem:[%s10818_s11 + $0x10a8] sm:$0xff] }
  0x9f   : > { %739 = vst [vmem:[%s10823_s12 + $0x850] sm:$0xff] %v738_v10  ;;  %v742_v12 = vld [vmem:[%s10818_s11 + $0x10c0] sm:$0xff]  ;;  %v744_v13 = vld [vmem:[%s10818_s11 + $0x10c8] sm:$0xff]  ;;  %741 = vst [vmem:[%s10823_s12 + $0x858] sm:$0xff] %v740_v11 }
  0xa0   : > { %743 = vst [vmem:[%s10823_s12 + $0x860] sm:$0xff] %v742_v12  ;;  %745 = vst [vmem:[%s10823_s12 + $0x868] sm:$0xff] %v744_v13  ;;  %v746_v14 = vld [vmem:[%s10818_s11 + $0x10e0] sm:$0xff]  ;;  %v748_v15 = vld [vmem:[%s10818_s11 + $0x10e8] sm:$0xff] }
  0xa1   : > { %v750_v16 = vld [vmem:[%s10818_s11 + $0x1100] sm:$0xff]  ;;  %747 = vst [vmem:[%s10823_s12 + $0x870] sm:$0xff] %v746_v14  ;;  %749 = vst [vmem:[%s10823_s12 + $0x878] sm:$0xff] %v748_v15  ;;  %v752_v17 = vld [vmem:[%s10818_s11 + $0x1108] sm:$0xff] }
  0xa2   : > { %751 = vst [vmem:[%s10823_s12 + $0x880] sm:$0xff] %v750_v16  ;;  %v754_v18 = vld [vmem:[%s10818_s11 + $0x1120] sm:$0xff]  ;;  %v756_v19 = vld [vmem:[%s10818_s11 + $0x1128] sm:$0xff]  ;;  %753 = vst [vmem:[%s10823_s12 + $0x888] sm:$0xff] %v752_v17 }
  0xa3   : > { %755 = vst [vmem:[%s10823_s12 + $0x890] sm:$0xff] %v754_v18  ;;  %757 = vst [vmem:[%s10823_s12 + $0x898] sm:$0xff] %v756_v19  ;;  %v758_v20 = vld [vmem:[%s10818_s11 + $0x1140] sm:$0xff]  ;;  %v760_v21 = vld [vmem:[%s10818_s11 + $0x1148] sm:$0xff] }
  0xa4   : > { %v762_v22 = vld [vmem:[%s10818_s11 + $0x1160] sm:$0xff]  ;;  %759 = vst [vmem:[%s10823_s12 + $0x8a0] sm:$0xff] %v758_v20  ;;  %761 = vst [vmem:[%s10823_s12 + $0x8a8] sm:$0xff] %v760_v21  ;;  %v764_v23 = vld [vmem:[%s10818_s11 + $0x1168] sm:$0xff] }
  0xa5   : > { %763 = vst [vmem:[%s10823_s12 + $0x8b0] sm:$0xff] %v762_v22  ;;  %v766_v24 = vld [vmem:[%s10818_s11 + $0x1180] sm:$0xff]  ;;  %v768_v25 = vld [vmem:[%s10818_s11 + $0x1188] sm:$0xff]  ;;  %765 = vst [vmem:[%s10823_s12 + $0x8b8] sm:$0xff] %v764_v23 }
  0xa6   : > { %767 = vst [vmem:[%s10823_s12 + $0x8c0] sm:$0xff] %v766_v24  ;;  %769 = vst [vmem:[%s10823_s12 + $0x8c8] sm:$0xff] %v768_v25  ;;  %v770_v26 = vld [vmem:[%s10818_s11 + $0x11a0] sm:$0xff]  ;;  %v772_v27 = vld [vmem:[%s10818_s11 + $0x11a8] sm:$0xff] }
  0xa7   : > { %v774_v28 = vld [vmem:[%s10818_s11 + $0x11c0] sm:$0xff]  ;;  %771 = vst [vmem:[%s10823_s12 + $0x8d0] sm:$0xff] %v770_v26  ;;  %773 = vst [vmem:[%s10823_s12 + $0x8d8] sm:$0xff] %v772_v27  ;;  %v776_v29 = vld [vmem:[%s10818_s11 + $0x11c8] sm:$0xff] }
  0xa8   : > { %775 = vst [vmem:[%s10823_s12 + $0x8e0] sm:$0xff] %v774_v28  ;;  %v778_v30 = vld [vmem:[%s10818_s11 + $0x11e0] sm:$0xff]  ;;  %v780_v31 = vld [vmem:[%s10818_s11 + $0x11e8] sm:$0xff]  ;;  %777 = vst [vmem:[%s10823_s12 + $0x8e8] sm:$0xff] %v776_v29 }
  0xa9   : > { %779 = vst [vmem:[%s10823_s12 + $0x8f0] sm:$0xff] %v778_v30  ;;  %781 = vst [vmem:[%s10823_s12 + $0x8f8] sm:$0xff] %v780_v31  ;;  %v782_v32 = vld [vmem:[%s10818_s11 + $0x1200] sm:$0xff]  ;;  %v784_v33 = vld [vmem:[%s10818_s11 + $0x1208] sm:$0xff] }
  0xaa   : > { %v786_v34 = vld [vmem:[%s10818_s11 + $0x1220] sm:$0xff]  ;;  %783 = vst [vmem:[%s10823_s12 + $0x900] sm:$0xff] %v782_v32  ;;  %785 = vst [vmem:[%s10823_s12 + $0x908] sm:$0xff] %v784_v33  ;;  %v788_v35 = vld [vmem:[%s10818_s11 + $0x1228] sm:$0xff] }
  0xab   : > { %787 = vst [vmem:[%s10823_s12 + $0x910] sm:$0xff] %v786_v34  ;;  %v790_v36 = vld [vmem:[%s10818_s11 + $0x1240] sm:$0xff]  ;;  %v792_v37 = vld [vmem:[%s10818_s11 + $0x1248] sm:$0xff]  ;;  %789 = vst [vmem:[%s10823_s12 + $0x918] sm:$0xff] %v788_v35 }
  0xac   : > { %791 = vst [vmem:[%s10823_s12 + $0x920] sm:$0xff] %v790_v36  ;;  %793 = vst [vmem:[%s10823_s12 + $0x928] sm:$0xff] %v792_v37  ;;  %v794_v38 = vld [vmem:[%s10818_s11 + $0x1260] sm:$0xff]  ;;  %v796_v39 = vld [vmem:[%s10818_s11 + $0x1268] sm:$0xff] }
  0xad   : > { %v798_v40 = vld [vmem:[%s10818_s11 + $0x1280] sm:$0xff]  ;;  %795 = vst [vmem:[%s10823_s12 + $0x930] sm:$0xff] %v794_v38  ;;  %797 = vst [vmem:[%s10823_s12 + $0x938] sm:$0xff] %v796_v39  ;;  %v800_v41 = vld [vmem:[%s10818_s11 + $0x1288] sm:$0xff] }
  0xae   : > { %799 = vst [vmem:[%s10823_s12 + $0x940] sm:$0xff] %v798_v40  ;;  %v802_v42 = vld [vmem:[%s10818_s11 + $0x12a0] sm:$0xff]  ;;  %v804_v43 = vld [vmem:[%s10818_s11 + $0x12a8] sm:$0xff]  ;;  %801 = vst [vmem:[%s10823_s12 + $0x948] sm:$0xff] %v800_v41 }
  0xaf   : > { %803 = vst [vmem:[%s10823_s12 + $0x950] sm:$0xff] %v802_v42  ;;  %805 = vst [vmem:[%s10823_s12 + $0x958] sm:$0xff] %v804_v43  ;;  %v806_v44 = vld [vmem:[%s10818_s11 + $0x12c0] sm:$0xff]  ;;  %v808_v45 = vld [vmem:[%s10818_s11 + $0x12c8] sm:$0xff] }
  0xb0   : > { %v810_v46 = vld [vmem:[%s10818_s11 + $0x12e0] sm:$0xff]  ;;  %807 = vst [vmem:[%s10823_s12 + $0x960] sm:$0xff] %v806_v44  ;;  %809 = vst [vmem:[%s10823_s12 + $0x968] sm:$0xff] %v808_v45  ;;  %v812_v47 = vld [vmem:[%s10818_s11 + $0x12e8] sm:$0xff] }
  0xb1   : > { %811 = vst [vmem:[%s10823_s12 + $0x970] sm:$0xff] %v810_v46  ;;  %v814_v48 = vld [vmem:[%s10818_s11 + $0x1300] sm:$0xff]  ;;  %v816_v49 = vld [vmem:[%s10818_s11 + $0x1308] sm:$0xff]  ;;  %813 = vst [vmem:[%s10823_s12 + $0x978] sm:$0xff] %v812_v47 }
  0xb2   : > { %815 = vst [vmem:[%s10823_s12 + $0x980] sm:$0xff] %v814_v48  ;;  %817 = vst [vmem:[%s10823_s12 + $0x988] sm:$0xff] %v816_v49  ;;  %v818_v50 = vld [vmem:[%s10818_s11 + $0x1320] sm:$0xff]  ;;  %v820_v51 = vld [vmem:[%s10818_s11 + $0x1328] sm:$0xff] }
  0xb3   : > { %v822_v52 = vld [vmem:[%s10818_s11 + $0x1340] sm:$0xff]  ;;  %819 = vst [vmem:[%s10823_s12 + $0x990] sm:$0xff] %v818_v50  ;;  %821 = vst [vmem:[%s10823_s12 + $0x998] sm:$0xff] %v820_v51  ;;  %v824_v53 = vld [vmem:[%s10818_s11 + $0x1348] sm:$0xff] }
  0xb4   : > { %823 = vst [vmem:[%s10823_s12 + $0x9a0] sm:$0xff] %v822_v52  ;;  %v826_v54 = vld [vmem:[%s10818_s11 + $0x1360] sm:$0xff]  ;;  %v828_v55 = vld [vmem:[%s10818_s11 + $0x1368] sm:$0xff]  ;;  %825 = vst [vmem:[%s10823_s12 + $0x9a8] sm:$0xff] %v824_v53 }
  0xb5   : > { %827 = vst [vmem:[%s10823_s12 + $0x9b0] sm:$0xff] %v826_v54  ;;  %829 = vst [vmem:[%s10823_s12 + $0x9b8] sm:$0xff] %v828_v55  ;;  %v830_v56 = vld [vmem:[%s10818_s11 + $0x1380] sm:$0xff]  ;;  %v832_v57 = vld [vmem:[%s10818_s11 + $0x1388] sm:$0xff] }
  0xb6   : > { %v834_v58 = vld [vmem:[%s10818_s11 + $0x13a0] sm:$0xff]  ;;  %831 = vst [vmem:[%s10823_s12 + $0x9c0] sm:$0xff] %v830_v56  ;;  %833 = vst [vmem:[%s10823_s12 + $0x9c8] sm:$0xff] %v832_v57  ;;  %v836_v59 = vld [vmem:[%s10818_s11 + $0x13a8] sm:$0xff] }
  0xb7   : > { %835 = vst [vmem:[%s10823_s12 + $0x9d0] sm:$0xff] %v834_v58  ;;  %v838_v60 = vld [vmem:[%s10818_s11 + $0x13c0] sm:$0xff]  ;;  %v840_v61 = vld [vmem:[%s10818_s11 + $0x13c8] sm:$0xff]  ;;  %837 = vst [vmem:[%s10823_s12 + $0x9d8] sm:$0xff] %v836_v59 }
  0xb8   : > { %839 = vst [vmem:[%s10823_s12 + $0x9e0] sm:$0xff] %v838_v60  ;;  %841 = vst [vmem:[%s10823_s12 + $0x9e8] sm:$0xff] %v840_v61  ;;  %v842_v62 = vld [vmem:[%s10818_s11 + $0x13e0] sm:$0xff]  ;;  %v844_v63 = vld [vmem:[%s10818_s11 + $0x13e8] sm:$0xff] }
  0xb9   : > { %v846_v0 = vld [vmem:[%s10818_s11 + $0x1400] sm:$0xff]  ;;  %843 = vst [vmem:[%s10823_s12 + $0x9f0] sm:$0xff] %v842_v62  ;;  %845 = vst [vmem:[%s10823_s12 + $0x9f8] sm:$0xff] %v844_v63  ;;  %v848_v1 = vld [vmem:[%s10818_s11 + $0x1408] sm:$0xff] }
  0xba   : > { %847 = vst [vmem:[%s10823_s12 + $0xa00] sm:$0xff] %v846_v0  ;;  %v850_v2 = vld [vmem:[%s10818_s11 + $0x1420] sm:$0xff]  ;;  %v852_v3 = vld [vmem:[%s10818_s11 + $0x1428] sm:$0xff]  ;;  %849 = vst [vmem:[%s10823_s12 + $0xa08] sm:$0xff] %v848_v1 }
  0xbb   : > { %851 = vst [vmem:[%s10823_s12 + $0xa10] sm:$0xff] %v850_v2  ;;  %853 = vst [vmem:[%s10823_s12 + $0xa18] sm:$0xff] %v852_v3  ;;  %v854_v4 = vld [vmem:[%s10818_s11 + $0x1440] sm:$0xff]  ;;  %v856_v5 = vld [vmem:[%s10818_s11 + $0x1448] sm:$0xff] }
  0xbc   : > { %v858_v6 = vld [vmem:[%s10818_s11 + $0x1460] sm:$0xff]  ;;  %855 = vst [vmem:[%s10823_s12 + $0xa20] sm:$0xff] %v854_v4  ;;  %857 = vst [vmem:[%s10823_s12 + $0xa28] sm:$0xff] %v856_v5  ;;  %v860_v7 = vld [vmem:[%s10818_s11 + $0x1468] sm:$0xff] }
  0xbd   : > { %859 = vst [vmem:[%s10823_s12 + $0xa30] sm:$0xff] %v858_v6  ;;  %v862_v8 = vld [vmem:[%s10818_s11 + $0x1480] sm:$0xff]  ;;  %v864_v9 = vld [vmem:[%s10818_s11 + $0x1488] sm:$0xff]  ;;  %861 = vst [vmem:[%s10823_s12 + $0xa38] sm:$0xff] %v860_v7 }
  0xbe   : > { %863 = vst [vmem:[%s10823_s12 + $0xa40] sm:$0xff] %v862_v8  ;;  %865 = vst [vmem:[%s10823_s12 + $0xa48] sm:$0xff] %v864_v9  ;;  %v866_v10 = vld [vmem:[%s10818_s11 + $0x14a0] sm:$0xff]  ;;  %v868_v11 = vld [vmem:[%s10818_s11 + $0x14a8] sm:$0xff] }
  0xbf   : > { %v870_v12 = vld [vmem:[%s10818_s11 + $0x14c0] sm:$0xff]  ;;  %867 = vst [vmem:[%s10823_s12 + $0xa50] sm:$0xff] %v866_v10  ;;  %869 = vst [vmem:[%s10823_s12 + $0xa58] sm:$0xff] %v868_v11  ;;  %v872_v13 = vld [vmem:[%s10818_s11 + $0x14c8] sm:$0xff] }
  0xc0   : > { %871 = vst [vmem:[%s10823_s12 + $0xa60] sm:$0xff] %v870_v12  ;;  %v874_v14 = vld [vmem:[%s10818_s11 + $0x14e0] sm:$0xff]  ;;  %v876_v15 = vld [vmem:[%s10818_s11 + $0x14e8] sm:$0xff]  ;;  %873 = vst [vmem:[%s10823_s12 + $0xa68] sm:$0xff] %v872_v13 }
  0xc1   : > { %875 = vst [vmem:[%s10823_s12 + $0xa70] sm:$0xff] %v874_v14  ;;  %877 = vst [vmem:[%s10823_s12 + $0xa78] sm:$0xff] %v876_v15  ;;  %v878_v16 = vld [vmem:[%s10818_s11 + $0x1500] sm:$0xff]  ;;  %v880_v17 = vld [vmem:[%s10818_s11 + $0x1508] sm:$0xff] }
  0xc2   : > { %v882_v18 = vld [vmem:[%s10818_s11 + $0x1520] sm:$0xff]  ;;  %879 = vst [vmem:[%s10823_s12 + $0xa80] sm:$0xff] %v878_v16  ;;  %881 = vst [vmem:[%s10823_s12 + $0xa88] sm:$0xff] %v880_v17  ;;  %v884_v19 = vld [vmem:[%s10818_s11 + $0x1528] sm:$0xff] }
  0xc3   : > { %883 = vst [vmem:[%s10823_s12 + $0xa90] sm:$0xff] %v882_v18  ;;  %v886_v20 = vld [vmem:[%s10818_s11 + $0x1540] sm:$0xff]  ;;  %v888_v21 = vld [vmem:[%s10818_s11 + $0x1548] sm:$0xff]  ;;  %885 = vst [vmem:[%s10823_s12 + $0xa98] sm:$0xff] %v884_v19 }
  0xc4   : > { %887 = vst [vmem:[%s10823_s12 + $0xaa0] sm:$0xff] %v886_v20  ;;  %889 = vst [vmem:[%s10823_s12 + $0xaa8] sm:$0xff] %v888_v21  ;;  %v890_v22 = vld [vmem:[%s10818_s11 + $0x1560] sm:$0xff]  ;;  %v892_v23 = vld [vmem:[%s10818_s11 + $0x1568] sm:$0xff] }
  0xc5   : > { %v894_v24 = vld [vmem:[%s10818_s11 + $0x1580] sm:$0xff]  ;;  %891 = vst [vmem:[%s10823_s12 + $0xab0] sm:$0xff] %v890_v22  ;;  %893 = vst [vmem:[%s10823_s12 + $0xab8] sm:$0xff] %v892_v23  ;;  %v896_v25 = vld [vmem:[%s10818_s11 + $0x1588] sm:$0xff] }
  0xc6   : > { %895 = vst [vmem:[%s10823_s12 + $0xac0] sm:$0xff] %v894_v24  ;;  %v898_v26 = vld [vmem:[%s10818_s11 + $0x15a0] sm:$0xff]  ;;  %v900_v27 = vld [vmem:[%s10818_s11 + $0x15a8] sm:$0xff]  ;;  %897 = vst [vmem:[%s10823_s12 + $0xac8] sm:$0xff] %v896_v25 }
  0xc7   : > { %899 = vst [vmem:[%s10823_s12 + $0xad0] sm:$0xff] %v898_v26  ;;  %901 = vst [vmem:[%s10823_s12 + $0xad8] sm:$0xff] %v900_v27  ;;  %v902_v28 = vld [vmem:[%s10818_s11 + $0x15c0] sm:$0xff]  ;;  %v904_v29 = vld [vmem:[%s10818_s11 + $0x15c8] sm:$0xff] }
  0xc8   : > { %v906_v30 = vld [vmem:[%s10818_s11 + $0x15e0] sm:$0xff]  ;;  %903 = vst [vmem:[%s10823_s12 + $0xae0] sm:$0xff] %v902_v28  ;;  %905 = vst [vmem:[%s10823_s12 + $0xae8] sm:$0xff] %v904_v29  ;;  %v908_v31 = vld [vmem:[%s10818_s11 + $0x15e8] sm:$0xff] }
  0xc9   : > { %907 = vst [vmem:[%s10823_s12 + $0xaf0] sm:$0xff] %v906_v30  ;;  %v910_v32 = vld [vmem:[%s10818_s11 + $0x1600] sm:$0xff]  ;;  %v912_v33 = vld [vmem:[%s10818_s11 + $0x1608] sm:$0xff]  ;;  %909 = vst [vmem:[%s10823_s12 + $0xaf8] sm:$0xff] %v908_v31 }
  0xca   : > { %911 = vst [vmem:[%s10823_s12 + $0xb00] sm:$0xff] %v910_v32  ;;  %913 = vst [vmem:[%s10823_s12 + $0xb08] sm:$0xff] %v912_v33  ;;  %v914_v34 = vld [vmem:[%s10818_s11 + $0x1620] sm:$0xff]  ;;  %v916_v35 = vld [vmem:[%s10818_s11 + $0x1628] sm:$0xff] }
  0xcb   : > { %v918_v36 = vld [vmem:[%s10818_s11 + $0x1640] sm:$0xff]  ;;  %915 = vst [vmem:[%s10823_s12 + $0xb10] sm:$0xff] %v914_v34  ;;  %917 = vst [vmem:[%s10823_s12 + $0xb18] sm:$0xff] %v916_v35  ;;  %v920_v37 = vld [vmem:[%s10818_s11 + $0x1648] sm:$0xff] }
  0xcc   : > { %919 = vst [vmem:[%s10823_s12 + $0xb20] sm:$0xff] %v918_v36  ;;  %v922_v38 = vld [vmem:[%s10818_s11 + $0x1660] sm:$0xff]  ;;  %v924_v39 = vld [vmem:[%s10818_s11 + $0x1668] sm:$0xff]  ;;  %921 = vst [vmem:[%s10823_s12 + $0xb28] sm:$0xff] %v920_v37 }
  0xcd   : > { %923 = vst [vmem:[%s10823_s12 + $0xb30] sm:$0xff] %v922_v38  ;;  %925 = vst [vmem:[%s10823_s12 + $0xb38] sm:$0xff] %v924_v39  ;;  %v926_v40 = vld [vmem:[%s10818_s11 + $0x1680] sm:$0xff]  ;;  %v928_v41 = vld [vmem:[%s10818_s11 + $0x1688] sm:$0xff] }
  0xce   : > { %v930_v42 = vld [vmem:[%s10818_s11 + $0x16a0] sm:$0xff]  ;;  %927 = vst [vmem:[%s10823_s12 + $0xb40] sm:$0xff] %v926_v40  ;;  %929 = vst [vmem:[%s10823_s12 + $0xb48] sm:$0xff] %v928_v41  ;;  %v932_v43 = vld [vmem:[%s10818_s11 + $0x16a8] sm:$0xff] }
  0xcf   : > { %931 = vst [vmem:[%s10823_s12 + $0xb50] sm:$0xff] %v930_v42  ;;  %v934_v44 = vld [vmem:[%s10818_s11 + $0x16c0] sm:$0xff]  ;;  %v936_v45 = vld [vmem:[%s10818_s11 + $0x16c8] sm:$0xff]  ;;  %933 = vst [vmem:[%s10823_s12 + $0xb58] sm:$0xff] %v932_v43 }
  0xd0   : > { %935 = vst [vmem:[%s10823_s12 + $0xb60] sm:$0xff] %v934_v44  ;;  %937 = vst [vmem:[%s10823_s12 + $0xb68] sm:$0xff] %v936_v45  ;;  %v938_v46 = vld [vmem:[%s10818_s11 + $0x16e0] sm:$0xff]  ;;  %v940_v47 = vld [vmem:[%s10818_s11 + $0x16e8] sm:$0xff] }
  0xd1   : > { %v942_v48 = vld [vmem:[%s10818_s11 + $0x1700] sm:$0xff]  ;;  %939 = vst [vmem:[%s10823_s12 + $0xb70] sm:$0xff] %v938_v46  ;;  %941 = vst [vmem:[%s10823_s12 + $0xb78] sm:$0xff] %v940_v47  ;;  %v944_v49 = vld [vmem:[%s10818_s11 + $0x1708] sm:$0xff] }
  0xd2   : > { %943 = vst [vmem:[%s10823_s12 + $0xb80] sm:$0xff] %v942_v48  ;;  %v946_v50 = vld [vmem:[%s10818_s11 + $0x1720] sm:$0xff]  ;;  %v948_v51 = vld [vmem:[%s10818_s11 + $0x1728] sm:$0xff]  ;;  %945 = vst [vmem:[%s10823_s12 + $0xb88] sm:$0xff] %v944_v49 }
  0xd3   : > { %947 = vst [vmem:[%s10823_s12 + $0xb90] sm:$0xff] %v946_v50  ;;  %949 = vst [vmem:[%s10823_s12 + $0xb98] sm:$0xff] %v948_v51  ;;  %v950_v52 = vld [vmem:[%s10818_s11 + $0x1740] sm:$0xff]  ;;  %v952_v53 = vld [vmem:[%s10818_s11 + $0x1748] sm:$0xff] }
  0xd4   : > { %v954_v54 = vld [vmem:[%s10818_s11 + $0x1760] sm:$0xff]  ;;  %951 = vst [vmem:[%s10823_s12 + $0xba0] sm:$0xff] %v950_v52  ;;  %953 = vst [vmem:[%s10823_s12 + $0xba8] sm:$0xff] %v952_v53  ;;  %v956_v55 = vld [vmem:[%s10818_s11 + $0x1768] sm:$0xff] }
  0xd5   : > { %955 = vst [vmem:[%s10823_s12 + $0xbb0] sm:$0xff] %v954_v54  ;;  %v958_v56 = vld [vmem:[%s10818_s11 + $0x1780] sm:$0xff]  ;;  %v960_v57 = vld [vmem:[%s10818_s11 + $0x1788] sm:$0xff]  ;;  %957 = vst [vmem:[%s10823_s12 + $0xbb8] sm:$0xff] %v956_v55 }
  0xd6   : > { %959 = vst [vmem:[%s10823_s12 + $0xbc0] sm:$0xff] %v958_v56  ;;  %961 = vst [vmem:[%s10823_s12 + $0xbc8] sm:$0xff] %v960_v57  ;;  %v962_v58 = vld [vmem:[%s10818_s11 + $0x17a0] sm:$0xff]  ;;  %v964_v59 = vld [vmem:[%s10818_s11 + $0x17a8] sm:$0xff] }
  0xd7   : > { %v966_v60 = vld [vmem:[%s10818_s11 + $0x17c0] sm:$0xff]  ;;  %963 = vst [vmem:[%s10823_s12 + $0xbd0] sm:$0xff] %v962_v58  ;;  %965 = vst [vmem:[%s10823_s12 + $0xbd8] sm:$0xff] %v964_v59  ;;  %v968_v61 = vld [vmem:[%s10818_s11 + $0x17c8] sm:$0xff] }
  0xd8   : > { %967 = vst [vmem:[%s10823_s12 + $0xbe0] sm:$0xff] %v966_v60  ;;  %v970_v62 = vld [vmem:[%s10818_s11 + $0x17e0] sm:$0xff]  ;;  %v972_v63 = vld [vmem:[%s10818_s11 + $0x17e8] sm:$0xff]  ;;  %969 = vst [vmem:[%s10823_s12 + $0xbe8] sm:$0xff] %v968_v61 }
  0xd9   : > { %971 = vst [vmem:[%s10823_s12 + $0xbf0] sm:$0xff] %v970_v62  ;;  %973 = vst [vmem:[%s10823_s12 + $0xbf8] sm:$0xff] %v972_v63  ;;  %v974_v0 = vld [vmem:[%s10818_s11 + $0x1800] sm:$0xff]  ;;  %v976_v1 = vld [vmem:[%s10818_s11 + $0x1808] sm:$0xff] }
  0xda   : > { %v978_v2 = vld [vmem:[%s10818_s11 + $0x1820] sm:$0xff]  ;;  %975 = vst [vmem:[%s10823_s12 + $0xc00] sm:$0xff] %v974_v0  ;;  %977 = vst [vmem:[%s10823_s12 + $0xc08] sm:$0xff] %v976_v1  ;;  %v980_v3 = vld [vmem:[%s10818_s11 + $0x1828] sm:$0xff] }
  0xdb   : > { %979 = vst [vmem:[%s10823_s12 + $0xc10] sm:$0xff] %v978_v2  ;;  %v982_v4 = vld [vmem:[%s10818_s11 + $0x1840] sm:$0xff]  ;;  %v984_v5 = vld [vmem:[%s10818_s11 + $0x1848] sm:$0xff]  ;;  %981 = vst [vmem:[%s10823_s12 + $0xc18] sm:$0xff] %v980_v3 }
  0xdc   : > { %983 = vst [vmem:[%s10823_s12 + $0xc20] sm:$0xff] %v982_v4  ;;  %985 = vst [vmem:[%s10823_s12 + $0xc28] sm:$0xff] %v984_v5  ;;  %v986_v6 = vld [vmem:[%s10818_s11 + $0x1860] sm:$0xff]  ;;  %v988_v7 = vld [vmem:[%s10818_s11 + $0x1868] sm:$0xff] }
  0xdd   : > { %v990_v8 = vld [vmem:[%s10818_s11 + $0x1880] sm:$0xff]  ;;  %987 = vst [vmem:[%s10823_s12 + $0xc30] sm:$0xff] %v986_v6  ;;  %989 = vst [vmem:[%s10823_s12 + $0xc38] sm:$0xff] %v988_v7  ;;  %v992_v9 = vld [vmem:[%s10818_s11 + $0x1888] sm:$0xff] }
  0xde   : > { %991 = vst [vmem:[%s10823_s12 + $0xc40] sm:$0xff] %v990_v8  ;;  %v994_v10 = vld [vmem:[%s10818_s11 + $0x18a0] sm:$0xff]  ;;  %v996_v11 = vld [vmem:[%s10818_s11 + $0x18a8] sm:$0xff]  ;;  %993 = vst [vmem:[%s10823_s12 + $0xc48] sm:$0xff] %v992_v9 }
  0xdf   : > { %995 = vst [vmem:[%s10823_s12 + $0xc50] sm:$0xff] %v994_v10  ;;  %997 = vst [vmem:[%s10823_s12 + $0xc58] sm:$0xff] %v996_v11  ;;  %v998_v12 = vld [vmem:[%s10818_s11 + $0x18c0] sm:$0xff]  ;;  %v1000_v13 = vld [vmem:[%s10818_s11 + $0x18c8] sm:$0xff] }
  0xe0   : > { %v1002_v14 = vld [vmem:[%s10818_s11 + $0x18e0] sm:$0xff]  ;;  %999 = vst [vmem:[%s10823_s12 + $0xc60] sm:$0xff] %v998_v12  ;;  %1001 = vst [vmem:[%s10823_s12 + $0xc68] sm:$0xff] %v1000_v13  ;;  %v1004_v15 = vld [vmem:[%s10818_s11 + $0x18e8] sm:$0xff] }
  0xe1   : > { %1003 = vst [vmem:[%s10823_s12 + $0xc70] sm:$0xff] %v1002_v14  ;;  %v1006_v16 = vld [vmem:[%s10818_s11 + $0x1900] sm:$0xff]  ;;  %v1008_v17 = vld [vmem:[%s10818_s11 + $0x1908] sm:$0xff]  ;;  %1005 = vst [vmem:[%s10823_s12 + $0xc78] sm:$0xff] %v1004_v15 }
  0xe2   : > { %1007 = vst [vmem:[%s10823_s12 + $0xc80] sm:$0xff] %v1006_v16  ;;  %1009 = vst [vmem:[%s10823_s12 + $0xc88] sm:$0xff] %v1008_v17  ;;  %v1010_v18 = vld [vmem:[%s10818_s11 + $0x1920] sm:$0xff]  ;;  %v1012_v19 = vld [vmem:[%s10818_s11 + $0x1928] sm:$0xff] }
  0xe3   : > { %v1014_v20 = vld [vmem:[%s10818_s11 + $0x1940] sm:$0xff]  ;;  %1011 = vst [vmem:[%s10823_s12 + $0xc90] sm:$0xff] %v1010_v18  ;;  %1013 = vst [vmem:[%s10823_s12 + $0xc98] sm:$0xff] %v1012_v19  ;;  %v1016_v21 = vld [vmem:[%s10818_s11 + $0x1948] sm:$0xff] }
  0xe4   : > { %1015 = vst [vmem:[%s10823_s12 + $0xca0] sm:$0xff] %v1014_v20  ;;  %v1018_v22 = vld [vmem:[%s10818_s11 + $0x1960] sm:$0xff]  ;;  %v1020_v23 = vld [vmem:[%s10818_s11 + $0x1968] sm:$0xff]  ;;  %1017 = vst [vmem:[%s10823_s12 + $0xca8] sm:$0xff] %v1016_v21 }
  0xe5   : > { %1019 = vst [vmem:[%s10823_s12 + $0xcb0] sm:$0xff] %v1018_v22  ;;  %1021 = vst [vmem:[%s10823_s12 + $0xcb8] sm:$0xff] %v1020_v23  ;;  %v1022_v24 = vld [vmem:[%s10818_s11 + $0x1980] sm:$0xff]  ;;  %v1024_v25 = vld [vmem:[%s10818_s11 + $0x1988] sm:$0xff] }
  0xe6   : > { %v1026_v26 = vld [vmem:[%s10818_s11 + $0x19a0] sm:$0xff]  ;;  %1023 = vst [vmem:[%s10823_s12 + $0xcc0] sm:$0xff] %v1022_v24  ;;  %1025 = vst [vmem:[%s10823_s12 + $0xcc8] sm:$0xff] %v1024_v25  ;;  %v1028_v27 = vld [vmem:[%s10818_s11 + $0x19a8] sm:$0xff] }
  0xe7   : > { %1027 = vst [vmem:[%s10823_s12 + $0xcd0] sm:$0xff] %v1026_v26  ;;  %v1030_v28 = vld [vmem:[%s10818_s11 + $0x19c0] sm:$0xff]  ;;  %v1032_v29 = vld [vmem:[%s10818_s11 + $0x19c8] sm:$0xff]  ;;  %1029 = vst [vmem:[%s10823_s12 + $0xcd8] sm:$0xff] %v1028_v27 }
  0xe8   : > { %1031 = vst [vmem:[%s10823_s12 + $0xce0] sm:$0xff] %v1030_v28  ;;  %1033 = vst [vmem:[%s10823_s12 + $0xce8] sm:$0xff] %v1032_v29  ;;  %v1034_v30 = vld [vmem:[%s10818_s11 + $0x19e0] sm:$0xff]  ;;  %v1036_v31 = vld [vmem:[%s10818_s11 + $0x19e8] sm:$0xff] }
  0xe9   : > { %v1038_v32 = vld [vmem:[%s10818_s11 + $0x1a00] sm:$0xff]  ;;  %1035 = vst [vmem:[%s10823_s12 + $0xcf0] sm:$0xff] %v1034_v30  ;;  %1037 = vst [vmem:[%s10823_s12 + $0xcf8] sm:$0xff] %v1036_v31  ;;  %v1040_v33 = vld [vmem:[%s10818_s11 + $0x1a08] sm:$0xff] }
  0xea   : > { %1039 = vst [vmem:[%s10823_s12 + $0xd00] sm:$0xff] %v1038_v32  ;;  %v1042_v34 = vld [vmem:[%s10818_s11 + $0x1a20] sm:$0xff]  ;;  %v1044_v35 = vld [vmem:[%s10818_s11 + $0x1a28] sm:$0xff]  ;;  %1041 = vst [vmem:[%s10823_s12 + $0xd08] sm:$0xff] %v1040_v33 }
  0xeb   : > { %1043 = vst [vmem:[%s10823_s12 + $0xd10] sm:$0xff] %v1042_v34  ;;  %1045 = vst [vmem:[%s10823_s12 + $0xd18] sm:$0xff] %v1044_v35  ;;  %v1046_v36 = vld [vmem:[%s10818_s11 + $0x1a40] sm:$0xff]  ;;  %v1048_v37 = vld [vmem:[%s10818_s11 + $0x1a48] sm:$0xff] }
  0xec   : > { %v1050_v38 = vld [vmem:[%s10818_s11 + $0x1a60] sm:$0xff]  ;;  %1047 = vst [vmem:[%s10823_s12 + $0xd20] sm:$0xff] %v1046_v36  ;;  %1049 = vst [vmem:[%s10823_s12 + $0xd28] sm:$0xff] %v1048_v37  ;;  %v1052_v39 = vld [vmem:[%s10818_s11 + $0x1a68] sm:$0xff] }
  0xed   : > { %1051 = vst [vmem:[%s10823_s12 + $0xd30] sm:$0xff] %v1050_v38  ;;  %v1054_v40 = vld [vmem:[%s10818_s11 + $0x1a80] sm:$0xff]  ;;  %v1056_v41 = vld [vmem:[%s10818_s11 + $0x1a88] sm:$0xff]  ;;  %1053 = vst [vmem:[%s10823_s12 + $0xd38] sm:$0xff] %v1052_v39 }
  0xee   : > { %1055 = vst [vmem:[%s10823_s12 + $0xd40] sm:$0xff] %v1054_v40  ;;  %1057 = vst [vmem:[%s10823_s12 + $0xd48] sm:$0xff] %v1056_v41  ;;  %v1058_v42 = vld [vmem:[%s10818_s11 + $0x1aa0] sm:$0xff]  ;;  %v1060_v43 = vld [vmem:[%s10818_s11 + $0x1aa8] sm:$0xff] }
  0xef   : > { %v1062_v44 = vld [vmem:[%s10818_s11 + $0x1ac0] sm:$0xff]  ;;  %1059 = vst [vmem:[%s10823_s12 + $0xd50] sm:$0xff] %v1058_v42  ;;  %1061 = vst [vmem:[%s10823_s12 + $0xd58] sm:$0xff] %v1060_v43  ;;  %v1064_v45 = vld [vmem:[%s10818_s11 + $0x1ac8] sm:$0xff] }
  0xf0   : > { %1063 = vst [vmem:[%s10823_s12 + $0xd60] sm:$0xff] %v1062_v44  ;;  %v1066_v46 = vld [vmem:[%s10818_s11 + $0x1ae0] sm:$0xff]  ;;  %v1068_v47 = vld [vmem:[%s10818_s11 + $0x1ae8] sm:$0xff]  ;;  %1065 = vst [vmem:[%s10823_s12 + $0xd68] sm:$0xff] %v1064_v45 }
  0xf1   : > { %1067 = vst [vmem:[%s10823_s12 + $0xd70] sm:$0xff] %v1066_v46  ;;  %1069 = vst [vmem:[%s10823_s12 + $0xd78] sm:$0xff] %v1068_v47  ;;  %v1070_v48 = vld [vmem:[%s10818_s11 + $0x1b00] sm:$0xff]  ;;  %v1072_v49 = vld [vmem:[%s10818_s11 + $0x1b08] sm:$0xff] }
  0xf2   : > { %v1074_v50 = vld [vmem:[%s10818_s11 + $0x1b20] sm:$0xff]  ;;  %1071 = vst [vmem:[%s10823_s12 + $0xd80] sm:$0xff] %v1070_v48  ;;  %1073 = vst [vmem:[%s10823_s12 + $0xd88] sm:$0xff] %v1072_v49  ;;  %v1076_v51 = vld [vmem:[%s10818_s11 + $0x1b28] sm:$0xff] }
  0xf3   : > { %1075 = vst [vmem:[%s10823_s12 + $0xd90] sm:$0xff] %v1074_v50  ;;  %v1078_v52 = vld [vmem:[%s10818_s11 + $0x1b40] sm:$0xff]  ;;  %v1080_v53 = vld [vmem:[%s10818_s11 + $0x1b48] sm:$0xff]  ;;  %1077 = vst [vmem:[%s10823_s12 + $0xd98] sm:$0xff] %v1076_v51 }
  0xf4   : > { %1079 = vst [vmem:[%s10823_s12 + $0xda0] sm:$0xff] %v1078_v52  ;;  %1081 = vst [vmem:[%s10823_s12 + $0xda8] sm:$0xff] %v1080_v53  ;;  %v1082_v54 = vld [vmem:[%s10818_s11 + $0x1b60] sm:$0xff]  ;;  %v1084_v55 = vld [vmem:[%s10818_s11 + $0x1b68] sm:$0xff] }
  0xf5   : > { %v1086_v56 = vld [vmem:[%s10818_s11 + $0x1b80] sm:$0xff]  ;;  %1083 = vst [vmem:[%s10823_s12 + $0xdb0] sm:$0xff] %v1082_v54  ;;  %1085 = vst [vmem:[%s10823_s12 + $0xdb8] sm:$0xff] %v1084_v55  ;;  %v1088_v57 = vld [vmem:[%s10818_s11 + $0x1b88] sm:$0xff] }
  0xf6   : > { %1087 = vst [vmem:[%s10823_s12 + $0xdc0] sm:$0xff] %v1086_v56  ;;  %v1090_v58 = vld [vmem:[%s10818_s11 + $0x1ba0] sm:$0xff]  ;;  %v1092_v59 = vld [vmem:[%s10818_s11 + $0x1ba8] sm:$0xff]  ;;  %1089 = vst [vmem:[%s10823_s12 + $0xdc8] sm:$0xff] %v1088_v57 }
  0xf7   : > { %1091 = vst [vmem:[%s10823_s12 + $0xdd0] sm:$0xff] %v1090_v58  ;;  %1093 = vst [vmem:[%s10823_s12 + $0xdd8] sm:$0xff] %v1092_v59  ;;  %v1094_v60 = vld [vmem:[%s10818_s11 + $0x1bc0] sm:$0xff]  ;;  %v1096_v61 = vld [vmem:[%s10818_s11 + $0x1bc8] sm:$0xff] }
  0xf8   : > { %v1098_v62 = vld [vmem:[%s10818_s11 + $0x1be0] sm:$0xff]  ;;  %1095 = vst [vmem:[%s10823_s12 + $0xde0] sm:$0xff] %v1094_v60  ;;  %1097 = vst [vmem:[%s10823_s12 + $0xde8] sm:$0xff] %v1096_v61  ;;  %v1100_v63 = vld [vmem:[%s10818_s11 + $0x1be8] sm:$0xff] }
  0xf9   : > { %1099 = vst [vmem:[%s10823_s12 + $0xdf0] sm:$0xff] %v1098_v62  ;;  %v1102_v0 = vld [vmem:[%s10818_s11 + $0x1c00] sm:$0xff]  ;;  %v1104_v1 = vld [vmem:[%s10818_s11 + $0x1c08] sm:$0xff]  ;;  %1101 = vst [vmem:[%s10823_s12 + $0xdf8] sm:$0xff] %v1100_v63 }
  0xfa   : > { %1103 = vst [vmem:[%s10823_s12 + $0xe00] sm:$0xff] %v1102_v0  ;;  %1105 = vst [vmem:[%s10823_s12 + $0xe08] sm:$0xff] %v1104_v1  ;;  %v1106_v2 = vld [vmem:[%s10818_s11 + $0x1c20] sm:$0xff]  ;;  %v1108_v3 = vld [vmem:[%s10818_s11 + $0x1c28] sm:$0xff] }
  0xfb   : > { %v1110_v4 = vld [vmem:[%s10818_s11 + $0x1c40] sm:$0xff]  ;;  %1107 = vst [vmem:[%s10823_s12 + $0xe10] sm:$0xff] %v1106_v2  ;;  %1109 = vst [vmem:[%s10823_s12 + $0xe18] sm:$0xff] %v1108_v3  ;;  %v1112_v5 = vld [vmem:[%s10818_s11 + $0x1c48] sm:$0xff] }
  0xfc   : > { %1111 = vst [vmem:[%s10823_s12 + $0xe20] sm:$0xff] %v1110_v4  ;;  %v1114_v6 = vld [vmem:[%s10818_s11 + $0x1c60] sm:$0xff]  ;;  %v1116_v7 = vld [vmem:[%s10818_s11 + $0x1c68] sm:$0xff]  ;;  %1113 = vst [vmem:[%s10823_s12 + $0xe28] sm:$0xff] %v1112_v5 }
  0xfd   : > { %1115 = vst [vmem:[%s10823_s12 + $0xe30] sm:$0xff] %v1114_v6  ;;  %1117 = vst [vmem:[%s10823_s12 + $0xe38] sm:$0xff] %v1116_v7  ;;  %v1118_v8 = vld [vmem:[%s10818_s11 + $0x1c80] sm:$0xff]  ;;  %v1120_v9 = vld [vmem:[%s10818_s11 + $0x1c88] sm:$0xff] }
  0xfe   : > { %v1122_v10 = vld [vmem:[%s10818_s11 + $0x1ca0] sm:$0xff]  ;;  %1119 = vst [vmem:[%s10823_s12 + $0xe40] sm:$0xff] %v1118_v8  ;;  %1121 = vst [vmem:[%s10823_s12 + $0xe48] sm:$0xff] %v1120_v9  ;;  %v1124_v11 = vld [vmem:[%s10818_s11 + $0x1ca8] sm:$0xff] }
  0xff   : > { %1123 = vst [vmem:[%s10823_s12 + $0xe50] sm:$0xff] %v1122_v10  ;;  %v1126_v12 = vld [vmem:[%s10818_s11 + $0x1cc0] sm:$0xff]  ;;  %v1128_v13 = vld [vmem:[%s10818_s11 + $0x1cc8] sm:$0xff]  ;;  %1125 = vst [vmem:[%s10823_s12 + $0xe58] sm:$0xff] %v1124_v11 }
 0x100   : > { %1127 = vst [vmem:[%s10823_s12 + $0xe60] sm:$0xff] %v1126_v12  ;;  %1129 = vst [vmem:[%s10823_s12 + $0xe68] sm:$0xff] %v1128_v13  ;;  %v1130_v14 = vld [vmem:[%s10818_s11 + $0x1ce0] sm:$0xff]  ;;  %v1132_v15 = vld [vmem:[%s10818_s11 + $0x1ce8] sm:$0xff] }
 0x101   : > { %v1134_v16 = vld [vmem:[%s10818_s11 + $0x1d00] sm:$0xff]  ;;  %1131 = vst [vmem:[%s10823_s12 + $0xe70] sm:$0xff] %v1130_v14  ;;  %1133 = vst [vmem:[%s10823_s12 + $0xe78] sm:$0xff] %v1132_v15  ;;  %v1136_v17 = vld [vmem:[%s10818_s11 + $0x1d08] sm:$0xff] }
 0x102   : > { %1135 = vst [vmem:[%s10823_s12 + $0xe80] sm:$0xff] %v1134_v16  ;;  %v1138_v18 = vld [vmem:[%s10818_s11 + $0x1d20] sm:$0xff]  ;;  %v1140_v19 = vld [vmem:[%s10818_s11 + $0x1d28] sm:$0xff]  ;;  %1137 = vst [vmem:[%s10823_s12 + $0xe88] sm:$0xff] %v1136_v17 }
 0x103   : > { %1139 = vst [vmem:[%s10823_s12 + $0xe90] sm:$0xff] %v1138_v18  ;;  %1141 = vst [vmem:[%s10823_s12 + $0xe98] sm:$0xff] %v1140_v19  ;;  %v1142_v20 = vld [vmem:[%s10818_s11 + $0x1d40] sm:$0xff]  ;;  %v1144_v21 = vld [vmem:[%s10818_s11 + $0x1d48] sm:$0xff] }
 0x104   : > { %v1146_v22 = vld [vmem:[%s10818_s11 + $0x1d60] sm:$0xff]  ;;  %1143 = vst [vmem:[%s10823_s12 + $0xea0] sm:$0xff] %v1142_v20  ;;  %1145 = vst [vmem:[%s10823_s12 + $0xea8] sm:$0xff] %v1144_v21  ;;  %v1148_v23 = vld [vmem:[%s10818_s11 + $0x1d68] sm:$0xff] }
 0x105   : > { %1147 = vst [vmem:[%s10823_s12 + $0xeb0] sm:$0xff] %v1146_v22  ;;  %v1150_v24 = vld [vmem:[%s10818_s11 + $0x1d80] sm:$0xff]  ;;  %v1152_v25 = vld [vmem:[%s10818_s11 + $0x1d88] sm:$0xff]  ;;  %1149 = vst [vmem:[%s10823_s12 + $0xeb8] sm:$0xff] %v1148_v23 }
 0x106   : > { %1151 = vst [vmem:[%s10823_s12 + $0xec0] sm:$0xff] %v1150_v24  ;;  %1153 = vst [vmem:[%s10823_s12 + $0xec8] sm:$0xff] %v1152_v25  ;;  %v1154_v26 = vld [vmem:[%s10818_s11 + $0x1da0] sm:$0xff]  ;;  %v1156_v27 = vld [vmem:[%s10818_s11 + $0x1da8] sm:$0xff] }
 0x107   : > { %v1158_v28 = vld [vmem:[%s10818_s11 + $0x1dc0] sm:$0xff]  ;;  %1155 = vst [vmem:[%s10823_s12 + $0xed0] sm:$0xff] %v1154_v26  ;;  %1157 = vst [vmem:[%s10823_s12 + $0xed8] sm:$0xff] %v1156_v27  ;;  %v1160_v29 = vld [vmem:[%s10818_s11 + $0x1dc8] sm:$0xff] }
 0x108   : > { %1159 = vst [vmem:[%s10823_s12 + $0xee0] sm:$0xff] %v1158_v28  ;;  %v1162_v30 = vld [vmem:[%s10818_s11 + $0x1de0] sm:$0xff]  ;;  %v1164_v31 = vld [vmem:[%s10818_s11 + $0x1de8] sm:$0xff]  ;;  %1161 = vst [vmem:[%s10823_s12 + $0xee8] sm:$0xff] %v1160_v29 }
 0x109   : > { %1163 = vst [vmem:[%s10823_s12 + $0xef0] sm:$0xff] %v1162_v30  ;;  %1165 = vst [vmem:[%s10823_s12 + $0xef8] sm:$0xff] %v1164_v31  ;;  %v1166_v32 = vld [vmem:[%s10818_s11 + $0x1e00] sm:$0xff]  ;;  %v1168_v33 = vld [vmem:[%s10818_s11 + $0x1e08] sm:$0xff] }
 0x10a   : > { %v1170_v34 = vld [vmem:[%s10818_s11 + $0x1e20] sm:$0xff]  ;;  %1167 = vst [vmem:[%s10823_s12 + $0xf00] sm:$0xff] %v1166_v32  ;;  %1169 = vst [vmem:[%s10823_s12 + $0xf08] sm:$0xff] %v1168_v33  ;;  %v1172_v35 = vld [vmem:[%s10818_s11 + $0x1e28] sm:$0xff] }
 0x10b   : > { %1171 = vst [vmem:[%s10823_s12 + $0xf10] sm:$0xff] %v1170_v34  ;;  %v1174_v36 = vld [vmem:[%s10818_s11 + $0x1e40] sm:$0xff]  ;;  %v1176_v37 = vld [vmem:[%s10818_s11 + $0x1e48] sm:$0xff]  ;;  %1173 = vst [vmem:[%s10823_s12 + $0xf18] sm:$0xff] %v1172_v35 }
 0x10c   : > { %1175 = vst [vmem:[%s10823_s12 + $0xf20] sm:$0xff] %v1174_v36  ;;  %1177 = vst [vmem:[%s10823_s12 + $0xf28] sm:$0xff] %v1176_v37  ;;  %v1178_v38 = vld [vmem:[%s10818_s11 + $0x1e60] sm:$0xff]  ;;  %v1180_v39 = vld [vmem:[%s10818_s11 + $0x1e68] sm:$0xff] }
 0x10d   : > { %v1182_v40 = vld [vmem:[%s10818_s11 + $0x1e80] sm:$0xff]  ;;  %1179 = vst [vmem:[%s10823_s12 + $0xf30] sm:$0xff] %v1178_v38  ;;  %1181 = vst [vmem:[%s10823_s12 + $0xf38] sm:$0xff] %v1180_v39  ;;  %v1184_v41 = vld [vmem:[%s10818_s11 + $0x1e88] sm:$0xff] }
 0x10e   : > { %1183 = vst [vmem:[%s10823_s12 + $0xf40] sm:$0xff] %v1182_v40  ;;  %v1186_v42 = vld [vmem:[%s10818_s11 + $0x1ea0] sm:$0xff]  ;;  %v1188_v43 = vld [vmem:[%s10818_s11 + $0x1ea8] sm:$0xff]  ;;  %1185 = vst [vmem:[%s10823_s12 + $0xf48] sm:$0xff] %v1184_v41 }
 0x10f   : > { %1187 = vst [vmem:[%s10823_s12 + $0xf50] sm:$0xff] %v1186_v42  ;;  %1189 = vst [vmem:[%s10823_s12 + $0xf58] sm:$0xff] %v1188_v43  ;;  %v1190_v44 = vld [vmem:[%s10818_s11 + $0x1ec0] sm:$0xff]  ;;  %v1192_v45 = vld [vmem:[%s10818_s11 + $0x1ec8] sm:$0xff] }
 0x110   : > { %v1194_v46 = vld [vmem:[%s10818_s11 + $0x1ee0] sm:$0xff]  ;;  %1191 = vst [vmem:[%s10823_s12 + $0xf60] sm:$0xff] %v1190_v44  ;;  %1193 = vst [vmem:[%s10823_s12 + $0xf68] sm:$0xff] %v1192_v45  ;;  %v1196_v47 = vld [vmem:[%s10818_s11 + $0x1ee8] sm:$0xff] }
 0x111   : > { %1195 = vst [vmem:[%s10823_s12 + $0xf70] sm:$0xff] %v1194_v46  ;;  %v1198_v48 = vld [vmem:[%s10818_s11 + $0x1f00] sm:$0xff]  ;;  %v1200_v49 = vld [vmem:[%s10818_s11 + $0x1f08] sm:$0xff]  ;;  %1197 = vst [vmem:[%s10823_s12 + $0xf78] sm:$0xff] %v1196_v47 }
 0x112   : > { %1199 = vst [vmem:[%s10823_s12 + $0xf80] sm:$0xff] %v1198_v48  ;;  %1201 = vst [vmem:[%s10823_s12 + $0xf88] sm:$0xff] %v1200_v49  ;;  %v1202_v50 = vld [vmem:[%s10818_s11 + $0x1f20] sm:$0xff]  ;;  %v1204_v51 = vld [vmem:[%s10818_s11 + $0x1f28] sm:$0xff] }
 0x113   : > { %v1206_v52 = vld [vmem:[%s10818_s11 + $0x1f40] sm:$0xff]  ;;  %1203 = vst [vmem:[%s10823_s12 + $0xf90] sm:$0xff] %v1202_v50  ;;  %1205 = vst [vmem:[%s10823_s12 + $0xf98] sm:$0xff] %v1204_v51  ;;  %v1208_v53 = vld [vmem:[%s10818_s11 + $0x1f48] sm:$0xff] }
 0x114   : > { %1207 = vst [vmem:[%s10823_s12 + $0xfa0] sm:$0xff] %v1206_v52  ;;  %v1210_v54 = vld [vmem:[%s10818_s11 + $0x1f60] sm:$0xff]  ;;  %v1212_v55 = vld [vmem:[%s10818_s11 + $0x1f68] sm:$0xff]  ;;  %1209 = vst [vmem:[%s10823_s12 + $0xfa8] sm:$0xff] %v1208_v53 }
 0x115   : > { %1211 = vst [vmem:[%s10823_s12 + $0xfb0] sm:$0xff] %v1210_v54  ;;  %1213 = vst [vmem:[%s10823_s12 + $0xfb8] sm:$0xff] %v1212_v55  ;;  %v1214_v56 = vld [vmem:[%s10818_s11 + $0x1f80] sm:$0xff]  ;;  %v1216_v57 = vld [vmem:[%s10818_s11 + $0x1f88] sm:$0xff] }
 0x116   : > { %v1218_v58 = vld [vmem:[%s10818_s11 + $0x1fa0] sm:$0xff]  ;;  %1215 = vst [vmem:[%s10823_s12 + $0xfc0] sm:$0xff] %v1214_v56  ;;  %1217 = vst [vmem:[%s10823_s12 + $0xfc8] sm:$0xff] %v1216_v57  ;;  %v1220_v59 = vld [vmem:[%s10818_s11 + $0x1fa8] sm:$0xff] }
 0x117   : > { %1219 = vst [vmem:[%s10823_s12 + $0xfd0] sm:$0xff] %v1218_v58  ;;  %v1222_v60 = vld [vmem:[%s10818_s11 + $0x1fc0] sm:$0xff]  ;;  %v1224_v61 = vld [vmem:[%s10818_s11 + $0x1fc8] sm:$0xff]  ;;  %1221 = vst [vmem:[%s10823_s12 + $0xfd8] sm:$0xff] %v1220_v59 }
 0x118   : > { %1223 = vst [vmem:[%s10823_s12 + $0xfe0] sm:$0xff] %v1222_v60  ;;  %1225 = vst [vmem:[%s10823_s12 + $0xfe8] sm:$0xff] %v1224_v61  ;;  %v1226_v62 = vld [vmem:[%s10818_s11 + $0x1fe0] sm:$0xff]  ;;  %v1228_v63 = vld [vmem:[%s10818_s11 + $0x1fe8] sm:$0xff] }
 0x119   : > { %v1230_v0 = vld [vmem:[%s10818_s11 + $0x2000] sm:$0xff]  ;;  %1227 = vst [vmem:[%s10823_s12 + $0xff0] sm:$0xff] %v1226_v62  ;;  %1229 = vst [vmem:[%s10823_s12 + $0xff8] sm:$0xff] %v1228_v63  ;;  %v1232_v1 = vld [vmem:[%s10818_s11 + $0x2008] sm:$0xff] }
 0x11a   : > { %1231 = vst [vmem:[%s10823_s12 + $0x1000] sm:$0xff] %v1230_v0  ;;  %v1234_v2 = vld [vmem:[%s10818_s11 + $0x2020] sm:$0xff]  ;;  %v1236_v3 = vld [vmem:[%s10818_s11 + $0x2028] sm:$0xff]  ;;  %1233 = vst [vmem:[%s10823_s12 + $0x1008] sm:$0xff] %v1232_v1 }
 0x11b   : > { %1235 = vst [vmem:[%s10823_s12 + $0x1010] sm:$0xff] %v1234_v2  ;;  %1237 = vst [vmem:[%s10823_s12 + $0x1018] sm:$0xff] %v1236_v3  ;;  %v1238_v4 = vld [vmem:[%s10818_s11 + $0x2040] sm:$0xff]  ;;  %v1240_v5 = vld [vmem:[%s10818_s11 + $0x2048] sm:$0xff] }
 0x11c   : > { %v1242_v6 = vld [vmem:[%s10818_s11 + $0x2060] sm:$0xff]  ;;  %1239 = vst [vmem:[%s10823_s12 + $0x1020] sm:$0xff] %v1238_v4  ;;  %1241 = vst [vmem:[%s10823_s12 + $0x1028] sm:$0xff] %v1240_v5  ;;  %v1244_v7 = vld [vmem:[%s10818_s11 + $0x2068] sm:$0xff] }
 0x11d   : > { %1243 = vst [vmem:[%s10823_s12 + $0x1030] sm:$0xff] %v1242_v6  ;;  %v1246_v8 = vld [vmem:[%s10818_s11 + $0x2080] sm:$0xff]  ;;  %v1248_v9 = vld [vmem:[%s10818_s11 + $0x2088] sm:$0xff]  ;;  %1245 = vst [vmem:[%s10823_s12 + $0x1038] sm:$0xff] %v1244_v7 }
 0x11e   : > { %1247 = vst [vmem:[%s10823_s12 + $0x1040] sm:$0xff] %v1246_v8  ;;  %1249 = vst [vmem:[%s10823_s12 + $0x1048] sm:$0xff] %v1248_v9  ;;  %v1250_v10 = vld [vmem:[%s10818_s11 + $0x20a0] sm:$0xff]  ;;  %v1252_v11 = vld [vmem:[%s10818_s11 + $0x20a8] sm:$0xff] }
 0x11f   : > { %v1254_v12 = vld [vmem:[%s10818_s11 + $0x20c0] sm:$0xff]  ;;  %1251 = vst [vmem:[%s10823_s12 + $0x1050] sm:$0xff] %v1250_v10  ;;  %1253 = vst [vmem:[%s10823_s12 + $0x1058] sm:$0xff] %v1252_v11  ;;  %v1256_v13 = vld [vmem:[%s10818_s11 + $0x20c8] sm:$0xff] }
 0x120   : > { %1255 = vst [vmem:[%s10823_s12 + $0x1060] sm:$0xff] %v1254_v12  ;;  %v1258_v14 = vld [vmem:[%s10818_s11 + $0x20e0] sm:$0xff]  ;;  %v1260_v15 = vld [vmem:[%s10818_s11 + $0x20e8] sm:$0xff]  ;;  %1257 = vst [vmem:[%s10823_s12 + $0x1068] sm:$0xff] %v1256_v13 }
 0x121   : > { %1259 = vst [vmem:[%s10823_s12 + $0x1070] sm:$0xff] %v1258_v14  ;;  %1261 = vst [vmem:[%s10823_s12 + $0x1078] sm:$0xff] %v1260_v15  ;;  %v1262_v16 = vld [vmem:[%s10818_s11 + $0x2100] sm:$0xff]  ;;  %v1264_v17 = vld [vmem:[%s10818_s11 + $0x2108] sm:$0xff] }
 0x122   : > { %v1266_v18 = vld [vmem:[%s10818_s11 + $0x2120] sm:$0xff]  ;;  %1263 = vst [vmem:[%s10823_s12 + $0x1080] sm:$0xff] %v1262_v16  ;;  %1265 = vst [vmem:[%s10823_s12 + $0x1088] sm:$0xff] %v1264_v17  ;;  %v1268_v19 = vld [vmem:[%s10818_s11 + $0x2128] sm:$0xff] }
 0x123   : > { %1267 = vst [vmem:[%s10823_s12 + $0x1090] sm:$0xff] %v1266_v18  ;;  %v1270_v20 = vld [vmem:[%s10818_s11 + $0x2140] sm:$0xff]  ;;  %v1272_v21 = vld [vmem:[%s10818_s11 + $0x2148] sm:$0xff]  ;;  %1269 = vst [vmem:[%s10823_s12 + $0x1098] sm:$0xff] %v1268_v19 }
 0x124   : > { %1271 = vst [vmem:[%s10823_s12 + $0x10a0] sm:$0xff] %v1270_v20  ;;  %1273 = vst [vmem:[%s10823_s12 + $0x10a8] sm:$0xff] %v1272_v21  ;;  %v1274_v22 = vld [vmem:[%s10818_s11 + $0x2160] sm:$0xff]  ;;  %v1276_v23 = vld [vmem:[%s10818_s11 + $0x2168] sm:$0xff] }
 0x125   : > { %v1278_v24 = vld [vmem:[%s10818_s11 + $0x2180] sm:$0xff]  ;;  %1275 = vst [vmem:[%s10823_s12 + $0x10b0] sm:$0xff] %v1274_v22  ;;  %1277 = vst [vmem:[%s10823_s12 + $0x10b8] sm:$0xff] %v1276_v23  ;;  %v1280_v25 = vld [vmem:[%s10818_s11 + $0x2188] sm:$0xff] }
 0x126   : > { %1279 = vst [vmem:[%s10823_s12 + $0x10c0] sm:$0xff] %v1278_v24  ;;  %v1282_v26 = vld [vmem:[%s10818_s11 + $0x21a0] sm:$0xff]  ;;  %v1284_v27 = vld [vmem:[%s10818_s11 + $0x21a8] sm:$0xff]  ;;  %1281 = vst [vmem:[%s10823_s12 + $0x10c8] sm:$0xff] %v1280_v25 }
 0x127   : > { %1283 = vst [vmem:[%s10823_s12 + $0x10d0] sm:$0xff] %v1282_v26  ;;  %1285 = vst [vmem:[%s10823_s12 + $0x10d8] sm:$0xff] %v1284_v27  ;;  %v1286_v28 = vld [vmem:[%s10818_s11 + $0x21c0] sm:$0xff]  ;;  %v1288_v29 = vld [vmem:[%s10818_s11 + $0x21c8] sm:$0xff] }
 0x128   : > { %v1290_v30 = vld [vmem:[%s10818_s11 + $0x21e0] sm:$0xff]  ;;  %1287 = vst [vmem:[%s10823_s12 + $0x10e0] sm:$0xff] %v1286_v28  ;;  %1289 = vst [vmem:[%s10823_s12 + $0x10e8] sm:$0xff] %v1288_v29  ;;  %v1292_v31 = vld [vmem:[%s10818_s11 + $0x21e8] sm:$0xff] }
 0x129   : > { %1291 = vst [vmem:[%s10823_s12 + $0x10f0] sm:$0xff] %v1290_v30  ;;  %v1294_v32 = vld [vmem:[%s10818_s11 + $0x2200] sm:$0xff]  ;;  %v1296_v33 = vld [vmem:[%s10818_s11 + $0x2208] sm:$0xff]  ;;  %1293 = vst [vmem:[%s10823_s12 + $0x10f8] sm:$0xff] %v1292_v31 }
 0x12a   : > { %1295 = vst [vmem:[%s10823_s12 + $0x1100] sm:$0xff] %v1294_v32  ;;  %1297 = vst [vmem:[%s10823_s12 + $0x1108] sm:$0xff] %v1296_v33  ;;  %v1298_v34 = vld [vmem:[%s10818_s11 + $0x2220] sm:$0xff]  ;;  %v1300_v35 = vld [vmem:[%s10818_s11 + $0x2228] sm:$0xff] }
 0x12b   : > { %v1302_v36 = vld [vmem:[%s10818_s11 + $0x2240] sm:$0xff]  ;;  %1299 = vst [vmem:[%s10823_s12 + $0x1110] sm:$0xff] %v1298_v34  ;;  %1301 = vst [vmem:[%s10823_s12 + $0x1118] sm:$0xff] %v1300_v35  ;;  %v1304_v37 = vld [vmem:[%s10818_s11 + $0x2248] sm:$0xff] }
 0x12c   : > { %1303 = vst [vmem:[%s10823_s12 + $0x1120] sm:$0xff] %v1302_v36  ;;  %v1306_v38 = vld [vmem:[%s10818_s11 + $0x2260] sm:$0xff]  ;;  %v1308_v39 = vld [vmem:[%s10818_s11 + $0x2268] sm:$0xff]  ;;  %1305 = vst [vmem:[%s10823_s12 + $0x1128] sm:$0xff] %v1304_v37 }
 0x12d   : > { %1307 = vst [vmem:[%s10823_s12 + $0x1130] sm:$0xff] %v1306_v38  ;;  %1309 = vst [vmem:[%s10823_s12 + $0x1138] sm:$0xff] %v1308_v39  ;;  %v1310_v40 = vld [vmem:[%s10818_s11 + $0x2280] sm:$0xff]  ;;  %v1312_v41 = vld [vmem:[%s10818_s11 + $0x2288] sm:$0xff] }
 0x12e   : > { %v1314_v42 = vld [vmem:[%s10818_s11 + $0x22a0] sm:$0xff]  ;;  %1311 = vst [vmem:[%s10823_s12 + $0x1140] sm:$0xff] %v1310_v40  ;;  %1313 = vst [vmem:[%s10823_s12 + $0x1148] sm:$0xff] %v1312_v41  ;;  %v1316_v43 = vld [vmem:[%s10818_s11 + $0x22a8] sm:$0xff] }
 0x12f   : > { %1315 = vst [vmem:[%s10823_s12 + $0x1150] sm:$0xff] %v1314_v42  ;;  %v1318_v44 = vld [vmem:[%s10818_s11 + $0x22c0] sm:$0xff]  ;;  %v1320_v45 = vld [vmem:[%s10818_s11 + $0x22c8] sm:$0xff]  ;;  %1317 = vst [vmem:[%s10823_s12 + $0x1158] sm:$0xff] %v1316_v43 }
 0x130   : > { %1319 = vst [vmem:[%s10823_s12 + $0x1160] sm:$0xff] %v1318_v44  ;;  %1321 = vst [vmem:[%s10823_s12 + $0x1168] sm:$0xff] %v1320_v45  ;;  %v1322_v46 = vld [vmem:[%s10818_s11 + $0x22e0] sm:$0xff]  ;;  %v1324_v47 = vld [vmem:[%s10818_s11 + $0x22e8] sm:$0xff] }
 0x131   : > { %v1326_v48 = vld [vmem:[%s10818_s11 + $0x2300] sm:$0xff]  ;;  %1323 = vst [vmem:[%s10823_s12 + $0x1170] sm:$0xff] %v1322_v46  ;;  %1325 = vst [vmem:[%s10823_s12 + $0x1178] sm:$0xff] %v1324_v47  ;;  %v1328_v49 = vld [vmem:[%s10818_s11 + $0x2308] sm:$0xff] }
 0x132   : > { %1327 = vst [vmem:[%s10823_s12 + $0x1180] sm:$0xff] %v1326_v48  ;;  %v1330_v50 = vld [vmem:[%s10818_s11 + $0x2320] sm:$0xff]  ;;  %v1332_v51 = vld [vmem:[%s10818_s11 + $0x2328] sm:$0xff]  ;;  %1329 = vst [vmem:[%s10823_s12 + $0x1188] sm:$0xff] %v1328_v49 }
 0x133   : > { %1331 = vst [vmem:[%s10823_s12 + $0x1190] sm:$0xff] %v1330_v50  ;;  %1333 = vst [vmem:[%s10823_s12 + $0x1198] sm:$0xff] %v1332_v51  ;;  %v1334_v52 = vld [vmem:[%s10818_s11 + $0x2340] sm:$0xff]  ;;  %v1336_v53 = vld [vmem:[%s10818_s11 + $0x2348] sm:$0xff] }
 0x134   : > { %v1338_v54 = vld [vmem:[%s10818_s11 + $0x2360] sm:$0xff]  ;;  %1335 = vst [vmem:[%s10823_s12 + $0x11a0] sm:$0xff] %v1334_v52  ;;  %1337 = vst [vmem:[%s10823_s12 + $0x11a8] sm:$0xff] %v1336_v53  ;;  %v1340_v55 = vld [vmem:[%s10818_s11 + $0x2368] sm:$0xff] }
 0x135   : > { %1339 = vst [vmem:[%s10823_s12 + $0x11b0] sm:$0xff] %v1338_v54  ;;  %v1342_v56 = vld [vmem:[%s10818_s11 + $0x2380] sm:$0xff]  ;;  %v1344_v57 = vld [vmem:[%s10818_s11 + $0x2388] sm:$0xff]  ;;  %1341 = vst [vmem:[%s10823_s12 + $0x11b8] sm:$0xff] %v1340_v55 }
 0x136   : > { %1343 = vst [vmem:[%s10823_s12 + $0x11c0] sm:$0xff] %v1342_v56  ;;  %1345 = vst [vmem:[%s10823_s12 + $0x11c8] sm:$0xff] %v1344_v57  ;;  %v1346_v58 = vld [vmem:[%s10818_s11 + $0x23a0] sm:$0xff]  ;;  %v1348_v59 = vld [vmem:[%s10818_s11 + $0x23a8] sm:$0xff] }
 0x137   : > { %v1350_v60 = vld [vmem:[%s10818_s11 + $0x23c0] sm:$0xff]  ;;  %1347 = vst [vmem:[%s10823_s12 + $0x11d0] sm:$0xff] %v1346_v58  ;;  %1349 = vst [vmem:[%s10823_s12 + $0x11d8] sm:$0xff] %v1348_v59  ;;  %v1352_v61 = vld [vmem:[%s10818_s11 + $0x23c8] sm:$0xff] }
 0x138   : > { %1351 = vst [vmem:[%s10823_s12 + $0x11e0] sm:$0xff] %v1350_v60  ;;  %v1354_v62 = vld [vmem:[%s10818_s11 + $0x23e0] sm:$0xff]  ;;  %v1356_v63 = vld [vmem:[%s10818_s11 + $0x23e8] sm:$0xff]  ;;  %1353 = vst [vmem:[%s10823_s12 + $0x11e8] sm:$0xff] %v1352_v61 }
 0x139   : > { %1355 = vst [vmem:[%s10823_s12 + $0x11f0] sm:$0xff] %v1354_v62  ;;  %1357 = vst [vmem:[%s10823_s12 + $0x11f8] sm:$0xff] %v1356_v63  ;;  %v1358_v0 = vld [vmem:[%s10818_s11 + $0x2400] sm:$0xff]  ;;  %v1360_v1 = vld [vmem:[%s10818_s11 + $0x2408] sm:$0xff] }
 0x13a   : > { %v1362_v2 = vld [vmem:[%s10818_s11 + $0x2420] sm:$0xff]  ;;  %1359 = vst [vmem:[%s10823_s12 + $0x1200] sm:$0xff] %v1358_v0  ;;  %1361 = vst [vmem:[%s10823_s12 + $0x1208] sm:$0xff] %v1360_v1  ;;  %v1364_v3 = vld [vmem:[%s10818_s11 + $0x2428] sm:$0xff] }
 0x13b   : > { %1363 = vst [vmem:[%s10823_s12 + $0x1210] sm:$0xff] %v1362_v2  ;;  %v1366_v4 = vld [vmem:[%s10818_s11 + $0x2440] sm:$0xff]  ;;  %v1368_v5 = vld [vmem:[%s10818_s11 + $0x2448] sm:$0xff]  ;;  %1365 = vst [vmem:[%s10823_s12 + $0x1218] sm:$0xff] %v1364_v3 }
 0x13c   : > { %1367 = vst [vmem:[%s10823_s12 + $0x1220] sm:$0xff] %v1366_v4  ;;  %1369 = vst [vmem:[%s10823_s12 + $0x1228] sm:$0xff] %v1368_v5  ;;  %v1370_v6 = vld [vmem:[%s10818_s11 + $0x2460] sm:$0xff]  ;;  %v1372_v7 = vld [vmem:[%s10818_s11 + $0x2468] sm:$0xff] }
 0x13d   : > { %v1374_v8 = vld [vmem:[%s10818_s11 + $0x2480] sm:$0xff]  ;;  %1371 = vst [vmem:[%s10823_s12 + $0x1230] sm:$0xff] %v1370_v6  ;;  %1373 = vst [vmem:[%s10823_s12 + $0x1238] sm:$0xff] %v1372_v7  ;;  %v1376_v9 = vld [vmem:[%s10818_s11 + $0x2488] sm:$0xff] }
 0x13e   : > { %1375 = vst [vmem:[%s10823_s12 + $0x1240] sm:$0xff] %v1374_v8  ;;  %v1378_v10 = vld [vmem:[%s10818_s11 + $0x24a0] sm:$0xff]  ;;  %v1380_v11 = vld [vmem:[%s10818_s11 + $0x24a8] sm:$0xff]  ;;  %1377 = vst [vmem:[%s10823_s12 + $0x1248] sm:$0xff] %v1376_v9 }
 0x13f   : > { %1379 = vst [vmem:[%s10823_s12 + $0x1250] sm:$0xff] %v1378_v10  ;;  %1381 = vst [vmem:[%s10823_s12 + $0x1258] sm:$0xff] %v1380_v11  ;;  %v1382_v12 = vld [vmem:[%s10818_s11 + $0x24c0] sm:$0xff]  ;;  %v1384_v13 = vld [vmem:[%s10818_s11 + $0x24c8] sm:$0xff] }
 0x140   : > { %v1386_v14 = vld [vmem:[%s10818_s11 + $0x24e0] sm:$0xff]  ;;  %1383 = vst [vmem:[%s10823_s12 + $0x1260] sm:$0xff] %v1382_v12  ;;  %1385 = vst [vmem:[%s10823_s12 + $0x1268] sm:$0xff] %v1384_v13  ;;  %v1388_v15 = vld [vmem:[%s10818_s11 + $0x24e8] sm:$0xff] }
 0x141   : > { %1387 = vst [vmem:[%s10823_s12 + $0x1270] sm:$0xff] %v1386_v14  ;;  %v1390_v16 = vld [vmem:[%s10818_s11 + $0x2500] sm:$0xff]  ;;  %v1392_v17 = vld [vmem:[%s10818_s11 + $0x2508] sm:$0xff]  ;;  %1389 = vst [vmem:[%s10823_s12 + $0x1278] sm:$0xff] %v1388_v15 }
 0x142   : > { %1391 = vst [vmem:[%s10823_s12 + $0x1280] sm:$0xff] %v1390_v16  ;;  %1393 = vst [vmem:[%s10823_s12 + $0x1288] sm:$0xff] %v1392_v17  ;;  %v1394_v18 = vld [vmem:[%s10818_s11 + $0x2520] sm:$0xff]  ;;  %v1396_v19 = vld [vmem:[%s10818_s11 + $0x2528] sm:$0xff] }
 0x143   : > { %v1398_v20 = vld [vmem:[%s10818_s11 + $0x2540] sm:$0xff]  ;;  %1395 = vst [vmem:[%s10823_s12 + $0x1290] sm:$0xff] %v1394_v18  ;;  %1397 = vst [vmem:[%s10823_s12 + $0x1298] sm:$0xff] %v1396_v19  ;;  %v1400_v21 = vld [vmem:[%s10818_s11 + $0x2548] sm:$0xff] }
 0x144   : > { %1399 = vst [vmem:[%s10823_s12 + $0x12a0] sm:$0xff] %v1398_v20  ;;  %v1402_v22 = vld [vmem:[%s10818_s11 + $0x2560] sm:$0xff]  ;;  %v1404_v23 = vld [vmem:[%s10818_s11 + $0x2568] sm:$0xff]  ;;  %1401 = vst [vmem:[%s10823_s12 + $0x12a8] sm:$0xff] %v1400_v21 }
 0x145   : > { %1403 = vst [vmem:[%s10823_s12 + $0x12b0] sm:$0xff] %v1402_v22  ;;  %1405 = vst [vmem:[%s10823_s12 + $0x12b8] sm:$0xff] %v1404_v23  ;;  %v1406_v24 = vld [vmem:[%s10818_s11 + $0x2580] sm:$0xff]  ;;  %v1408_v25 = vld [vmem:[%s10818_s11 + $0x2588] sm:$0xff] }
 0x146   : > { %v1410_v26 = vld [vmem:[%s10818_s11 + $0x25a0] sm:$0xff]  ;;  %1407 = vst [vmem:[%s10823_s12 + $0x12c0] sm:$0xff] %v1406_v24  ;;  %1409 = vst [vmem:[%s10823_s12 + $0x12c8] sm:$0xff] %v1408_v25  ;;  %v1412_v27 = vld [vmem:[%s10818_s11 + $0x25a8] sm:$0xff] }
 0x147   : > { %1411 = vst [vmem:[%s10823_s12 + $0x12d0] sm:$0xff] %v1410_v26  ;;  %v1414_v28 = vld [vmem:[%s10818_s11 + $0x25c0] sm:$0xff]  ;;  %v1416_v29 = vld [vmem:[%s10818_s11 + $0x25c8] sm:$0xff]  ;;  %1413 = vst [vmem:[%s10823_s12 + $0x12d8] sm:$0xff] %v1412_v27 }
 0x148   : > { %1415 = vst [vmem:[%s10823_s12 + $0x12e0] sm:$0xff] %v1414_v28  ;;  %1417 = vst [vmem:[%s10823_s12 + $0x12e8] sm:$0xff] %v1416_v29  ;;  %v1418_v30 = vld [vmem:[%s10818_s11 + $0x25e0] sm:$0xff]  ;;  %v1420_v31 = vld [vmem:[%s10818_s11 + $0x25e8] sm:$0xff] }
 0x149   : > { %v1422_v32 = vld [vmem:[%s10818_s11 + $0x2600] sm:$0xff]  ;;  %1419 = vst [vmem:[%s10823_s12 + $0x12f0] sm:$0xff] %v1418_v30  ;;  %1421 = vst [vmem:[%s10823_s12 + $0x12f8] sm:$0xff] %v1420_v31  ;;  %v1424_v33 = vld [vmem:[%s10818_s11 + $0x2608] sm:$0xff] }
 0x14a   : > { %1423 = vst [vmem:[%s10823_s12 + $0x1300] sm:$0xff] %v1422_v32  ;;  %v1426_v34 = vld [vmem:[%s10818_s11 + $0x2620] sm:$0xff]  ;;  %v1428_v35 = vld [vmem:[%s10818_s11 + $0x2628] sm:$0xff]  ;;  %1425 = vst [vmem:[%s10823_s12 + $0x1308] sm:$0xff] %v1424_v33 }
 0x14b   : > { %1427 = vst [vmem:[%s10823_s12 + $0x1310] sm:$0xff] %v1426_v34  ;;  %1429 = vst [vmem:[%s10823_s12 + $0x1318] sm:$0xff] %v1428_v35  ;;  %v1430_v36 = vld [vmem:[%s10818_s11 + $0x2640] sm:$0xff]  ;;  %v1432_v37 = vld [vmem:[%s10818_s11 + $0x2648] sm:$0xff] }
 0x14c   : > { %v1434_v38 = vld [vmem:[%s10818_s11 + $0x2660] sm:$0xff]  ;;  %1431 = vst [vmem:[%s10823_s12 + $0x1320] sm:$0xff] %v1430_v36  ;;  %1433 = vst [vmem:[%s10823_s12 + $0x1328] sm:$0xff] %v1432_v37  ;;  %v1436_v39 = vld [vmem:[%s10818_s11 + $0x2668] sm:$0xff] }
 0x14d   : > { %1435 = vst [vmem:[%s10823_s12 + $0x1330] sm:$0xff] %v1434_v38  ;;  %v1438_v40 = vld [vmem:[%s10818_s11 + $0x2680] sm:$0xff]  ;;  %v1440_v41 = vld [vmem:[%s10818_s11 + $0x2688] sm:$0xff]  ;;  %1437 = vst [vmem:[%s10823_s12 + $0x1338] sm:$0xff] %v1436_v39 }
 0x14e   : > { %1439 = vst [vmem:[%s10823_s12 + $0x1340] sm:$0xff] %v1438_v40  ;;  %1441 = vst [vmem:[%s10823_s12 + $0x1348] sm:$0xff] %v1440_v41  ;;  %v1442_v42 = vld [vmem:[%s10818_s11 + $0x26a0] sm:$0xff]  ;;  %v1444_v43 = vld [vmem:[%s10818_s11 + $0x26a8] sm:$0xff] }
 0x14f   : > { %v1446_v44 = vld [vmem:[%s10818_s11 + $0x26c0] sm:$0xff]  ;;  %1443 = vst [vmem:[%s10823_s12 + $0x1350] sm:$0xff] %v1442_v42  ;;  %1445 = vst [vmem:[%s10823_s12 + $0x1358] sm:$0xff] %v1444_v43  ;;  %v1448_v45 = vld [vmem:[%s10818_s11 + $0x26c8] sm:$0xff] }
 0x150   : > { %1447 = vst [vmem:[%s10823_s12 + $0x1360] sm:$0xff] %v1446_v44  ;;  %v1450_v46 = vld [vmem:[%s10818_s11 + $0x26e0] sm:$0xff]  ;;  %v1452_v47 = vld [vmem:[%s10818_s11 + $0x26e8] sm:$0xff]  ;;  %1449 = vst [vmem:[%s10823_s12 + $0x1368] sm:$0xff] %v1448_v45 }
 0x151   : > { %1451 = vst [vmem:[%s10823_s12 + $0x1370] sm:$0xff] %v1450_v46  ;;  %1453 = vst [vmem:[%s10823_s12 + $0x1378] sm:$0xff] %v1452_v47  ;;  %v1454_v48 = vld [vmem:[%s10818_s11 + $0x2700] sm:$0xff]  ;;  %v1456_v49 = vld [vmem:[%s10818_s11 + $0x2708] sm:$0xff] }
 0x152   : > { %v1458_v50 = vld [vmem:[%s10818_s11 + $0x2720] sm:$0xff]  ;;  %1455 = vst [vmem:[%s10823_s12 + $0x1380] sm:$0xff] %v1454_v48  ;;  %1457 = vst [vmem:[%s10823_s12 + $0x1388] sm:$0xff] %v1456_v49  ;;  %v1460_v51 = vld [vmem:[%s10818_s11 + $0x2728] sm:$0xff] }
 0x153   : > { %1459 = vst [vmem:[%s10823_s12 + $0x1390] sm:$0xff] %v1458_v50  ;;  %v1462_v52 = vld [vmem:[%s10818_s11 + $0x2740] sm:$0xff]  ;;  %v1464_v53 = vld [vmem:[%s10818_s11 + $0x2748] sm:$0xff]  ;;  %1461 = vst [vmem:[%s10823_s12 + $0x1398] sm:$0xff] %v1460_v51 }
 0x154   : > { %1463 = vst [vmem:[%s10823_s12 + $0x13a0] sm:$0xff] %v1462_v52  ;;  %1465 = vst [vmem:[%s10823_s12 + $0x13a8] sm:$0xff] %v1464_v53  ;;  %v1466_v54 = vld [vmem:[%s10818_s11 + $0x2760] sm:$0xff]  ;;  %v1468_v55 = vld [vmem:[%s10818_s11 + $0x2768] sm:$0xff] }
 0x155   : > { %v1470_v56 = vld [vmem:[%s10818_s11 + $0x2780] sm:$0xff]  ;;  %1467 = vst [vmem:[%s10823_s12 + $0x13b0] sm:$0xff] %v1466_v54  ;;  %1469 = vst [vmem:[%s10823_s12 + $0x13b8] sm:$0xff] %v1468_v55  ;;  %v1472_v57 = vld [vmem:[%s10818_s11 + $0x2788] sm:$0xff] }
 0x156   : > { %1471 = vst [vmem:[%s10823_s12 + $0x13c0] sm:$0xff] %v1470_v56  ;;  %v1474_v58 = vld [vmem:[%s10818_s11 + $0x27a0] sm:$0xff]  ;;  %v1476_v59 = vld [vmem:[%s10818_s11 + $0x27a8] sm:$0xff]  ;;  %1473 = vst [vmem:[%s10823_s12 + $0x13c8] sm:$0xff] %v1472_v57 }
 0x157   : > { %1475 = vst [vmem:[%s10823_s12 + $0x13d0] sm:$0xff] %v1474_v58  ;;  %1477 = vst [vmem:[%s10823_s12 + $0x13d8] sm:$0xff] %v1476_v59  ;;  %v1478_v60 = vld [vmem:[%s10818_s11 + $0x27c0] sm:$0xff]  ;;  %v1480_v61 = vld [vmem:[%s10818_s11 + $0x27c8] sm:$0xff] }
 0x158   : > { %v1482_v62 = vld [vmem:[%s10818_s11 + $0x27e0] sm:$0xff]  ;;  %1479 = vst [vmem:[%s10823_s12 + $0x13e0] sm:$0xff] %v1478_v60  ;;  %1481 = vst [vmem:[%s10823_s12 + $0x13e8] sm:$0xff] %v1480_v61  ;;  %v1484_v63 = vld [vmem:[%s10818_s11 + $0x27e8] sm:$0xff] }
 0x159   : > { %1483 = vst [vmem:[%s10823_s12 + $0x13f0] sm:$0xff] %v1482_v62  ;;  %v1486_v0 = vld [vmem:[%s10818_s11 + $0x2800] sm:$0xff]  ;;  %v1488_v1 = vld [vmem:[%s10818_s11 + $0x2808] sm:$0xff]  ;;  %1485 = vst [vmem:[%s10823_s12 + $0x13f8] sm:$0xff] %v1484_v63 }
 0x15a   : > { %1487 = vst [vmem:[%s10823_s12 + $0x1400] sm:$0xff] %v1486_v0  ;;  %1489 = vst [vmem:[%s10823_s12 + $0x1408] sm:$0xff] %v1488_v1  ;;  %v1490_v2 = vld [vmem:[%s10818_s11 + $0x2820] sm:$0xff]  ;;  %v1492_v3 = vld [vmem:[%s10818_s11 + $0x2828] sm:$0xff] }
 0x15b   : > { %v1494_v4 = vld [vmem:[%s10818_s11 + $0x2840] sm:$0xff]  ;;  %1491 = vst [vmem:[%s10823_s12 + $0x1410] sm:$0xff] %v1490_v2  ;;  %1493 = vst [vmem:[%s10823_s12 + $0x1418] sm:$0xff] %v1492_v3  ;;  %v1496_v5 = vld [vmem:[%s10818_s11 + $0x2848] sm:$0xff] }
 0x15c   : > { %1495 = vst [vmem:[%s10823_s12 + $0x1420] sm:$0xff] %v1494_v4  ;;  %v1498_v6 = vld [vmem:[%s10818_s11 + $0x2860] sm:$0xff]  ;;  %v1500_v7 = vld [vmem:[%s10818_s11 + $0x2868] sm:$0xff]  ;;  %1497 = vst [vmem:[%s10823_s12 + $0x1428] sm:$0xff] %v1496_v5 }
 0x15d   : > { %1499 = vst [vmem:[%s10823_s12 + $0x1430] sm:$0xff] %v1498_v6  ;;  %1501 = vst [vmem:[%s10823_s12 + $0x1438] sm:$0xff] %v1500_v7  ;;  %v1502_v8 = vld [vmem:[%s10818_s11 + $0x2880] sm:$0xff]  ;;  %v1504_v9 = vld [vmem:[%s10818_s11 + $0x2888] sm:$0xff] }
 0x15e   : > { %v1506_v10 = vld [vmem:[%s10818_s11 + $0x28a0] sm:$0xff]  ;;  %1503 = vst [vmem:[%s10823_s12 + $0x1440] sm:$0xff] %v1502_v8  ;;  %1505 = vst [vmem:[%s10823_s12 + $0x1448] sm:$0xff] %v1504_v9  ;;  %v1508_v11 = vld [vmem:[%s10818_s11 + $0x28a8] sm:$0xff] }
 0x15f   : > { %1507 = vst [vmem:[%s10823_s12 + $0x1450] sm:$0xff] %v1506_v10  ;;  %v1510_v12 = vld [vmem:[%s10818_s11 + $0x28c0] sm:$0xff]  ;;  %v1512_v13 = vld [vmem:[%s10818_s11 + $0x28c8] sm:$0xff]  ;;  %1509 = vst [vmem:[%s10823_s12 + $0x1458] sm:$0xff] %v1508_v11 }
 0x160   : > { %1511 = vst [vmem:[%s10823_s12 + $0x1460] sm:$0xff] %v1510_v12  ;;  %1513 = vst [vmem:[%s10823_s12 + $0x1468] sm:$0xff] %v1512_v13  ;;  %v1514_v14 = vld [vmem:[%s10818_s11 + $0x28e0] sm:$0xff]  ;;  %v1516_v15 = vld [vmem:[%s10818_s11 + $0x28e8] sm:$0xff] }
 0x161   : > { %v1518_v16 = vld [vmem:[%s10818_s11 + $0x2900] sm:$0xff]  ;;  %1515 = vst [vmem:[%s10823_s12 + $0x1470] sm:$0xff] %v1514_v14  ;;  %1517 = vst [vmem:[%s10823_s12 + $0x1478] sm:$0xff] %v1516_v15  ;;  %v1520_v17 = vld [vmem:[%s10818_s11 + $0x2908] sm:$0xff] }
 0x162   : > { %1519 = vst [vmem:[%s10823_s12 + $0x1480] sm:$0xff] %v1518_v16  ;;  %v1522_v18 = vld [vmem:[%s10818_s11 + $0x2920] sm:$0xff]  ;;  %v1524_v19 = vld [vmem:[%s10818_s11 + $0x2928] sm:$0xff]  ;;  %1521 = vst [vmem:[%s10823_s12 + $0x1488] sm:$0xff] %v1520_v17 }
 0x163   : > { %1523 = vst [vmem:[%s10823_s12 + $0x1490] sm:$0xff] %v1522_v18  ;;  %1525 = vst [vmem:[%s10823_s12 + $0x1498] sm:$0xff] %v1524_v19  ;;  %v1526_v20 = vld [vmem:[%s10818_s11 + $0x2940] sm:$0xff]  ;;  %v1528_v21 = vld [vmem:[%s10818_s11 + $0x2948] sm:$0xff] }
 0x164   : > { %v1530_v22 = vld [vmem:[%s10818_s11 + $0x2960] sm:$0xff]  ;;  %1527 = vst [vmem:[%s10823_s12 + $0x14a0] sm:$0xff] %v1526_v20  ;;  %1529 = vst [vmem:[%s10823_s12 + $0x14a8] sm:$0xff] %v1528_v21  ;;  %v1532_v23 = vld [vmem:[%s10818_s11 + $0x2968] sm:$0xff] }
 0x165   : > { %1531 = vst [vmem:[%s10823_s12 + $0x14b0] sm:$0xff] %v1530_v22  ;;  %v1534_v24 = vld [vmem:[%s10818_s11 + $0x2980] sm:$0xff]  ;;  %v1536_v25 = vld [vmem:[%s10818_s11 + $0x2988] sm:$0xff]  ;;  %1533 = vst [vmem:[%s10823_s12 + $0x14b8] sm:$0xff] %v1532_v23 }
 0x166   : > { %1535 = vst [vmem:[%s10823_s12 + $0x14c0] sm:$0xff] %v1534_v24  ;;  %1537 = vst [vmem:[%s10823_s12 + $0x14c8] sm:$0xff] %v1536_v25  ;;  %v1538_v26 = vld [vmem:[%s10818_s11 + $0x29a0] sm:$0xff]  ;;  %v1540_v27 = vld [vmem:[%s10818_s11 + $0x29a8] sm:$0xff] }
 0x167   : > { %v1542_v28 = vld [vmem:[%s10818_s11 + $0x29c0] sm:$0xff]  ;;  %1539 = vst [vmem:[%s10823_s12 + $0x14d0] sm:$0xff] %v1538_v26  ;;  %1541 = vst [vmem:[%s10823_s12 + $0x14d8] sm:$0xff] %v1540_v27  ;;  %v1544_v29 = vld [vmem:[%s10818_s11 + $0x29c8] sm:$0xff] }
 0x168   : > { %1543 = vst [vmem:[%s10823_s12 + $0x14e0] sm:$0xff] %v1542_v28  ;;  %v1546_v30 = vld [vmem:[%s10818_s11 + $0x29e0] sm:$0xff]  ;;  %v1548_v31 = vld [vmem:[%s10818_s11 + $0x29e8] sm:$0xff]  ;;  %1545 = vst [vmem:[%s10823_s12 + $0x14e8] sm:$0xff] %v1544_v29 }
 0x169   : > { %1547 = vst [vmem:[%s10823_s12 + $0x14f0] sm:$0xff] %v1546_v30  ;;  %1549 = vst [vmem:[%s10823_s12 + $0x14f8] sm:$0xff] %v1548_v31  ;;  %v1550_v32 = vld [vmem:[%s10818_s11 + $0x2a00] sm:$0xff]  ;;  %v1552_v33 = vld [vmem:[%s10818_s11 + $0x2a08] sm:$0xff] }
 0x16a   : > { %v1554_v34 = vld [vmem:[%s10818_s11 + $0x2a20] sm:$0xff]  ;;  %1551 = vst [vmem:[%s10823_s12 + $0x1500] sm:$0xff] %v1550_v32  ;;  %1553 = vst [vmem:[%s10823_s12 + $0x1508] sm:$0xff] %v1552_v33  ;;  %v1556_v35 = vld [vmem:[%s10818_s11 + $0x2a28] sm:$0xff] }
 0x16b   : > { %1555 = vst [vmem:[%s10823_s12 + $0x1510] sm:$0xff] %v1554_v34  ;;  %v1558_v36 = vld [vmem:[%s10818_s11 + $0x2a40] sm:$0xff]  ;;  %v1560_v37 = vld [vmem:[%s10818_s11 + $0x2a48] sm:$0xff]  ;;  %1557 = vst [vmem:[%s10823_s12 + $0x1518] sm:$0xff] %v1556_v35 }
 0x16c   : > { %1559 = vst [vmem:[%s10823_s12 + $0x1520] sm:$0xff] %v1558_v36  ;;  %1561 = vst [vmem:[%s10823_s12 + $0x1528] sm:$0xff] %v1560_v37  ;;  %v1562_v38 = vld [vmem:[%s10818_s11 + $0x2a60] sm:$0xff]  ;;  %v1564_v39 = vld [vmem:[%s10818_s11 + $0x2a68] sm:$0xff] }
 0x16d   : > { %v1566_v40 = vld [vmem:[%s10818_s11 + $0x2a80] sm:$0xff]  ;;  %1563 = vst [vmem:[%s10823_s12 + $0x1530] sm:$0xff] %v1562_v38  ;;  %1565 = vst [vmem:[%s10823_s12 + $0x1538] sm:$0xff] %v1564_v39  ;;  %v1568_v41 = vld [vmem:[%s10818_s11 + $0x2a88] sm:$0xff] }
 0x16e   : > { %1567 = vst [vmem:[%s10823_s12 + $0x1540] sm:$0xff] %v1566_v40  ;;  %v1570_v42 = vld [vmem:[%s10818_s11 + $0x2aa0] sm:$0xff]  ;;  %v1572_v43 = vld [vmem:[%s10818_s11 + $0x2aa8] sm:$0xff]  ;;  %1569 = vst [vmem:[%s10823_s12 + $0x1548] sm:$0xff] %v1568_v41 }
 0x16f   : > { %1571 = vst [vmem:[%s10823_s12 + $0x1550] sm:$0xff] %v1570_v42  ;;  %1573 = vst [vmem:[%s10823_s12 + $0x1558] sm:$0xff] %v1572_v43  ;;  %v1574_v44 = vld [vmem:[%s10818_s11 + $0x2ac0] sm:$0xff]  ;;  %v1576_v45 = vld [vmem:[%s10818_s11 + $0x2ac8] sm:$0xff] }
 0x170   : > { %v1578_v46 = vld [vmem:[%s10818_s11 + $0x2ae0] sm:$0xff]  ;;  %1575 = vst [vmem:[%s10823_s12 + $0x1560] sm:$0xff] %v1574_v44  ;;  %1577 = vst [vmem:[%s10823_s12 + $0x1568] sm:$0xff] %v1576_v45  ;;  %v1580_v47 = vld [vmem:[%s10818_s11 + $0x2ae8] sm:$0xff] }
 0x171   : > { %1579 = vst [vmem:[%s10823_s12 + $0x1570] sm:$0xff] %v1578_v46  ;;  %v1582_v48 = vld [vmem:[%s10818_s11 + $0x2b00] sm:$0xff]  ;;  %v1584_v49 = vld [vmem:[%s10818_s11 + $0x2b08] sm:$0xff]  ;;  %1581 = vst [vmem:[%s10823_s12 + $0x1578] sm:$0xff] %v1580_v47 }
 0x172   : > { %1583 = vst [vmem:[%s10823_s12 + $0x1580] sm:$0xff] %v1582_v48  ;;  %1585 = vst [vmem:[%s10823_s12 + $0x1588] sm:$0xff] %v1584_v49  ;;  %v1586_v50 = vld [vmem:[%s10818_s11 + $0x2b20] sm:$0xff]  ;;  %v1588_v51 = vld [vmem:[%s10818_s11 + $0x2b28] sm:$0xff] }
 0x173   : > { %v1590_v52 = vld [vmem:[%s10818_s11 + $0x2b40] sm:$0xff]  ;;  %1587 = vst [vmem:[%s10823_s12 + $0x1590] sm:$0xff] %v1586_v50  ;;  %1589 = vst [vmem:[%s10823_s12 + $0x1598] sm:$0xff] %v1588_v51  ;;  %v1592_v53 = vld [vmem:[%s10818_s11 + $0x2b48] sm:$0xff] }
 0x174   : > { %1591 = vst [vmem:[%s10823_s12 + $0x15a0] sm:$0xff] %v1590_v52  ;;  %v1594_v54 = vld [vmem:[%s10818_s11 + $0x2b60] sm:$0xff]  ;;  %v1596_v55 = vld [vmem:[%s10818_s11 + $0x2b68] sm:$0xff]  ;;  %1593 = vst [vmem:[%s10823_s12 + $0x15a8] sm:$0xff] %v1592_v53 }
 0x175   : > { %1595 = vst [vmem:[%s10823_s12 + $0x15b0] sm:$0xff] %v1594_v54  ;;  %1597 = vst [vmem:[%s10823_s12 + $0x15b8] sm:$0xff] %v1596_v55  ;;  %v1598_v56 = vld [vmem:[%s10818_s11 + $0x2b80] sm:$0xff]  ;;  %v1600_v57 = vld [vmem:[%s10818_s11 + $0x2b88] sm:$0xff] }
 0x176   : > { %v1602_v58 = vld [vmem:[%s10818_s11 + $0x2ba0] sm:$0xff]  ;;  %1599 = vst [vmem:[%s10823_s12 + $0x15c0] sm:$0xff] %v1598_v56  ;;  %1601 = vst [vmem:[%s10823_s12 + $0x15c8] sm:$0xff] %v1600_v57  ;;  %v1604_v59 = vld [vmem:[%s10818_s11 + $0x2ba8] sm:$0xff] }
 0x177   : > { %1603 = vst [vmem:[%s10823_s12 + $0x15d0] sm:$0xff] %v1602_v58  ;;  %v1606_v60 = vld [vmem:[%s10818_s11 + $0x2bc0] sm:$0xff]  ;;  %v1608_v61 = vld [vmem:[%s10818_s11 + $0x2bc8] sm:$0xff]  ;;  %1605 = vst [vmem:[%s10823_s12 + $0x15d8] sm:$0xff] %v1604_v59 }
 0x178   : > { %1607 = vst [vmem:[%s10823_s12 + $0x15e0] sm:$0xff] %v1606_v60  ;;  %1609 = vst [vmem:[%s10823_s12 + $0x15e8] sm:$0xff] %v1608_v61  ;;  %v1610_v62 = vld [vmem:[%s10818_s11 + $0x2be0] sm:$0xff]  ;;  %v1612_v63 = vld [vmem:[%s10818_s11 + $0x2be8] sm:$0xff] }
 0x179   : > { %v1614_v0 = vld [vmem:[%s10818_s11 + $0x2c00] sm:$0xff]  ;;  %1611 = vst [vmem:[%s10823_s12 + $0x15f0] sm:$0xff] %v1610_v62  ;;  %1613 = vst [vmem:[%s10823_s12 + $0x15f8] sm:$0xff] %v1612_v63  ;;  %v1616_v1 = vld [vmem:[%s10818_s11 + $0x2c08] sm:$0xff] }
 0x17a   : > { %1615 = vst [vmem:[%s10823_s12 + $0x1600] sm:$0xff] %v1614_v0  ;;  %v1618_v2 = vld [vmem:[%s10818_s11 + $0x2c20] sm:$0xff]  ;;  %v1620_v3 = vld [vmem:[%s10818_s11 + $0x2c28] sm:$0xff]  ;;  %1617 = vst [vmem:[%s10823_s12 + $0x1608] sm:$0xff] %v1616_v1 }
 0x17b   : > { %1619 = vst [vmem:[%s10823_s12 + $0x1610] sm:$0xff] %v1618_v2  ;;  %1621 = vst [vmem:[%s10823_s12 + $0x1618] sm:$0xff] %v1620_v3  ;;  %v1622_v4 = vld [vmem:[%s10818_s11 + $0x2c40] sm:$0xff]  ;;  %v1624_v5 = vld [vmem:[%s10818_s11 + $0x2c48] sm:$0xff] }
 0x17c   : > { %v1626_v6 = vld [vmem:[%s10818_s11 + $0x2c60] sm:$0xff]  ;;  %1623 = vst [vmem:[%s10823_s12 + $0x1620] sm:$0xff] %v1622_v4  ;;  %1625 = vst [vmem:[%s10823_s12 + $0x1628] sm:$0xff] %v1624_v5  ;;  %v1628_v7 = vld [vmem:[%s10818_s11 + $0x2c68] sm:$0xff] }
 0x17d   : > { %1627 = vst [vmem:[%s10823_s12 + $0x1630] sm:$0xff] %v1626_v6  ;;  %v1630_v8 = vld [vmem:[%s10818_s11 + $0x2c80] sm:$0xff]  ;;  %v1632_v9 = vld [vmem:[%s10818_s11 + $0x2c88] sm:$0xff]  ;;  %1629 = vst [vmem:[%s10823_s12 + $0x1638] sm:$0xff] %v1628_v7 }
 0x17e   : > { %1631 = vst [vmem:[%s10823_s12 + $0x1640] sm:$0xff] %v1630_v8  ;;  %1633 = vst [vmem:[%s10823_s12 + $0x1648] sm:$0xff] %v1632_v9  ;;  %v1634_v10 = vld [vmem:[%s10818_s11 + $0x2ca0] sm:$0xff]  ;;  %v1636_v11 = vld [vmem:[%s10818_s11 + $0x2ca8] sm:$0xff] }
 0x17f   : > { %v1638_v12 = vld [vmem:[%s10818_s11 + $0x2cc0] sm:$0xff]  ;;  %1635 = vst [vmem:[%s10823_s12 + $0x1650] sm:$0xff] %v1634_v10  ;;  %1637 = vst [vmem:[%s10823_s12 + $0x1658] sm:$0xff] %v1636_v11  ;;  %v1640_v13 = vld [vmem:[%s10818_s11 + $0x2cc8] sm:$0xff] }
 0x180   : > { %1639 = vst [vmem:[%s10823_s12 + $0x1660] sm:$0xff] %v1638_v12  ;;  %v1642_v14 = vld [vmem:[%s10818_s11 + $0x2ce0] sm:$0xff]  ;;  %v1644_v15 = vld [vmem:[%s10818_s11 + $0x2ce8] sm:$0xff]  ;;  %1641 = vst [vmem:[%s10823_s12 + $0x1668] sm:$0xff] %v1640_v13 }
 0x181   : > { %1643 = vst [vmem:[%s10823_s12 + $0x1670] sm:$0xff] %v1642_v14  ;;  %1645 = vst [vmem:[%s10823_s12 + $0x1678] sm:$0xff] %v1644_v15  ;;  %v1646_v16 = vld [vmem:[%s10818_s11 + $0x2d00] sm:$0xff]  ;;  %v1648_v17 = vld [vmem:[%s10818_s11 + $0x2d08] sm:$0xff] }
 0x182   : > { %v1650_v18 = vld [vmem:[%s10818_s11 + $0x2d20] sm:$0xff]  ;;  %1647 = vst [vmem:[%s10823_s12 + $0x1680] sm:$0xff] %v1646_v16  ;;  %1649 = vst [vmem:[%s10823_s12 + $0x1688] sm:$0xff] %v1648_v17  ;;  %v1652_v19 = vld [vmem:[%s10818_s11 + $0x2d28] sm:$0xff] }
 0x183   : > { %1651 = vst [vmem:[%s10823_s12 + $0x1690] sm:$0xff] %v1650_v18  ;;  %v1654_v20 = vld [vmem:[%s10818_s11 + $0x2d40] sm:$0xff]  ;;  %v1656_v21 = vld [vmem:[%s10818_s11 + $0x2d48] sm:$0xff]  ;;  %1653 = vst [vmem:[%s10823_s12 + $0x1698] sm:$0xff] %v1652_v19 }
 0x184   : > { %1655 = vst [vmem:[%s10823_s12 + $0x16a0] sm:$0xff] %v1654_v20  ;;  %1657 = vst [vmem:[%s10823_s12 + $0x16a8] sm:$0xff] %v1656_v21  ;;  %v1658_v22 = vld [vmem:[%s10818_s11 + $0x2d60] sm:$0xff]  ;;  %v1660_v23 = vld [vmem:[%s10818_s11 + $0x2d68] sm:$0xff] }
 0x185   : > { %v1662_v24 = vld [vmem:[%s10818_s11 + $0x2d80] sm:$0xff]  ;;  %1659 = vst [vmem:[%s10823_s12 + $0x16b0] sm:$0xff] %v1658_v22  ;;  %1661 = vst [vmem:[%s10823_s12 + $0x16b8] sm:$0xff] %v1660_v23  ;;  %v1664_v25 = vld [vmem:[%s10818_s11 + $0x2d88] sm:$0xff] }
 0x186   : > { %1663 = vst [vmem:[%s10823_s12 + $0x16c0] sm:$0xff] %v1662_v24  ;;  %v1666_v26 = vld [vmem:[%s10818_s11 + $0x2da0] sm:$0xff]  ;;  %v1668_v27 = vld [vmem:[%s10818_s11 + $0x2da8] sm:$0xff]  ;;  %1665 = vst [vmem:[%s10823_s12 + $0x16c8] sm:$0xff] %v1664_v25 }
 0x187   : > { %1667 = vst [vmem:[%s10823_s12 + $0x16d0] sm:$0xff] %v1666_v26  ;;  %1669 = vst [vmem:[%s10823_s12 + $0x16d8] sm:$0xff] %v1668_v27  ;;  %v1670_v28 = vld [vmem:[%s10818_s11 + $0x2dc0] sm:$0xff]  ;;  %v1672_v29 = vld [vmem:[%s10818_s11 + $0x2dc8] sm:$0xff] }
 0x188   : > { %v1674_v30 = vld [vmem:[%s10818_s11 + $0x2de0] sm:$0xff]  ;;  %1671 = vst [vmem:[%s10823_s12 + $0x16e0] sm:$0xff] %v1670_v28  ;;  %1673 = vst [vmem:[%s10823_s12 + $0x16e8] sm:$0xff] %v1672_v29  ;;  %v1676_v31 = vld [vmem:[%s10818_s11 + $0x2de8] sm:$0xff] }
 0x189   : > { %1675 = vst [vmem:[%s10823_s12 + $0x16f0] sm:$0xff] %v1674_v30  ;;  %v1678_v32 = vld [vmem:[%s10818_s11 + $0x2e00] sm:$0xff]  ;;  %v1680_v33 = vld [vmem:[%s10818_s11 + $0x2e08] sm:$0xff]  ;;  %1677 = vst [vmem:[%s10823_s12 + $0x16f8] sm:$0xff] %v1676_v31 }
 0x18a   : > { %1679 = vst [vmem:[%s10823_s12 + $0x1700] sm:$0xff] %v1678_v32  ;;  %1681 = vst [vmem:[%s10823_s12 + $0x1708] sm:$0xff] %v1680_v33  ;;  %v1682_v34 = vld [vmem:[%s10818_s11 + $0x2e20] sm:$0xff]  ;;  %v1684_v35 = vld [vmem:[%s10818_s11 + $0x2e28] sm:$0xff] }
 0x18b   : > { %v1686_v36 = vld [vmem:[%s10818_s11 + $0x2e40] sm:$0xff]  ;;  %1683 = vst [vmem:[%s10823_s12 + $0x1710] sm:$0xff] %v1682_v34  ;;  %1685 = vst [vmem:[%s10823_s12 + $0x1718] sm:$0xff] %v1684_v35  ;;  %v1688_v37 = vld [vmem:[%s10818_s11 + $0x2e48] sm:$0xff] }
 0x18c   : > { %1687 = vst [vmem:[%s10823_s12 + $0x1720] sm:$0xff] %v1686_v36  ;;  %v1690_v38 = vld [vmem:[%s10818_s11 + $0x2e60] sm:$0xff]  ;;  %v1692_v39 = vld [vmem:[%s10818_s11 + $0x2e68] sm:$0xff]  ;;  %1689 = vst [vmem:[%s10823_s12 + $0x1728] sm:$0xff] %v1688_v37 }
 0x18d   : > { %1691 = vst [vmem:[%s10823_s12 + $0x1730] sm:$0xff] %v1690_v38  ;;  %1693 = vst [vmem:[%s10823_s12 + $0x1738] sm:$0xff] %v1692_v39  ;;  %v1694_v40 = vld [vmem:[%s10818_s11 + $0x2e80] sm:$0xff]  ;;  %v1696_v41 = vld [vmem:[%s10818_s11 + $0x2e88] sm:$0xff] }
 0x18e   : > { %v1698_v42 = vld [vmem:[%s10818_s11 + $0x2ea0] sm:$0xff]  ;;  %1695 = vst [vmem:[%s10823_s12 + $0x1740] sm:$0xff] %v1694_v40  ;;  %1697 = vst [vmem:[%s10823_s12 + $0x1748] sm:$0xff] %v1696_v41  ;;  %v1700_v43 = vld [vmem:[%s10818_s11 + $0x2ea8] sm:$0xff] }
 0x18f   : > { %1699 = vst [vmem:[%s10823_s12 + $0x1750] sm:$0xff] %v1698_v42  ;;  %v1702_v44 = vld [vmem:[%s10818_s11 + $0x2ec0] sm:$0xff]  ;;  %v1704_v45 = vld [vmem:[%s10818_s11 + $0x2ec8] sm:$0xff]  ;;  %1701 = vst [vmem:[%s10823_s12 + $0x1758] sm:$0xff] %v1700_v43 }
 0x190   : > { %1703 = vst [vmem:[%s10823_s12 + $0x1760] sm:$0xff] %v1702_v44  ;;  %1705 = vst [vmem:[%s10823_s12 + $0x1768] sm:$0xff] %v1704_v45  ;;  %v1706_v46 = vld [vmem:[%s10818_s11 + $0x2ee0] sm:$0xff]  ;;  %v1708_v47 = vld [vmem:[%s10818_s11 + $0x2ee8] sm:$0xff] }
 0x191   : > { %v1710_v48 = vld [vmem:[%s10818_s11 + $0x2f00] sm:$0xff]  ;;  %1707 = vst [vmem:[%s10823_s12 + $0x1770] sm:$0xff] %v1706_v46  ;;  %1709 = vst [vmem:[%s10823_s12 + $0x1778] sm:$0xff] %v1708_v47  ;;  %v1712_v49 = vld [vmem:[%s10818_s11 + $0x2f08] sm:$0xff] }
 0x192   : > { %1711 = vst [vmem:[%s10823_s12 + $0x1780] sm:$0xff] %v1710_v48  ;;  %v1714_v50 = vld [vmem:[%s10818_s11 + $0x2f20] sm:$0xff]  ;;  %v1716_v51 = vld [vmem:[%s10818_s11 + $0x2f28] sm:$0xff]  ;;  %1713 = vst [vmem:[%s10823_s12 + $0x1788] sm:$0xff] %v1712_v49 }
 0x193   : > { %1715 = vst [vmem:[%s10823_s12 + $0x1790] sm:$0xff] %v1714_v50  ;;  %1717 = vst [vmem:[%s10823_s12 + $0x1798] sm:$0xff] %v1716_v51  ;;  %v1718_v52 = vld [vmem:[%s10818_s11 + $0x2f40] sm:$0xff]  ;;  %v1720_v53 = vld [vmem:[%s10818_s11 + $0x2f48] sm:$0xff] }
 0x194   : > { %v1722_v54 = vld [vmem:[%s10818_s11 + $0x2f60] sm:$0xff]  ;;  %1719 = vst [vmem:[%s10823_s12 + $0x17a0] sm:$0xff] %v1718_v52  ;;  %1721 = vst [vmem:[%s10823_s12 + $0x17a8] sm:$0xff] %v1720_v53  ;;  %v1724_v55 = vld [vmem:[%s10818_s11 + $0x2f68] sm:$0xff] }
 0x195   : > { %1723 = vst [vmem:[%s10823_s12 + $0x17b0] sm:$0xff] %v1722_v54  ;;  %v1726_v56 = vld [vmem:[%s10818_s11 + $0x2f80] sm:$0xff]  ;;  %v1728_v57 = vld [vmem:[%s10818_s11 + $0x2f88] sm:$0xff]  ;;  %1725 = vst [vmem:[%s10823_s12 + $0x17b8] sm:$0xff] %v1724_v55 }
 0x196   : > { %1727 = vst [vmem:[%s10823_s12 + $0x17c0] sm:$0xff] %v1726_v56  ;;  %1729 = vst [vmem:[%s10823_s12 + $0x17c8] sm:$0xff] %v1728_v57  ;;  %v1730_v58 = vld [vmem:[%s10818_s11 + $0x2fa0] sm:$0xff]  ;;  %v1732_v59 = vld [vmem:[%s10818_s11 + $0x2fa8] sm:$0xff] }
 0x197   : > { %v1734_v60 = vld [vmem:[%s10818_s11 + $0x2fc0] sm:$0xff]  ;;  %1731 = vst [vmem:[%s10823_s12 + $0x17d0] sm:$0xff] %v1730_v58  ;;  %1733 = vst [vmem:[%s10823_s12 + $0x17d8] sm:$0xff] %v1732_v59  ;;  %v1736_v61 = vld [vmem:[%s10818_s11 + $0x2fc8] sm:$0xff] }
 0x198   : > { %1735 = vst [vmem:[%s10823_s12 + $0x17e0] sm:$0xff] %v1734_v60  ;;  %v1738_v62 = vld [vmem:[%s10818_s11 + $0x2fe0] sm:$0xff]  ;;  %v1740_v63 = vld [vmem:[%s10818_s11 + $0x2fe8] sm:$0xff]  ;;  %1737 = vst [vmem:[%s10823_s12 + $0x17e8] sm:$0xff] %v1736_v61 }
 0x199   : > { %1739 = vst [vmem:[%s10823_s12 + $0x17f0] sm:$0xff] %v1738_v62  ;;  %1741 = vst [vmem:[%s10823_s12 + $0x17f8] sm:$0xff] %v1740_v63  ;;  %v1742_v0 = vld [vmem:[%s10818_s11 + $0x3000] sm:$0xff]  ;;  %v1744_v1 = vld [vmem:[%s10818_s11 + $0x3008] sm:$0xff] }
 0x19a   : > { %v1746_v2 = vld [vmem:[%s10818_s11 + $0x3020] sm:$0xff]  ;;  %1743 = vst [vmem:[%s10823_s12 + $0x1800] sm:$0xff] %v1742_v0  ;;  %1745 = vst [vmem:[%s10823_s12 + $0x1808] sm:$0xff] %v1744_v1  ;;  %v1748_v3 = vld [vmem:[%s10818_s11 + $0x3028] sm:$0xff] }
 0x19b   : > { %1747 = vst [vmem:[%s10823_s12 + $0x1810] sm:$0xff] %v1746_v2  ;;  %v1750_v4 = vld [vmem:[%s10818_s11 + $0x3040] sm:$0xff]  ;;  %v1752_v5 = vld [vmem:[%s10818_s11 + $0x3048] sm:$0xff]  ;;  %1749 = vst [vmem:[%s10823_s12 + $0x1818] sm:$0xff] %v1748_v3 }
 0x19c   : > { %1751 = vst [vmem:[%s10823_s12 + $0x1820] sm:$0xff] %v1750_v4  ;;  %1753 = vst [vmem:[%s10823_s12 + $0x1828] sm:$0xff] %v1752_v5  ;;  %v1754_v6 = vld [vmem:[%s10818_s11 + $0x3060] sm:$0xff]  ;;  %v1756_v7 = vld [vmem:[%s10818_s11 + $0x3068] sm:$0xff] }
 0x19d   : > { %v1758_v8 = vld [vmem:[%s10818_s11 + $0x3080] sm:$0xff]  ;;  %1755 = vst [vmem:[%s10823_s12 + $0x1830] sm:$0xff] %v1754_v6  ;;  %1757 = vst [vmem:[%s10823_s12 + $0x1838] sm:$0xff] %v1756_v7  ;;  %v1760_v9 = vld [vmem:[%s10818_s11 + $0x3088] sm:$0xff] }
 0x19e   : > { %1759 = vst [vmem:[%s10823_s12 + $0x1840] sm:$0xff] %v1758_v8  ;;  %v1762_v10 = vld [vmem:[%s10818_s11 + $0x30a0] sm:$0xff]  ;;  %v1764_v11 = vld [vmem:[%s10818_s11 + $0x30a8] sm:$0xff]  ;;  %1761 = vst [vmem:[%s10823_s12 + $0x1848] sm:$0xff] %v1760_v9 }
 0x19f   : > { %1763 = vst [vmem:[%s10823_s12 + $0x1850] sm:$0xff] %v1762_v10  ;;  %1765 = vst [vmem:[%s10823_s12 + $0x1858] sm:$0xff] %v1764_v11  ;;  %v1766_v12 = vld [vmem:[%s10818_s11 + $0x30c0] sm:$0xff]  ;;  %v1768_v13 = vld [vmem:[%s10818_s11 + $0x30c8] sm:$0xff] }
 0x1a0   : > { %v1770_v14 = vld [vmem:[%s10818_s11 + $0x30e0] sm:$0xff]  ;;  %1767 = vst [vmem:[%s10823_s12 + $0x1860] sm:$0xff] %v1766_v12  ;;  %1769 = vst [vmem:[%s10823_s12 + $0x1868] sm:$0xff] %v1768_v13  ;;  %v1772_v15 = vld [vmem:[%s10818_s11 + $0x30e8] sm:$0xff] }
 0x1a1   : > { %1771 = vst [vmem:[%s10823_s12 + $0x1870] sm:$0xff] %v1770_v14  ;;  %v1774_v16 = vld [vmem:[%s10818_s11 + $0x3100] sm:$0xff]  ;;  %v1776_v17 = vld [vmem:[%s10818_s11 + $0x3108] sm:$0xff]  ;;  %1773 = vst [vmem:[%s10823_s12 + $0x1878] sm:$0xff] %v1772_v15 }
 0x1a2   : > { %1775 = vst [vmem:[%s10823_s12 + $0x1880] sm:$0xff] %v1774_v16  ;;  %1777 = vst [vmem:[%s10823_s12 + $0x1888] sm:$0xff] %v1776_v17  ;;  %v1778_v18 = vld [vmem:[%s10818_s11 + $0x3120] sm:$0xff]  ;;  %v1780_v19 = vld [vmem:[%s10818_s11 + $0x3128] sm:$0xff] }
 0x1a3   : > { %v1782_v20 = vld [vmem:[%s10818_s11 + $0x3140] sm:$0xff]  ;;  %1779 = vst [vmem:[%s10823_s12 + $0x1890] sm:$0xff] %v1778_v18  ;;  %1781 = vst [vmem:[%s10823_s12 + $0x1898] sm:$0xff] %v1780_v19  ;;  %v1784_v21 = vld [vmem:[%s10818_s11 + $0x3148] sm:$0xff] }
 0x1a4   : > { %1783 = vst [vmem:[%s10823_s12 + $0x18a0] sm:$0xff] %v1782_v20  ;;  %v1786_v22 = vld [vmem:[%s10818_s11 + $0x3160] sm:$0xff]  ;;  %v1788_v23 = vld [vmem:[%s10818_s11 + $0x3168] sm:$0xff]  ;;  %1785 = vst [vmem:[%s10823_s12 + $0x18a8] sm:$0xff] %v1784_v21 }
 0x1a5   : > { %1787 = vst [vmem:[%s10823_s12 + $0x18b0] sm:$0xff] %v1786_v22  ;;  %1789 = vst [vmem:[%s10823_s12 + $0x18b8] sm:$0xff] %v1788_v23  ;;  %v1790_v24 = vld [vmem:[%s10818_s11 + $0x3180] sm:$0xff]  ;;  %v1792_v25 = vld [vmem:[%s10818_s11 + $0x3188] sm:$0xff] }
 0x1a6   : > { %v1794_v26 = vld [vmem:[%s10818_s11 + $0x31a0] sm:$0xff]  ;;  %1791 = vst [vmem:[%s10823_s12 + $0x18c0] sm:$0xff] %v1790_v24  ;;  %1793 = vst [vmem:[%s10823_s12 + $0x18c8] sm:$0xff] %v1792_v25  ;;  %v1796_v27 = vld [vmem:[%s10818_s11 + $0x31a8] sm:$0xff] }
 0x1a7   : > { %1795 = vst [vmem:[%s10823_s12 + $0x18d0] sm:$0xff] %v1794_v26  ;;  %v1798_v28 = vld [vmem:[%s10818_s11 + $0x31c0] sm:$0xff]  ;;  %v1800_v29 = vld [vmem:[%s10818_s11 + $0x31c8] sm:$0xff]  ;;  %1797 = vst [vmem:[%s10823_s12 + $0x18d8] sm:$0xff] %v1796_v27 }
 0x1a8   : > { %1799 = vst [vmem:[%s10823_s12 + $0x18e0] sm:$0xff] %v1798_v28  ;;  %1801 = vst [vmem:[%s10823_s12 + $0x18e8] sm:$0xff] %v1800_v29  ;;  %v1802_v30 = vld [vmem:[%s10818_s11 + $0x31e0] sm:$0xff]  ;;  %v1804_v31 = vld [vmem:[%s10818_s11 + $0x31e8] sm:$0xff] }
 0x1a9   : > { %1803 = vst [vmem:[%s10823_s12 + $0x18f0] sm:$0xff] %v1802_v30  ;;  %1805 = vst [vmem:[%s10823_s12 + $0x18f8] sm:$0xff] %v1804_v31 }
 0x1aa PF: > { %p8365_p7 = scmp.ge.s32.totalorder %s10727_s21, 1  ;;  %p1827_p8 = scmp.lt.s32.totalorder %s10727_s21, 5 }
 0x1ac   : > { %p1828_p9 = pnand %p8365_p7, %p1827_p8 }
 0x1ad   : > { %s1834_s13 = sand.u32 (!%p1828_p9), 1, %s10703_s15   ;;  %s1871_s14 = smul.u32 (!%p1828_p9), 25, %s10711_s17 }
 0x1ae   : > { %1831 = sbr.rel (%p1828_p9) target bundleno = 1708 (0x6ac), region = 55  ;;  %s8366_s25 = sshll.u32 (!%p1828_p9), %s10715_s18, 2 }
 0x1af   : > { %s9407_s24 = smul.u32 (!%p1828_p9), 6400, %s1834_s13  ;;  %p1872_p10 = scmp.lt.s32.totalorder (!%p1828_p9), %s1871_s14, 49 }
 0x1b0   : > { %p1879_p11 = scmp.lt.s32.totalorder (!%p1828_p9), %s8366_s25, 7  ;;  %s8367_s26 = sshll.u32 (!%p1828_p9), %s10715_s18, 6 }
 0x1b1   : > { %p1884_p12 = scmp.lt.s32.totalorder (!%p1828_p9), %s8367_s26, 127  ;;  %p1889_p13 = scmp.lt.s32.totalorder (!%p1828_p9), %s10715_s18, 1 }
 0x1b2   : > { %s12451_s27 = scalar_lea.vmem (!%p1828_p9), [#allocation3], %s9407_s24  ;;  %p8370_p0 = scmp.ne.s32.totalorder (!%p1828_p9), %s10711_s17, 0 }
 0x1b5   : > { %s13506_s14 = smov (!%p1872_p10, %s1871_s14), 49  ;;  %s13508_s25 = smov (!%p1879_p11, %s8366_s25), 7 }
 0x1b6   : > { %s12433_s30 = scalar_lea.vmem %s13488_s0, %s13506_s14  ;;  %s1881_s15 = scalar_lea.vmem %s13490_s2, %s13508_s25  ;;  %v10729_v32 = vmov (!%p8370_p0), 0.0  }
 0x1b7   : > { %s13510_s26 = smov (!%p1884_p12, %s8367_s26), 127  ;;  %s13512_s18 = smov (!%p1889_p13, %s10715_s18), 1 }
 0x1b8   : > { %s8368_s7 = sshll.u32 %s13510_s26, 3  ;;  %s8369_s11 = sshll.u32 %s13512_s18, 1  ;;  %1898 = vst [vmem:[#allocation2] sm:$0xff] (!%p8370_p0), %v10729_v32 }
 0x1b9   : > { %s12444_s10 = scalar_lea.vmem %s13491_s3, %s8368_s7  ;;  %s12449_s14 = scalar_lea.vmem %s13492_s4, %s8369_s11 }
 0x1ba   : > { %1897 = sbr.rel (%p8370_p0) target bundleno = 449 (0x1c1), region = 63 }
 0x1c1 PF: > { %v9468_v33 = vld [vmem:[%s12451_s27 + $0x4] ss:$16 sps:$4 sm:$0xff]   ;;  %v9470_v34 = vld [vmem:[%s12451_s27 + $0xc] ss:$16 sps:$4 sm:$0xff]   ;;  %v9472_v35 = vld [vmem:[%s12451_s27] ss:$16 sps:$4 sm:$0xff]   ;;  %v2712_v7 = vlaneseq }
 0x1c2   : > { %6894 = vmatprep.subr.bf16.mxu0 %v9468_v33  ;;  %v9473_v36 = vld [vmem:[%s12451_s27 + $0x8] ss:$16 sps:$4 sm:$0xff]   ;;  %7427 = vmatprep.subr.bf16.mxu1 %v9470_v34  ;;  %v9474_v37 = vld [vmem:[%s12451_s27 + $0x24] ss:$16 sps:$4 sm:$0xff]   ;;  %v9476_v38 = vld [vmem:[%s12451_s27 + $0x2c] ss:$16 sps:$4 sm:$0xff]  }
 0x1c3   : > { %6895 = vmatpush1.bf16.msra.mxu0 %v9472_v35  ;;  %7428 = vmatpush1.bf16.msra.mxu1 %v9473_v36  ;;  %v9478_v39 = vld [vmem:[%s12451_s27 + $0x20] ss:$16 sps:$4 sm:$0xff]   ;;  %v9479_v40 = vld [vmem:[%s12451_s27 + $0x28] ss:$16 sps:$4 sm:$0xff]   ;;  %v9480_v41 = vld [vmem:[%s12451_s27 + $0x44] ss:$16 sps:$4 sm:$0xff]  }
 0x1c4   : > { %6896 = vmatprep.subr.bf16.mxu0 %v9474_v37  ;;  %7429 = vmatprep.subr.bf16.mxu1 %v9476_v38  ;;  %v9482_v42 = vld [vmem:[%s12451_s27 + $0x4c] ss:$16 sps:$4 sm:$0xff]   ;;  %v9484_v43 = vld [vmem:[%s12451_s27 + $0x40] ss:$16 sps:$4 sm:$0xff]   ;;  %v9485_v44 = vld [vmem:[%s12451_s27 + $0x48] ss:$16 sps:$4 sm:$0xff]  }
 0x1c5   : > { %v9486_v45 = vld [vmem:[%s12451_s27 + $0x64] ss:$16 sps:$4 sm:$0xff]   ;;  %v9488_v46 = vld [vmem:[%s12451_s27 + $0x6c] ss:$16 sps:$4 sm:$0xff]   ;;  %v9490_v47 = vld [vmem:[%s12451_s27 + $0x60] ss:$16 sps:$4 sm:$0xff]  }
 0x1c6   : > { %v9491_v48 = vld [vmem:[%s12451_s27 + $0x68] ss:$16 sps:$4 sm:$0xff]   ;;  %v9492_v49 = vld [vmem:[%s12451_s27 + $0x84] ss:$16 sps:$4 sm:$0xff]   ;;  %v9494_v50 = vld [vmem:[%s12451_s27 + $0x8c] ss:$16 sps:$4 sm:$0xff]  }
 0x1c7   : > { %6897 = vmatpush1.bf16.msra.mxu0 %v9478_v39  ;;  %7430 = vmatpush1.bf16.msra.mxu1 %v9479_v40  ;;  %v9496_v51 = vld [vmem:[%s12451_s27 + $0x80] ss:$16 sps:$4 sm:$0xff]   ;;  %v9497_v52 = vld [vmem:[%s12451_s27 + $0x88] ss:$16 sps:$4 sm:$0xff]   ;;  %v9498_v53 = vld [vmem:[%s12451_s27 + $0xa4] ss:$16 sps:$4 sm:$0xff]  }
 0x1c8   : > { %6898 = vmatprep.subr.bf16.mxu0 %v9480_v41  ;;  %7431 = vmatprep.subr.bf16.mxu1 %v9482_v42  ;;  %v9500_v54 = vld [vmem:[%s12451_s27 + $0xac] ss:$16 sps:$4 sm:$0xff]   ;;  %v9502_v55 = vld [vmem:[%s12451_s27 + $0xa0] ss:$16 sps:$4 sm:$0xff]   ;;  %v9503_v56 = vld [vmem:[%s12451_s27 + $0xa8] ss:$16 sps:$4 sm:$0xff]  }
 0x1c9   : > { %v9504_v57 = vld [vmem:[%s12451_s27 + $0xc4] ss:$16 sps:$4 sm:$0xff]   ;;  %v9506_v58 = vld [vmem:[%s12451_s27 + $0xcc] ss:$16 sps:$4 sm:$0xff]   ;;  %v9508_v59 = vld [vmem:[%s12451_s27 + $0xc0] ss:$16 sps:$4 sm:$0xff]  }
 0x1ca   : > { %v9509_v60 = vld [vmem:[%s12451_s27 + $0xc8] ss:$16 sps:$4 sm:$0xff]   ;;  %v9510_v61 = vld [vmem:[%s12451_s27 + $0xe4] ss:$16 sps:$4 sm:$0xff]   ;;  %v9512_v62 = vld [vmem:[%s12451_s27 + $0xec] ss:$16 sps:$4 sm:$0xff]  }
 0x1cb   : > { %6899 = vmatpush1.bf16.msra.mxu0 %v9484_v43  ;;  %7432 = vmatpush1.bf16.msra.mxu1 %v9485_v44  ;;  %v9514_v63 = vld [vmem:[%s12451_s27 + $0xe0] ss:$16 sps:$4 sm:$0xff]   ;;  %v9515_v0 = vld [vmem:[%s12451_s27 + $0xe8] ss:$16 sps:$4 sm:$0xff]   ;;  %v9516_v1 = vld [vmem:[%s12451_s27 + $0x104] ss:$16 sps:$4 sm:$0xff]  }
 0x1cc   : > { %6900 = vmatprep.subr.bf16.mxu0 %v9486_v45  ;;  %7433 = vmatprep.subr.bf16.mxu1 %v9488_v46  ;;  %v9518_v2 = vld [vmem:[%s12451_s27 + $0x10c] ss:$16 sps:$4 sm:$0xff]   ;;  %v9520_v3 = vld [vmem:[%s12451_s27 + $0x100] ss:$16 sps:$4 sm:$0xff]   ;;  %v9521_v4 = vld [vmem:[%s12451_s27 + $0x108] ss:$16 sps:$4 sm:$0xff]  }
 0x1cd   : > { %v10730_v5 = vmov 1966171168   ;;  %v9522_v8 = vld [vmem:[%s12451_s27 + $0x124] ss:$16 sps:$4 sm:$0xff]   ;;  %v9524_v9 = vld [vmem:[%s12451_s27 + $0x12c] ss:$16 sps:$4 sm:$0xff]  }
 0x1ce   : > { %v2710_v6 = vunpack.c.l.s4 %v10730_v5  ;;  %v9526_v10 = vld [vmem:[%s12451_s27 + $0x120] ss:$16 sps:$4 sm:$0xff]   ;;  %v12493_v12 = vshrl.u32 %v2712_v7, 7  ;;  %v9527_v13 = vld [vmem:[%s12451_s27 + $0x128] ss:$16 sps:$4 sm:$0xff]   ;;  %p9172_p1 = scmp.ne.s32.totalorder %s10711_s17, 1 }
 0x1cf   : > { %6901 = vmatpush1.bf16.msra.mxu0 %v9490_v47  ;;  %7434 = vmatpush1.bf16.msra.mxu1 %v9491_v48  ;;  %v9528_v14 = vld [vmem:[%s12451_s27 + $0x144] ss:$16 sps:$4 sm:$0xff]   ;;  %v9530_v15 = vld [vmem:[%s12451_s27 + $0x14c] ss:$16 sps:$4 sm:$0xff]   ;;  %v9532_v16 = vld [vmem:[%s12451_s27 + $0x140] ss:$16 sps:$4 sm:$0xff]  }
 0x1d0   : > { %6902 = vmatprep.subr.bf16.mxu0 %v9492_v49  ;;  %7435 = vmatprep.subr.bf16.mxu1 %v9494_v50  ;;  %v2711_v11 = vunpack.c.0.s8 %v2710_v6  ;;  %v9533_v17 = vld [vmem:[%s12451_s27 + $0x148] ss:$16 sps:$4 sm:$0xff]   ;;  %v9534_v19 = vld [vmem:[%s12451_s27 + $0x164] ss:$16 sps:$4 sm:$0xff]   ;;  %v9536_v20 = vld [vmem:[%s12451_s27 + $0x16c] ss:$16 sps:$4 sm:$0xff]  }
 0x1d1   : > { %v12506_v21 = vld [vmem:[%s12433_s30] sm:$0xff]  ;;  %v9538_v22 = vld [vmem:[%s12451_s27 + $0x160] ss:$16 sps:$4 sm:$0xff]   ;;  %v9540_v25 = vld [vmem:[%s12451_s27 + $0x184] ss:$16 sps:$4 sm:$0xff]   ;;  %vm8253_vm0 = vcmask (!%p9172_p1), 74752  }
 0x1d2   : > { %v12501_v18 = vsub.s32 %v2711_v11, %v12493_v12  ;;  %v9539_v24 = vld [vmem:[%s12451_s27 + $0x168] ss:$16 sps:$4 sm:$0xff]   ;;  %v9542_v26 = vld [vmem:[%s12451_s27 + $0x18c] ss:$16 sps:$4 sm:$0xff]   ;;  %v9544_v28 = vld [vmem:[%s12451_s27 + $0x180] ss:$16 sps:$4 sm:$0xff]  }
 0x1d3   : > { %6903 = vmatpush1.bf16.msra.mxu0 %v9496_v51  ;;  %7436 = vmatpush1.bf16.msra.mxu1 %v9497_v52  ;;  %v9545_v30 = vld [vmem:[%s12451_s27 + $0x188] ss:$16 sps:$4 sm:$0xff]   ;;  %v9546_v31 = vld [vmem:[%s12451_s27 + $0x1a4] ss:$16 sps:$4 sm:$0xff]   ;;  %v9548_v32 = vld [vmem:[%s12451_s27 + $0x1ac] ss:$16 sps:$4 sm:$0xff]  }
 0x1d4   : > { %6904 = vmatprep.subr.bf16.mxu0 %v9498_v53  ;;  %7437 = vmatprep.subr.bf16.mxu1 %v9500_v54  ;;  %v2715_v23 = vrot.slane %v12506_v21, %v12501_v18  ;;  %v9550_v33 = vld [vmem:[%s12451_s27 + $0x1a0] ss:$16 sps:$4 sm:$0xff]   ;;  %v9551_v34 = vld [vmem:[%s12451_s27 + $0x1a8] ss:$16 sps:$4 sm:$0xff]   ;;  %v9552_v35 = vld [vmem:[%s12451_s27 + $0x1c4] ss:$16 sps:$4 sm:$0xff]  }
 0x1d5   : > { %v9554_v36 = vld [vmem:[%s12451_s27 + $0x1cc] ss:$16 sps:$4 sm:$0xff]   ;;  %v9556_v37 = vld [vmem:[%s12451_s27 + $0x1c0] ss:$16 sps:$4 sm:$0xff]   ;;  %v9557_v38 = vld [vmem:[%s12451_s27 + $0x1c8] ss:$16 sps:$4 sm:$0xff]  }
 0x1d6   : > { %v2723_v27 = vcombine.high %v2715_v23, %v2715_v23  ;;  %v9558_v39 = vld [vmem:[%s12451_s27 + $0x1e4] ss:$16 sps:$4 sm:$0xff]   ;;  %v9560_v40 = vld [vmem:[%s12451_s27 + $0x1ec] ss:$16 sps:$4 sm:$0xff]   ;;  %v9562_v41 = vld [vmem:[%s12451_s27 + $0x1e0] ss:$16 sps:$4 sm:$0xff]   ;;  %v12533_v46 = vrot.slane %v2715_v23, %v12501_v18 }
 0x1d7   : > { %6905 = vmatpush1.bf16.msra.mxu0 %v9502_v55  ;;  %7438 = vmatpush1.bf16.msra.mxu1 %v9503_v56  ;;  %v9563_v42 = vld [vmem:[%s12451_s27 + $0x1e8] ss:$16 sps:$4 sm:$0xff]   ;;  %v9566_v43 = vld [vmem:[%s12451_s27 + $0x204] ss:$16 sps:$4 sm:$0xff]   ;;  %v9569_v44 = vld [vmem:[%s12451_s27 + $0x20c] ss:$16 sps:$4 sm:$0xff]  }
 0x1d8   : > { %6906 = vmatprep.subr.bf16.mxu0 %v9504_v57  ;;  %7439 = vmatprep.subr.bf16.mxu1 %v9506_v58  ;;  %v2745_v29 = vrot.slane %v2723_v27, %v12501_v18  ;;  %v9564_v45 = vld [vmem:[%s12451_s27 + $0x200] ss:$16 sps:$4 sm:$0xff]   ;;  %v9567_v47 = vld [vmem:[%s12451_s27 + $0x208] ss:$16 sps:$4 sm:$0xff]   ;;  %v9572_v48 = vld [vmem:[%s12451_s27 + $0x224] ss:$16 sps:$4 sm:$0xff]  }
 0x1d9   : > { %v9575_v49 = vld [vmem:[%s12451_s27 + $0x22c] ss:$16 sps:$4 sm:$0xff]   ;;  %v9570_v51 = vld [vmem:[%s12451_s27 + $0x220] ss:$16 sps:$4 sm:$0xff]   ;;  %v9573_v52 = vld [vmem:[%s12451_s27 + $0x228] ss:$16 sps:$4 sm:$0xff]  }
 0x1da   : > { %6926 = vmatprep.mubr.bf16.mxu0 %v2745_v29  ;;  %7459 = vmatprep.mubr.bf16.mxu1 %v2745_v29  ;;  %v2755_v50 = vcombine.high %v2745_v29, %v2745_v29  ;;  %v9578_v53 = vld [vmem:[%s12451_s27 + $0x244] ss:$16 sps:$4 sm:$0xff]   ;;  %v9581_v54 = vld [vmem:[%s12451_s27 + $0x24c] ss:$16 sps:$4 sm:$0xff]   ;;  %v9576_v55 = vld [vmem:[%s12451_s27 + $0x240] ss:$16 sps:$4 sm:$0xff]  }
 0x1db   : > { %6907 = vmatpush1.bf16.msra.mxu0 %v9508_v59  ;;  %7440 = vmatpush1.bf16.msra.mxu1 %v9509_v60  ;;  %v9579_v56 = vld [vmem:[%s12451_s27 + $0x248] ss:$16 sps:$4 sm:$0xff]   ;;  %v9584_v57 = vld [vmem:[%s12451_s27 + $0x264] ss:$16 sps:$4 sm:$0xff]   ;;  %v9587_v58 = vld [vmem:[%s12451_s27 + $0x26c] ss:$16 sps:$4 sm:$0xff]  }
 0x1dc   : > { %6908 = vmatprep.subr.bf16.mxu0 %v9510_v61  ;;  %7441 = vmatprep.subr.bf16.mxu1 %v9512_v62  ;;  %v9582_v59 = vld [vmem:[%s12451_s27 + $0x260] ss:$16 sps:$4 sm:$0xff]   ;;  %v9585_v60 = vld [vmem:[%s12451_s27 + $0x268] ss:$16 sps:$4 sm:$0xff]   ;;  %v9590_v61 = vld [vmem:[%s12451_s27 + $0x284] ss:$16 sps:$4 sm:$0xff]  }
 0x1dd   : > { %v9593_v62 = vld [vmem:[%s12451_s27 + $0x28c] ss:$16 sps:$4 sm:$0xff]   ;;  %v9602_v5 = vld [vmem:[%s12451_s27 + $0x2c4] ss:$16 sps:$4 sm:$0xff]   ;;  %v9600_v7 = vld [vmem:[%s12451_s27 + $0x2c0] ss:$16 sps:$4 sm:$0xff]  }
 0x1de   : > { %v9605_v6 = vld [vmem:[%s12451_s27 + $0x2cc] ss:$16 sps:$4 sm:$0xff]   ;;  %v9606_v11 = vld [vmem:[%s12451_s27 + $0x2e0] ss:$16 sps:$4 sm:$0xff]   ;;  %v9621_v23 = vld [vmem:[%s12451_s27 + $0x328] ss:$16 sps:$4 sm:$0xff]  }
 0x1df   : > { %6909 = vmatpush1.bf16.msra.mxu0 %v9514_v63  ;;  %7442 = vmatpush1.bf16.msra.mxu1 %v9515_v0  ;;  %v9588_v63 = vld [vmem:[%s12451_s27 + $0x280] ss:$16 sps:$4 sm:$0xff]   ;;  %v9591_v0 = vld [vmem:[%s12451_s27 + $0x288] ss:$16 sps:$4 sm:$0xff]   ;;  %v9635_v29 = vld [vmem:[%s12451_s27 + $0x36c] ss:$16 sps:$4 sm:$0xff]  }
 0x1e0   : > { %6910 = vmatprep.subr.bf16.mxu0 %v9516_v1  ;;  %7443 = vmatprep.subr.bf16.mxu1 %v9518_v2  ;;  %v9596_v1 = vld [vmem:[%s12451_s27 + $0x2a4] ss:$16 sps:$4 sm:$0xff]   ;;  %v9599_v2 = vld [vmem:[%s12451_s27 + $0x2ac] ss:$16 sps:$4 sm:$0xff]   ;;  %v9627_v27 = vld [vmem:[%s12451_s27 + $0x348] ss:$16 sps:$4 sm:$0xff]  }
 0x1e3   : > { %6911 = vmatpush1.bf16.msra.mxu0 %v9520_v3  ;;  %7444 = vmatpush1.bf16.msra.mxu1 %v9521_v4  ;;  %v9594_v3 = vld [vmem:[%s12451_s27 + $0x2a0] ss:$16 sps:$4 sm:$0xff]   ;;  %v9597_v4 = vld [vmem:[%s12451_s27 + $0x2a8] ss:$16 sps:$4 sm:$0xff]  }
 0x1e4   : > { %6912 = vmatprep.subr.bf16.mxu0 %v9522_v8  ;;  %7445 = vmatprep.subr.bf16.mxu1 %v9524_v9  ;;  %v9603_v8 = vld [vmem:[%s12451_s27 + $0x2c8] ss:$16 sps:$4 sm:$0xff]   ;;  %v9608_v9 = vld [vmem:[%s12451_s27 + $0x2e4] ss:$16 sps:$4 sm:$0xff]  }
 0x1e7   : > { %6913 = vmatpush1.bf16.msra.mxu0 %v9526_v10  ;;  %7446 = vmatpush1.bf16.msra.mxu1 %v9527_v13  ;;  %v9611_v10 = vld [vmem:[%s12451_s27 + $0x2ec] ss:$16 sps:$4 sm:$0xff]   ;;  %v9609_v13 = vld [vmem:[%s12451_s27 + $0x2e8] ss:$16 sps:$4 sm:$0xff]  }
 0x1e8   : > { %6914 = vmatprep.subr.bf16.mxu0 %v9528_v14  ;;  %7447 = vmatprep.subr.bf16.mxu1 %v9530_v15  ;;  %v9614_v14 = vld [vmem:[%s12451_s27 + $0x304] ss:$16 sps:$4 sm:$0xff]   ;;  %v9617_v15 = vld [vmem:[%s12451_s27 + $0x30c] ss:$16 sps:$4 sm:$0xff]  }
 0x1eb   : > { %6915 = vmatpush1.bf16.msra.mxu0 %v9532_v16  ;;  %7448 = vmatpush1.bf16.msra.mxu1 %v9533_v17  ;;  %v9612_v16 = vld [vmem:[%s12451_s27 + $0x300] ss:$16 sps:$4 sm:$0xff]   ;;  %v9615_v17 = vld [vmem:[%s12451_s27 + $0x308] ss:$16 sps:$4 sm:$0xff]  }
 0x1ec   : > { %6916 = vmatprep.subr.bf16.mxu0 %v9534_v19  ;;  %7449 = vmatprep.subr.bf16.mxu1 %v9536_v20  ;;  %v9620_v19 = vld [vmem:[%s12451_s27 + $0x324] ss:$16 sps:$4 sm:$0xff]   ;;  %v9623_v20 = vld [vmem:[%s12451_s27 + $0x32c] ss:$16 sps:$4 sm:$0xff]  }
 0x1ef   : > { %6917 = vmatpush1.bf16.msra.mxu0 %v9538_v22  ;;  %7450 = vmatpush1.bf16.msra.mxu1 %v9539_v24  ;;  %v9618_v22 = vld [vmem:[%s12451_s27 + $0x320] ss:$16 sps:$4 sm:$0xff]   ;;  %v9626_v24 = vld [vmem:[%s12451_s27 + $0x344] ss:$16 sps:$4 sm:$0xff]  }
 0x1f0   : > { %6918 = vmatprep.subr.bf16.mxu0 %v9540_v25  ;;  %7451 = vmatprep.subr.bf16.mxu1 %v9542_v26  ;;  %v9629_v25 = vld [vmem:[%s12451_s27 + $0x34c] ss:$16 sps:$4 sm:$0xff]   ;;  %v9624_v26 = vld [vmem:[%s12451_s27 + $0x340] ss:$16 sps:$4 sm:$0xff]  }
 0x1f3   : > { %6919 = vmatpush1.bf16.msra.mxu0 %v9544_v28  ;;  %7452 = vmatpush1.bf16.msra.mxu1 %v9545_v30  ;;  %v9632_v28 = vld [vmem:[%s12451_s27 + $0x364] ss:$16 sps:$4 sm:$0xff]   ;;  %v9630_v30 = vld [vmem:[%s12451_s27 + $0x360] ss:$16 sps:$4 sm:$0xff]  }
 0x1f4   : > { %6920 = vmatprep.subr.bf16.mxu0 %v9546_v31  ;;  %7453 = vmatprep.subr.bf16.mxu1 %v9548_v32  ;;  %v9633_v31 = vld [vmem:[%s12451_s27 + $0x368] ss:$16 sps:$4 sm:$0xff]   ;;  %v9638_v32 = vld [vmem:[%s12451_s27 + $0x384] ss:$16 sps:$4 sm:$0xff]  }
 0x1f7   : > { %6921 = vmatpush1.bf16.msra.mxu0 %v9550_v33  ;;  %7454 = vmatpush1.bf16.msra.mxu1 %v9551_v34  ;;  %v9641_v33 = vld [vmem:[%s12451_s27 + $0x38c] ss:$16 sps:$4 sm:$0xff]   ;;  %v9636_v34 = vld [vmem:[%s12451_s27 + $0x380] ss:$16 sps:$4 sm:$0xff]  }
 0x1f8   : > { %6922 = vmatprep.subr.bf16.mxu0 %v9552_v35  ;;  %7455 = vmatprep.subr.bf16.mxu1 %v9554_v36  ;;  %v9639_v35 = vld [vmem:[%s12451_s27 + $0x388] ss:$16 sps:$4 sm:$0xff]   ;;  %v9644_v36 = vld [vmem:[%s12451_s27 + $0x3a4] ss:$16 sps:$4 sm:$0xff]  }
 0x1fb   : > { %6923 = vmatpush1.bf16.msra.mxu0 %v9556_v37  ;;  %7456 = vmatpush1.bf16.msra.mxu1 %v9557_v38  ;;  %v9647_v37 = vld [vmem:[%s12451_s27 + $0x3ac] ss:$16 sps:$4 sm:$0xff]   ;;  %v9642_v38 = vld [vmem:[%s12451_s27 + $0x3a0] ss:$16 sps:$4 sm:$0xff]  }
 0x1fc   : > { %6924 = vmatprep.subr.bf16.mxu0 %v9558_v39  ;;  %7457 = vmatprep.subr.bf16.mxu1 %v9560_v40  ;;  %v9645_v39 = vld [vmem:[%s12451_s27 + $0x3a8] ss:$16 sps:$4 sm:$0xff]   ;;  %v9650_v40 = vld [vmem:[%s12451_s27 + $0x3c4] ss:$16 sps:$4 sm:$0xff]  }
 0x1ff   : > { %6925 = vmatpush1.bf16.msra.mxu0 %v9562_v41  ;;  %7458 = vmatpush1.bf16.msra.mxu1 %v9563_v42  ;;  %v9653_v41 = vld [vmem:[%s12451_s27 + $0x3cc] ss:$16 sps:$4 sm:$0xff]   ;;  %v2708_v42 = vcombine.high %v12506_v21, %v12506_v21  ;;  %v9657_v21 = vld [vmem:[%s12451_s27 + $0x3e8] ss:$16 sps:$4 sm:$0xff]  }
 0x200   : > { %6935 = vmatprep.subr.bf16.mxu0 %v9566_v43  ;;  %7468 = vmatprep.subr.bf16.mxu1 %v9569_v44  ;;  %v9648_v43 = vld [vmem:[%s12451_s27 + $0x3c0] ss:$16 sps:$4 sm:$0xff]   ;;  %v9651_v44 = vld [vmem:[%s12451_s27 + $0x3c8] ss:$16 sps:$4 sm:$0xff]  }
 0x202   : > { %6927 = vmatmul.mubr.bf16.vlgmr.msra.gmra.mrb[0].mxu0 %v12533_v46  ;;  %7460 = vmatmul.mubr.bf16.vlgmr.msra.gmra.mrb[0].mxu1 %v12533_v46 }
 0x203   : > { %6936 = vmatpush1.bf16.msra.mxu0 %v9564_v45  ;;  %7469 = vmatpush1.bf16.msra.mxu1 %v9567_v47  ;;  %v9656_v45 = vld [vmem:[%s12451_s27 + $0x3e4] ss:$16 sps:$4 sm:$0xff]   ;;  %v9659_v47 = vld [vmem:[%s12451_s27 + $0x3ec] ss:$16 sps:$4 sm:$0xff]  }
 0x204   : > { %6937 = vmatprep.subr.bf16.mxu0 %v9572_v48  ;;  %7470 = vmatprep.subr.bf16.mxu1 %v9575_v49  ;;  %v12599_v48 = vrot.slane %v2708_v42, %v12501_v18  ;;  %v9654_v49 = vld [vmem:[%s12451_s27 + $0x3e0] ss:$16 sps:$4 sm:$0xff]   ;;  %v9735_v42 = vld [vmem:[%s12451_s27 + $0x588] ss:$16 sps:$4 sm:$0xff]  }
 0x205   : > { %6967 = vmatprep.mubr.bf16.mxu0 %v2755_v50  ;;  %7500 = vmatprep.mubr.bf16.mxu1 %v2755_v50  ;;  %v9662_v50 = vld [vmem:[%s12451_s27 + $0x404] ss:$16 sps:$4 sm:$0xff]  }
 0x207   : > { %6938 = vmatpush1.bf16.msra.mxu0 %v9570_v51  ;;  %7471 = vmatpush1.bf16.msra.mxu1 %v9573_v52  ;;  %v9665_v51 = vld [vmem:[%s12451_s27 + $0x40c] ss:$16 sps:$4 sm:$0xff]   ;;  %v2724_v52 = vcombine.high %v12599_v48, %v12599_v48 }
 0x208   : > { %6939 = vmatprep.subr.bf16.mxu0 %v9578_v53  ;;  %7472 = vmatprep.subr.bf16.mxu1 %v9581_v54  ;;  %v9660_v53 = vld [vmem:[%s12451_s27 + $0x400] ss:$16 sps:$4 sm:$0xff]   ;;  %v2753_v54 = vcombine.high %v12533_v46, %v12533_v46  ;;  %v9669_v46 = vld [vmem:[%s12451_s27 + $0x428] ss:$16 sps:$4 sm:$0xff]  }
 0x20b   : > { %6940 = vmatpush1.bf16.msra.mxu0 %v9576_v55  ;;  %7473 = vmatpush1.bf16.msra.mxu1 %v9579_v56  ;;  %v9663_v55 = vld [vmem:[%s12451_s27 + $0x408] ss:$16 sps:$4 sm:$0xff]   ;;  %v9668_v56 = vld [vmem:[%s12451_s27 + $0x424] ss:$16 sps:$4 sm:$0xff]  }
 0x20c   : > { %6941 = vmatprep.subr.bf16.mxu0 %v9584_v57  ;;  %7474 = vmatprep.subr.bf16.mxu1 %v9587_v58  ;;  %v9671_v57 = vld [vmem:[%s12451_s27 + $0x42c] ss:$16 sps:$4 sm:$0xff]   ;;  %v12614_v58 = vrot.slane %v2724_v52, %v12501_v18  ;;  %v9752_v52 = vld [vmem:[%s12451_s27 + $0x5e4] ss:$16 sps:$4 sm:$0xff]  }
 0x20f   : > { %6942 = vmatpush1.bf16.msra.mxu0 %v9582_v59  ;;  %7475 = vmatpush1.bf16.msra.mxu1 %v9585_v60  ;;  %v9666_v59 = vld [vmem:[%s12451_s27 + $0x420] ss:$16 sps:$4 sm:$0xff]   ;;  %v9674_v60 = vld [vmem:[%s12451_s27 + $0x444] ss:$16 sps:$4 sm:$0xff]  }
 0x210   : > { %6943 = vmatprep.subr.bf16.mxu0 %v9590_v61  ;;  %7476 = vmatprep.subr.bf16.mxu1 %v9593_v62  ;;  %v9677_v61 = vld [vmem:[%s12451_s27 + $0x44c] ss:$16 sps:$4 sm:$0xff]   ;;  %v9672_v62 = vld [vmem:[%s12451_s27 + $0x440] ss:$16 sps:$4 sm:$0xff]  }
 0x213   : > { %6944 = vmatpush1.bf16.msra.mxu0 %v9588_v63  ;;  %7477 = vmatpush1.bf16.msra.mxu1 %v9591_v0  ;;  %v9675_v63 = vld [vmem:[%s12451_s27 + $0x448] ss:$16 sps:$4 sm:$0xff]   ;;  %v9680_v0 = vld [vmem:[%s12451_s27 + $0x464] ss:$16 sps:$4 sm:$0xff]  }
 0x214   : > { %6945 = vmatprep.subr.bf16.mxu0 %v9596_v1  ;;  %7478 = vmatprep.subr.bf16.mxu1 %v9599_v2  ;;  %v9683_v1 = vld [vmem:[%s12451_s27 + $0x46c] ss:$16 sps:$4 sm:$0xff]   ;;  %v9678_v2 = vld [vmem:[%s12451_s27 + $0x460] ss:$16 sps:$4 sm:$0xff]  }
 0x217   : > { %6946 = vmatpush1.bf16.msra.mxu0 %v9594_v3  ;;  %7479 = vmatpush1.bf16.msra.mxu1 %v9597_v4  ;;  %v9681_v3 = vld [vmem:[%s12451_s27 + $0x468] ss:$16 sps:$4 sm:$0xff]   ;;  %v9686_v4 = vld [vmem:[%s12451_s27 + $0x484] ss:$16 sps:$4 sm:$0xff]  }
 0x218   : > { %6947 = vmatprep.subr.bf16.mxu0 %v9602_v5  ;;  %7480 = vmatprep.subr.bf16.mxu1 %v9605_v6  ;;  %v9689_v5 = vld [vmem:[%s12451_s27 + $0x48c] ss:$16 sps:$4 sm:$0xff]   ;;  %v9684_v6 = vld [vmem:[%s12451_s27 + $0x480] ss:$16 sps:$4 sm:$0xff]  }
 0x21b   : > { %6948 = vmatpush1.bf16.msra.mxu0 %v9600_v7  ;;  %7481 = vmatpush1.bf16.msra.mxu1 %v9603_v8  ;;  %v9687_v7 = vld [vmem:[%s12451_s27 + $0x488] ss:$16 sps:$4 sm:$0xff]   ;;  %v9692_v8 = vld [vmem:[%s12451_s27 + $0x4a4] ss:$16 sps:$4 sm:$0xff]  }
 0x21c   : > { %6949 = vmatprep.subr.bf16.mxu0 %v9608_v9  ;;  %7482 = vmatprep.subr.bf16.mxu1 %v9611_v10  ;;  %v9695_v9 = vld [vmem:[%s12451_s27 + $0x4ac] ss:$16 sps:$4 sm:$0xff]   ;;  %v9690_v10 = vld [vmem:[%s12451_s27 + $0x4a0] ss:$16 sps:$4 sm:$0xff]  }
 0x21f   : > { %6950 = vmatpush1.bf16.msra.mxu0 %v9606_v11  ;;  %7483 = vmatpush1.bf16.msra.mxu1 %v9609_v13  ;;  %v9693_v11 = vld [vmem:[%s12451_s27 + $0x4a8] ss:$16 sps:$4 sm:$0xff]   ;;  %v9698_v13 = vld [vmem:[%s12451_s27 + $0x4c4] ss:$16 sps:$4 sm:$0xff]  }
 0x220   : > { %6951 = vmatprep.subr.bf16.mxu0 %v9614_v14  ;;  %7484 = vmatprep.subr.bf16.mxu1 %v9617_v15  ;;  %v9701_v14 = vld [vmem:[%s12451_s27 + $0x4cc] ss:$16 sps:$4 sm:$0xff]   ;;  %v9696_v15 = vld [vmem:[%s12451_s27 + $0x4c0] ss:$16 sps:$4 sm:$0xff]  }
 0x223   : > { %6952 = vmatpush1.bf16.msra.mxu0 %v9612_v16  ;;  %7485 = vmatpush1.bf16.msra.mxu1 %v9615_v17  ;;  %v9699_v16 = vld [vmem:[%s12451_s27 + $0x4c8] ss:$16 sps:$4 sm:$0xff]   ;;  %v9704_v17 = vld [vmem:[%s12451_s27 + $0x4e4] ss:$16 sps:$4 sm:$0xff]  }
 0x224   : > { %6953 = vmatprep.subr.bf16.mxu0 %v9620_v19  ;;  %7486 = vmatprep.subr.bf16.mxu1 %v9623_v20  ;;  %v9707_v19 = vld [vmem:[%s12451_s27 + $0x4ec] ss:$16 sps:$4 sm:$0xff]   ;;  %v9702_v20 = vld [vmem:[%s12451_s27 + $0x4e0] ss:$16 sps:$4 sm:$0xff]  }
 0x227   : > { %6954 = vmatpush1.bf16.msra.mxu0 %v9618_v22  ;;  %7487 = vmatpush1.bf16.msra.mxu1 %v9621_v23  ;;  %v9705_v22 = vld [vmem:[%s12451_s27 + $0x4e8] ss:$16 sps:$4 sm:$0xff]   ;;  %v9710_v23 = vld [vmem:[%s12451_s27 + $0x504] ss:$16 sps:$4 sm:$0xff]  }
 0x228   : > { %6955 = vmatprep.subr.bf16.mxu0 %v9626_v24  ;;  %7488 = vmatprep.subr.bf16.mxu1 %v9629_v25  ;;  %v9713_v24 = vld [vmem:[%s12451_s27 + $0x50c] ss:$16 sps:$4 sm:$0xff]   ;;  %v9708_v25 = vld [vmem:[%s12451_s27 + $0x500] ss:$16 sps:$4 sm:$0xff]  }
 0x22b   : > { %6956 = vmatpush1.bf16.msra.mxu0 %v9624_v26  ;;  %7489 = vmatpush1.bf16.msra.mxu1 %v9627_v27  ;;  %v9711_v26 = vld [vmem:[%s12451_s27 + $0x508] ss:$16 sps:$4 sm:$0xff]   ;;  %v9716_v27 = vld [vmem:[%s12451_s27 + $0x524] ss:$16 sps:$4 sm:$0xff]  }
 0x22c   : > { %6957 = vmatprep.subr.bf16.mxu0 %v9632_v28  ;;  %7490 = vmatprep.subr.bf16.mxu1 %v9635_v29  ;;  %v9719_v28 = vld [vmem:[%s12451_s27 + $0x52c] ss:$16 sps:$4 sm:$0xff]   ;;  %v9714_v29 = vld [vmem:[%s12451_s27 + $0x520] ss:$16 sps:$4 sm:$0xff]  }
 0x22f   : > { %6958 = vmatpush1.bf16.msra.mxu0 %v9630_v30  ;;  %7491 = vmatpush1.bf16.msra.mxu1 %v9633_v31  ;;  %v9717_v30 = vld [vmem:[%s12451_s27 + $0x528] ss:$16 sps:$4 sm:$0xff]   ;;  %v9722_v31 = vld [vmem:[%s12451_s27 + $0x544] ss:$16 sps:$4 sm:$0xff]  }
 0x230   : > { %6959 = vmatprep.subr.bf16.mxu0 %v9638_v32  ;;  %7492 = vmatprep.subr.bf16.mxu1 %v9641_v33  ;;  %v9725_v32 = vld [vmem:[%s12451_s27 + $0x54c] ss:$16 sps:$4 sm:$0xff]   ;;  %v9720_v33 = vld [vmem:[%s12451_s27 + $0x540] ss:$16 sps:$4 sm:$0xff]  }
 0x233   : > { %6960 = vmatpush1.bf16.msra.mxu0 %v9636_v34  ;;  %7493 = vmatpush1.bf16.msra.mxu1 %v9639_v35  ;;  %v9723_v34 = vld [vmem:[%s12451_s27 + $0x548] ss:$16 sps:$4 sm:$0xff]   ;;  %v9728_v35 = vld [vmem:[%s12451_s27 + $0x564] ss:$16 sps:$4 sm:$0xff]  }
 0x234   : > { %6961 = vmatprep.subr.bf16.mxu0 %v9644_v36  ;;  %7494 = vmatprep.subr.bf16.mxu1 %v9647_v37  ;;  %v9731_v36 = vld [vmem:[%s12451_s27 + $0x56c] ss:$16 sps:$4 sm:$0xff]   ;;  %v9726_v37 = vld [vmem:[%s12451_s27 + $0x560] ss:$16 sps:$4 sm:$0xff]  }
 0x237   : > { %6962 = vmatpush1.bf16.msra.mxu0 %v9642_v38  ;;  %7495 = vmatpush1.bf16.msra.mxu1 %v9645_v39  ;;  %v9729_v38 = vld [vmem:[%s12451_s27 + $0x568] ss:$16 sps:$4 sm:$0xff]   ;;  %v9734_v39 = vld [vmem:[%s12451_s27 + $0x584] ss:$16 sps:$4 sm:$0xff]  }
 0x238   : > { %6963 = vmatprep.subr.bf16.mxu0 %v9650_v40  ;;  %7496 = vmatprep.subr.bf16.mxu1 %v9653_v41  ;;  %v9737_v40 = vld [vmem:[%s12451_s27 + $0x58c] ss:$16 sps:$4 sm:$0xff]   ;;  %v9732_v41 = vld [vmem:[%s12451_s27 + $0x580] ss:$16 sps:$4 sm:$0xff]  }
 0x23b   : > { %6964 = vmatpush1.bf16.msra.mxu0 %v9648_v43  ;;  %7497 = vmatpush1.bf16.msra.mxu1 %v9651_v44  ;;  %v9740_v43 = vld [vmem:[%s12451_s27 + $0x5a4] ss:$16 sps:$4 sm:$0xff]   ;;  %v9743_v44 = vld [vmem:[%s12451_s27 + $0x5ac] ss:$16 sps:$4 sm:$0xff]  }
 0x23c   : > { %6965 = vmatprep.subr.bf16.mxu0 %v9656_v45  ;;  %7498 = vmatprep.subr.bf16.mxu1 %v9659_v47  ;;  %v9738_v45 = vld [vmem:[%s12451_s27 + $0x5a0] ss:$16 sps:$4 sm:$0xff]   ;;  %v9741_v47 = vld [vmem:[%s12451_s27 + $0x5a8] ss:$16 sps:$4 sm:$0xff]  }
 0x23f   : > { %6966 = vmatpush1.bf16.msra.mxu0 %v9654_v49  ;;  %7499 = vmatpush1.bf16.msra.mxu1 %v9657_v21  ;;  %v9746_v49 = vld [vmem:[%s12451_s27 + $0x5c4] ss:$16 sps:$4 sm:$0xff]   ;;  %v9749_v21 = vld [vmem:[%s12451_s27 + $0x5cc] ss:$16 sps:$4 sm:$0xff]  }
 0x240   : > { %6976 = vmatprep.subr.bf16.mxu0 %v9662_v50  ;;  %7509 = vmatprep.subr.bf16.mxu1 %v9665_v51  ;;  %v9744_v50 = vld [vmem:[%s12451_s27 + $0x5c0] ss:$16 sps:$4 sm:$0xff]   ;;  %v9747_v51 = vld [vmem:[%s12451_s27 + $0x5c8] ss:$16 sps:$4 sm:$0xff]  }
 0x242   : > { %6968 = vmatmul.mubr.bf16.vlgmr.msra.gmra.mrb[0].mxu0 %v2753_v54  ;;  %7501 = vmatmul.mubr.bf16.vlgmr.msra.gmra.mrb[0].mxu1 %v2753_v54  ;;  %v9750_v54 = vld [vmem:[%s12451_s27 + $0x5e0] ss:$16 sps:$4 sm:$0xff]  }
 0x243   : > { %6977 = vmatpush1.bf16.msra.mxu0 %v9660_v53  ;;  %7510 = vmatpush1.bf16.msra.mxu1 %v9663_v55  ;;  %v9755_v53 = vld [vmem:[%s12451_s27 + $0x5ec] ss:$16 sps:$4 sm:$0xff]   ;;  %v9753_v55 = vld [vmem:[%s12451_s27 + $0x5e8] ss:$16 sps:$4 sm:$0xff]  }
 0x244   : > { %6978 = vmatprep.subr.bf16.mxu0 %v9668_v56  ;;  %7511 = vmatprep.subr.bf16.mxu1 %v9671_v57  ;;  %v9759_v56 = vld [vmem:[%s12451_s27 + $0x604] ss:$16 sps:$4 sm:$0xff]   ;;  %v9762_v57 = vld [vmem:[%s12451_s27 + $0x60c] ss:$16 sps:$4 sm:$0xff]  }
 0x245   : > { %7008 = vmatprep.mubr.bf16.mxu0 %v12614_v58  ;;  %7541 = vmatprep.mubr.bf16.mxu1 %v12614_v58 }
 0x247   : > { %6979 = vmatpush1.bf16.msra.mxu0 %v9666_v59  ;;  %7512 = vmatpush1.bf16.msra.mxu1 %v9669_v46  ;;  %v9757_v59 = vld [vmem:[%s12451_s27 + $0x600] ss:$16 sps:$4 sm:$0xff]   ;;  %v12681_v46 = vrot.slane %v12599_v48, %v12501_v18 }
 0x248   : > { %6980 = vmatprep.subr.bf16.mxu0 %v9674_v60  ;;  %7513 = vmatprep.subr.bf16.mxu1 %v9677_v61  ;;  %v9760_v60 = vld [vmem:[%s12451_s27 + $0x608] ss:$16 sps:$4 sm:$0xff]   ;;  %v9765_v61 = vld [vmem:[%s12451_s27 + $0x624] ss:$16 sps:$4 sm:$0xff]   ;;  %v9763_v48 = vld [vmem:[%s12451_s27 + $0x620] ss:$16 sps:$4 sm:$0xff]  }
 0x24b   : > { %6981 = vmatpush1.bf16.msra.mxu0 %v9672_v62  ;;  %7514 = vmatpush1.bf16.msra.mxu1 %v9675_v63  ;;  %v9768_v62 = vld [vmem:[%s12451_s27 + $0x62c] ss:$16 sps:$4 sm:$0xff]   ;;  %v2756_v63 = vcombine.high %v12614_v58, %v12614_v58  ;;  %v9769_v58 = vld [vmem:[%s12451_s27 + $0x640] ss:$16 sps:$4 sm:$0xff]  }
 0x24c   : > { %6982 = vmatprep.subr.bf16.mxu0 %v9680_v0  ;;  %7515 = vmatprep.subr.bf16.mxu1 %v9683_v1  ;;  %v9766_v0 = vld [vmem:[%s12451_s27 + $0x628] ss:$16 sps:$4 sm:$0xff]   ;;  %v9771_v1 = vld [vmem:[%s12451_s27 + $0x644] ss:$16 sps:$4 sm:$0xff]  }
 0x24f   : > { %6983 = vmatpush1.bf16.msra.mxu0 %v9678_v2  ;;  %7516 = vmatpush1.bf16.msra.mxu1 %v9681_v3  ;;  %v9774_v2 = vld [vmem:[%s12451_s27 + $0x64c] ss:$16 sps:$4 sm:$0xff]   ;;  %v9772_v3 = vld [vmem:[%s12451_s27 + $0x648] ss:$16 sps:$4 sm:$0xff]  }
 0x250   : > { %6984 = vmatprep.subr.bf16.mxu0 %v9686_v4  ;;  %7517 = vmatprep.subr.bf16.mxu1 %v9689_v5  ;;  %v9777_v4 = vld [vmem:[%s12451_s27 + $0x664] ss:$16 sps:$4 sm:$0xff]   ;;  %v9780_v5 = vld [vmem:[%s12451_s27 + $0x66c] ss:$16 sps:$4 sm:$0xff]  }
 0x253   : > { %6985 = vmatpush1.bf16.msra.mxu0 %v9684_v6  ;;  %7518 = vmatpush1.bf16.msra.mxu1 %v9687_v7  ;;  %v9775_v6 = vld [vmem:[%s12451_s27 + $0x660] ss:$16 sps:$4 sm:$0xff]   ;;  %v9778_v7 = vld [vmem:[%s12451_s27 + $0x668] ss:$16 sps:$4 sm:$0xff]  }
 0x254   : > { %6986 = vmatprep.subr.bf16.mxu0 %v9692_v8  ;;  %7519 = vmatprep.subr.bf16.mxu1 %v9695_v9  ;;  %v9783_v8 = vld [vmem:[%s12451_s27 + $0x684] ss:$16 sps:$4 sm:$0xff]   ;;  %v9786_v9 = vld [vmem:[%s12451_s27 + $0x68c] ss:$16 sps:$4 sm:$0xff]  }
 0x257   : > { %6987 = vmatpush1.bf16.msra.mxu0 %v9690_v10  ;;  %7520 = vmatpush1.bf16.msra.mxu1 %v9693_v11  ;;  %v9781_v10 = vld [vmem:[%s12451_s27 + $0x680] ss:$16 sps:$4 sm:$0xff]   ;;  %v9784_v11 = vld [vmem:[%s12451_s27 + $0x688] ss:$16 sps:$4 sm:$0xff]  }
 0x258   : > { %6988 = vmatprep.subr.bf16.mxu0 %v9698_v13  ;;  %7521 = vmatprep.subr.bf16.mxu1 %v9701_v14  ;;  %v9789_v13 = vld [vmem:[%s12451_s27 + $0x6a4] ss:$16 sps:$4 sm:$0xff]   ;;  %v9792_v14 = vld [vmem:[%s12451_s27 + $0x6ac] ss:$16 sps:$4 sm:$0xff]  }
 0x25b   : > { %6989 = vmatpush1.bf16.msra.mxu0 %v9696_v15  ;;  %7522 = vmatpush1.bf16.msra.mxu1 %v9699_v16  ;;  %v9787_v15 = vld [vmem:[%s12451_s27 + $0x6a0] ss:$16 sps:$4 sm:$0xff]   ;;  %v9790_v16 = vld [vmem:[%s12451_s27 + $0x6a8] ss:$16 sps:$4 sm:$0xff]  }
 0x25c   : > { %6990 = vmatprep.subr.bf16.mxu0 %v9704_v17  ;;  %7523 = vmatprep.subr.bf16.mxu1 %v9707_v19  ;;  %v9795_v17 = vld [vmem:[%s12451_s27 + $0x6c4] ss:$16 sps:$4 sm:$0xff]   ;;  %v9798_v19 = vld [vmem:[%s12451_s27 + $0x6cc] ss:$16 sps:$4 sm:$0xff]  }
 0x25f   : > { %6991 = vmatpush1.bf16.msra.mxu0 %v9702_v20  ;;  %7524 = vmatpush1.bf16.msra.mxu1 %v9705_v22  ;;  %v9793_v20 = vld [vmem:[%s12451_s27 + $0x6c0] ss:$16 sps:$4 sm:$0xff]   ;;  %v9796_v22 = vld [vmem:[%s12451_s27 + $0x6c8] ss:$16 sps:$4 sm:$0xff]  }
 0x260   : > { %6992 = vmatprep.subr.bf16.mxu0 %v9710_v23  ;;  %7525 = vmatprep.subr.bf16.mxu1 %v9713_v24  ;;  %v9801_v23 = vld [vmem:[%s12451_s27 + $0x6e4] ss:$16 sps:$4 sm:$0xff]   ;;  %v9804_v24 = vld [vmem:[%s12451_s27 + $0x6ec] ss:$16 sps:$4 sm:$0xff]  }
 0x263   : > { %6993 = vmatpush1.bf16.msra.mxu0 %v9708_v25  ;;  %7526 = vmatpush1.bf16.msra.mxu1 %v9711_v26  ;;  %v9799_v25 = vld [vmem:[%s12451_s27 + $0x6e0] ss:$16 sps:$4 sm:$0xff]   ;;  %v9802_v26 = vld [vmem:[%s12451_s27 + $0x6e8] ss:$16 sps:$4 sm:$0xff]  }
 0x264   : > { %6994 = vmatprep.subr.bf16.mxu0 %v9716_v27  ;;  %7527 = vmatprep.subr.bf16.mxu1 %v9719_v28  ;;  %v9807_v27 = vld [vmem:[%s12451_s27 + $0x704] ss:$16 sps:$4 sm:$0xff]   ;;  %v9810_v28 = vld [vmem:[%s12451_s27 + $0x70c] ss:$16 sps:$4 sm:$0xff]  }
 0x267   : > { %6995 = vmatpush1.bf16.msra.mxu0 %v9714_v29  ;;  %7528 = vmatpush1.bf16.msra.mxu1 %v9717_v30  ;;  %v9805_v29 = vld [vmem:[%s12451_s27 + $0x700] ss:$16 sps:$4 sm:$0xff]   ;;  %v9808_v30 = vld [vmem:[%s12451_s27 + $0x708] ss:$16 sps:$4 sm:$0xff]  }
 0x268   : > { %6996 = vmatprep.subr.bf16.mxu0 %v9722_v31  ;;  %7529 = vmatprep.subr.bf16.mxu1 %v9725_v32  ;;  %v9813_v31 = vld [vmem:[%s12451_s27 + $0x724] ss:$16 sps:$4 sm:$0xff]   ;;  %v9816_v32 = vld [vmem:[%s12451_s27 + $0x72c] ss:$16 sps:$4 sm:$0xff]  }
 0x26b   : > { %6997 = vmatpush1.bf16.msra.mxu0 %v9720_v33  ;;  %7530 = vmatpush1.bf16.msra.mxu1 %v9723_v34  ;;  %v9811_v33 = vld [vmem:[%s12451_s27 + $0x720] ss:$16 sps:$4 sm:$0xff]   ;;  %v9814_v34 = vld [vmem:[%s12451_s27 + $0x728] ss:$16 sps:$4 sm:$0xff]  }
 0x26c   : > { %6998 = vmatprep.subr.bf16.mxu0 %v9728_v35  ;;  %7531 = vmatprep.subr.bf16.mxu1 %v9731_v36  ;;  %v9819_v35 = vld [vmem:[%s12451_s27 + $0x744] ss:$16 sps:$4 sm:$0xff]   ;;  %v9822_v36 = vld [vmem:[%s12451_s27 + $0x74c] ss:$16 sps:$4 sm:$0xff]  }
 0x26f   : > { %6999 = vmatpush1.bf16.msra.mxu0 %v9726_v37  ;;  %7532 = vmatpush1.bf16.msra.mxu1 %v9729_v38  ;;  %v9817_v37 = vld [vmem:[%s12451_s27 + $0x740] ss:$16 sps:$4 sm:$0xff]   ;;  %v9820_v38 = vld [vmem:[%s12451_s27 + $0x748] ss:$16 sps:$4 sm:$0xff]  }
 0x270   : > { %7000 = vmatprep.subr.bf16.mxu0 %v9734_v39  ;;  %7533 = vmatprep.subr.bf16.mxu1 %v9737_v40  ;;  %v9825_v39 = vld [vmem:[%s12451_s27 + $0x764] ss:$16 sps:$4 sm:$0xff]   ;;  %v9828_v40 = vld [vmem:[%s12451_s27 + $0x76c] ss:$16 sps:$4 sm:$0xff]  }
 0x273   : > { %7001 = vmatpush1.bf16.msra.mxu0 %v9732_v41  ;;  %7534 = vmatpush1.bf16.msra.mxu1 %v9735_v42  ;;  %v9823_v41 = vld [vmem:[%s12451_s27 + $0x760] ss:$16 sps:$4 sm:$0xff]   ;;  %v9826_v42 = vld [vmem:[%s12451_s27 + $0x768] ss:$16 sps:$4 sm:$0xff]  }
 0x274   : > { %7002 = vmatprep.subr.bf16.mxu0 %v9740_v43  ;;  %7535 = vmatprep.subr.bf16.mxu1 %v9743_v44  ;;  %v9831_v43 = vld [vmem:[%s12451_s27 + $0x784] ss:$16 sps:$4 sm:$0xff]   ;;  %v9834_v44 = vld [vmem:[%s12451_s27 + $0x78c] ss:$16 sps:$4 sm:$0xff]  }
 0x277   : > { %7003 = vmatpush1.bf16.msra.mxu0 %v9738_v45  ;;  %7536 = vmatpush1.bf16.msra.mxu1 %v9741_v47  ;;  %v9829_v45 = vld [vmem:[%s12451_s27 + $0x780] ss:$16 sps:$4 sm:$0xff]   ;;  %v9832_v47 = vld [vmem:[%s12451_s27 + $0x788] ss:$16 sps:$4 sm:$0xff]  }
 0x278   : > { %7004 = vmatprep.subr.bf16.mxu0 %v9746_v49  ;;  %7537 = vmatprep.subr.bf16.mxu1 %v9749_v21  ;;  %v9837_v49 = vld [vmem:[%s12451_s27 + $0x7a4] ss:$16 sps:$4 sm:$0xff]   ;;  %v9840_v21 = vld [vmem:[%s12451_s27 + $0x7ac] ss:$16 sps:$4 sm:$0xff]  }
 0x27b   : > { %7005 = vmatpush1.bf16.msra.mxu0 %v9744_v50  ;;  %7538 = vmatpush1.bf16.msra.mxu1 %v9747_v51  ;;  %v9835_v50 = vld [vmem:[%s12451_s27 + $0x7a0] ss:$16 sps:$4 sm:$0xff]   ;;  %v9838_v51 = vld [vmem:[%s12451_s27 + $0x7a8] ss:$16 sps:$4 sm:$0xff]  }
 0x27c   : > { %7006 = vmatprep.subr.bf16.mxu0 %v9752_v52  ;;  %7539 = vmatprep.subr.bf16.mxu1 %v9755_v53  ;;  %v9843_v52 = vld [vmem:[%s12451_s27 + $0x7c4] ss:$16 sps:$4 sm:$0xff]   ;;  %v9846_v53 = vld [vmem:[%s12451_s27 + $0x7cc] ss:$16 sps:$4 sm:$0xff]  }
 0x27f   : > { %7007 = vmatpush1.bf16.msra.mxu0 %v9750_v54  ;;  %7540 = vmatpush1.bf16.msra.mxu1 %v9753_v55  ;;  %v12743_v54 = vld.sshfl [vmem:[%s12433_s30 + $0x8] sm:$0xff pattern:$0x75316420] }
 0x280   : > { %7017 = vmatprep.subr.bf16.mxu0 %v9759_v56  ;;  %7550 = vmatprep.subr.bf16.mxu1 %v9762_v57  ;;  %v9841_v55 = vld [vmem:[%s12451_s27 + $0x7c0] ss:$16 sps:$4 sm:$0xff]   ;;  %v9844_v56 = vld [vmem:[%s12451_s27 + $0x7c8] ss:$16 sps:$4 sm:$0xff]   ;;  %v9849_v57 = vld [vmem:[%s12451_s27 + $0x7e4] ss:$16 sps:$4 sm:$0xff]  }
 0x282   : > { %7009 = vmatmul.mubr.bf16.vlgmr.msra.gmra.mrb[0].mxu0 %v12681_v46  ;;  %7542 = vmatmul.mubr.bf16.vlgmr.msra.gmra.mrb[0].mxu1 %v12681_v46 }
 0x283   : > { %7018 = vmatpush1.bf16.msra.mxu0 %v9757_v59  ;;  %7551 = vmatpush1.bf16.msra.mxu1 %v9760_v60  ;;  %v9852_v59 = vld [vmem:[%s12451_s27 + $0x7ec] ss:$16 sps:$4 sm:$0xff]   ;;  %v9847_v60 = vld [vmem:[%s12451_s27 + $0x7e0] ss:$16 sps:$4 sm:$0xff]  }
 0x284   : > { %7019 = vmatprep.subr.bf16.mxu0 %v9765_v61  ;;  %7552 = vmatprep.subr.bf16.mxu1 %v9768_v62  ;;  %v9850_v61 = vld [vmem:[%s12451_s27 + $0x7e8] ss:$16 sps:$4 sm:$0xff]   ;;  %v9855_v62 = vld [vmem:[%s12451_s27 + $0x804] ss:$16 sps:$4 sm:$0xff]  }
 0x285   : > { %7049 = vmatprep.mubr.bf16.mxu0 %v2756_v63  ;;  %7582 = vmatprep.mubr.bf16.mxu1 %v2756_v63  ;;  %v9858_v63 = vld [vmem:[%s12451_s27 + $0x80c] ss:$16 sps:$4 sm:$0xff]  }
 0x287   : > { %7020 = vmatpush1.bf16.msra.mxu0 %v9763_v48  ;;  %7553 = vmatpush1.bf16.msra.mxu1 %v9766_v0  ;;  %v2772_v48 = vcombine.high %v12743_v54, %v12743_v54  ;;  %v2754_v0 = vcombine.high %v12681_v46, %v12681_v46  ;;  %v9859_v46 = vld [vmem:[%s12451_s27 + $0x820] ss:$16 sps:$4 sm:$0xff]  }
 0x288   : > { %7021 = vmatprep.subr.bf16.mxu0 %v9771_v1  ;;  %7554 = vmatprep.subr.bf16.mxu1 %v9774_v2  ;;  %v9853_v1 = vld [vmem:[%s12451_s27 + $0x800] ss:$16 sps:$4 sm:$0xff]   ;;  %v9856_v2 = vld [vmem:[%s12451_s27 + $0x808] ss:$16 sps:$4 sm:$0xff]  }
 0x28b   : > { %7022 = vmatpush1.bf16.msra.mxu0 %v9769_v58  ;;  %7555 = vmatpush1.bf16.msra.mxu1 %v9772_v3  ;;  %v9861_v58 = vld [vmem:[%s12451_s27 + $0x824] ss:$16 sps:$4 sm:$0xff]   ;;  %v9864_v3 = vld [vmem:[%s12451_s27 + $0x82c] ss:$16 sps:$4 sm:$0xff]  }
 0x28c   : > { %7023 = vmatprep.subr.bf16.mxu0 %v9777_v4  ;;  %7556 = vmatprep.subr.bf16.mxu1 %v9780_v5  ;;  %v12762_v4 = vrot.slane %v2772_v48, %v12501_v18  ;;  %v9862_v5 = vld [vmem:[%s12451_s27 + $0x828] ss:$16 sps:$4 sm:$0xff]   ;;  %v9945_v48 = vld [vmem:[%s12451_s27 + $0x9e4] ss:$16 sps:$4 sm:$0xff]  }
 0x28f   : > { %7024 = vmatpush1.bf16.msra.mxu0 %v9775_v6  ;;  %7557 = vmatpush1.bf16.msra.mxu1 %v9778_v7  ;;  %v9867_v6 = vld [vmem:[%s12451_s27 + $0x844] ss:$16 sps:$4 sm:$0xff]   ;;  %v9870_v7 = vld [vmem:[%s12451_s27 + $0x84c] ss:$16 sps:$4 sm:$0xff]  }
 0x290   : > { %7025 = vmatprep.subr.bf16.mxu0 %v9783_v8  ;;  %7558 = vmatprep.subr.bf16.mxu1 %v9786_v9  ;;  %v9865_v8 = vld [vmem:[%s12451_s27 + $0x840] ss:$16 sps:$4 sm:$0xff]   ;;  %v9868_v9 = vld [vmem:[%s12451_s27 + $0x848] ss:$16 sps:$4 sm:$0xff]  }
 0x293   : > { %7026 = vmatpush1.bf16.msra.mxu0 %v9781_v10  ;;  %7559 = vmatpush1.bf16.msra.mxu1 %v9784_v11  ;;  %v9873_v10 = vld [vmem:[%s12451_s27 + $0x864] ss:$16 sps:$4 sm:$0xff]   ;;  %v9876_v11 = vld [vmem:[%s12451_s27 + $0x86c] ss:$16 sps:$4 sm:$0xff]  }
 0x294   : > { %7027 = vmatprep.subr.bf16.mxu0 %v9789_v13  ;;  %7560 = vmatprep.subr.bf16.mxu1 %v9792_v14  ;;  %v9871_v13 = vld [vmem:[%s12451_s27 + $0x860] ss:$16 sps:$4 sm:$0xff]   ;;  %v9874_v14 = vld [vmem:[%s12451_s27 + $0x868] ss:$16 sps:$4 sm:$0xff]  }
 0x297   : > { %7028 = vmatpush1.bf16.msra.mxu0 %v9787_v15  ;;  %7561 = vmatpush1.bf16.msra.mxu1 %v9790_v16  ;;  %v9879_v15 = vld [vmem:[%s12451_s27 + $0x884] ss:$16 sps:$4 sm:$0xff]   ;;  %v9882_v16 = vld [vmem:[%s12451_s27 + $0x88c] ss:$16 sps:$4 sm:$0xff]  }
 0x298   : > { %7029 = vmatprep.subr.bf16.mxu0 %v9795_v17  ;;  %7562 = vmatprep.subr.bf16.mxu1 %v9798_v19  ;;  %v9877_v17 = vld [vmem:[%s12451_s27 + $0x880] ss:$16 sps:$4 sm:$0xff]   ;;  %v9880_v19 = vld [vmem:[%s12451_s27 + $0x888] ss:$16 sps:$4 sm:$0xff]  }
 0x29b   : > { %7030 = vmatpush1.bf16.msra.mxu0 %v9793_v20  ;;  %7563 = vmatpush1.bf16.msra.mxu1 %v9796_v22  ;;  %v9885_v20 = vld [vmem:[%s12451_s27 + $0x8a4] ss:$16 sps:$4 sm:$0xff]   ;;  %v9888_v22 = vld [vmem:[%s12451_s27 + $0x8ac] ss:$16 sps:$4 sm:$0xff]  }
 0x29c   : > { %7031 = vmatprep.subr.bf16.mxu0 %v9801_v23  ;;  %7564 = vmatprep.subr.bf16.mxu1 %v9804_v24  ;;  %v9883_v23 = vld [vmem:[%s12451_s27 + $0x8a0] ss:$16 sps:$4 sm:$0xff]   ;;  %v9886_v24 = vld [vmem:[%s12451_s27 + $0x8a8] ss:$16 sps:$4 sm:$0xff]  }
 0x29f   : > { %7032 = vmatpush1.bf16.msra.mxu0 %v9799_v25  ;;  %7565 = vmatpush1.bf16.msra.mxu1 %v9802_v26  ;;  %v9891_v25 = vld [vmem:[%s12451_s27 + $0x8c4] ss:$16 sps:$4 sm:$0xff]   ;;  %v9894_v26 = vld [vmem:[%s12451_s27 + $0x8cc] ss:$16 sps:$4 sm:$0xff]  }
 0x2a0   : > { %7033 = vmatprep.subr.bf16.mxu0 %v9807_v27  ;;  %7566 = vmatprep.subr.bf16.mxu1 %v9810_v28  ;;  %v9889_v27 = vld [vmem:[%s12451_s27 + $0x8c0] ss:$16 sps:$4 sm:$0xff]   ;;  %v9892_v28 = vld [vmem:[%s12451_s27 + $0x8c8] ss:$16 sps:$4 sm:$0xff]  }
 0x2a3   : > { %7034 = vmatpush1.bf16.msra.mxu0 %v9805_v29  ;;  %7567 = vmatpush1.bf16.msra.mxu1 %v9808_v30  ;;  %v9897_v29 = vld [vmem:[%s12451_s27 + $0x8e4] ss:$16 sps:$4 sm:$0xff]   ;;  %v9900_v30 = vld [vmem:[%s12451_s27 + $0x8ec] ss:$16 sps:$4 sm:$0xff]  }
 0x2a4   : > { %7035 = vmatprep.subr.bf16.mxu0 %v9813_v31  ;;  %7568 = vmatprep.subr.bf16.mxu1 %v9816_v32  ;;  %v9895_v31 = vld [vmem:[%s12451_s27 + $0x8e0] ss:$16 sps:$4 sm:$0xff]   ;;  %v9898_v32 = vld [vmem:[%s12451_s27 + $0x8e8] ss:$16 sps:$4 sm:$0xff]  }
 0x2a7   : > { %7036 = vmatpush1.bf16.msra.mxu0 %v9811_v33  ;;  %7569 = vmatpush1.bf16.msra.mxu1 %v9814_v34  ;;  %v9903_v33 = vld [vmem:[%s12451_s27 + $0x904] ss:$16 sps:$4 sm:$0xff]   ;;  %v9906_v34 = vld [vmem:[%s12451_s27 + $0x90c] ss:$16 sps:$4 sm:$0xff]  }
 0x2a8   : > { %7037 = vmatprep.subr.bf16.mxu0 %v9819_v35  ;;  %7570 = vmatprep.subr.bf16.mxu1 %v9822_v36  ;;  %v9901_v35 = vld [vmem:[%s12451_s27 + $0x900] ss:$16 sps:$4 sm:$0xff]   ;;  %v9904_v36 = vld [vmem:[%s12451_s27 + $0x908] ss:$16 sps:$4 sm:$0xff]  }
 0x2ab   : > { %7038 = vmatpush1.bf16.msra.mxu0 %v9817_v37  ;;  %7571 = vmatpush1.bf16.msra.mxu1 %v9820_v38  ;;  %v9909_v37 = vld [vmem:[%s12451_s27 + $0x924] ss:$16 sps:$4 sm:$0xff]   ;;  %v9912_v38 = vld [vmem:[%s12451_s27 + $0x92c] ss:$16 sps:$4 sm:$0xff]  }
 0x2ac   : > { %7039 = vmatprep.subr.bf16.mxu0 %v9825_v39  ;;  %7572 = vmatprep.subr.bf16.mxu1 %v9828_v40  ;;  %v9907_v39 = vld [vmem:[%s12451_s27 + $0x920] ss:$16 sps:$4 sm:$0xff]   ;;  %v9910_v40 = vld [vmem:[%s12451_s27 + $0x928] ss:$16 sps:$4 sm:$0xff]  }
 0x2af   : > { %7040 = vmatpush1.bf16.msra.mxu0 %v9823_v41  ;;  %7573 = vmatpush1.bf16.msra.mxu1 %v9826_v42  ;;  %v9915_v41 = vld [vmem:[%s12451_s27 + $0x944] ss:$16 sps:$4 sm:$0xff]   ;;  %v9918_v42 = vld [vmem:[%s12451_s27 + $0x94c] ss:$16 sps:$4 sm:$0xff]  }
 0x2b0   : > { %7041 = vmatprep.subr.bf16.mxu0 %v9831_v43  ;;  %7574 = vmatprep.subr.bf16.mxu1 %v9834_v44  ;;  %v9913_v43 = vld [vmem:[%s12451_s27 + $0x940] ss:$16 sps:$4 sm:$0xff]   ;;  %v9916_v44 = vld [vmem:[%s12451_s27 + $0x948] ss:$16 sps:$4 sm:$0xff]  }
 0x2b3   : > { %7042 = vmatpush1.bf16.msra.mxu0 %v9829_v45  ;;  %7575 = vmatpush1.bf16.msra.mxu1 %v9832_v47  ;;  %v9921_v45 = vld [vmem:[%s12451_s27 + $0x964] ss:$16 sps:$4 sm:$0xff]   ;;  %v9924_v47 = vld [vmem:[%s12451_s27 + $0x96c] ss:$16 sps:$4 sm:$0xff]  }
 0x2b4   : > { %7043 = vmatprep.subr.bf16.mxu0 %v9837_v49  ;;  %7576 = vmatprep.subr.bf16.mxu1 %v9840_v21  ;;  %v9919_v49 = vld [vmem:[%s12451_s27 + $0x960] ss:$16 sps:$4 sm:$0xff]   ;;  %v9922_v21 = vld [vmem:[%s12451_s27 + $0x968] ss:$16 sps:$4 sm:$0xff]  }
 0x2b7   : > { %7044 = vmatpush1.bf16.msra.mxu0 %v9835_v50  ;;  %7577 = vmatpush1.bf16.msra.mxu1 %v9838_v51  ;;  %v9927_v50 = vld [vmem:[%s12451_s27 + $0x984] ss:$16 sps:$4 sm:$0xff]   ;;  %v9930_v51 = vld [vmem:[%s12451_s27 + $0x98c] ss:$16 sps:$4 sm:$0xff]  }
 0x2b8   : > { %7045 = vmatprep.subr.bf16.mxu0 %v9843_v52  ;;  %7578 = vmatprep.subr.bf16.mxu1 %v9846_v53  ;;  %v9925_v52 = vld [vmem:[%s12451_s27 + $0x980] ss:$16 sps:$4 sm:$0xff]   ;;  %v9928_v53 = vld [vmem:[%s12451_s27 + $0x988] ss:$16 sps:$4 sm:$0xff]  }
 0x2bb   : > { %7046 = vmatpush1.bf16.msra.mxu0 %v9841_v55  ;;  %7579 = vmatpush1.bf16.msra.mxu1 %v9844_v56  ;;  %v9933_v55 = vld [vmem:[%s12451_s27 + $0x9a4] ss:$16 sps:$4 sm:$0xff]   ;;  %v9936_v56 = vld [vmem:[%s12451_s27 + $0x9ac] ss:$16 sps:$4 sm:$0xff]  }
 0x2bc   : > { %7047 = vmatprep.subr.bf16.mxu0 %v9849_v57  ;;  %7580 = vmatprep.subr.bf16.mxu1 %v9852_v59  ;;  %v9931_v57 = vld [vmem:[%s12451_s27 + $0x9a0] ss:$16 sps:$4 sm:$0xff]   ;;  %v9934_v59 = vld [vmem:[%s12451_s27 + $0x9a8] ss:$16 sps:$4 sm:$0xff]  }
 0x2bf   : > { %7048 = vmatpush1.bf16.msra.mxu0 %v9847_v60  ;;  %7581 = vmatpush1.bf16.msra.mxu1 %v9850_v61  ;;  %v9939_v60 = vld [vmem:[%s12451_s27 + $0x9c4] ss:$16 sps:$4 sm:$0xff]   ;;  %v9942_v61 = vld [vmem:[%s12451_s27 + $0x9cc] ss:$16 sps:$4 sm:$0xff]  }
 0x2c0   : > { %7058 = vmatprep.subr.bf16.mxu0 %v9855_v62  ;;  %7591 = vmatprep.subr.bf16.mxu1 %v9858_v63  ;;  %v9937_v62 = vld [vmem:[%s12451_s27 + $0x9c0] ss:$16 sps:$4 sm:$0xff]   ;;  %v9940_v63 = vld [vmem:[%s12451_s27 + $0x9c8] ss:$16 sps:$4 sm:$0xff]  }
 0x2c2   : > { %7050 = vmatmul.mubr.bf16.vlgmr.msra.gmra.mrb[0].mxu0 %v2754_v0  ;;  %7583 = vmatmul.mubr.bf16.vlgmr.msra.gmra.mrb[0].mxu1 %v2754_v0  ;;  %v9948_v0 = vld [vmem:[%s12451_s27 + $0x9ec] ss:$16 sps:$4 sm:$0xff]  }
 0x2c3   : > { %7059 = vmatpush1.bf16.msra.mxu0 %v9853_v1  ;;  %7592 = vmatpush1.bf16.msra.mxu1 %v9856_v2  ;;  %v9943_v1 = vld [vmem:[%s12451_s27 + $0x9e0] ss:$16 sps:$4 sm:$0xff]   ;;  %v9946_v2 = vld [vmem:[%s12451_s27 + $0x9e8] ss:$16 sps:$4 sm:$0xff]  }
 0x2c4   : > { %7060 = vmatprep.subr.bf16.mxu0 %v9861_v58  ;;  %7593 = vmatprep.subr.bf16.mxu1 %v9864_v3  ;;  %v9951_v58 = vld [vmem:[%s12451_s27 + $0xa04] ss:$16 sps:$4 sm:$0xff]   ;;  %v9954_v3 = vld [vmem:[%s12451_s27 + $0xa0c] ss:$16 sps:$4 sm:$0xff]  }
 0x2c5   : > { %7090 = vmatprep.mubr.bf16.mxu0 %v12762_v4  ;;  %7623 = vmatprep.mubr.bf16.mxu1 %v12762_v4 }
 0x2c7   : > { %7061 = vmatpush1.bf16.msra.mxu0 %v9859_v46  ;;  %7594 = vmatpush1.bf16.msra.mxu1 %v9862_v5  ;;  %v12828_v46 = vrot.slane %v12743_v54, %v12501_v18  ;;  %v9949_v5 = vld [vmem:[%s12451_s27 + $0xa00] ss:$16 sps:$4 sm:$0xff]  }
 0x2c8   : > { %7062 = vmatprep.subr.bf16.mxu0 %v9867_v6  ;;  %7595 = vmatprep.subr.bf16.mxu1 %v9870_v7  ;;  %v9952_v6 = vld [vmem:[%s12451_s27 + $0xa08] ss:$16 sps:$4 sm:$0xff]   ;;  %v9957_v7 = vld [vmem:[%s12451_s27 + $0xa24] ss:$16 sps:$4 sm:$0xff]   ;;  %v9955_v54 = vld [vmem:[%s12451_s27 + $0xa20] ss:$16 sps:$4 sm:$0xff]  }
 0x2cb   : > { %7063 = vmatpush1.bf16.msra.mxu0 %v9865_v8  ;;  %7596 = vmatpush1.bf16.msra.mxu1 %v9868_v9  ;;  %v9960_v8 = vld [vmem:[%s12451_s27 + $0xa2c] ss:$16 sps:$4 sm:$0xff]   ;;  %v2804_v9 = vcombine.high %v12762_v4, %v12762_v4  ;;  %v9961_v4 = vld [vmem:[%s12451_s27 + $0xa40] ss:$16 sps:$4 sm:$0xff]  }
 0x2cc   : > { %7064 = vmatprep.subr.bf16.mxu0 %v9873_v10  ;;  %7597 = vmatprep.subr.bf16.mxu1 %v9876_v11  ;;  %v9958_v10 = vld [vmem:[%s12451_s27 + $0xa28] ss:$16 sps:$4 sm:$0xff]   ;;  %v9963_v11 = vld [vmem:[%s12451_s27 + $0xa44] ss:$16 sps:$4 sm:$0xff]  }
 0x2cf   : > { %7065 = vmatpush1.bf16.msra.mxu0 %v9871_v13  ;;  %7598 = vmatpush1.bf16.msra.mxu1 %v9874_v14  ;;  %v9966_v13 = vld [vmem:[%s12451_s27 + $0xa4c] ss:$16 sps:$4 sm:$0xff]   ;;  %v9964_v14 = vld [vmem:[%s12451_s27 + $0xa48] ss:$16 sps:$4 sm:$0xff]  }
 0x2d0   : > { %7066 = vmatprep.subr.bf16.mxu0 %v9879_v15  ;;  %7599 = vmatprep.subr.bf16.mxu1 %v9882_v16  ;;  %v9969_v15 = vld [vmem:[%s12451_s27 + $0xa64] ss:$16 sps:$4 sm:$0xff]   ;;  %v9972_v16 = vld [vmem:[%s12451_s27 + $0xa6c] ss:$16 sps:$4 sm:$0xff]  }
 0x2d3   : > { %7067 = vmatpush1.bf16.msra.mxu0 %v9877_v17  ;;  %7600 = vmatpush1.bf16.msra.mxu1 %v9880_v19  ;;  %v9967_v17 = vld [vmem:[%s12451_s27 + $0xa60] ss:$16 sps:$4 sm:$0xff]   ;;  %v9970_v19 = vld [vmem:[%s12451_s27 + $0xa68] ss:$16 sps:$4 sm:$0xff]  }
 0x2d4   : > { %7068 = vmatprep.subr.bf16.mxu0 %v9885_v20  ;;  %7601 = vmatprep.subr.bf16.mxu1 %v9888_v22  ;;  %v9975_v20 = vld [vmem:[%s12451_s27 + $0xa84] ss:$16 sps:$4 sm:$0xff]   ;;  %v9978_v22 = vld [vmem:[%s12451_s27 + $0xa8c] ss:$16 sps:$4 sm:$0xff]  }
 0x2d7   : > { %7069 = vmatpush1.bf16.msra.mxu0 %v9883_v23  ;;  %7602 = vmatpush1.bf16.msra.mxu1 %v9886_v24  ;;  %v9973_v23 = vld [vmem:[%s12451_s27 + $0xa80] ss:$16 sps:$4 sm:$0xff]   ;;  %v9976_v24 = vld [vmem:[%s12451_s27 + $0xa88] ss:$16 sps:$4 sm:$0xff]  }
 0x2d8   : > { %7070 = vmatprep.subr.bf16.mxu0 %v9891_v25  ;;  %7603 = vmatprep.subr.bf16.mxu1 %v9894_v26  ;;  %v9981_v25 = vld [vmem:[%s12451_s27 + $0xaa4] ss:$16 sps:$4 sm:$0xff]   ;;  %v9984_v26 = vld [vmem:[%s12451_s27 + $0xaac] ss:$16 sps:$4 sm:$0xff]  }
 0x2db   : > { %7071 = vmatpush1.bf16.msra.mxu0 %v9889_v27  ;;  %7604 = vmatpush1.bf16.msra.mxu1 %v9892_v28  ;;  %v9979_v27 = vld [vmem:[%s12451_s27 + $0xaa0] ss:$16 sps:$4 sm:$0xff]   ;;  %v9982_v28 = vld [vmem:[%s12451_s27 + $0xaa8] ss:$16 sps:$4 sm:$0xff]  }
 0x2dc   : > { %7072 = vmatprep.subr.bf16.mxu0 %v9897_v29  ;;  %7605 = vmatprep.subr.bf16.mxu1 %v9900_v30  ;;  %v9987_v29 = vld [vmem:[%s12451_s27 + $0xac4] ss:$16 sps:$4 sm:$0xff]   ;;  %v9990_v30 = vld [vmem:[%s12451_s27 + $0xacc] ss:$16 sps:$4 sm:$0xff]  }
 0x2df   : > { %7073 = vmatpush1.bf16.msra.mxu0 %v9895_v31  ;;  %7606 = vmatpush1.bf16.msra.mxu1 %v9898_v32  ;;  %v9985_v31 = vld [vmem:[%s12451_s27 + $0xac0] ss:$16 sps:$4 sm:$0xff]   ;;  %v9988_v32 = vld [vmem:[%s12451_s27 + $0xac8] ss:$16 sps:$4 sm:$0xff]  }
 0x2e0   : > { %7074 = vmatprep.subr.bf16.mxu0 %v9903_v33  ;;  %7607 = vmatprep.subr.bf16.mxu1 %v9906_v34  ;;  %v9993_v33 = vld [vmem:[%s12451_s27 + $0xae4] ss:$16 sps:$4 sm:$0xff]   ;;  %v9996_v34 = vld [vmem:[%s12451_s27 + $0xaec] ss:$16 sps:$4 sm:$0xff]  }
 0x2e3   : > { %7075 = vmatpush1.bf16.msra.mxu0 %v9901_v35  ;;  %7608 = vmatpush1.bf16.msra.mxu1 %v9904_v36  ;;  %v9991_v35 = vld [vmem:[%s12451_s27 + $0xae0] ss:$16 sps:$4 sm:$0xff]   ;;  %v9994_v36 = vld [vmem:[%s12451_s27 + $0xae8] ss:$16 sps:$4 sm:$0xff]  }
 0x2e4   : > { %7076 = vmatprep.subr.bf16.mxu0 %v9909_v37  ;;  %7609 = vmatprep.subr.bf16.mxu1 %v9912_v38  ;;  %v9999_v37 = vld [vmem:[%s12451_s27 + $0xb04] ss:$16 sps:$4 sm:$0xff]   ;;  %v10002_v38 = vld [vmem:[%s12451_s27 + $0xb0c] ss:$16 sps:$4 sm:$0xff]  }
 0x2e7   : > { %7077 = vmatpush1.bf16.msra.mxu0 %v9907_v39  ;;  %7610 = vmatpush1.bf16.msra.mxu1 %v9910_v40  ;;  %v9997_v39 = vld [vmem:[%s12451_s27 + $0xb00] ss:$16 sps:$4 sm:$0xff]   ;;  %v10000_v40 = vld [vmem:[%s12451_s27 + $0xb08] ss:$16 sps:$4 sm:$0xff]  }
 0x2e8   : > { %7078 = vmatprep.subr.bf16.mxu0 %v9915_v41  ;;  %7611 = vmatprep.subr.bf16.mxu1 %v9918_v42  ;;  %v10005_v41 = vld [vmem:[%s12451_s27 + $0xb24] ss:$16 sps:$4 sm:$0xff]   ;;  %v10008_v42 = vld [vmem:[%s12451_s27 + $0xb2c] ss:$16 sps:$4 sm:$0xff]  }
 0x2eb   : > { %7079 = vmatpush1.bf16.msra.mxu0 %v9913_v43  ;;  %7612 = vmatpush1.bf16.msra.mxu1 %v9916_v44  ;;  %v10003_v43 = vld [vmem:[%s12451_s27 + $0xb20] ss:$16 sps:$4 sm:$0xff]   ;;  %v10006_v44 = vld [vmem:[%s12451_s27 + $0xb28] ss:$16 sps:$4 sm:$0xff]  }
 0x2ec   : > { %7080 = vmatprep.subr.bf16.mxu0 %v9921_v45  ;;  %7613 = vmatprep.subr.bf16.mxu1 %v9924_v47  ;;  %v10011_v45 = vld [vmem:[%s12451_s27 + $0xb44] ss:$16 sps:$4 sm:$0xff]   ;;  %v10014_v47 = vld [vmem:[%s12451_s27 + $0xb4c] ss:$16 sps:$4 sm:$0xff]  }
 0x2ef   : > { %7081 = vmatpush1.bf16.msra.mxu0 %v9919_v49  ;;  %7614 = vmatpush1.bf16.msra.mxu1 %v9922_v21  ;;  %v10009_v49 = vld [vmem:[%s12451_s27 + $0xb40] ss:$16 sps:$4 sm:$0xff]   ;;  %v10012_v21 = vld [vmem:[%s12451_s27 + $0xb48] ss:$16 sps:$4 sm:$0xff]  }
 0x2f0   : > { %7082 = vmatprep.subr.bf16.mxu0 %v9927_v50  ;;  %7615 = vmatprep.subr.bf16.mxu1 %v9930_v51  ;;  %v10017_v50 = vld [vmem:[%s12451_s27 + $0xb64] ss:$16 sps:$4 sm:$0xff]   ;;  %v10020_v51 = vld [vmem:[%s12451_s27 + $0xb6c] ss:$16 sps:$4 sm:$0xff]  }
 0x2f3   : > { %7083 = vmatpush1.bf16.msra.mxu0 %v9925_v52  ;;  %7616 = vmatpush1.bf16.msra.mxu1 %v9928_v53  ;;  %v10015_v52 = vld [vmem:[%s12451_s27 + $0xb60] ss:$16 sps:$4 sm:$0xff]   ;;  %v10018_v53 = vld [vmem:[%s12451_s27 + $0xb68] ss:$16 sps:$4 sm:$0xff]  }
 0x2f4   : > { %7084 = vmatprep.subr.bf16.mxu0 %v9933_v55  ;;  %7617 = vmatprep.subr.bf16.mxu1 %v9936_v56  ;;  %v10023_v55 = vld [vmem:[%s12451_s27 + $0xb84] ss:$16 sps:$4 sm:$0xff]   ;;  %v10026_v56 = vld [vmem:[%s12451_s27 + $0xb8c] ss:$16 sps:$4 sm:$0xff]  }
 0x2f7   : > { %7085 = vmatpush1.bf16.msra.mxu0 %v9931_v57  ;;  %7618 = vmatpush1.bf16.msra.mxu1 %v9934_v59  ;;  %v10021_v57 = vld [vmem:[%s12451_s27 + $0xb80] ss:$16 sps:$4 sm:$0xff]   ;;  %v10024_v59 = vld [vmem:[%s12451_s27 + $0xb88] ss:$16 sps:$4 sm:$0xff]  }
 0x2f8   : > { %7086 = vmatprep.subr.bf16.mxu0 %v9939_v60  ;;  %7619 = vmatprep.subr.bf16.mxu1 %v9942_v61  ;;  %v10029_v60 = vld [vmem:[%s12451_s27 + $0xba4] ss:$16 sps:$4 sm:$0xff]   ;;  %v10032_v61 = vld [vmem:[%s12451_s27 + $0xbac] ss:$16 sps:$4 sm:$0xff]  }
 0x2fb   : > { %7087 = vmatpush1.bf16.msra.mxu0 %v9937_v62  ;;  %7620 = vmatpush1.bf16.msra.mxu1 %v9940_v63  ;;  %v10027_v62 = vld [vmem:[%s12451_s27 + $0xba0] ss:$16 sps:$4 sm:$0xff]   ;;  %v10030_v63 = vld [vmem:[%s12451_s27 + $0xba8] ss:$16 sps:$4 sm:$0xff]  }
 0x2fc   : > { %7088 = vmatprep.subr.bf16.mxu0 %v9945_v48  ;;  %7621 = vmatprep.subr.bf16.mxu1 %v9948_v0  ;;  %v10035_v48 = vld [vmem:[%s12451_s27 + $0xbc4] ss:$16 sps:$4 sm:$0xff]   ;;  %v10038_v0 = vld [vmem:[%s12451_s27 + $0xbcc] ss:$16 sps:$4 sm:$0xff]  }
 0x2ff   : > { %7089 = vmatpush1.bf16.msra.mxu0 %v9943_v1  ;;  %7622 = vmatpush1.bf16.msra.mxu1 %v9946_v2  ;;  %v10671_v1 = vld [vmem:[%s12433_s30 + $0x8] sm:$0xff] }
 0x300   : > { %7099 = vmatprep.subr.bf16.mxu0 %v9951_v58  ;;  %7632 = vmatprep.subr.bf16.mxu1 %v9954_v3  ;;  %v2757_v2 = vcombine.high %v10671_v1, %v10671_v1  ;;  %v10033_v58 = vld [vmem:[%s12451_s27 + $0xbc0] ss:$16 sps:$4 sm:$0xff]   ;;  %v10036_v3 = vld [vmem:[%s12451_s27 + $0xbc8] ss:$16 sps:$4 sm:$0xff]  }
 0x301   : > { %v10117_v1 = vld [vmem:[%s12451_s27 + $0xd80] ss:$16 sps:$4 sm:$0xff]  }
 0x302   : > { %7091 = vmatmul.mubr.bf16.vlgmr.msra.gmra.mrb[0].mxu0 %v12828_v46  ;;  %7624 = vmatmul.mubr.bf16.vlgmr.msra.gmra.mrb[0].mxu1 %v12828_v46 }
 0x303   : > { %7100 = vmatpush1.bf16.msra.mxu0 %v9949_v5  ;;  %7633 = vmatpush1.bf16.msra.mxu1 %v9952_v6  ;;  %v10041_v5 = vld [vmem:[%s12451_s27 + $0xbe4] ss:$16 sps:$4 sm:$0xff]   ;;  %v10044_v6 = vld [vmem:[%s12451_s27 + $0xbec] ss:$16 sps:$4 sm:$0xff]  }
 0x304   : > { %7101 = vmatprep.subr.bf16.mxu0 %v9957_v7  ;;  %7634 = vmatprep.subr.bf16.mxu1 %v9960_v8  ;;  %v12896_v7 = vrot.slane %v2757_v2, %v12501_v18  ;;  %v10039_v8 = vld [vmem:[%s12451_s27 + $0xbe0] ss:$16 sps:$4 sm:$0xff]   ;;  %v10120_v2 = vld [vmem:[%s12451_s27 + $0xd88] ss:$16 sps:$4 sm:$0xff]  }
 0x305   : > { %7131 = vmatprep.mubr.bf16.mxu0 %v2804_v9  ;;  %7664 = vmatprep.mubr.bf16.mxu1 %v2804_v9  ;;  %v10042_v9 = vld [vmem:[%s12451_s27 + $0xbe8] ss:$16 sps:$4 sm:$0xff]  }
 0x307   : > { %7102 = vmatpush1.bf16.msra.mxu0 %v9955_v54  ;;  %7635 = vmatpush1.bf16.msra.mxu1 %v9958_v10  ;;  %v10047_v54 = vld [vmem:[%s12451_s27 + $0xc04] ss:$16 sps:$4 sm:$0xff]   ;;  %v10050_v10 = vld [vmem:[%s12451_s27 + $0xc0c] ss:$16 sps:$4 sm:$0xff]  }
 0x308   : > { %7103 = vmatprep.subr.bf16.mxu0 %v9963_v11  ;;  %7636 = vmatprep.subr.bf16.mxu1 %v9966_v13  ;;  %v2773_v11 = vcombine.high %v12896_v7, %v12896_v7  ;;  %v2802_v13 = vcombine.high %v12828_v46, %v12828_v46  ;;  %v10051_v46 = vld [vmem:[%s12451_s27 + $0xc20] ss:$16 sps:$4 sm:$0xff]  }
 0x30b   : > { %7104 = vmatpush1.bf16.msra.mxu0 %v9961_v4  ;;  %7637 = vmatpush1.bf16.msra.mxu1 %v9964_v14  ;;  %v10045_v4 = vld [vmem:[%s12451_s27 + $0xc00] ss:$16 sps:$4 sm:$0xff]   ;;  %v10048_v14 = vld [vmem:[%s12451_s27 + $0xc08] ss:$16 sps:$4 sm:$0xff]  }
 0x30c   : > { %7105 = vmatprep.subr.bf16.mxu0 %v9969_v15  ;;  %7638 = vmatprep.subr.bf16.mxu1 %v9972_v16  ;;  %v10053_v15 = vld [vmem:[%s12451_s27 + $0xc24] ss:$16 sps:$4 sm:$0xff]   ;;  %v10056_v16 = vld [vmem:[%s12451_s27 + $0xc2c] ss:$16 sps:$4 sm:$0xff]  }
 0x30f   : > { %7106 = vmatpush1.bf16.msra.mxu0 %v9967_v17  ;;  %7639 = vmatpush1.bf16.msra.mxu1 %v9970_v19  ;;  %v12911_v17 = vrot.slane %v2773_v11, %v12501_v18  ;;  %v10054_v19 = vld [vmem:[%s12451_s27 + $0xc28] ss:$16 sps:$4 sm:$0xff]   ;;  %v10137_v11 = vld [vmem:[%s12451_s27 + $0xde4] ss:$16 sps:$4 sm:$0xff]  }
 0x310   : > { %7107 = vmatprep.subr.bf16.mxu0 %v9975_v20  ;;  %7640 = vmatprep.subr.bf16.mxu1 %v9978_v22  ;;  %v10059_v20 = vld [vmem:[%s12451_s27 + $0xc44] ss:$16 sps:$4 sm:$0xff]   ;;  %v10062_v22 = vld [vmem:[%s12451_s27 + $0xc4c] ss:$16 sps:$4 sm:$0xff]  }
 0x313   : > { %7108 = vmatpush1.bf16.msra.mxu0 %v9973_v23  ;;  %7641 = vmatpush1.bf16.msra.mxu1 %v9976_v24  ;;  %v10057_v23 = vld [vmem:[%s12451_s27 + $0xc40] ss:$16 sps:$4 sm:$0xff]   ;;  %v10060_v24 = vld [vmem:[%s12451_s27 + $0xc48] ss:$16 sps:$4 sm:$0xff]  }
 0x314   : > { %7109 = vmatprep.subr.bf16.mxu0 %v9981_v25  ;;  %7642 = vmatprep.subr.bf16.mxu1 %v9984_v26  ;;  %v10065_v25 = vld [vmem:[%s12451_s27 + $0xc64] ss:$16 sps:$4 sm:$0xff]   ;;  %v10068_v26 = vld [vmem:[%s12451_s27 + $0xc6c] ss:$16 sps:$4 sm:$0xff]  }
 0x317   : > { %7110 = vmatpush1.bf16.msra.mxu0 %v9979_v27  ;;  %7643 = vmatpush1.bf16.msra.mxu1 %v9982_v28  ;;  %v10063_v27 = vld [vmem:[%s12451_s27 + $0xc60] ss:$16 sps:$4 sm:$0xff]   ;;  %v10066_v28 = vld [vmem:[%s12451_s27 + $0xc68] ss:$16 sps:$4 sm:$0xff]  }
 0x318   : > { %7111 = vmatprep.subr.bf16.mxu0 %v9987_v29  ;;  %7644 = vmatprep.subr.bf16.mxu1 %v9990_v30  ;;  %v10071_v29 = vld [vmem:[%s12451_s27 + $0xc84] ss:$16 sps:$4 sm:$0xff]   ;;  %v10074_v30 = vld [vmem:[%s12451_s27 + $0xc8c] ss:$16 sps:$4 sm:$0xff]  }
 0x31b   : > { %7112 = vmatpush1.bf16.msra.mxu0 %v9985_v31  ;;  %7645 = vmatpush1.bf16.msra.mxu1 %v9988_v32  ;;  %v10069_v31 = vld [vmem:[%s12451_s27 + $0xc80] ss:$16 sps:$4 sm:$0xff]   ;;  %v10072_v32 = vld [vmem:[%s12451_s27 + $0xc88] ss:$16 sps:$4 sm:$0xff]  }
 0x31c   : > { %7113 = vmatprep.subr.bf16.mxu0 %v9993_v33  ;;  %7646 = vmatprep.subr.bf16.mxu1 %v9996_v34  ;;  %v10077_v33 = vld [vmem:[%s12451_s27 + $0xca4] ss:$16 sps:$4 sm:$0xff]   ;;  %v10080_v34 = vld [vmem:[%s12451_s27 + $0xcac] ss:$16 sps:$4 sm:$0xff]  }
 0x31f   : > { %7114 = vmatpush1.bf16.msra.mxu0 %v9991_v35  ;;  %7647 = vmatpush1.bf16.msra.mxu1 %v9994_v36  ;;  %v10075_v35 = vld [vmem:[%s12451_s27 + $0xca0] ss:$16 sps:$4 sm:$0xff]   ;;  %v10078_v36 = vld [vmem:[%s12451_s27 + $0xca8] ss:$16 sps:$4 sm:$0xff]  }
 0x320   : > { %7115 = vmatprep.subr.bf16.mxu0 %v9999_v37  ;;  %7648 = vmatprep.subr.bf16.mxu1 %v10002_v38  ;;  %v10083_v37 = vld [vmem:[%s12451_s27 + $0xcc4] ss:$16 sps:$4 sm:$0xff]   ;;  %v10086_v38 = vld [vmem:[%s12451_s27 + $0xccc] ss:$16 sps:$4 sm:$0xff]  }
 0x323   : > { %7116 = vmatpush1.bf16.msra.mxu0 %v9997_v39  ;;  %7649 = vmatpush1.bf16.msra.mxu1 %v10000_v40  ;;  %v10081_v39 = vld [vmem:[%s12451_s27 + $0xcc0] ss:$16 sps:$4 sm:$0xff]   ;;  %v10084_v40 = vld [vmem:[%s12451_s27 + $0xcc8] ss:$16 sps:$4 sm:$0xff]  }
 0x324   : > { %7117 = vmatprep.subr.bf16.mxu0 %v10005_v41  ;;  %7650 = vmatprep.subr.bf16.mxu1 %v10008_v42  ;;  %v10089_v41 = vld [vmem:[%s12451_s27 + $0xce4] ss:$16 sps:$4 sm:$0xff]   ;;  %v10092_v42 = vld [vmem:[%s12451_s27 + $0xcec] ss:$16 sps:$4 sm:$0xff]  }
 0x327   : > { %7118 = vmatpush1.bf16.msra.mxu0 %v10003_v43  ;;  %7651 = vmatpush1.bf16.msra.mxu1 %v10006_v44  ;;  %v10087_v43 = vld [vmem:[%s12451_s27 + $0xce0] ss:$16 sps:$4 sm:$0xff]   ;;  %v10090_v44 = vld [vmem:[%s12451_s27 + $0xce8] ss:$16 sps:$4 sm:$0xff]  }
 0x328   : > { %7119 = vmatprep.subr.bf16.mxu0 %v10011_v45  ;;  %7652 = vmatprep.subr.bf16.mxu1 %v10014_v47  ;;  %v10095_v45 = vld [vmem:[%s12451_s27 + $0xd04] ss:$16 sps:$4 sm:$0xff]   ;;  %v10098_v47 = vld [vmem:[%s12451_s27 + $0xd0c] ss:$16 sps:$4 sm:$0xff]  }
 0x32b   : > { %7120 = vmatpush1.bf16.msra.mxu0 %v10009_v49  ;;  %7653 = vmatpush1.bf16.msra.mxu1 %v10012_v21  ;;  %v10093_v49 = vld [vmem:[%s12451_s27 + $0xd00] ss:$16 sps:$4 sm:$0xff]   ;;  %v10096_v21 = vld [vmem:[%s12451_s27 + $0xd08] ss:$16 sps:$4 sm:$0xff]  }
 0x32c   : > { %7121 = vmatprep.subr.bf16.mxu0 %v10017_v50  ;;  %7654 = vmatprep.subr.bf16.mxu1 %v10020_v51  ;;  %v10101_v50 = vld [vmem:[%s12451_s27 + $0xd24] ss:$16 sps:$4 sm:$0xff]   ;;  %v10104_v51 = vld [vmem:[%s12451_s27 + $0xd2c] ss:$16 sps:$4 sm:$0xff]  }
 0x32f   : > { %7122 = vmatpush1.bf16.msra.mxu0 %v10015_v52  ;;  %7655 = vmatpush1.bf16.msra.mxu1 %v10018_v53  ;;  %v10099_v52 = vld [vmem:[%s12451_s27 + $0xd20] ss:$16 sps:$4 sm:$0xff]   ;;  %v10102_v53 = vld [vmem:[%s12451_s27 + $0xd28] ss:$16 sps:$4 sm:$0xff]  }
 0x330   : > { %7123 = vmatprep.subr.bf16.mxu0 %v10023_v55  ;;  %7656 = vmatprep.subr.bf16.mxu1 %v10026_v56  ;;  %v10107_v55 = vld [vmem:[%s12451_s27 + $0xd44] ss:$16 sps:$4 sm:$0xff]   ;;  %v10110_v56 = vld [vmem:[%s12451_s27 + $0xd4c] ss:$16 sps:$4 sm:$0xff]  }
 0x333   : > { %7124 = vmatpush1.bf16.msra.mxu0 %v10021_v57  ;;  %7657 = vmatpush1.bf16.msra.mxu1 %v10024_v59  ;;  %v10105_v57 = vld [vmem:[%s12451_s27 + $0xd40] ss:$16 sps:$4 sm:$0xff]   ;;  %v10108_v59 = vld [vmem:[%s12451_s27 + $0xd48] ss:$16 sps:$4 sm:$0xff]  }
 0x334   : > { %7125 = vmatprep.subr.bf16.mxu0 %v10029_v60  ;;  %7658 = vmatprep.subr.bf16.mxu1 %v10032_v61  ;;  %v10113_v60 = vld [vmem:[%s12451_s27 + $0xd64] ss:$16 sps:$4 sm:$0xff]   ;;  %v10116_v61 = vld [vmem:[%s12451_s27 + $0xd6c] ss:$16 sps:$4 sm:$0xff]  }
 0x337   : > { %7126 = vmatpush1.bf16.msra.mxu0 %v10027_v62  ;;  %7659 = vmatpush1.bf16.msra.mxu1 %v10030_v63  ;;  %v10111_v62 = vld [vmem:[%s12451_s27 + $0xd60] ss:$16 sps:$4 sm:$0xff]   ;;  %v10114_v63 = vld [vmem:[%s12451_s27 + $0xd68] ss:$16 sps:$4 sm:$0xff]  }
 0x338   : > { %7127 = vmatprep.subr.bf16.mxu0 %v10035_v48  ;;  %7660 = vmatprep.subr.bf16.mxu1 %v10038_v0  ;;  %v10119_v48 = vld [vmem:[%s12451_s27 + $0xd84] ss:$16 sps:$4 sm:$0xff]   ;;  %v10122_v0 = vld [vmem:[%s12451_s27 + $0xd8c] ss:$16 sps:$4 sm:$0xff]  }
 0x33b   : > { %7128 = vmatpush1.bf16.msra.mxu0 %v10033_v58  ;;  %7661 = vmatpush1.bf16.msra.mxu1 %v10036_v3  ;;  %v10125_v58 = vld [vmem:[%s12451_s27 + $0xda4] ss:$16 sps:$4 sm:$0xff]   ;;  %v10128_v3 = vld [vmem:[%s12451_s27 + $0xdac] ss:$16 sps:$4 sm:$0xff]  }
 0x33c   : > { %7129 = vmatprep.subr.bf16.mxu0 %v10041_v5  ;;  %7662 = vmatprep.subr.bf16.mxu1 %v10044_v6  ;;  %v10123_v5 = vld [vmem:[%s12451_s27 + $0xda0] ss:$16 sps:$4 sm:$0xff]   ;;  %v10126_v6 = vld [vmem:[%s12451_s27 + $0xda8] ss:$16 sps:$4 sm:$0xff]  }
 0x33f   : > { %7130 = vmatpush1.bf16.msra.mxu0 %v10039_v8  ;;  %7663 = vmatpush1.bf16.msra.mxu1 %v10042_v9  ;;  %v10131_v8 = vld [vmem:[%s12451_s27 + $0xdc4] ss:$16 sps:$4 sm:$0xff]   ;;  %v10134_v9 = vld [vmem:[%s12451_s27 + $0xdcc] ss:$16 sps:$4 sm:$0xff]  }
 0x340   : > { %7140 = vmatprep.subr.bf16.mxu0 %v10047_v54  ;;  %7673 = vmatprep.subr.bf16.mxu1 %v10050_v10  ;;  %v10129_v54 = vld [vmem:[%s12451_s27 + $0xdc0] ss:$16 sps:$4 sm:$0xff]   ;;  %v10132_v10 = vld [vmem:[%s12451_s27 + $0xdc8] ss:$16 sps:$4 sm:$0xff]  }
 0x342   : > { %7132 = vmatmul.mubr.bf16.vlgmr.msra.gmra.mrb[0].mxu0 %v2802_v13  ;;  %7665 = vmatmul.mubr.bf16.vlgmr.msra.gmra.mrb[0].mxu1 %v2802_v13  ;;  %v10140_v13 = vld [vmem:[%s12451_s27 + $0xdec] ss:$16 sps:$4 sm:$0xff]  }
 0x343   : > { %7141 = vmatpush1.bf16.msra.mxu0 %v10045_v4  ;;  %7674 = vmatpush1.bf16.msra.mxu1 %v10048_v14  ;;  %v10135_v4 = vld [vmem:[%s12451_s27 + $0xde0] ss:$16 sps:$4 sm:$0xff]   ;;  %v10138_v14 = vld [vmem:[%s12451_s27 + $0xde8] ss:$16 sps:$4 sm:$0xff]  }
 0x344   : > { %7142 = vmatprep.subr.bf16.mxu0 %v10053_v15  ;;  %7675 = vmatprep.subr.bf16.mxu1 %v10056_v16  ;;  %v10144_v15 = vld [vmem:[%s12451_s27 + $0xe04] ss:$16 sps:$4 sm:$0xff]   ;;  %v10147_v16 = vld [vmem:[%s12451_s27 + $0xe0c] ss:$16 sps:$4 sm:$0xff]  }
 0x345   : > { %7172 = vmatprep.mubr.bf16.mxu0 %v12911_v17  ;;  %7705 = vmatprep.mubr.bf16.mxu1 %v12911_v17 }
 0x347   : > { %7143 = vmatpush1.bf16.msra.mxu0 %v10051_v46  ;;  %7676 = vmatpush1.bf16.msra.mxu1 %v10054_v19  ;;  %v12977_v46 = vrot.slane %v12896_v7, %v12501_v18  ;;  %v10142_v19 = vld [vmem:[%s12451_s27 + $0xe00] ss:$16 sps:$4 sm:$0xff]  }
 0x348   : > { %7144 = vmatprep.subr.bf16.mxu0 %v10059_v20  ;;  %7677 = vmatprep.subr.bf16.mxu1 %v10062_v22  ;;  %v10145_v20 = vld [vmem:[%s12451_s27 + $0xe08] ss:$16 sps:$4 sm:$0xff]   ;;  %v10150_v22 = vld [vmem:[%s12451_s27 + $0xe24] ss:$16 sps:$4 sm:$0xff]   ;;  %v10148_v7 = vld [vmem:[%s12451_s27 + $0xe20] ss:$16 sps:$4 sm:$0xff]  }
 0x34b   : > { %7145 = vmatpush1.bf16.msra.mxu0 %v10057_v23  ;;  %7678 = vmatpush1.bf16.msra.mxu1 %v10060_v24  ;;  %v10153_v23 = vld [vmem:[%s12451_s27 + $0xe2c] ss:$16 sps:$4 sm:$0xff]   ;;  %v2805_v24 = vcombine.high %v12911_v17, %v12911_v17  ;;  %v10154_v17 = vld [vmem:[%s12451_s27 + $0xe40] ss:$16 sps:$4 sm:$0xff]  }
 0x34c   : > { %7146 = vmatprep.subr.bf16.mxu0 %v10065_v25  ;;  %7679 = vmatprep.subr.bf16.mxu1 %v10068_v26  ;;  %v10151_v25 = vld [vmem:[%s12451_s27 + $0xe28] ss:$16 sps:$4 sm:$0xff]   ;;  %v10156_v26 = vld [vmem:[%s12451_s27 + $0xe44] ss:$16 sps:$4 sm:$0xff]  }
 0x34f   : > { %7147 = vmatpush1.bf16.msra.mxu0 %v10063_v27  ;;  %7680 = vmatpush1.bf16.msra.mxu1 %v10066_v28  ;;  %v10159_v27 = vld [vmem:[%s12451_s27 + $0xe4c] ss:$16 sps:$4 sm:$0xff]   ;;  %v10157_v28 = vld [vmem:[%s12451_s27 + $0xe48] ss:$16 sps:$4 sm:$0xff]  }
 0x350   : > { %7148 = vmatprep.subr.bf16.mxu0 %v10071_v29  ;;  %7681 = vmatprep.subr.bf16.mxu1 %v10074_v30  ;;  %v10162_v29 = vld [vmem:[%s12451_s27 + $0xe64] ss:$16 sps:$4 sm:$0xff]   ;;  %v10165_v30 = vld [vmem:[%s12451_s27 + $0xe6c] ss:$16 sps:$4 sm:$0xff]  }
 0x353   : > { %7149 = vmatpush1.bf16.msra.mxu0 %v10069_v31  ;;  %7682 = vmatpush1.bf16.msra.mxu1 %v10072_v32  ;;  %v10160_v31 = vld [vmem:[%s12451_s27 + $0xe60] ss:$16 sps:$4 sm:$0xff]   ;;  %v10163_v32 = vld [vmem:[%s12451_s27 + $0xe68] ss:$16 sps:$4 sm:$0xff]  }
 0x354   : > { %7150 = vmatprep.subr.bf16.mxu0 %v10077_v33  ;;  %7683 = vmatprep.subr.bf16.mxu1 %v10080_v34  ;;  %v10168_v33 = vld [vmem:[%s12451_s27 + $0xe84] ss:$16 sps:$4 sm:$0xff]   ;;  %v10171_v34 = vld [vmem:[%s12451_s27 + $0xe8c] ss:$16 sps:$4 sm:$0xff]  }
 0x357   : > { %7151 = vmatpush1.bf16.msra.mxu0 %v10075_v35  ;;  %7684 = vmatpush1.bf16.msra.mxu1 %v10078_v36  ;;  %v10166_v35 = vld [vmem:[%s12451_s27 + $0xe80] ss:$16 sps:$4 sm:$0xff]   ;;  %v10169_v36 = vld [vmem:[%s12451_s27 + $0xe88] ss:$16 sps:$4 sm:$0xff]  }
 0x358   : > { %7152 = vmatprep.subr.bf16.mxu0 %v10083_v37  ;;  %7685 = vmatprep.subr.bf16.mxu1 %v10086_v38  ;;  %v10174_v37 = vld [vmem:[%s12451_s27 + $0xea4] ss:$16 sps:$4 sm:$0xff]   ;;  %v10177_v38 = vld [vmem:[%s12451_s27 + $0xeac] ss:$16 sps:$4 sm:$0xff]  }
 0x35b   : > { %7153 = vmatpush1.bf16.msra.mxu0 %v10081_v39  ;;  %7686 = vmatpush1.bf16.msra.mxu1 %v10084_v40  ;;  %v10172_v39 = vld [vmem:[%s12451_s27 + $0xea0] ss:$16 sps:$4 sm:$0xff]   ;;  %v10175_v40 = vld [vmem:[%s12451_s27 + $0xea8] ss:$16 sps:$4 sm:$0xff]  }
 0x35c   : > { %7154 = vmatprep.subr.bf16.mxu0 %v10089_v41  ;;  %7687 = vmatprep.subr.bf16.mxu1 %v10092_v42  ;;  %v10180_v41 = vld [vmem:[%s12451_s27 + $0xec4] ss:$16 sps:$4 sm:$0xff]   ;;  %v10183_v42 = vld [vmem:[%s12451_s27 + $0xecc] ss:$16 sps:$4 sm:$0xff]  }
 0x35f   : > { %7155 = vmatpush1.bf16.msra.mxu0 %v10087_v43  ;;  %7688 = vmatpush1.bf16.msra.mxu1 %v10090_v44  ;;  %v10178_v43 = vld [vmem:[%s12451_s27 + $0xec0] ss:$16 sps:$4 sm:$0xff]   ;;  %v10181_v44 = vld [vmem:[%s12451_s27 + $0xec8] ss:$16 sps:$4 sm:$0xff]  }
 0x360   : > { %7156 = vmatprep.subr.bf16.mxu0 %v10095_v45  ;;  %7689 = vmatprep.subr.bf16.mxu1 %v10098_v47  ;;  %v10186_v45 = vld [vmem:[%s12451_s27 + $0xee4] ss:$16 sps:$4 sm:$0xff]   ;;  %v10189_v47 = vld [vmem:[%s12451_s27 + $0xeec] ss:$16 sps:$4 sm:$0xff]  }
 0x363   : > { %7157 = vmatpush1.bf16.msra.mxu0 %v10093_v49  ;;  %7690 = vmatpush1.bf16.msra.mxu1 %v10096_v21  ;;  %v10184_v49 = vld [vmem:[%s12451_s27 + $0xee0] ss:$16 sps:$4 sm:$0xff]   ;;  %v10187_v21 = vld [vmem:[%s12451_s27 + $0xee8] ss:$16 sps:$4 sm:$0xff]  }
 0x364   : > { %7158 = vmatprep.subr.bf16.mxu0 %v10101_v50  ;;  %7691 = vmatprep.subr.bf16.mxu1 %v10104_v51  ;;  %v10192_v50 = vld [vmem:[%s12451_s27 + $0xf04] ss:$16 sps:$4 sm:$0xff]   ;;  %v10195_v51 = vld [vmem:[%s12451_s27 + $0xf0c] ss:$16 sps:$4 sm:$0xff]  }
 0x367   : > { %7159 = vmatpush1.bf16.msra.mxu0 %v10099_v52  ;;  %7692 = vmatpush1.bf16.msra.mxu1 %v10102_v53  ;;  %v10190_v52 = vld [vmem:[%s12451_s27 + $0xf00] ss:$16 sps:$4 sm:$0xff]   ;;  %v10193_v53 = vld [vmem:[%s12451_s27 + $0xf08] ss:$16 sps:$4 sm:$0xff]  }
 0x368   : > { %7160 = vmatprep.subr.bf16.mxu0 %v10107_v55  ;;  %7693 = vmatprep.subr.bf16.mxu1 %v10110_v56  ;;  %v10198_v55 = vld [vmem:[%s12451_s27 + $0xf24] ss:$16 sps:$4 sm:$0xff]   ;;  %v10201_v56 = vld [vmem:[%s12451_s27 + $0xf2c] ss:$16 sps:$4 sm:$0xff]  }
 0x36b   : > { %7161 = vmatpush1.bf16.msra.mxu0 %v10105_v57  ;;  %7694 = vmatpush1.bf16.msra.mxu1 %v10108_v59  ;;  %v10196_v57 = vld [vmem:[%s12451_s27 + $0xf20] ss:$16 sps:$4 sm:$0xff]   ;;  %v10199_v59 = vld [vmem:[%s12451_s27 + $0xf28] ss:$16 sps:$4 sm:$0xff]  }
 0x36c   : > { %7162 = vmatprep.subr.bf16.mxu0 %v10113_v60  ;;  %7695 = vmatprep.subr.bf16.mxu1 %v10116_v61  ;;  %v10204_v60 = vld [vmem:[%s12451_s27 + $0xf44] ss:$16 sps:$4 sm:$0xff]   ;;  %v10207_v61 = vld [vmem:[%s12451_s27 + $0xf4c] ss:$16 sps:$4 sm:$0xff]  }
 0x36f   : > { %7163 = vmatpush1.bf16.msra.mxu0 %v10111_v62  ;;  %7696 = vmatpush1.bf16.msra.mxu1 %v10114_v63  ;;  %v10202_v62 = vld [vmem:[%s12451_s27 + $0xf40] ss:$16 sps:$4 sm:$0xff]   ;;  %v10205_v63 = vld [vmem:[%s12451_s27 + $0xf48] ss:$16 sps:$4 sm:$0xff]  }
 0x370   : > { %7164 = vmatprep.subr.bf16.mxu0 %v10119_v48  ;;  %7697 = vmatprep.subr.bf16.mxu1 %v10122_v0  ;;  %v10210_v48 = vld [vmem:[%s12451_s27 + $0xf64] ss:$16 sps:$4 sm:$0xff]   ;;  %v10213_v0 = vld [vmem:[%s12451_s27 + $0xf6c] ss:$16 sps:$4 sm:$0xff]  }
 0x373   : > { %7165 = vmatpush1.bf16.msra.mxu0 %v10117_v1  ;;  %7698 = vmatpush1.bf16.msra.mxu1 %v10120_v2  ;;  %v10208_v1 = vld [vmem:[%s12451_s27 + $0xf60] ss:$16 sps:$4 sm:$0xff]   ;;  %v10211_v2 = vld [vmem:[%s12451_s27 + $0xf68] ss:$16 sps:$4 sm:$0xff]  }
 0x374   : > { %7166 = vmatprep.subr.bf16.mxu0 %v10125_v58  ;;  %7699 = vmatprep.subr.bf16.mxu1 %v10128_v3  ;;  %v10216_v58 = vld [vmem:[%s12451_s27 + $0xf84] ss:$16 sps:$4 sm:$0xff]   ;;  %v10219_v3 = vld [vmem:[%s12451_s27 + $0xf8c] ss:$16 sps:$4 sm:$0xff]  }
 0x377   : > { %7167 = vmatpush1.bf16.msra.mxu0 %v10123_v5  ;;  %7700 = vmatpush1.bf16.msra.mxu1 %v10126_v6  ;;  %v10214_v5 = vld [vmem:[%s12451_s27 + $0xf80] ss:$16 sps:$4 sm:$0xff]   ;;  %v10217_v6 = vld [vmem:[%s12451_s27 + $0xf88] ss:$16 sps:$4 sm:$0xff]  }
 0x378   : > { %7168 = vmatprep.subr.bf16.mxu0 %v10131_v8  ;;  %7701 = vmatprep.subr.bf16.mxu1 %v10134_v9  ;;  %v10222_v8 = vld [vmem:[%s12451_s27 + $0xfa4] ss:$16 sps:$4 sm:$0xff]   ;;  %v10225_v9 = vld [vmem:[%s12451_s27 + $0xfac] ss:$16 sps:$4 sm:$0xff]  }
 0x37b   : > { %7169 = vmatpush1.bf16.msra.mxu0 %v10129_v54  ;;  %7702 = vmatpush1.bf16.msra.mxu1 %v10132_v10  ;;  %v10220_v54 = vld [vmem:[%s12451_s27 + $0xfa0] ss:$16 sps:$4 sm:$0xff]   ;;  %v10223_v10 = vld [vmem:[%s12451_s27 + $0xfa8] ss:$16 sps:$4 sm:$0xff]  }
 0x37c   : > { %7170 = vmatprep.subr.bf16.mxu0 %v10137_v11  ;;  %7703 = vmatprep.subr.bf16.mxu1 %v10140_v13  ;;  %v10228_v11 = vld [vmem:[%s12451_s27 + $0xfc4] ss:$16 sps:$4 sm:$0xff]   ;;  %v10231_v13 = vld [vmem:[%s12451_s27 + $0xfcc] ss:$16 sps:$4 sm:$0xff]  }
 0x37f   : > { %7171 = vmatpush1.bf16.msra.mxu0 %v10135_v4  ;;  %7704 = vmatpush1.bf16.msra.mxu1 %v10138_v14  ;;  %v13040_v4 = vld [vmem:[%s12433_s30 + $0x10] sm:$0xff]  ;;  %v10226_v14 = vld [vmem:[%s12451_s27 + $0xfc0] ss:$16 sps:$4 sm:$0xff]  }
 0x380   : > { %7181 = vmatprep.subr.bf16.mxu0 %v10144_v15  ;;  %7714 = vmatprep.subr.bf16.mxu1 %v10147_v16  ;;  %v10229_v15 = vld [vmem:[%s12451_s27 + $0xfc8] ss:$16 sps:$4 sm:$0xff]   ;;  %v10234_v16 = vld [vmem:[%s12451_s27 + $0xfe4] ss:$16 sps:$4 sm:$0xff]  }
 0x382   : > { %7173 = vmatmul.mubr.bf16.vlgmr.msra.gmra.mrb[0].mxu0 %v12977_v46  ;;  %7706 = vmatmul.mubr.bf16.vlgmr.msra.gmra.mrb[0].mxu1 %v12977_v46 }
 0x383   : > { %7182 = vmatpush1.bf16.msra.mxu0 %v10142_v19  ;;  %7715 = vmatpush1.bf16.msra.mxu1 %v10145_v20  ;;  %v10237_v19 = vld [vmem:[%s12451_s27 + $0xfec] ss:$16 sps:$4 sm:$0xff]   ;;  %v13048_v20 = vrot.slane %v13040_v4, %v12501_v18 }
 0x384   : > { %7183 = vmatprep.subr.bf16.mxu0 %v10150_v22  ;;  %7716 = vmatprep.subr.bf16.mxu1 %v10153_v23  ;;  %v10232_v22 = vld [vmem:[%s12451_s27 + $0xfe0] ss:$16 sps:$4 sm:$0xff]   ;;  %v10235_v23 = vld [vmem:[%s12451_s27 + $0xfe8] ss:$16 sps:$4 sm:$0xff]  }
 0x385   : > { %7213 = vmatprep.mubr.bf16.mxu0 %v2805_v24  ;;  %7746 = vmatprep.mubr.bf16.mxu1 %v2805_v24  ;;  %v10240_v24 = vld [vmem:[%s12451_s27 + $0x1004] ss:$16 sps:$4 sm:$0xff]  }
 0x387   : > { %7184 = vmatpush1.bf16.msra.mxu0 %v10148_v7  ;;  %7717 = vmatpush1.bf16.msra.mxu1 %v10151_v25  ;;  %v10243_v7 = vld [vmem:[%s12451_s27 + $0x100c] ss:$16 sps:$4 sm:$0xff]   ;;  %v2821_v25 = vcombine.high %v13048_v20, %v13048_v20 }
 0x388   : > { %7185 = vmatprep.subr.bf16.mxu0 %v10156_v26  ;;  %7718 = vmatprep.subr.bf16.mxu1 %v10159_v27  ;;  %v2803_v26 = vcombine.high %v12977_v46, %v12977_v46  ;;  %v10238_v27 = vld [vmem:[%s12451_s27 + $0x1000] ss:$16 sps:$4 sm:$0xff]  }
 0x389   : > { %v10244_v46 = vld [vmem:[%s12451_s27 + $0x1020] ss:$16 sps:$4 sm:$0xff]  }
 0x38b   : > { %7186 = vmatpush1.bf16.msra.mxu0 %v10154_v17  ;;  %7719 = vmatpush1.bf16.msra.mxu1 %v10157_v28  ;;  %v10241_v17 = vld [vmem:[%s12451_s27 + $0x1008] ss:$16 sps:$4 sm:$0xff]   ;;  %v10246_v28 = vld [vmem:[%s12451_s27 + $0x1024] ss:$16 sps:$4 sm:$0xff]  }
 0x38c   : > { %7187 = vmatprep.subr.bf16.mxu0 %v10162_v29  ;;  %7720 = vmatprep.subr.bf16.mxu1 %v10165_v30  ;;  %v10249_v29 = vld [vmem:[%s12451_s27 + $0x102c] ss:$16 sps:$4 sm:$0xff]   ;;  %v13063_v30 = vrot.slane %v2821_v25, %v12501_v18  ;;  %v10325_v25 = vld [vmem:[%s12451_s27 + $0x11c8] ss:$16 sps:$4 sm:$0xff]  }
 0x38f   : > { %7188 = vmatpush1.bf16.msra.mxu0 %v10160_v31  ;;  %7721 = vmatpush1.bf16.msra.mxu1 %v10163_v32  ;;  %v10247_v31 = vld [vmem:[%s12451_s27 + $0x1028] ss:$16 sps:$4 sm:$0xff]   ;;  %v10252_v32 = vld [vmem:[%s12451_s27 + $0x1044] ss:$16 sps:$4 sm:$0xff]  }
 0x390   : > { %7189 = vmatprep.subr.bf16.mxu0 %v10168_v33  ;;  %7722 = vmatprep.subr.bf16.mxu1 %v10171_v34  ;;  %v10255_v33 = vld [vmem:[%s12451_s27 + $0x104c] ss:$16 sps:$4 sm:$0xff]   ;;  %v10250_v34 = vld [vmem:[%s12451_s27 + $0x1040] ss:$16 sps:$4 sm:$0xff]  }
 0x393   : > { %7190 = vmatpush1.bf16.msra.mxu0 %v10166_v35  ;;  %7723 = vmatpush1.bf16.msra.mxu1 %v10169_v36  ;;  %v10253_v35 = vld [vmem:[%s12451_s27 + $0x1048] ss:$16 sps:$4 sm:$0xff]   ;;  %v10258_v36 = vld [vmem:[%s12451_s27 + $0x1064] ss:$16 sps:$4 sm:$0xff]  }
 0x394   : > { %7191 = vmatprep.subr.bf16.mxu0 %v10174_v37  ;;  %7724 = vmatprep.subr.bf16.mxu1 %v10177_v38  ;;  %v10261_v37 = vld [vmem:[%s12451_s27 + $0x106c] ss:$16 sps:$4 sm:$0xff]   ;;  %v10256_v38 = vld [vmem:[%s12451_s27 + $0x1060] ss:$16 sps:$4 sm:$0xff]  }
 0x397   : > { %7192 = vmatpush1.bf16.msra.mxu0 %v10172_v39  ;;  %7725 = vmatpush1.bf16.msra.mxu1 %v10175_v40  ;;  %v10259_v39 = vld [vmem:[%s12451_s27 + $0x1068] ss:$16 sps:$4 sm:$0xff]   ;;  %v10264_v40 = vld [vmem:[%s12451_s27 + $0x1084] ss:$16 sps:$4 sm:$0xff]  }
 0x398   : > { %7193 = vmatprep.subr.bf16.mxu0 %v10180_v41  ;;  %7726 = vmatprep.subr.bf16.mxu1 %v10183_v42  ;;  %v10267_v41 = vld [vmem:[%s12451_s27 + $0x108c] ss:$16 sps:$4 sm:$0xff]   ;;  %v10262_v42 = vld [vmem:[%s12451_s27 + $0x1080] ss:$16 sps:$4 sm:$0xff]  }
 0x39b   : > { %7194 = vmatpush1.bf16.msra.mxu0 %v10178_v43  ;;  %7727 = vmatpush1.bf16.msra.mxu1 %v10181_v44  ;;  %v10265_v43 = vld [vmem:[%s12451_s27 + $0x1088] ss:$16 sps:$4 sm:$0xff]   ;;  %v10270_v44 = vld [vmem:[%s12451_s27 + $0x10a4] ss:$16 sps:$4 sm:$0xff]  }
 0x39c   : > { %7195 = vmatprep.subr.bf16.mxu0 %v10186_v45  ;;  %7728 = vmatprep.subr.bf16.mxu1 %v10189_v47  ;;  %v10273_v45 = vld [vmem:[%s12451_s27 + $0x10ac] ss:$16 sps:$4 sm:$0xff]   ;;  %v10268_v47 = vld [vmem:[%s12451_s27 + $0x10a0] ss:$16 sps:$4 sm:$0xff]  }
 0x39f   : > { %7196 = vmatpush1.bf16.msra.mxu0 %v10184_v49  ;;  %7729 = vmatpush1.bf16.msra.mxu1 %v10187_v21  ;;  %v10271_v49 = vld [vmem:[%s12451_s27 + $0x10a8] ss:$16 sps:$4 sm:$0xff]   ;;  %v10276_v21 = vld [vmem:[%s12451_s27 + $0x10c4] ss:$16 sps:$4 sm:$0xff]  }
 0x3a0   : > { %7197 = vmatprep.subr.bf16.mxu0 %v10192_v50  ;;  %7730 = vmatprep.subr.bf16.mxu1 %v10195_v51  ;;  %v10279_v50 = vld [vmem:[%s12451_s27 + $0x10cc] ss:$16 sps:$4 sm:$0xff]   ;;  %v10274_v51 = vld [vmem:[%s12451_s27 + $0x10c0] ss:$16 sps:$4 sm:$0xff]  }
 0x3a3   : > { %7198 = vmatpush1.bf16.msra.mxu0 %v10190_v52  ;;  %7731 = vmatpush1.bf16.msra.mxu1 %v10193_v53  ;;  %v10277_v52 = vld [vmem:[%s12451_s27 + $0x10c8] ss:$16 sps:$4 sm:$0xff]   ;;  %v10282_v53 = vld [vmem:[%s12451_s27 + $0x10e4] ss:$16 sps:$4 sm:$0xff]  }
 0x3a4   : > { %7199 = vmatprep.subr.bf16.mxu0 %v10198_v55  ;;  %7732 = vmatprep.subr.bf16.mxu1 %v10201_v56  ;;  %v10285_v55 = vld [vmem:[%s12451_s27 + $0x10ec] ss:$16 sps:$4 sm:$0xff]   ;;  %v10280_v56 = vld [vmem:[%s12451_s27 + $0x10e0] ss:$16 sps:$4 sm:$0xff]  }
 0x3a7   : > { %7200 = vmatpush1.bf16.msra.mxu0 %v10196_v57  ;;  %7733 = vmatpush1.bf16.msra.mxu1 %v10199_v59  ;;  %v10283_v57 = vld [vmem:[%s12451_s27 + $0x10e8] ss:$16 sps:$4 sm:$0xff]   ;;  %v10288_v59 = vld [vmem:[%s12451_s27 + $0x1104] ss:$16 sps:$4 sm:$0xff]  }
 0x3a8   : > { %7201 = vmatprep.subr.bf16.mxu0 %v10204_v60  ;;  %7734 = vmatprep.subr.bf16.mxu1 %v10207_v61  ;;  %v10291_v60 = vld [vmem:[%s12451_s27 + $0x110c] ss:$16 sps:$4 sm:$0xff]   ;;  %v10286_v61 = vld [vmem:[%s12451_s27 + $0x1100] ss:$16 sps:$4 sm:$0xff]  }
 0x3ab   : > { %7202 = vmatpush1.bf16.msra.mxu0 %v10202_v62  ;;  %7735 = vmatpush1.bf16.msra.mxu1 %v10205_v63  ;;  %v10289_v62 = vld [vmem:[%s12451_s27 + $0x1108] ss:$16 sps:$4 sm:$0xff]   ;;  %v10294_v63 = vld [vmem:[%s12451_s27 + $0x1124] ss:$16 sps:$4 sm:$0xff]  }
 0x3ac   : > { %7203 = vmatprep.subr.bf16.mxu0 %v10210_v48  ;;  %7736 = vmatprep.subr.bf16.mxu1 %v10213_v0  ;;  %v10297_v48 = vld [vmem:[%s12451_s27 + $0x112c] ss:$16 sps:$4 sm:$0xff]   ;;  %v10292_v0 = vld [vmem:[%s12451_s27 + $0x1120] ss:$16 sps:$4 sm:$0xff]  }
 0x3af   : > { %7204 = vmatpush1.bf16.msra.mxu0 %v10208_v1  ;;  %7737 = vmatpush1.bf16.msra.mxu1 %v10211_v2  ;;  %v10295_v1 = vld [vmem:[%s12451_s27 + $0x1128] ss:$16 sps:$4 sm:$0xff]   ;;  %v10300_v2 = vld [vmem:[%s12451_s27 + $0x1144] ss:$16 sps:$4 sm:$0xff]  }
 0x3b0   : > { %7205 = vmatprep.subr.bf16.mxu0 %v10216_v58  ;;  %7738 = vmatprep.subr.bf16.mxu1 %v10219_v3  ;;  %v10303_v58 = vld [vmem:[%s12451_s27 + $0x114c] ss:$16 sps:$4 sm:$0xff]   ;;  %v10298_v3 = vld [vmem:[%s12451_s27 + $0x1140] ss:$16 sps:$4 sm:$0xff]  }
 0x3b3   : > { %7206 = vmatpush1.bf16.msra.mxu0 %v10214_v5  ;;  %7739 = vmatpush1.bf16.msra.mxu1 %v10217_v6  ;;  %v10301_v5 = vld [vmem:[%s12451_s27 + $0x1148] ss:$16 sps:$4 sm:$0xff]   ;;  %v10306_v6 = vld [vmem:[%s12451_s27 + $0x1164] ss:$16 sps:$4 sm:$0xff]  }
 0x3b4   : > { %7207 = vmatprep.subr.bf16.mxu0 %v10222_v8  ;;  %7740 = vmatprep.subr.bf16.mxu1 %v10225_v9  ;;  %v10309_v8 = vld [vmem:[%s12451_s27 + $0x116c] ss:$16 sps:$4 sm:$0xff]   ;;  %v10304_v9 = vld [vmem:[%s12451_s27 + $0x1160] ss:$16 sps:$4 sm:$0xff]  }
 0x3b7   : > { %7208 = vmatpush1.bf16.msra.mxu0 %v10220_v54  ;;  %7741 = vmatpush1.bf16.msra.mxu1 %v10223_v10  ;;  %v10307_v54 = vld [vmem:[%s12451_s27 + $0x1168] ss:$16 sps:$4 sm:$0xff]   ;;  %v10312_v10 = vld [vmem:[%s12451_s27 + $0x1184] ss:$16 sps:$4 sm:$0xff]  }
 0x3b8   : > { %7209 = vmatprep.subr.bf16.mxu0 %v10228_v11  ;;  %7742 = vmatprep.subr.bf16.mxu1 %v10231_v13  ;;  %v10315_v11 = vld [vmem:[%s12451_s27 + $0x118c] ss:$16 sps:$4 sm:$0xff]   ;;  %v10310_v13 = vld [vmem:[%s12451_s27 + $0x1180] ss:$16 sps:$4 sm:$0xff]  }
 0x3bb   : > { %7210 = vmatpush1.bf16.msra.mxu0 %v10226_v14  ;;  %7743 = vmatpush1.bf16.msra.mxu1 %v10229_v15  ;;  %v10313_v14 = vld [vmem:[%s12451_s27 + $0x1188] ss:$16 sps:$4 sm:$0xff]   ;;  %v10318_v15 = vld [vmem:[%s12451_s27 + $0x11a4] ss:$16 sps:$4 sm:$0xff]  }
 0x3bc   : > { %7211 = vmatprep.subr.bf16.mxu0 %v10234_v16  ;;  %7744 = vmatprep.subr.bf16.mxu1 %v10237_v19  ;;  %v10321_v16 = vld [vmem:[%s12451_s27 + $0x11ac] ss:$16 sps:$4 sm:$0xff]   ;;  %v10316_v19 = vld [vmem:[%s12451_s27 + $0x11a0] ss:$16 sps:$4 sm:$0xff]  }
 0x3bf   : > { %7212 = vmatpush1.bf16.msra.mxu0 %v10232_v22  ;;  %7745 = vmatpush1.bf16.msra.mxu1 %v10235_v23  ;;  %v10319_v22 = vld [vmem:[%s12451_s27 + $0x11a8] ss:$16 sps:$4 sm:$0xff]   ;;  %v10324_v23 = vld [vmem:[%s12451_s27 + $0x11c4] ss:$16 sps:$4 sm:$0xff]  }
 0x3c0   : > { %7222 = vmatprep.subr.bf16.mxu0 %v10240_v24  ;;  %7755 = vmatprep.subr.bf16.mxu1 %v10243_v7  ;;  %v10327_v24 = vld [vmem:[%s12451_s27 + $0x11cc] ss:$16 sps:$4 sm:$0xff]   ;;  %v10322_v7 = vld [vmem:[%s12451_s27 + $0x11c0] ss:$16 sps:$4 sm:$0xff]  }
 0x3c2   : > { %7214 = vmatmul.mubr.bf16.vlgmr.msra.gmra.mrb[0].mxu0 %v2803_v26  ;;  %7747 = vmatmul.mubr.bf16.vlgmr.msra.gmra.mrb[0].mxu1 %v2803_v26  ;;  %v10330_v26 = vld [vmem:[%s12451_s27 + $0x11e4] ss:$16 sps:$4 sm:$0xff]  }
 0x3c3   : > { %7223 = vmatpush1.bf16.msra.mxu0 %v10238_v27  ;;  %7756 = vmatpush1.bf16.msra.mxu1 %v10241_v17  ;;  %v10333_v27 = vld [vmem:[%s12451_s27 + $0x11ec] ss:$16 sps:$4 sm:$0xff]   ;;  %v10328_v17 = vld [vmem:[%s12451_s27 + $0x11e0] ss:$16 sps:$4 sm:$0xff]  }
 0x3c4   : > { %7224 = vmatprep.subr.bf16.mxu0 %v10246_v28  ;;  %7757 = vmatprep.subr.bf16.mxu1 %v10249_v29  ;;  %v10331_v28 = vld [vmem:[%s12451_s27 + $0x11e8] ss:$16 sps:$4 sm:$0xff]   ;;  %v10336_v29 = vld [vmem:[%s12451_s27 + $0x1204] ss:$16 sps:$4 sm:$0xff]  }
 0x3c5   : > { %7254 = vmatprep.mubr.bf16.mxu0 %v13063_v30  ;;  %7787 = vmatprep.mubr.bf16.mxu1 %v13063_v30 }
 0x3c7   : > { %7225 = vmatpush1.bf16.msra.mxu0 %v10244_v46  ;;  %7758 = vmatpush1.bf16.msra.mxu1 %v10247_v31  ;;  %v10339_v46 = vld [vmem:[%s12451_s27 + $0x120c] ss:$16 sps:$4 sm:$0xff]   ;;  %v13129_v31 = vrot.slane %v13048_v20, %v12501_v18  ;;  %v10340_v20 = vld [vmem:[%s12451_s27 + $0x1220] ss:$16 sps:$4 sm:$0xff]  }
 0x3c8   : > { %7226 = vmatprep.subr.bf16.mxu0 %v10252_v32  ;;  %7759 = vmatprep.subr.bf16.mxu1 %v10255_v33  ;;  %v10334_v32 = vld [vmem:[%s12451_s27 + $0x1200] ss:$16 sps:$4 sm:$0xff]   ;;  %v10337_v33 = vld [vmem:[%s12451_s27 + $0x1208] ss:$16 sps:$4 sm:$0xff]  }
 0x3cb   : > { %7227 = vmatpush1.bf16.msra.mxu0 %v10250_v34  ;;  %7760 = vmatpush1.bf16.msra.mxu1 %v10253_v35  ;;  %v10342_v34 = vld [vmem:[%s12451_s27 + $0x1224] ss:$16 sps:$4 sm:$0xff]   ;;  %v10345_v35 = vld [vmem:[%s12451_s27 + $0x122c] ss:$16 sps:$4 sm:$0xff]  }
 0x3cc   : > { %7228 = vmatprep.subr.bf16.mxu0 %v10258_v36  ;;  %7761 = vmatprep.subr.bf16.mxu1 %v10261_v37  ;;  %v2853_v36 = vcombine.high %v13063_v30, %v13063_v30  ;;  %v10343_v37 = vld [vmem:[%s12451_s27 + $0x1228] ss:$16 sps:$4 sm:$0xff]   ;;  %v10346_v30 = vld [vmem:[%s12451_s27 + $0x1240] ss:$16 sps:$4 sm:$0xff]  }
 0x3cf   : > { %7229 = vmatpush1.bf16.msra.mxu0 %v10256_v38  ;;  %7762 = vmatpush1.bf16.msra.mxu1 %v10259_v39  ;;  %v10348_v38 = vld [vmem:[%s12451_s27 + $0x1244] ss:$16 sps:$4 sm:$0xff]   ;;  %v10351_v39 = vld [vmem:[%s12451_s27 + $0x124c] ss:$16 sps:$4 sm:$0xff]  }
 0x3d0   : > { %7230 = vmatprep.subr.bf16.mxu0 %v10264_v40  ;;  %7763 = vmatprep.subr.bf16.mxu1 %v10267_v41  ;;  %v10349_v40 = vld [vmem:[%s12451_s27 + $0x1248] ss:$16 sps:$4 sm:$0xff]   ;;  %v10354_v41 = vld [vmem:[%s12451_s27 + $0x1264] ss:$16 sps:$4 sm:$0xff]  }
 0x3d3   : > { %7231 = vmatpush1.bf16.msra.mxu0 %v10262_v42  ;;  %7764 = vmatpush1.bf16.msra.mxu1 %v10265_v43  ;;  %v10357_v42 = vld [vmem:[%s12451_s27 + $0x126c] ss:$16 sps:$4 sm:$0xff]   ;;  %v10352_v43 = vld [vmem:[%s12451_s27 + $0x1260] ss:$16 sps:$4 sm:$0xff]  }
 0x3d4   : > { %7232 = vmatprep.subr.bf16.mxu0 %v10270_v44  ;;  %7765 = vmatprep.subr.bf16.mxu1 %v10273_v45  ;;  %v10355_v44 = vld [vmem:[%s12451_s27 + $0x1268] ss:$16 sps:$4 sm:$0xff]   ;;  %v10360_v45 = vld [vmem:[%s12451_s27 + $0x1284] ss:$16 sps:$4 sm:$0xff]  }
 0x3d7   : > { %7233 = vmatpush1.bf16.msra.mxu0 %v10268_v47  ;;  %7766 = vmatpush1.bf16.msra.mxu1 %v10271_v49  ;;  %v10363_v47 = vld [vmem:[%s12451_s27 + $0x128c] ss:$16 sps:$4 sm:$0xff]   ;;  %v10358_v49 = vld [vmem:[%s12451_s27 + $0x1280] ss:$16 sps:$4 sm:$0xff]  }
 0x3d8   : > { %7234 = vmatprep.subr.bf16.mxu0 %v10276_v21  ;;  %7767 = vmatprep.subr.bf16.mxu1 %v10279_v50  ;;  %v10361_v21 = vld [vmem:[%s12451_s27 + $0x1288] ss:$16 sps:$4 sm:$0xff]   ;;  %v10366_v50 = vld [vmem:[%s12451_s27 + $0x12a4] ss:$16 sps:$4 sm:$0xff]  }
 0x3db   : > { %7235 = vmatpush1.bf16.msra.mxu0 %v10274_v51  ;;  %7768 = vmatpush1.bf16.msra.mxu1 %v10277_v52  ;;  %v10369_v51 = vld [vmem:[%s12451_s27 + $0x12ac] ss:$16 sps:$4 sm:$0xff]   ;;  %v10364_v52 = vld [vmem:[%s12451_s27 + $0x12a0] ss:$16 sps:$4 sm:$0xff]  }
 0x3dc   : > { %7236 = vmatprep.subr.bf16.mxu0 %v10282_v53  ;;  %7769 = vmatprep.subr.bf16.mxu1 %v10285_v55  ;;  %v10367_v53 = vld [vmem:[%s12451_s27 + $0x12a8] ss:$16 sps:$4 sm:$0xff]   ;;  %v10372_v55 = vld [vmem:[%s12451_s27 + $0x12c4] ss:$16 sps:$4 sm:$0xff]  }
 0x3df   : > { %7237 = vmatpush1.bf16.msra.mxu0 %v10280_v56  ;;  %7770 = vmatpush1.bf16.msra.mxu1 %v10283_v57  ;;  %v10375_v56 = vld [vmem:[%s12451_s27 + $0x12cc] ss:$16 sps:$4 sm:$0xff]   ;;  %v10370_v57 = vld [vmem:[%s12451_s27 + $0x12c0] ss:$16 sps:$4 sm:$0xff]  }
 0x3e0   : > { %7238 = vmatprep.subr.bf16.mxu0 %v10288_v59  ;;  %7771 = vmatprep.subr.bf16.mxu1 %v10291_v60  ;;  %v10373_v59 = vld [vmem:[%s12451_s27 + $0x12c8] ss:$16 sps:$4 sm:$0xff]   ;;  %v10378_v60 = vld [vmem:[%s12451_s27 + $0x12e4] ss:$16 sps:$4 sm:$0xff]  }
 0x3e3   : > { %7239 = vmatpush1.bf16.msra.mxu0 %v10286_v61  ;;  %7772 = vmatpush1.bf16.msra.mxu1 %v10289_v62  ;;  %v10381_v61 = vld [vmem:[%s12451_s27 + $0x12ec] ss:$16 sps:$4 sm:$0xff]   ;;  %v10376_v62 = vld [vmem:[%s12451_s27 + $0x12e0] ss:$16 sps:$4 sm:$0xff]  }
 0x3e4   : > { %7240 = vmatprep.subr.bf16.mxu0 %v10294_v63  ;;  %7773 = vmatprep.subr.bf16.mxu1 %v10297_v48  ;;  %v10379_v63 = vld [vmem:[%s12451_s27 + $0x12e8] ss:$16 sps:$4 sm:$0xff]   ;;  %v10384_v48 = vld [vmem:[%s12451_s27 + $0x1304] ss:$16 sps:$4 sm:$0xff]  }
 0x3e7   : > { %7241 = vmatpush1.bf16.msra.mxu0 %v10292_v0  ;;  %7774 = vmatpush1.bf16.msra.mxu1 %v10295_v1  ;;  %v10387_v0 = vld [vmem:[%s12451_s27 + $0x130c] ss:$16 sps:$4 sm:$0xff]   ;;  %v10382_v1 = vld [vmem:[%s12451_s27 + $0x1300] ss:$16 sps:$4 sm:$0xff]  }
 0x3e8   : > { %7242 = vmatprep.subr.bf16.mxu0 %v10300_v2  ;;  %7775 = vmatprep.subr.bf16.mxu1 %v10303_v58  ;;  %v10385_v2 = vld [vmem:[%s12451_s27 + $0x1308] ss:$16 sps:$4 sm:$0xff]   ;;  %v10390_v58 = vld [vmem:[%s12451_s27 + $0x1324] ss:$16 sps:$4 sm:$0xff]  }
 0x3eb   : > { %7243 = vmatpush1.bf16.msra.mxu0 %v10298_v3  ;;  %7776 = vmatpush1.bf16.msra.mxu1 %v10301_v5  ;;  %v10393_v3 = vld [vmem:[%s12451_s27 + $0x132c] ss:$16 sps:$4 sm:$0xff]   ;;  %v10388_v5 = vld [vmem:[%s12451_s27 + $0x1320] ss:$16 sps:$4 sm:$0xff]  }
 0x3ec   : > { %7244 = vmatprep.subr.bf16.mxu0 %v10306_v6  ;;  %7777 = vmatprep.subr.bf16.mxu1 %v10309_v8  ;;  %v10391_v6 = vld [vmem:[%s12451_s27 + $0x1328] ss:$16 sps:$4 sm:$0xff]   ;;  %v10396_v8 = vld [vmem:[%s12451_s27 + $0x1344] ss:$16 sps:$4 sm:$0xff]  }
 0x3ef   : > { %7245 = vmatpush1.bf16.msra.mxu0 %v10304_v9  ;;  %7778 = vmatpush1.bf16.msra.mxu1 %v10307_v54  ;;  %v10399_v9 = vld [vmem:[%s12451_s27 + $0x134c] ss:$16 sps:$4 sm:$0xff]   ;;  %v10394_v54 = vld [vmem:[%s12451_s27 + $0x1340] ss:$16 sps:$4 sm:$0xff]  }
 0x3f0   : > { %7246 = vmatprep.subr.bf16.mxu0 %v10312_v10  ;;  %7779 = vmatprep.subr.bf16.mxu1 %v10315_v11  ;;  %v10397_v10 = vld [vmem:[%s12451_s27 + $0x1348] ss:$16 sps:$4 sm:$0xff]   ;;  %v10402_v11 = vld [vmem:[%s12451_s27 + $0x1364] ss:$16 sps:$4 sm:$0xff]  }
 0x3f3   : > { %7247 = vmatpush1.bf16.msra.mxu0 %v10310_v13  ;;  %7780 = vmatpush1.bf16.msra.mxu1 %v10313_v14  ;;  %v10405_v13 = vld [vmem:[%s12451_s27 + $0x136c] ss:$16 sps:$4 sm:$0xff]   ;;  %v10400_v14 = vld [vmem:[%s12451_s27 + $0x1360] ss:$16 sps:$4 sm:$0xff]  }
 0x3f4   : > { %7248 = vmatprep.subr.bf16.mxu0 %v10318_v15  ;;  %7781 = vmatprep.subr.bf16.mxu1 %v10321_v16  ;;  %v10403_v15 = vld [vmem:[%s12451_s27 + $0x1368] ss:$16 sps:$4 sm:$0xff]   ;;  %v10408_v16 = vld [vmem:[%s12451_s27 + $0x1384] ss:$16 sps:$4 sm:$0xff]  }
 0x3f7   : > { %7249 = vmatpush1.bf16.msra.mxu0 %v10316_v19  ;;  %7782 = vmatpush1.bf16.msra.mxu1 %v10319_v22  ;;  %v10411_v19 = vld [vmem:[%s12451_s27 + $0x138c] ss:$16 sps:$4 sm:$0xff]   ;;  %v10406_v22 = vld [vmem:[%s12451_s27 + $0x1380] ss:$16 sps:$4 sm:$0xff]  }
 0x3f8   : > { %7250 = vmatprep.subr.bf16.mxu0 %v10324_v23  ;;  %7783 = vmatprep.subr.bf16.mxu1 %v10327_v24  ;;  %v10409_v23 = vld [vmem:[%s12451_s27 + $0x1388] ss:$16 sps:$4 sm:$0xff]   ;;  %v10414_v24 = vld [vmem:[%s12451_s27 + $0x13a4] ss:$16 sps:$4 sm:$0xff]  }
 0x3fb   : > { %7251 = vmatpush1.bf16.msra.mxu0 %v10322_v7  ;;  %7784 = vmatpush1.bf16.msra.mxu1 %v10325_v25  ;;  %v10417_v7 = vld [vmem:[%s12451_s27 + $0x13ac] ss:$16 sps:$4 sm:$0xff]   ;;  %v10412_v25 = vld [vmem:[%s12451_s27 + $0x13a0] ss:$16 sps:$4 sm:$0xff]  }
 0x3fc   : > { %7252 = vmatprep.subr.bf16.mxu0 %v10330_v26  ;;  %7785 = vmatprep.subr.bf16.mxu1 %v10333_v27  ;;  %v10415_v26 = vld [vmem:[%s12451_s27 + $0x13a8] ss:$16 sps:$4 sm:$0xff]   ;;  %v10420_v27 = vld [vmem:[%s12451_s27 + $0x13c4] ss:$16 sps:$4 sm:$0xff]  }
 0x3ff   : > { %7253 = vmatpush1.bf16.msra.mxu0 %v10328_v17  ;;  %7786 = vmatpush1.bf16.msra.mxu1 %v10331_v28  ;;  %v10423_v17 = vld [vmem:[%s12451_s27 + $0x13cc] ss:$16 sps:$4 sm:$0xff]   ;;  %v2806_v28 = vcombine.high %v13040_v4, %v13040_v4  ;;  %v10424_v4 = vld [vmem:[%s12451_s27 + $0x13e0] ss:$16 sps:$4 sm:$0xff]  }
 0x400   : > { %7263 = vmatprep.subr.bf16.mxu0 %v10336_v29  ;;  %7796 = vmatprep.subr.bf16.mxu1 %v10339_v46  ;;  %v10418_v29 = vld [vmem:[%s12451_s27 + $0x13c0] ss:$16 sps:$4 sm:$0xff]   ;;  %v10421_v46 = vld [vmem:[%s12451_s27 + $0x13c8] ss:$16 sps:$4 sm:$0xff]  }
 0x402   : > { %7255 = vmatmul.mubr.bf16.vlgmr.msra.gmra.mrb[0].mxu0 %v13129_v31  ;;  %7788 = vmatmul.mubr.bf16.vlgmr.msra.gmra.mrb[0].mxu1 %v13129_v31 }
 0x403   : > { %7264 = vmatpush1.bf16.msra.mxu0 %v10334_v32  ;;  %7797 = vmatpush1.bf16.msra.mxu1 %v10337_v33  ;;  %v10426_v32 = vld [vmem:[%s12451_s27 + $0x13e4] ss:$16 sps:$4 sm:$0xff]   ;;  %v10429_v33 = vld [vmem:[%s12451_s27 + $0x13ec] ss:$16 sps:$4 sm:$0xff]  }
 0x404   : > { %7265 = vmatprep.subr.bf16.mxu0 %v10342_v34  ;;  %7798 = vmatprep.subr.bf16.mxu1 %v10345_v35  ;;  %v13198_v34 = vrot.slane %v2806_v28, %v12501_v18  ;;  %v10427_v35 = vld [vmem:[%s12451_s27 + $0x13e8] ss:$16 sps:$4 sm:$0xff]  }
 0x405   : > { %7295 = vmatprep.mubr.bf16.mxu0 %v2853_v36  ;;  %7828 = vmatprep.mubr.bf16.mxu1 %v2853_v36  ;;  %v10432_v36 = vld [vmem:[%s12451_s27 + $0x1404] ss:$16 sps:$4 sm:$0xff]   ;;  %v10505_v28 = vld [vmem:[%s12451_s27 + $0x1588] ss:$16 sps:$4 sm:$0xff]  }
 0x407   : > { %7266 = vmatpush1.bf16.msra.mxu0 %v10340_v20  ;;  %7799 = vmatpush1.bf16.msra.mxu1 %v10343_v37  ;;  %v10435_v20 = vld [vmem:[%s12451_s27 + $0x140c] ss:$16 sps:$4 sm:$0xff]   ;;  %v2822_v37 = vcombine.high %v13198_v34, %v13198_v34 }
 0x408   : > { %7267 = vmatprep.subr.bf16.mxu0 %v10348_v38  ;;  %7800 = vmatprep.subr.bf16.mxu1 %v10351_v39  ;;  %v2851_v38 = vcombine.high %v13129_v31, %v13129_v31  ;;  %v10430_v39 = vld [vmem:[%s12451_s27 + $0x1400] ss:$16 sps:$4 sm:$0xff]  }
 0x409   : > { %v10436_v31 = vld [vmem:[%s12451_s27 + $0x1420] ss:$16 sps:$4 sm:$0xff]  }
 0x40b   : > { %7268 = vmatpush1.bf16.msra.mxu0 %v10346_v30  ;;  %7801 = vmatpush1.bf16.msra.mxu1 %v10349_v40  ;;  %v10433_v30 = vld [vmem:[%s12451_s27 + $0x1408] ss:$16 sps:$4 sm:$0xff]   ;;  %v10438_v40 = vld [vmem:[%s12451_s27 + $0x1424] ss:$16 sps:$4 sm:$0xff]  }
 0x40c   : > { %7269 = vmatprep.subr.bf16.mxu0 %v10354_v41  ;;  %7802 = vmatprep.subr.bf16.mxu1 %v10357_v42  ;;  %v10441_v41 = vld [vmem:[%s12451_s27 + $0x142c] ss:$16 sps:$4 sm:$0xff]   ;;  %v13213_v42 = vrot.slane %v2822_v37, %v12501_v18  ;;  %v10522_v37 = vld [vmem:[%s12451_s27 + $0x15e4] ss:$16 sps:$4 sm:$0xff]  }
 0x40f   : > { %7270 = vmatpush1.bf16.msra.mxu0 %v10352_v43  ;;  %7803 = vmatpush1.bf16.msra.mxu1 %v10355_v44  ;;  %v10439_v43 = vld [vmem:[%s12451_s27 + $0x1428] ss:$16 sps:$4 sm:$0xff]   ;;  %v10444_v44 = vld [vmem:[%s12451_s27 + $0x1444] ss:$16 sps:$4 sm:$0xff]  }
 0x410   : > { %7271 = vmatprep.subr.bf16.mxu0 %v10360_v45  ;;  %7804 = vmatprep.subr.bf16.mxu1 %v10363_v47  ;;  %v10447_v45 = vld [vmem:[%s12451_s27 + $0x144c] ss:$16 sps:$4 sm:$0xff]   ;;  %v10442_v47 = vld [vmem:[%s12451_s27 + $0x1440] ss:$16 sps:$4 sm:$0xff]  }
 0x413   : > { %7272 = vmatpush1.bf16.msra.mxu0 %v10358_v49  ;;  %7805 = vmatpush1.bf16.msra.mxu1 %v10361_v21  ;;  %v10445_v49 = vld [vmem:[%s12451_s27 + $0x1448] ss:$16 sps:$4 sm:$0xff]   ;;  %v10450_v21 = vld [vmem:[%s12451_s27 + $0x1464] ss:$16 sps:$4 sm:$0xff]  }
 0x414   : > { %7273 = vmatprep.subr.bf16.mxu0 %v10366_v50  ;;  %7806 = vmatprep.subr.bf16.mxu1 %v10369_v51  ;;  %v10453_v50 = vld [vmem:[%s12451_s27 + $0x146c] ss:$16 sps:$4 sm:$0xff]   ;;  %v10448_v51 = vld [vmem:[%s12451_s27 + $0x1460] ss:$16 sps:$4 sm:$0xff]  }
 0x417   : > { %7274 = vmatpush1.bf16.msra.mxu0 %v10364_v52  ;;  %7807 = vmatpush1.bf16.msra.mxu1 %v10367_v53  ;;  %v10451_v52 = vld [vmem:[%s12451_s27 + $0x1468] ss:$16 sps:$4 sm:$0xff]   ;;  %v10456_v53 = vld [vmem:[%s12451_s27 + $0x1484] ss:$16 sps:$4 sm:$0xff]  }
 0x418   : > { %7275 = vmatprep.subr.bf16.mxu0 %v10372_v55  ;;  %7808 = vmatprep.subr.bf16.mxu1 %v10375_v56  ;;  %v10459_v55 = vld [vmem:[%s12451_s27 + $0x148c] ss:$16 sps:$4 sm:$0xff]   ;;  %v10454_v56 = vld [vmem:[%s12451_s27 + $0x1480] ss:$16 sps:$4 sm:$0xff]  }
 0x41b   : > { %7276 = vmatpush1.bf16.msra.mxu0 %v10370_v57  ;;  %7809 = vmatpush1.bf16.msra.mxu1 %v10373_v59  ;;  %v10457_v57 = vld [vmem:[%s12451_s27 + $0x1488] ss:$16 sps:$4 sm:$0xff]   ;;  %v10462_v59 = vld [vmem:[%s12451_s27 + $0x14a4] ss:$16 sps:$4 sm:$0xff]  }
 0x41c   : > { %7277 = vmatprep.subr.bf16.mxu0 %v10378_v60  ;;  %7810 = vmatprep.subr.bf16.mxu1 %v10381_v61  ;;  %v10465_v60 = vld [vmem:[%s12451_s27 + $0x14ac] ss:$16 sps:$4 sm:$0xff]   ;;  %v10460_v61 = vld [vmem:[%s12451_s27 + $0x14a0] ss:$16 sps:$4 sm:$0xff]  }
 0x41f   : > { %7278 = vmatpush1.bf16.msra.mxu0 %v10376_v62  ;;  %7811 = vmatpush1.bf16.msra.mxu1 %v10379_v63  ;;  %v10463_v62 = vld [vmem:[%s12451_s27 + $0x14a8] ss:$16 sps:$4 sm:$0xff]   ;;  %v10468_v63 = vld [vmem:[%s12451_s27 + $0x14c4] ss:$16 sps:$4 sm:$0xff]  }
 0x420   : > { %7279 = vmatprep.subr.bf16.mxu0 %v10384_v48  ;;  %7812 = vmatprep.subr.bf16.mxu1 %v10387_v0  ;;  %v10471_v48 = vld [vmem:[%s12451_s27 + $0x14cc] ss:$16 sps:$4 sm:$0xff]   ;;  %v10466_v0 = vld [vmem:[%s12451_s27 + $0x14c0] ss:$16 sps:$4 sm:$0xff]  }
 0x423   : > { %7280 = vmatpush1.bf16.msra.mxu0 %v10382_v1  ;;  %7813 = vmatpush1.bf16.msra.mxu1 %v10385_v2  ;;  %v10469_v1 = vld [vmem:[%s12451_s27 + $0x14c8] ss:$16 sps:$4 sm:$0xff]   ;;  %v10474_v2 = vld [vmem:[%s12451_s27 + $0x14e4] ss:$16 sps:$4 sm:$0xff]  }
 0x424   : > { %7281 = vmatprep.subr.bf16.mxu0 %v10390_v58  ;;  %7814 = vmatprep.subr.bf16.mxu1 %v10393_v3  ;;  %v10477_v58 = vld [vmem:[%s12451_s27 + $0x14ec] ss:$16 sps:$4 sm:$0xff]   ;;  %v10472_v3 = vld [vmem:[%s12451_s27 + $0x14e0] ss:$16 sps:$4 sm:$0xff]  }
 0x427   : > { %7282 = vmatpush1.bf16.msra.mxu0 %v10388_v5  ;;  %7815 = vmatpush1.bf16.msra.mxu1 %v10391_v6  ;;  %v10475_v5 = vld [vmem:[%s12451_s27 + $0x14e8] ss:$16 sps:$4 sm:$0xff]   ;;  %v10480_v6 = vld [vmem:[%s12451_s27 + $0x1504] ss:$16 sps:$4 sm:$0xff]  }
 0x428   : > { %7283 = vmatprep.subr.bf16.mxu0 %v10396_v8  ;;  %7816 = vmatprep.subr.bf16.mxu1 %v10399_v9  ;;  %v10483_v8 = vld [vmem:[%s12451_s27 + $0x150c] ss:$16 sps:$4 sm:$0xff]   ;;  %v10478_v9 = vld [vmem:[%s12451_s27 + $0x1500] ss:$16 sps:$4 sm:$0xff]  }
 0x42b   : > { %7284 = vmatpush1.bf16.msra.mxu0 %v10394_v54  ;;  %7817 = vmatpush1.bf16.msra.mxu1 %v10397_v10  ;;  %v10481_v54 = vld [vmem:[%s12451_s27 + $0x1508] ss:$16 sps:$4 sm:$0xff]   ;;  %v10486_v10 = vld [vmem:[%s12451_s27 + $0x1524] ss:$16 sps:$4 sm:$0xff]  }
 0x42c   : > { %7285 = vmatprep.subr.bf16.mxu0 %v10402_v11  ;;  %7818 = vmatprep.subr.bf16.mxu1 %v10405_v13  ;;  %v10489_v11 = vld [vmem:[%s12451_s27 + $0x152c] ss:$16 sps:$4 sm:$0xff]   ;;  %v10484_v13 = vld [vmem:[%s12451_s27 + $0x1520] ss:$16 sps:$4 sm:$0xff]  }
 0x42f   : > { %7286 = vmatpush1.bf16.msra.mxu0 %v10400_v14  ;;  %7819 = vmatpush1.bf16.msra.mxu1 %v10403_v15  ;;  %v10487_v14 = vld [vmem:[%s12451_s27 + $0x1528] ss:$16 sps:$4 sm:$0xff]   ;;  %v10492_v15 = vld [vmem:[%s12451_s27 + $0x1544] ss:$16 sps:$4 sm:$0xff]  }
 0x430   : > { %7287 = vmatprep.subr.bf16.mxu0 %v10408_v16  ;;  %7820 = vmatprep.subr.bf16.mxu1 %v10411_v19  ;;  %v10495_v16 = vld [vmem:[%s12451_s27 + $0x154c] ss:$16 sps:$4 sm:$0xff]   ;;  %v10490_v19 = vld [vmem:[%s12451_s27 + $0x1540] ss:$16 sps:$4 sm:$0xff]  }
 0x433   : > { %7288 = vmatpush1.bf16.msra.mxu0 %v10406_v22  ;;  %7821 = vmatpush1.bf16.msra.mxu1 %v10409_v23  ;;  %v10493_v22 = vld [vmem:[%s12451_s27 + $0x1548] ss:$16 sps:$4 sm:$0xff]   ;;  %v10498_v23 = vld [vmem:[%s12451_s27 + $0x1564] ss:$16 sps:$4 sm:$0xff]  }
 0x434   : > { %7289 = vmatprep.subr.bf16.mxu0 %v10414_v24  ;;  %7822 = vmatprep.subr.bf16.mxu1 %v10417_v7  ;;  %v10501_v24 = vld [vmem:[%s12451_s27 + $0x156c] ss:$16 sps:$4 sm:$0xff]   ;;  %v10496_v7 = vld [vmem:[%s12451_s27 + $0x1560] ss:$16 sps:$4 sm:$0xff]  }
 0x437   : > { %7290 = vmatpush1.bf16.msra.mxu0 %v10412_v25  ;;  %7823 = vmatpush1.bf16.msra.mxu1 %v10415_v26  ;;  %v10499_v25 = vld [vmem:[%s12451_s27 + $0x1568] ss:$16 sps:$4 sm:$0xff]   ;;  %v10504_v26 = vld [vmem:[%s12451_s27 + $0x1584] ss:$16 sps:$4 sm:$0xff]  }
 0x438   : > { %7291 = vmatprep.subr.bf16.mxu0 %v10420_v27  ;;  %7824 = vmatprep.subr.bf16.mxu1 %v10423_v17  ;;  %v10507_v27 = vld [vmem:[%s12451_s27 + $0x158c] ss:$16 sps:$4 sm:$0xff]   ;;  %v10502_v17 = vld [vmem:[%s12451_s27 + $0x1580] ss:$16 sps:$4 sm:$0xff]  }
 0x43b   : > { %7292 = vmatpush1.bf16.msra.mxu0 %v10418_v29  ;;  %7825 = vmatpush1.bf16.msra.mxu1 %v10421_v46  ;;  %v10510_v29 = vld [vmem:[%s12451_s27 + $0x15a4] ss:$16 sps:$4 sm:$0xff]   ;;  %v10513_v46 = vld [vmem:[%s12451_s27 + $0x15ac] ss:$16 sps:$4 sm:$0xff]  }
 0x43c   : > { %7293 = vmatprep.subr.bf16.mxu0 %v10426_v32  ;;  %7826 = vmatprep.subr.bf16.mxu1 %v10429_v33  ;;  %v10508_v32 = vld [vmem:[%s12451_s27 + $0x15a0] ss:$16 sps:$4 sm:$0xff]   ;;  %v10511_v33 = vld [vmem:[%s12451_s27 + $0x15a8] ss:$16 sps:$4 sm:$0xff]  }
 0x43f   : > { %7294 = vmatpush1.bf16.msra.mxu0 %v10424_v4  ;;  %7827 = vmatpush1.bf16.msra.mxu1 %v10427_v35  ;;  %v10516_v4 = vld [vmem:[%s12451_s27 + $0x15c4] ss:$16 sps:$4 sm:$0xff]   ;;  %v10519_v35 = vld [vmem:[%s12451_s27 + $0x15cc] ss:$16 sps:$4 sm:$0xff]  }
 0x440   : > { %7304 = vmatprep.subr.bf16.mxu0 %v10432_v36  ;;  %7837 = vmatprep.subr.bf16.mxu1 %v10435_v20  ;;  %v10514_v36 = vld [vmem:[%s12451_s27 + $0x15c0] ss:$16 sps:$4 sm:$0xff]   ;;  %v10517_v20 = vld [vmem:[%s12451_s27 + $0x15c8] ss:$16 sps:$4 sm:$0xff]  }
 0x442   : > { %7296 = vmatmul.mubr.bf16.vlgmr.msra.gmra.mrb[0].mxu0 %v2851_v38  ;;  %7829 = vmatmul.mubr.bf16.vlgmr.msra.gmra.mrb[0].mxu1 %v2851_v38  ;;  %v10525_v38 = vld [vmem:[%s12451_s27 + $0x15ec] ss:$16 sps:$4 sm:$0xff]  }
 0x443   : > { %7305 = vmatpush1.bf16.msra.mxu0 %v10430_v39  ;;  %7838 = vmatpush1.bf16.msra.mxu1 %v10433_v30  ;;  %v10520_v39 = vld [vmem:[%s12451_s27 + $0x15e0] ss:$16 sps:$4 sm:$0xff]   ;;  %v10523_v30 = vld [vmem:[%s12451_s27 + $0x15e8] ss:$16 sps:$4 sm:$0xff]  }
 0x444   : > { %7306 = vmatprep.subr.bf16.mxu0 %v10438_v40  ;;  %7839 = vmatprep.subr.bf16.mxu1 %v10441_v41  ;;  %v10529_v40 = vld [vmem:[%s12451_s27 + $0x1604] ss:$16 sps:$4 sm:$0xff]   ;;  %v10532_v41 = vld [vmem:[%s12451_s27 + $0x160c] ss:$16 sps:$4 sm:$0xff]  }
 0x445   : > { %7336 = vmatprep.mubr.bf16.mxu0 %v13213_v42  ;;  %7869 = vmatprep.mubr.bf16.mxu1 %v13213_v42 }
 0x447   : > { %7307 = vmatpush1.bf16.msra.mxu0 %v10436_v31  ;;  %7840 = vmatpush1.bf16.msra.mxu1 %v10439_v43  ;;  %v13279_v31 = vrot.slane %v13198_v34, %v12501_v18  ;;  %v10527_v43 = vld [vmem:[%s12451_s27 + $0x1600] ss:$16 sps:$4 sm:$0xff]  }
 0x448   : > { %7308 = vmatprep.subr.bf16.mxu0 %v10444_v44  ;;  %7841 = vmatprep.subr.bf16.mxu1 %v10447_v45  ;;  %v10530_v44 = vld [vmem:[%s12451_s27 + $0x1608] ss:$16 sps:$4 sm:$0xff]   ;;  %v10535_v45 = vld [vmem:[%s12451_s27 + $0x1624] ss:$16 sps:$4 sm:$0xff]   ;;  %v10533_v34 = vld [vmem:[%s12451_s27 + $0x1620] ss:$16 sps:$4 sm:$0xff]  }
 0x44b   : > { %7309 = vmatpush1.bf16.msra.mxu0 %v10442_v47  ;;  %7842 = vmatpush1.bf16.msra.mxu1 %v10445_v49  ;;  %v10538_v47 = vld [vmem:[%s12451_s27 + $0x162c] ss:$16 sps:$4 sm:$0xff]   ;;  %v2854_v49 = vcombine.high %v13213_v42, %v13213_v42  ;;  %v10539_v42 = vld [vmem:[%s12451_s27 + $0x1640] ss:$16 sps:$4 sm:$0xff]  }
 0x44c   : > { %7310 = vmatprep.subr.bf16.mxu0 %v10450_v21  ;;  %7843 = vmatprep.subr.bf16.mxu1 %v10453_v50  ;;  %v10536_v21 = vld [vmem:[%s12451_s27 + $0x1628] ss:$16 sps:$4 sm:$0xff]   ;;  %v10541_v50 = vld [vmem:[%s12451_s27 + $0x1644] ss:$16 sps:$4 sm:$0xff]  }
 0x44f   : > { %7311 = vmatpush1.bf16.msra.mxu0 %v10448_v51  ;;  %7844 = vmatpush1.bf16.msra.mxu1 %v10451_v52  ;;  %v10544_v51 = vld [vmem:[%s12451_s27 + $0x164c] ss:$16 sps:$4 sm:$0xff]   ;;  %v10542_v52 = vld [vmem:[%s12451_s27 + $0x1648] ss:$16 sps:$4 sm:$0xff]  }
 0x450   : > { %7312 = vmatprep.subr.bf16.mxu0 %v10456_v53  ;;  %7845 = vmatprep.subr.bf16.mxu1 %v10459_v55  ;;  %v10547_v53 = vld [vmem:[%s12451_s27 + $0x1664] ss:$16 sps:$4 sm:$0xff]   ;;  %v10550_v55 = vld [vmem:[%s12451_s27 + $0x166c] ss:$16 sps:$4 sm:$0xff]  }
 0x453   : > { %7313 = vmatpush1.bf16.msra.mxu0 %v10454_v56  ;;  %7846 = vmatpush1.bf16.msra.mxu1 %v10457_v57  ;;  %v10545_v56 = vld [vmem:[%s12451_s27 + $0x1660] ss:$16 sps:$4 sm:$0xff]   ;;  %v10548_v57 = vld [vmem:[%s12451_s27 + $0x1668] ss:$16 sps:$4 sm:$0xff]  }
 0x454   : > { %7314 = vmatprep.subr.bf16.mxu0 %v10462_v59  ;;  %7847 = vmatprep.subr.bf16.mxu1 %v10465_v60  ;;  %v10553_v59 = vld [vmem:[%s12451_s27 + $0x1684] ss:$16 sps:$4 sm:$0xff]   ;;  %v10556_v60 = vld [vmem:[%s12451_s27 + $0x168c] ss:$16 sps:$4 sm:$0xff]  }
 0x457   : > { %7315 = vmatpush1.bf16.msra.mxu0 %v10460_v61  ;;  %7848 = vmatpush1.bf16.msra.mxu1 %v10463_v62  ;;  %v10551_v61 = vld [vmem:[%s12451_s27 + $0x1680] ss:$16 sps:$4 sm:$0xff]   ;;  %v10554_v62 = vld [vmem:[%s12451_s27 + $0x1688] ss:$16 sps:$4 sm:$0xff]  }
 0x458   : > { %7316 = vmatprep.subr.bf16.mxu0 %v10468_v63  ;;  %7849 = vmatprep.subr.bf16.mxu1 %v10471_v48  ;;  %v10559_v63 = vld [vmem:[%s12451_s27 + $0x16a4] ss:$16 sps:$4 sm:$0xff]   ;;  %v10562_v48 = vld [vmem:[%s12451_s27 + $0x16ac] ss:$16 sps:$4 sm:$0xff]  }
 0x45b   : > { %7317 = vmatpush1.bf16.msra.mxu0 %v10466_v0  ;;  %7850 = vmatpush1.bf16.msra.mxu1 %v10469_v1  ;;  %v10557_v0 = vld [vmem:[%s12451_s27 + $0x16a0] ss:$16 sps:$4 sm:$0xff]   ;;  %v10560_v1 = vld [vmem:[%s12451_s27 + $0x16a8] ss:$16 sps:$4 sm:$0xff]  }
 0x45c   : > { %7318 = vmatprep.subr.bf16.mxu0 %v10474_v2  ;;  %7851 = vmatprep.subr.bf16.mxu1 %v10477_v58  ;;  %v10565_v2 = vld [vmem:[%s12451_s27 + $0x16c4] ss:$16 sps:$4 sm:$0xff]   ;;  %v10568_v58 = vld [vmem:[%s12451_s27 + $0x16cc] ss:$16 sps:$4 sm:$0xff]  }
 0x45f   : > { %7319 = vmatpush1.bf16.msra.mxu0 %v10472_v3  ;;  %7852 = vmatpush1.bf16.msra.mxu1 %v10475_v5  ;;  %v10563_v3 = vld [vmem:[%s12451_s27 + $0x16c0] ss:$16 sps:$4 sm:$0xff]   ;;  %v10566_v5 = vld [vmem:[%s12451_s27 + $0x16c8] ss:$16 sps:$4 sm:$0xff]  }
 0x460   : > { %7320 = vmatprep.subr.bf16.mxu0 %v10480_v6  ;;  %7853 = vmatprep.subr.bf16.mxu1 %v10483_v8  ;;  %v10571_v6 = vld [vmem:[%s12451_s27 + $0x16e4] ss:$16 sps:$4 sm:$0xff]   ;;  %v10574_v8 = vld [vmem:[%s12451_s27 + $0x16ec] ss:$16 sps:$4 sm:$0xff]  }
 0x463   : > { %7321 = vmatpush1.bf16.msra.mxu0 %v10478_v9  ;;  %7854 = vmatpush1.bf16.msra.mxu1 %v10481_v54  ;;  %v10569_v9 = vld [vmem:[%s12451_s27 + $0x16e0] ss:$16 sps:$4 sm:$0xff]   ;;  %v10572_v54 = vld [vmem:[%s12451_s27 + $0x16e8] ss:$16 sps:$4 sm:$0xff]  }
 0x464   : > { %7322 = vmatprep.subr.bf16.mxu0 %v10486_v10  ;;  %7855 = vmatprep.subr.bf16.mxu1 %v10489_v11  ;;  %v10577_v10 = vld [vmem:[%s12451_s27 + $0x1704] ss:$16 sps:$4 sm:$0xff]   ;;  %v10580_v11 = vld [vmem:[%s12451_s27 + $0x170c] ss:$16 sps:$4 sm:$0xff]  }
 0x467   : > { %7323 = vmatpush1.bf16.msra.mxu0 %v10484_v13  ;;  %7856 = vmatpush1.bf16.msra.mxu1 %v10487_v14  ;;  %v10575_v13 = vld [vmem:[%s12451_s27 + $0x1700] ss:$16 sps:$4 sm:$0xff]   ;;  %v10578_v14 = vld [vmem:[%s12451_s27 + $0x1708] ss:$16 sps:$4 sm:$0xff]  }
 0x468   : > { %7324 = vmatprep.subr.bf16.mxu0 %v10492_v15  ;;  %7857 = vmatprep.subr.bf16.mxu1 %v10495_v16  ;;  %v10583_v15 = vld [vmem:[%s12451_s27 + $0x1724] ss:$16 sps:$4 sm:$0xff]   ;;  %v10586_v16 = vld [vmem:[%s12451_s27 + $0x172c] ss:$16 sps:$4 sm:$0xff]  }
 0x46b   : > { %7325 = vmatpush1.bf16.msra.mxu0 %v10490_v19  ;;  %7858 = vmatpush1.bf16.msra.mxu1 %v10493_v22  ;;  %v10581_v19 = vld [vmem:[%s12451_s27 + $0x1720] ss:$16 sps:$4 sm:$0xff]   ;;  %v10584_v22 = vld [vmem:[%s12451_s27 + $0x1728] ss:$16 sps:$4 sm:$0xff]  }
 0x46c   : > { %7326 = vmatprep.subr.bf16.mxu0 %v10498_v23  ;;  %7859 = vmatprep.subr.bf16.mxu1 %v10501_v24  ;;  %v10589_v23 = vld [vmem:[%s12451_s27 + $0x1744] ss:$16 sps:$4 sm:$0xff]   ;;  %v10592_v24 = vld [vmem:[%s12451_s27 + $0x174c] ss:$16 sps:$4 sm:$0xff]  }
 0x46f   : > { %7327 = vmatpush1.bf16.msra.mxu0 %v10496_v7  ;;  %7860 = vmatpush1.bf16.msra.mxu1 %v10499_v25  ;;  %v10587_v7 = vld [vmem:[%s12451_s27 + $0x1740] ss:$16 sps:$4 sm:$0xff]   ;;  %v10590_v25 = vld [vmem:[%s12451_s27 + $0x1748] ss:$16 sps:$4 sm:$0xff]  }
 0x470   : > { %7328 = vmatprep.subr.bf16.mxu0 %v10504_v26  ;;  %7861 = vmatprep.subr.bf16.mxu1 %v10507_v27  ;;  %v10595_v26 = vld [vmem:[%s12451_s27 + $0x1764] ss:$16 sps:$4 sm:$0xff]   ;;  %v10598_v27 = vld [vmem:[%s12451_s27 + $0x176c] ss:$16 sps:$4 sm:$0xff]  }
 0x473   : > { %7329 = vmatpush1.bf16.msra.mxu0 %v10502_v17  ;;  %7862 = vmatpush1.bf16.msra.mxu1 %v10505_v28  ;;  %v10593_v17 = vld [vmem:[%s12451_s27 + $0x1760] ss:$16 sps:$4 sm:$0xff]   ;;  %v10596_v28 = vld [vmem:[%s12451_s27 + $0x1768] ss:$16 sps:$4 sm:$0xff]  }
 0x474   : > { %7330 = vmatprep.subr.bf16.mxu0 %v10510_v29  ;;  %7863 = vmatprep.subr.bf16.mxu1 %v10513_v46  ;;  %v10601_v29 = vld [vmem:[%s12451_s27 + $0x1784] ss:$16 sps:$4 sm:$0xff]   ;;  %v10604_v46 = vld [vmem:[%s12451_s27 + $0x178c] ss:$16 sps:$4 sm:$0xff]  }
 0x477   : > { %7331 = vmatpush1.bf16.msra.mxu0 %v10508_v32  ;;  %7864 = vmatpush1.bf16.msra.mxu1 %v10511_v33  ;;  %v10599_v32 = vld [vmem:[%s12451_s27 + $0x1780] ss:$16 sps:$4 sm:$0xff]   ;;  %v10602_v33 = vld [vmem:[%s12451_s27 + $0x1788] ss:$16 sps:$4 sm:$0xff]  }
 0x478   : > { %7332 = vmatprep.subr.bf16.mxu0 %v10516_v4  ;;  %7865 = vmatprep.subr.bf16.mxu1 %v10519_v35  ;;  %v10607_v4 = vld [vmem:[%s12451_s27 + $0x17a4] ss:$16 sps:$4 sm:$0xff]   ;;  %v10610_v35 = vld [vmem:[%s12451_s27 + $0x17ac] ss:$16 sps:$4 sm:$0xff]  }
 0x47b   : > { %7333 = vmatpush1.bf16.msra.mxu0 %v10514_v36  ;;  %7866 = vmatpush1.bf16.msra.mxu1 %v10517_v20  ;;  %v10605_v36 = vld [vmem:[%s12451_s27 + $0x17a0] ss:$16 sps:$4 sm:$0xff]   ;;  %v10608_v20 = vld [vmem:[%s12451_s27 + $0x17a8] ss:$16 sps:$4 sm:$0xff]  }
 0x47c   : > { %7334 = vmatprep.subr.bf16.mxu0 %v10522_v37  ;;  %7867 = vmatprep.subr.bf16.mxu1 %v10525_v38  ;;  %v10613_v37 = vld [vmem:[%s12451_s27 + $0x17c4] ss:$16 sps:$4 sm:$0xff]   ;;  %v10616_v38 = vld [vmem:[%s12451_s27 + $0x17cc] ss:$16 sps:$4 sm:$0xff]  }
 0x47f   : > { %7335 = vmatpush1.bf16.msra.mxu0 %v10520_v39  ;;  %7868 = vmatpush1.bf16.msra.mxu1 %v10523_v30  ;;  %v10611_v39 = vld [vmem:[%s12451_s27 + $0x17c0] ss:$16 sps:$4 sm:$0xff]   ;;  %v10614_v30 = vld [vmem:[%s12451_s27 + $0x17c8] ss:$16 sps:$4 sm:$0xff]  }
 0x480   : > { %7345 = vmatprep.subr.bf16.mxu0 %v10529_v40  ;;  %7878 = vmatprep.subr.bf16.mxu1 %v10532_v41  ;;  %v10619_v40 = vld [vmem:[%s12451_s27 + $0x17e4] ss:$16 sps:$4 sm:$0xff]   ;;  %v10622_v41 = vld [vmem:[%s12451_s27 + $0x17ec] ss:$16 sps:$4 sm:$0xff]  }
 0x482   : > { %7337 = vmatmul.mubr.bf16.vlgmr.msra.gmra.mrb[0].mxu0 %v13279_v31  ;;  %7870 = vmatmul.mubr.bf16.vlgmr.msra.gmra.mrb[0].mxu1 %v13279_v31 }
 0x483   : > { %7346 = vmatpush1.bf16.msra.mxu0 %v10527_v43  ;;  %7879 = vmatpush1.bf16.msra.mxu1 %v10530_v44  ;;  %v10617_v43 = vld [vmem:[%s12451_s27 + $0x17e0] ss:$16 sps:$4 sm:$0xff]   ;;  %v10620_v44 = vld [vmem:[%s12451_s27 + $0x17e8] ss:$16 sps:$4 sm:$0xff]  }
 0x484   : > { %7347 = vmatprep.subr.bf16.mxu0 %v10535_v45  ;;  %7880 = vmatprep.subr.bf16.mxu1 %v10538_v47  ;;  %v10625_v45 = vld [vmem:[%s12451_s27 + $0x1804] ss:$16 sps:$4 sm:$0xff]   ;;  %v10628_v47 = vld [vmem:[%s12451_s27 + $0x180c] ss:$16 sps:$4 sm:$0xff]  }
 0x485   : > { %7377 = vmatprep.mubr.bf16.mxu0 %v2854_v49  ;;  %7910 = vmatprep.mubr.bf16.mxu1 %v2854_v49  ;;  %v2852_v49 = vcombine.high %v13279_v31, %v13279_v31  ;;  %v10632_v31 = vld [vmem:[%s12451_s27 + $0x1828] ss:$16 sps:$4 sm:$0xff]  }
 0x487   : > { %7348 = vmatpush1.bf16.msra.mxu0 %v10533_v34  ;;  %7881 = vmatpush1.bf16.msra.mxu1 %v10536_v21  ;;  %v10623_v34 = vld [vmem:[%s12451_s27 + $0x1800] ss:$16 sps:$4 sm:$0xff]   ;;  %v10626_v21 = vld [vmem:[%s12451_s27 + $0x1808] ss:$16 sps:$4 sm:$0xff]  }
 0x488   : > { %7349 = vmatprep.subr.bf16.mxu0 %v10541_v50  ;;  %7882 = vmatprep.subr.bf16.mxu1 %v10544_v51  ;;  %v10631_v50 = vld [vmem:[%s12451_s27 + $0x1824] ss:$16 sps:$4 sm:$0xff]   ;;  %v10634_v51 = vld [vmem:[%s12451_s27 + $0x182c] ss:$16 sps:$4 sm:$0xff]  }
 0x48b   : > { %7350 = vmatpush1.bf16.msra.mxu0 %v10539_v42  ;;  %7883 = vmatpush1.bf16.msra.mxu1 %v10542_v52  ;;  %v10629_v42 = vld [vmem:[%s12451_s27 + $0x1820] ss:$16 sps:$4 sm:$0xff]   ;;  %v10637_v52 = vld [vmem:[%s12451_s27 + $0x1844] ss:$16 sps:$4 sm:$0xff]  }
 0x48c   : > { %7351 = vmatprep.subr.bf16.mxu0 %v10547_v53  ;;  %7884 = vmatprep.subr.bf16.mxu1 %v10550_v55  ;;  %v10640_v53 = vld [vmem:[%s12451_s27 + $0x184c] ss:$16 sps:$4 sm:$0xff]   ;;  %v10731_v55 = vmov 0  }
 0x48f   : > { %7352 = vmatpush1.bf16.msra.mxu0 %v10545_v56  ;;  %7885 = vmatpush1.bf16.msra.mxu1 %v10548_v57  ;;  %v10635_v56 = vld [vmem:[%s12451_s27 + $0x1840] ss:$16 sps:$4 sm:$0xff]   ;;  %v10638_v57 = vld [vmem:[%s12451_s27 + $0x1848] ss:$16 sps:$4 sm:$0xff]  }
 0x490   : > { %7353 = vmatprep.subr.bf16.mxu0 %v10553_v59  ;;  %7886 = vmatprep.subr.bf16.mxu1 %v10556_v60  ;;  %v10643_v59 = vld [vmem:[%s12451_s27 + $0x1864] ss:$16 sps:$4 sm:$0xff]   ;;  %v10646_v60 = vld [vmem:[%s12451_s27 + $0x186c] ss:$16 sps:$4 sm:$0xff]  }
 0x493   : > { %7354 = vmatpush1.bf16.msra.mxu0 %v10551_v61  ;;  %7887 = vmatpush1.bf16.msra.mxu1 %v10554_v62  ;;  %v10641_v61 = vld [vmem:[%s12451_s27 + $0x1860] ss:$16 sps:$4 sm:$0xff]   ;;  %v10644_v62 = vld [vmem:[%s12451_s27 + $0x1868] ss:$16 sps:$4 sm:$0xff]  }
 0x494   : > { %7355 = vmatprep.subr.bf16.mxu0 %v10559_v63  ;;  %7888 = vmatprep.subr.bf16.mxu1 %v10562_v48  ;;  %v10649_v63 = vld [vmem:[%s12451_s27 + $0x1884] ss:$16 sps:$4 sm:$0xff]   ;;  %v10652_v48 = vld [vmem:[%s12451_s27 + $0x188c] ss:$16 sps:$4 sm:$0xff]  }
 0x497   : > { %7356 = vmatpush1.bf16.msra.mxu0 %v10557_v0  ;;  %7889 = vmatpush1.bf16.msra.mxu1 %v10560_v1  ;;  %v10647_v0 = vld [vmem:[%s12451_s27 + $0x1880] ss:$16 sps:$4 sm:$0xff]   ;;  %v10650_v1 = vld [vmem:[%s12451_s27 + $0x1888] ss:$16 sps:$4 sm:$0xff]  }
 0x498   : > { %7357 = vmatprep.subr.bf16.mxu0 %v10565_v2  ;;  %7890 = vmatprep.subr.bf16.mxu1 %v10568_v58  ;;  %v10655_v2 = vld [vmem:[%s12451_s27 + $0x18a4] ss:$16 sps:$4 sm:$0xff]   ;;  %v10658_v58 = vld [vmem:[%s12451_s27 + $0x18ac] ss:$16 sps:$4 sm:$0xff]  }
 0x49b   : > { %7358 = vmatpush1.bf16.msra.mxu0 %v10563_v3  ;;  %7891 = vmatpush1.bf16.msra.mxu1 %v10566_v5  ;;  %v10653_v3 = vld [vmem:[%s12451_s27 + $0x18a0] ss:$16 sps:$4 sm:$0xff]   ;;  %v10656_v5 = vld [vmem:[%s12451_s27 + $0x18a8] ss:$16 sps:$4 sm:$0xff]  }
 0x49c   : > { %7359 = vmatprep.subr.bf16.mxu0 %v10571_v6  ;;  %7892 = vmatprep.subr.bf16.mxu1 %v10574_v8  ;;  %v10661_v6 = vld [vmem:[%s12451_s27 + $0x18c4] ss:$16 sps:$4 sm:$0xff]   ;;  %v10664_v8 = vld [vmem:[%s12451_s27 + $0x18cc] ss:$16 sps:$4 sm:$0xff]  }
 0x49f   : > { %7360 = vmatpush1.bf16.msra.mxu0 %v10569_v9  ;;  %7893 = vmatpush1.bf16.msra.mxu1 %v10572_v54  ;;  %v10659_v9 = vld [vmem:[%s12451_s27 + $0x18c0] ss:$16 sps:$4 sm:$0xff]   ;;  %v10662_v54 = vld [vmem:[%s12451_s27 + $0x18c8] ss:$16 sps:$4 sm:$0xff]  }
 0x4a0   : > { %7361 = vmatprep.subr.bf16.mxu0 %v10577_v10  ;;  %7894 = vmatprep.subr.bf16.mxu1 %v10580_v11  ;;  %v10667_v10 = vld [vmem:[%s12451_s27 + $0x18e4] ss:$16 sps:$4 sm:$0xff]   ;;  %v10670_v11 = vld [vmem:[%s12451_s27 + $0x18ec] ss:$16 sps:$4 sm:$0xff]  }
 0x4a3   : > { %7362 = vmatpush1.bf16.msra.mxu0 %v10575_v13  ;;  %7895 = vmatpush1.bf16.msra.mxu1 %v10578_v14  ;;  %v10665_v13 = vld [vmem:[%s12451_s27 + $0x18e0] ss:$16 sps:$4 sm:$0xff]   ;;  %v10668_v14 = vld [vmem:[%s12451_s27 + $0x18e8] ss:$16 sps:$4 sm:$0xff]  }
 0x4a4   : > { %7363 = vmatprep.subr.bf16.mxu0 %v10583_v15  ;;  %7896 = vmatprep.subr.bf16.mxu1 %v10586_v16  ;;  %v8371_v15 = vld.sshfl [vmem:[%s12433_s30 + $0x18] sm:$0x1 pattern:$0x75316420] }
 0x4a5   : > { %v2868_v16 = vrot.slane %v8371_v15, %v12501_v18  ;;  %v8034_v15 = vld [vmem:[%s12444_s10 + $0x38] sm:$0xff] (!%p9172_p1) }
 0x4a7   : > { %7364 = vmatpush1.bf16.msra.mxu0 %v10581_v19  ;;  %7897 = vmatpush1.bf16.msra.mxu1 %v10584_v22  ;;  %v10732_v19 = vmov 1983009808  }
 0x4a8   : > { %7365 = vmatprep.subr.bf16.mxu0 %v10589_v23  ;;  %7898 = vmatprep.subr.bf16.mxu1 %v10592_v24  ;;  %v7967_v22 = vunpack.c.l.s4 %v10732_v19  ;;  %v8065_v19 = vld [vmem:[%s12444_s10 + $0x130] sm:$0xff] (!%p9172_p1) }
 0x4aa   : > { %v7968_v23 = vunpack.c.0.s8 %v7967_v22  ;;  %v8066_v22 = vld [vmem:[%s12444_s10 + $0x138] sm:$0xff] (!%p9172_p1) }
 0x4ab   : > { %7366 = vmatpush1.bf16.msra.mxu0 %v10587_v7  ;;  %7899 = vmatpush1.bf16.msra.mxu1 %v10590_v25 }
 0x4ac   : > { %7367 = vmatprep.subr.bf16.mxu0 %v10595_v26  ;;  %7900 = vmatprep.subr.bf16.mxu1 %v10598_v27  ;;  %v13384_v25 = vsub.s32 %v7968_v23, %v12493_v12  ;;  %v8051_v23 = vld [vmem:[%s12444_s10 + $0xc0] sm:$0xff] (!%p9172_p1) }
 0x4af   : > { %7368 = vmatpush1.bf16.msra.mxu0 %v10593_v17  ;;  %7901 = vmatpush1.bf16.msra.mxu1 %v10596_v28 }
 0x4b0   : > { %7369 = vmatprep.subr.bf16.mxu0 %v10601_v29  ;;  %7902 = vmatprep.subr.bf16.mxu1 %v10604_v46 }
 0x4b3   : > { %7370 = vmatpush1.bf16.msra.mxu0 %v10599_v32  ;;  %7903 = vmatpush1.bf16.msra.mxu1 %v10602_v33 }
 0x4b4   : > { %7371 = vmatprep.subr.bf16.mxu0 %v10607_v4  ;;  %7904 = vmatprep.subr.bf16.mxu1 %v10610_v35  ;;  %v1899_v35 = vld [vmem:[#allocation2] sm:$0xff] }
 0x4b7   : > { %7372 = vmatpush1.bf16.msra.mxu0 %v10605_v36  ;;  %7905 = vmatpush1.bf16.msra.mxu1 %v10608_v20 }
 0x4b8   : > { %7373 = vmatprep.subr.bf16.mxu0 %v10613_v37  ;;  %7906 = vmatprep.subr.bf16.mxu1 %v10616_v38  ;;  %v8043_v37 = vld [vmem:[%s12444_s10 + $0x80] sm:$0xff] (!%p9172_p1)  ;;  %v8044_v38 = vld [vmem:[%s12444_s10 + $0x88] sm:$0xff] (!%p9172_p1) }
 0x4bb   : > { %7374 = vmatpush1.bf16.msra.mxu0 %v10611_v39  ;;  %7907 = vmatpush1.bf16.msra.mxu1 %v10614_v30  ;;  %v8075_v39 = vld [vmem:[%s12444_s10 + $0x180] sm:$0xff] (!%p9172_p1)  ;;  %v9246_v30 = vpack.c.bf16 (!%p9172_p1), %v8044_v38, %v8043_v37 }
 0x4bc   : > { %7375 = vmatprep.subr.bf16.mxu0 %v10619_v40  ;;  %7908 = vmatprep.subr.bf16.mxu1 %v10622_v41  ;;  %v8076_v40 = vld [vmem:[%s12444_s10 + $0x188] sm:$0xff] (!%p9172_p1)  ;;  %v8027_v41 = vld [vmem:[%s12444_s10] sm:$0xff] (!%p9172_p1) }
 0x4bf   : > { %7376 = vmatpush1.bf16.msra.mxu0 %v10617_v43  ;;  %7909 = vmatpush1.bf16.msra.mxu1 %v10620_v44  ;;  %v8028_v43 = vld [vmem:[%s12444_s10 + $0x8] sm:$0xff] (!%p9172_p1)  ;;  %v9278_v44 = vpack.c.bf16 (!%p9172_p1), %v8076_v40, %v8075_v39  ;;  %v8038_v40 = vld [vmem:[%s12444_s10 + $0x58] sm:$0xff] (!%p9172_p1) }
 0x4c0   : > { %7386 = vmatprep.subr.bf16.mxu0 %v10625_v45  ;;  %7919 = vmatprep.subr.bf16.mxu1 %v10628_v47  ;;  %v9248_v45 = vpack.c.bf16 (!%p9172_p1), %v8028_v43, %v8027_v41  ;;  %v8059_v47 = vld [vmem:[%s12444_s10 + $0x100] sm:$0xff] (!%p9172_p1)  ;;  %v8069_v41 = vld [vmem:[%s12444_s10 + $0x150] sm:$0xff] (!%p9172_p1) }
 0x4c2   : > { %7378 = vmatmul.mubr.bf16.vlgmr.msra.gmra.mrb[0].mxu0 %v2852_v49  ;;  %7911 = vmatmul.mubr.bf16.vlgmr.msra.gmra.mrb[0].mxu1 %v2852_v49  ;;  %v8060_v49 = vld [vmem:[%s12444_s10 + $0x108] sm:$0xff] (!%p9172_p1) }
 0x4c3   : > { %7387 = vmatpush1.bf16.msra.mxu0 %v10623_v34  ;;  %7920 = vmatpush1.bf16.msra.mxu1 %v10626_v21  ;;  %v8045_v34 = vld [vmem:[%s12444_s10 + $0x90] sm:$0xff] (!%p9172_p1)  ;;  %v9280_v21 = vpack.c.bf16 (!%p9172_p1), %v8060_v49, %v8059_v47  ;;  %v8056_v47 = vld [vmem:[%s12444_s10 + $0xe8] sm:$0xff] (!%p9172_p1)  ;;  %v7993_v49 = vsub.s32 (!%p9172_p1), 0, %v12493_v12 }
 0x4c4   : > { %7388 = vmatprep.subr.bf16.mxu0 %v10631_v50  ;;  %7921 = vmatprep.subr.bf16.mxu1 %v10634_v51  ;;  %v8046_v50 = vld [vmem:[%s12444_s10 + $0x98] sm:$0xff] (!%p9172_p1)  ;;  %v8077_v51 = vld [vmem:[%s12444_s10 + $0x190] sm:$0xff] (!%p9172_p1) }
 0x4c5   : > { %7418 = vmatprep.mubr.bf16.mxu0 %v10731_v55  ;;  %7951 = vmatprep.mubr.bf16.mxu1 %v10731_v55  ;;  %v8030_v55 = vld [vmem:[%s12444_s10 + $0x18] sm:$0xff] (!%p9172_p1) }
 0x4c7   : > { %7389 = vmatpush1.bf16.msra.mxu0 %v10629_v42  ;;  %7922 = vmatpush1.bf16.msra.mxu1 %v10632_v31  ;;  %v8078_v42 = vld [vmem:[%s12444_s10 + $0x198] sm:$0xff] (!%p9172_p1)  ;;  %v9250_v31 = vpack.c.bf16 (!%p9172_p1), %v8046_v50, %v8045_v34  ;;  %v7997_v34 = vsub.s32 (!%p9172_p1), 1, %v12493_v12  ;;  %v8087_v50 = vld [vmem:[%s12444_s10 + $0x1e0] sm:$0xff] (!%p9172_p1) }
 0x4c8   : > { %7390 = vmatprep.subr.bf16.mxu0 %v10637_v52  ;;  %7923 = vmatprep.subr.bf16.mxu1 %v10640_v53  ;;  %v9282_v52 = vpack.c.bf16 (!%p9172_p1), %v8078_v42, %v8077_v51  ;;  %v8029_v53 = vld [vmem:[%s12444_s10 + $0x10] sm:$0xff] (!%p9172_p1)  ;;  %v8088_v51 = vld [vmem:[%s12444_s10 + $0x1e8] sm:$0xff] (!%p9172_p1)  ;;  %v8005_v42 = vsub.s32 (!%p9172_p1), 3, %v12493_v12 }
 0x4cb   : > { %7391 = vmatpush1.bf16.msra.mxu0 %v10635_v56  ;;  %7924 = vmatpush1.bf16.msra.mxu1 %v10638_v57  ;;  %v8061_v56 = vld [vmem:[%s12444_s10 + $0x110] sm:$0xff] (!%p9172_p1)  ;;  %v9252_v57 = vpack.c.bf16 (!%p9172_p1), %v8030_v55, %v8029_v53 }
 0x4cc   : > { %7392 = vmatprep.subr.bf16.mxu0 %v10643_v59  ;;  %7925 = vmatprep.subr.bf16.mxu1 %v10646_v60  ;;  %v8062_v59 = vld [vmem:[%s12444_s10 + $0x118] sm:$0xff] (!%p9172_p1)  ;;  %v8047_v60 = vld [vmem:[%s12444_s10 + $0xa0] sm:$0xff] (!%p9172_p1) }
 0x4cf   : > { %7393 = vmatpush1.bf16.msra.mxu0 %v10641_v61  ;;  %7926 = vmatpush1.bf16.msra.mxu1 %v10644_v62  ;;  %v8048_v61 = vld [vmem:[%s12444_s10 + $0xa8] sm:$0xff] (!%p9172_p1)  ;;  %v9284_v62 = vpack.c.bf16 (!%p9172_p1), %v8062_v59, %v8061_v56  ;;  %v7989_v59 = vld [vmem:[%s1881_s15] sm:$0xf] (!%p9172_p1) }
 0x4d0   : > { %7394 = vmatprep.subr.bf16.mxu0 %v10649_v63  ;;  %7927 = vmatprep.subr.bf16.mxu1 %v10652_v48  ;;  %v9254_v63 = vpack.c.bf16 (!%p9172_p1), %v8048_v61, %v8047_v60  ;;  %v8079_v48 = vld [vmem:[%s12444_s10 + $0x1a0] sm:$0xff] (!%p9172_p1)  ;;  %v8040_v56 = vld [vmem:[%s12444_s10 + $0x68] sm:$0xff] (!%p9172_p1)  ;;  %v9302_v60 = vpack.c.bf16 (!%p9172_p1), %v8088_v51, %v8087_v50 }
 0x4d1   : > { %v8072_v61 = vld [vmem:[%s12444_s10 + $0x168] sm:$0xff] (!%p9172_p1) }
 0x4d3   : > { %7395 = vmatpush1.bf16.msra.mxu0 %v10647_v0  ;;  %7928 = vmatpush1.bf16.msra.mxu1 %v10650_v1  ;;  %v8080_v0 = vld [vmem:[%s12444_s10 + $0x1a8] sm:$0xff] (!%p9172_p1)  ;;  %v8031_v1 = vld [vmem:[%s12444_s10 + $0x20] sm:$0xff] (!%p9172_p1) }
 0x4d4   : > { %7396 = vmatprep.subr.bf16.mxu0 %v10655_v2  ;;  %7929 = vmatprep.subr.bf16.mxu1 %v10658_v58  ;;  %v9286_v2 = vpack.c.bf16 (!%p9172_p1), %v8080_v0, %v8079_v48  ;;  %v8032_v58 = vld [vmem:[%s12444_s10 + $0x28] sm:$0xff] (!%p9172_p1)  ;;  %v7998_v48 = vrot.slane (!%p9172_p1), %v7989_v59, %v7997_v34 }
 0x4d7   : > { %7397 = vmatpush1.bf16.msra.mxu0 %v10653_v3  ;;  %7930 = vmatpush1.bf16.msra.mxu1 %v10656_v5  ;;  %v8063_v3 = vld [vmem:[%s12444_s10 + $0x120] sm:$0xff] (!%p9172_p1)  ;;  %v8064_v5 = vld [vmem:[%s12444_s10 + $0x128] sm:$0xff] (!%p9172_p1) }
 0x4d8   : > { %7398 = vmatprep.subr.bf16.mxu0 %v10661_v6  ;;  %7931 = vmatprep.subr.bf16.mxu1 %v10664_v8  ;;  %v9256_v6 = vpack.c.bf16 (!%p9172_p1), %v8032_v58, %v8031_v1  ;;  %v8049_v8 = vld [vmem:[%s12444_s10 + $0xb0] sm:$0xff] (!%p9172_p1)  ;;  %v8006_v58 = vrot.slane (!%p9172_p1), %v7989_v59, %v8005_v42 }
 0x4d9   : > { %v8089_v1 = vld [vmem:[%s12444_s10 + $0x1f0] sm:$0xff] (!%p9172_p1) }
 0x4db   : > { %7399 = vmatpush1.bf16.msra.mxu0 %v10659_v9  ;;  %7932 = vmatpush1.bf16.msra.mxu1 %v10662_v54  ;;  %v8050_v9 = vld [vmem:[%s12444_s10 + $0xb8] sm:$0xff] (!%p9172_p1)  ;;  %v8081_v54 = vld [vmem:[%s12444_s10 + $0x1b0] sm:$0xff] (!%p9172_p1) }
 0x4dc   : > { %7400 = vmatprep.subr.bf16.mxu0 %v10667_v10  ;;  %7933 = vmatprep.subr.bf16.mxu1 %v10670_v11  ;;  %v9288_v10 = vpack.c.bf16 (!%p9172_p1), %v8064_v5, %v8063_v3  ;;  %v9258_v11 = vpack.c.bf16 (!%p9172_p1), %v8050_v9, %v8049_v8  ;;  %v8041_v9 = vld [vmem:[%s12444_s10 + $0x70] sm:$0xff] (!%p9172_p1) }
 0x4df   : > { %7401 = vmatpush1.bf16.msra.mxu0 %v10665_v13  ;;  %7934 = vmatpush1.bf16.msra.mxu1 %v10668_v14  ;;  %v8082_v13 = vld [vmem:[%s12444_s10 + $0x1b8] sm:$0xff] (!%p9172_p1)  ;;  %v8033_v14 = vld [vmem:[%s12444_s10 + $0x30] sm:$0xff] (!%p9172_p1) }
 0x4e0   : > { %9247 = vmatprep.subr.bf16.mxu0 (!%p9172_p1), %v9246_v30  ;;  %9279 = vmatprep.subr.bf16.mxu1 (!%p9172_p1), %v9278_v44  ;;  %v8037_v30 = vld [vmem:[%s12444_s10 + $0x50] sm:$0xff] (!%p9172_p1)  ;;  %v8070_v44 = vld [vmem:[%s12444_s10 + $0x158] sm:$0xff] (!%p9172_p1) }
 0x4e1   : > { %v9300_v53 = vpack.c.bf16 (!%p9172_p1), %v8070_v44, %v8069_v41 }
 0x4e2   : > { %7419 = vmatmul.mubr.bf16.vlgmr.msra.gmra.mrb[0].mxu0 %v2868_v16  ;;  %7952 = vmatmul.mubr.bf16.vlgmr.msra.gmra.mrb[0].mxu1 %v2868_v16  ;;  %v9290_v16 = vpack.c.bf16 (!%p9172_p1), %v8082_v13, %v8081_v54  ;;  %v8042_v54 = vld [vmem:[%s12444_s10 + $0x78] sm:$0xff] (!%p9172_p1)  ;;  %v8073_v13 = vld [vmem:[%s12444_s10 + $0x170] sm:$0xff] (!%p9172_p1) }
 0x4e3   : > { %9249 = vmatpush3.bf16.msra.mxu0 (!%p9172_p1), %v9248_v45  ;;  %9281 = vmatpush3.bf16.msra.mxu1 (!%p9172_p1), %v9280_v21  ;;  %v8055_v45 = vld [vmem:[%s12444_s10 + $0xe0] sm:$0xff] (!%p9172_p1)  ;;  %v8001_v21 = vsub.s32 (!%p9172_p1), 2, %v12493_v12  ;;  %v8057_v12 = vld [vmem:[%s12444_s10 + $0xf0] sm:$0xff] (!%p9172_p1) }
 0x4e4   : > { %9251 = vmatprep.subr.bf16.mxu0 (!%p9172_p1), %v9250_v31  ;;  %9283 = vmatprep.subr.bf16.mxu1 (!%p9172_p1), %v9282_v52  ;;  %v9268_v31 = vpack.c.bf16 (!%p9172_p1), %v8038_v40, %v8037_v30  ;;  %v8039_v52 = vld [vmem:[%s12444_s10 + $0x60] sm:$0xff] (!%p9172_p1)  ;;  %v9270_v55 = vpack.c.bf16 (!%p9172_p1), %v8056_v47, %v8055_v45 }
 0x4e5   : > { %v8002_v0 = vrot.slane (!%p9172_p1), %v7989_v59, %v8001_v21  ;;  %v9272_v3 = vpack.c.bf16 (!%p9172_p1), %v8040_v56, %v8039_v52 }
 0x4e7   : > { %9253 = vmatpush3.bf16.msra.mxu0 (!%p9172_p1), %v9252_v57  ;;  %9285 = vmatpush3.bf16.msra.mxu1 (!%p9172_p1), %v9284_v62  ;;  %v8071_v57 = vld [vmem:[%s12444_s10 + $0x160] sm:$0xff] (!%p9172_p1)  ;;  %v8058_v62 = vld [vmem:[%s12444_s10 + $0xf8] sm:$0xff] (!%p9172_p1) }
 0x4e8   : > { %9255 = vmatprep.subr.bf16.mxu0 (!%p9172_p1), %v9254_v63  ;;  %9287 = vmatprep.subr.bf16.mxu1 (!%p9172_p1), %v9286_v2  ;;  %v7994_v63 = vrot.slane (!%p9172_p1), %v7989_v59, %v7993_v49  ;;  %v8090_v2 = vld [vmem:[%s12444_s10 + $0x1f8] sm:$0xff] (!%p9172_p1)  ;;  %v9274_v8 = vpack.c.bf16 (!%p9172_p1), %v8058_v62, %v8057_v12 }
 0x4ea   : > { %v8007_v5 = vcombine.low (!%p9172_p1), %v7994_v63, %v7998_v48 }
 0x4eb   : > { %9257 = vmatpush3.bf16.msra.mxu0 (!%p9172_p1), %v9256_v6  ;;  %9289 = vmatpush3.bf16.msra.mxu1 (!%p9172_p1), %v9288_v10  ;;  %v9304_v6 = vpack.c.bf16 (!%p9172_p1), %v8072_v61, %v8071_v57  ;;  %v8008_v10 = vcombine.low (!%p9172_p1), %v8002_v0, %v8006_v58 }
 0x4ec   : > { %9259 = vmatprep.subr.bf16.mxu0 (!%p9172_p1), %v9258_v11  ;;  %9291 = vmatprep.subr.bf16.mxu1 (!%p9172_p1), %v9290_v16  ;;  %v9306_v11 = vpack.c.bf16 (!%p9172_p1), %v8090_v2, %v8089_v1 }
 0x4ed   : > { %v8022_v16 = vrot.slane (!%p9172_p1), %v8008_v10, %v13384_v25 }
 0x5b5   : > { %v7420_v24 = vpop.f32.mrb[0].mxu0  ;;  %v7953_v7 = vpop.f32.mrb[0].mxu1 }
 0x5b6   : > { %v7422_v26 = vpop.f32.mrb[1].mxu0  ;;  %v7955_v27 = vpop.f32.mrb[1].mxu1 }
 0x5b7   : > { %v7964_v17 = vcombine.low %v7420_v24, %v7422_v26  ;;  %v7965_v28 = vcombine.low %v7953_v7, %v7955_v27  ;;  %v7424_v29 = vpop.f32.mrb[2].mxu0  ;;  %v7957_v46 = vpop.f32.mrb[2].mxu1  ;;  %v8052_v24 = vld [vmem:[%s12444_s10 + $0xc8] sm:$0xff] (!%p9172_p1)  ;;  %v8083_v7 = vld [vmem:[%s12444_s10 + $0x1c0] sm:$0xff] (!%p9172_p1)  ;;  %v9260_v27 = vpack.c.bf16 (!%p9172_p1), %v8034_v15, %v8033_v14  ;;  %v8074_v14 = vld [vmem:[%s12444_s10 + $0x178] sm:$0xff] (!%p9172_p1)  ;;  %v8015_v15 = vrot.slane (!%p9172_p1), %v8007_v5, %v13384_v25 }
 0x5b8   : > { %v7425_v32 = vpop.f32.mrb[3].mxu0  ;;  %v7958_v18 = vpop.f32.mrb[3].mxu1  ;;  %v8084_v26 = vld [vmem:[%s12444_s10 + $0x1c8] sm:$0xff] (!%p9172_p1)  ;;  %v8035_v29 = vld [vmem:[%s12444_s10 + $0x40] sm:$0xff] (!%p9172_p1) }
 0x5b9   : > { %v7972_v33 = vrot.slane %v7964_v17, %v13384_v25  ;;  %v7979_v4 = vrot.slane %v7965_v28, %v13384_v25  ;;  %7987 = sbr.rel (%p9172_p1) target bundleno = 1708 (0x6ac), region = 67  ;;  %v9292_v17 = vpack.c.bf16 (!%p9172_p1), %v8066_v22, %v8065_v19  ;;  %v9262_v28 = vpack.c.bf16 (!%p9172_p1), %v8052_v24, %v8051_v23  ;;  %v8036_v46 = vld [vmem:[%s12444_s10 + $0x48] sm:$0xff] (!%p9172_p1)  ;;  %v8067_v32 = vld [vmem:[%s12444_s10 + $0x140] sm:$0xff] (!%p9172_p1)  ;;  %9261 = vmatpush3.bf16.msra.mxu0 (!%p9172_p1), %v9260_v27 }
 0x5ba   : > { %v9294_v18 = vpack.c.bf16 (!%p9172_p1), %v8084_v26, %v8083_v7  ;;  %v9264_v37 = vpack.c.bf16 (!%p9172_p1), %v8036_v46, %v8035_v29  ;;  %v9276_v19 = vpack.c.bf16 (!%p9172_p1), %v8042_v54, %v8041_v9  ;;  %v9308_v23 = vpack.c.bf16 (!%p9172_p1), %v8074_v14, %v8073_v13 }
 0x5bb   : > { %v7980_v36 = vcombine.low %v7972_v33, %v7979_v4  ;;  %v8068_v33 = vld [vmem:[%s12444_s10 + $0x148] sm:$0xff] (!%p9172_p1)  ;;  %v8053_v4 = vld [vmem:[%s12444_s10 + $0xd0] sm:$0xff] (!%p9172_p1)  ;;  %9293 = vmatpush3.bf16.msra.mxu1 (!%p9172_p1), %v9292_v17  ;;  %9263 = vmatprep.subr.bf16.mxu0 (!%p9172_p1), %v9262_v28  ;;  %v8023_v24 = vcombine.low (!%p9172_p1), %v8015_v15, %v8022_v16 }
 0x5bc   : > { %v9296_v38 = vpack.c.bf16 (!%p9172_p1), %v8068_v33, %v8067_v32  ;;  %9295 = vmatprep.subr.bf16.mxu1 (!%p9172_p1), %v9294_v18 }
 0x5bd   : > { %v7982_v20 = vadd.f32 %v7980_v36, %v1899_v35  ;;  %v8054_v35 = vld [vmem:[%s12444_s10 + $0xd8] sm:$0xff] (!%p9172_p1)  ;;  %v8085_v36 = vld [vmem:[%s12444_s10 + $0x1d0] sm:$0xff] (!%p9172_p1)  ;;  %9265 = vmatpush3.bf16.msra.mxu0 (!%p9172_p1), %v9264_v37 }
 0x5be   : > { %v9266_v39 = vpack.c.bf16 (!%p9172_p1), %v8054_v35, %v8053_v4 }
 0x5bf   : > { %7983 = vst [vmem:[#allocation2] sm:$0xff] %v7982_v20  ;;  %v8086_v20 = vld [vmem:[%s12444_s10 + $0x1d8] sm:$0xff] (!%p9172_p1)  ;;  %9297 = vmatpush3.bf16.msra.mxu1 (!%p9172_p1), %v9296_v38 }
 0x5c0   : > { %v9298_v43 = vpack.c.bf16 %v8086_v20, %v8085_v36  ;;  %9267 = vmatprep.subr.bf16.mxu0 %v9266_v39 }
 0x5c1   : > { %9269 = vmatpush3.bf16.msra.mxu0 %v9268_v31 }
 0x5c2   : > { %9299 = vmatprep.subr.bf16.mxu1 %v9298_v43  ;;  %9271 = vmatprep.subr.bf16.mxu0 %v9270_v55 }
 0x5c3   : > { %9301 = vmatpush3.bf16.msra.mxu1 %v9300_v53 }
 0x5c4   : > { %9303 = vmatprep.subr.bf16.mxu1 %v9302_v60 }
 0x5c5   : > { %9273 = vmatpush3.bf16.msra.mxu0 %v9272_v3 }
 0x5c6   : > { %v7988_v22 = vld [vmem:[#allocation2] sm:$0xff]  ;;  %9275 = vmatprep.subr.bf16.mxu0 %v9274_v8 }
 0x5c7   : > { %9305 = vmatpush3.bf16.msra.mxu1 %v9304_v6  ;;  %v8025_v7 = vadd.f32 %v8023_v24, %v7988_v22 }
 0x5c8   : > { %9307 = vmatprep.subr.bf16.mxu1 %v9306_v11 }
 0x5c9   : > { %9277 = vmatpush3.bf16.msra.mxu0 %v9276_v19  ;;  %v8026_v26 = vmax.f32 %v8025_v7, 0.0 }
 0x5cb   : > { %9309 = vmatpush3.bf16.msra.mxu1 %v9308_v23  ;;  %v8099_v27 = vrot.slane %v8026_v26, %v13384_v25  ;;  %v8092_v17 = vcombine.high %v8026_v26, %v8026_v26 }
 0x5cd   : > { %v8107_v28 = vcombine.high %v8099_v27, %v8099_v27  ;;  %v8106_v29 = vrot.slane %v8092_v17, %v13384_v25 }
 0x5cf   : > { %8177 = vmatprep.mubr.f32.mxu0 %v8107_v28  ;;  %v8108_v46 = vcombine.high %v8106_v29, %v8106_v29 }
 0x5d0   : > { %8178 = vmatmul.mubr.f32.vlgmr.msra.gmra.mrb[0].mxu0 %v8099_v27 }
 0x5d1   : > { %8247 = vmatprep.mubr.f32.mxu1 %v8108_v46 }
 0x5d2   : > { %8248 = vmatmul.mubr.f32.vlgmr.msra.gmra.mrb[0].mxu1 %v8106_v29 }
 0x6a3   : > { %v9208_v32 = vpop.f32.mrb[0].mxu0 }
 0x6a4   : > { %v9209_v18 = vpop.f32.mrb[1].mxu0 }
 0x6a5   : > { %v9243_v33 = vpop.f32.mrb[0].mxu1  ;;  %v9210_v4 = vadd.f32 %v9209_v18, %v9208_v32 }
 0x6a6   : > { %v9244_v35 = vpop.f32.mrb[1].mxu1 }
 0x6a7   : > { %v9245_v36 = vadd.f32 %v9244_v35, %v9243_v33 }
 0x6a9   : > { %v8250_v20 = vadd.f32 %v9245_v36, %v9210_v4 }
 0x6ab   : > { %8254 = vst.msk [vmem:[%s12449_s14] sm:$0x3] %vm8253_vm0, %v8250_v20 }
 0x6ac PF: > { %s14_s21 = sadd.s32 1, %s10727_s21   ;;  %s13493_s15 = smov %s10707_s16 }
 0x6ad   : > { %p11_p2 = scmp.ge.s32.totalorder %s14_s21, 6   ;;  %s13494_s16 = smov %s10809_s28 }
 0x6ae   : > { %s13495_s17 = smov %s10719_s19  ;;  %s13496_s18 = smov %s10723_s20 }
 0x6af   : > { %s13497_s19 = smov %s13500_s22  ;;  %s13498_s20 = smov %s13504_s23 }
 0x6b0   :  { %13 = sbr.rel (!%p11_p2) target bundleno = 4 (0x4), region = 111 }

</bundles_post_ra>
